<compile_context>
chip_gen: v7x
topology: tpu7x:2x2x1
jax: 0.10.0
libtpu: 0.0.40
codegen_flags: <defaults>
</compile_context>

<pallas_src>
import numpy as np

import jax
import jax.numpy as jnp
from jax.experimental import pallas as pl
from jax.experimental.pallas import tpu as pltpu

LANE = 128


# ------------------------------ small helpers ------------------------------

def _pad_axis(a, axis, target):
    if a.shape[axis] == target:
        return a
    pad = [(0, 0)] * a.ndim
    pad[axis] = (0, target - a.shape[axis])
    return jnp.pad(a, pad)


def fold_bn(gamma, beta, mean, var, eps=1e-4):
    """Inference-mode BatchNorm folded to per-channel scale/shift (eps=1e-4
    matches the module's explicit eps=0.0001)."""
    if gamma is None:
        gamma = jnp.ones_like(var)
    if beta is None:
        beta = jnp.zeros_like(var)
    scale = gamma / jnp.sqrt(var + eps)
    shift = beta - mean * scale
    return scale, shift


def _prep_bn(gamma, beta, mean, var, n_pad):
    s, b = fold_bn(gamma, beta, mean, var)
    s = _pad_axis(s, 0, n_pad).reshape(1, n_pad).astype(jnp.float32)
    b = _pad_axis(b, 0, n_pad).reshape(1, n_pad).astype(jnp.float32)
    return s, b


# ---------------- constant pooling / conv2-gather matrices ------------------

def _pool_matrix(oh, ow):
    """(oh*ow/4, oh*ow): 2x2 average pooling over row-major (h, w) rows."""
    ho, wo = oh // 2, ow // 2
    m = np.zeros((ho * wo, oh * ow), np.float32)
    for ph in range(ho):
        for pw in range(wo):
            for dh in range(2):
                for dw in range(2):
                    m[ph * wo + pw, (2 * ph + dh) * ow + (2 * pw + dw)] = 0.25
    return m


def _conv2_gather():
    """(25, 64, 144) one-hot row-gather matrices: tap (i, j) of a 5x5 VALID
    conv over a 12x12 input (rows ph*12+pw) -> 8x8 output (rows ho*8+wo)."""
    s = np.zeros((25, 64, 144), np.float32)
    for i in range(5):
        for j in range(5):
            t = i * 5 + j
            for ho in range(8):
                for wo in range(8):
                    s[t, ho * 8 + wo, (ho + i) * 12 + (wo + j)] = 1.0
    return s


# ----------------------------- Pallas kernels -------------------------------

def _conv_stack_kernel(cols_ref, w1_ref, s1_ref, b1_ref, p1_ref,
                       g_ref, w2_ref, s2_ref, b2_ref, p2_ref, feat_ref):
    # conv1 as a matmul over the 25 taps (K=25; MXU pads the contraction).
    a1 = jnp.dot(cols_ref[0], w1_ref[...], preferred_element_type=jnp.float32)
    a1 = jnp.maximum(a1 * s1_ref[...] + b1_ref[...], 0.0).astype(jnp.bfloat16)

    # AvgPool2d(2,2) as a constant matmul: (144,576) @ (576,128).
    a1p = jnp.dot(p1_ref[...], a1, preferred_element_type=jnp.float32)
    a1p = a1p.astype(jnp.bfloat16)

    # conv2: in-kernel im2col via one-hot gather matmuls + 25-tap accumulation,
    # conv1 activations stay resident in VMEM (no HBM cols materialization).
    acc = jnp.zeros((64, LANE), jnp.float32)
    for t in range(25):
        sel = jnp.dot(g_ref[t], a1p, preferred_element_type=jnp.float32)
        sel = sel.astype(jnp.bfloat16)          # exact: one-hot row gather
        acc = acc + jnp.dot(sel, w2_ref[t], preferred_element_type=jnp.float32)
    a2 = jnp.maximum(acc * s2_ref[...] + b2_ref[...], 0.0).astype(jnp.bfloat16)

    # AvgPool2d(2,2) as a constant matmul: (16,64) @ (64,128).
    feat = jnp.dot(p2_ref[...], a2, preferred_element_type=jnp.float32)
    feat_ref[0] = feat.astype(feat_ref.dtype)


def conv_stack(cols, q):
    """Fused conv1+bn1+relu+pool1+conv2+bn2+relu+pool2, one image per grid step.
    cols: (n, 576, 25) bf16.  Returns (n, 16, 128) bf16 pooled features."""
    n = cols.shape[0]
    const2 = lambda i: (0, 0)
    const3 = lambda i: (0, 0, 0)

    cost = pl.CostEstimate(
        flops=int(n * 2 * (576 * 25 * LANE + 144 * 576 * LANE
                           + 25 * (64 * 144 * LANE + 64 * LANE * LANE)
                           + 16 * 64 * LANE)),
        transcendentals=0,
        bytes_accessed=int(cols.size * 2 + n * 16 * LANE * 2
                           + (q["conv1_w"].size + q["pool1"].size
                              + q["gather2"].size + q["conv2_w"].size
                              + q["pool2"].size) * 2 + 4 * LANE * 4))

    return pl.pallas_call(
        _conv_stack_kernel,
        out_shape=jax.ShapeDtypeStruct((n, 16, LANE), jnp.bfloat16),
        grid=(n,),
        in_specs=[pl.BlockSpec((1, 576, 25), lambda i: (i, 0, 0)),
                  pl.BlockSpec((25, LANE), const2),      # conv1 weight (resident)
                  pl.BlockSpec((1, LANE), const2),       # bn1 scale
                  pl.BlockSpec((1, LANE), const2),       # bn1 shift
                  pl.BlockSpec((144, 576), const2),      # pool1 matrix
                  pl.BlockSpec((25, 64, 144), const3),   # conv2 gather matrices
                  pl.BlockSpec((25, LANE, LANE), const3),  # conv2 weights
                  pl.BlockSpec((1, LANE), const2),       # bn2 scale
                  pl.BlockSpec((1, LANE), const2),       # bn2 shift
                  pl.BlockSpec((16, 64), const2)],       # pool2 matrix
        out_specs=pl.BlockSpec((1, 16, LANE), lambda i: (i, 0, 0)),
        compiler_params=pltpu.CompilerParams(
            dimension_semantics=("parallel",)),
        cost_estimate=cost,
    )(cols, q["conv1_w"], q["bn1_s"], q["bn1_b"], q["pool1"],
      q["gather2"], q["conv2_w"], q["bn2_s"], q["bn2_b"], q["pool2"])


def _fc_stack_kernel(x_ref, w1_ref, s3_ref, b3_ref, w2_ref, s4_ref, b4_ref,
                     w3_ref, o_ref):
    # l1 + bn3 + relu -> l2 + bn4 + relu -> l3, all weights VMEM-resident.
    h = jnp.dot(x_ref[...], w1_ref[...], preferred_element_type=jnp.float32)
    h = jnp.maximum(h * s3_ref[...] + b3_ref[...], 0.0).astype(jnp.bfloat16)
    h = jnp.dot(h, w2_ref[...], preferred_element_type=jnp.float32)
    h = jnp.maximum(h * s4_ref[...] + b4_ref[...], 0.0).astype(jnp.bfloat16)
    o_ref[...] = jnp.dot(h, w3_ref[...],
                         preferred_element_type=jnp.float32).astype(o_ref.dtype)


def fc_stack(x, q, *, block_m=256):
    """Fused l1/bn3/relu -> l2/bn4/relu -> l3.  x:(M, 2048) bf16; no row pad."""
    M, K1 = x.shape
    N1, N2, N3 = q["l1_w"].shape[1], q["l2_w"].shape[1], q["l3_w"].shape[1]
    bm = M if M <= block_m else block_m
    grid = (pl.cdiv(M, bm),)
    const = lambda i: (0, 0)

    cost = pl.CostEstimate(
        flops=int(2 * M * (K1 * N1 + N1 * N2 + N2 * N3)),
        transcendentals=0,
        bytes_accessed=int(x.size * 2 + (q["l1_w"].size + q["l2_w"].size
                                         + q["l3_w"].size) * 2 + M * N3 * 4))

    return pl.pallas_call(
        _fc_stack_kernel,
        out_shape=jax.ShapeDtypeStruct((M, N3), jnp.float32),
        grid=grid,
        in_specs=[pl.BlockSpec((bm, K1), lambda i: (i, 0)),
                  pl.BlockSpec((K1, N1), const), pl.BlockSpec((1, N1), const),
                  pl.BlockSpec((1, N1), const),
                  pl.BlockSpec((N1, N2), const), pl.BlockSpec((1, N2), const),
                  pl.BlockSpec((1, N2), const),
                  pl.BlockSpec((N2, N3), const)],
        out_specs=pl.BlockSpec((bm, N3), lambda i: (i, 0)),
        compiler_params=pltpu.CompilerParams(
            dimension_semantics=("parallel",)),
        cost_estimate=cost,
    )(x, q["l1_w"], q["bn3_s"], q["bn3_b"], q["l2_w"], q["bn4_s"], q["bn4_b"],
      q["l3_w"])


# ------------------------------- JAX glue -----------------------------------

def im2col_conv1(x):
    """x: (n, 28, 28) -> (n, 576, 25) bf16 (row = h*24 + w, col = i*5 + j)."""
    # TODO(synk): overlapping-window patch extraction for the 1-channel input
    # stays in XLA (tiny: 29 KB/image); no clean rectangular BlockSpec for it.
    n = x.shape[0]
    taps = [x[:, i:i + 24, j:j + 24] for i in range(5) for j in range(5)]
    cols = jnp.stack(taps, axis=-1)                 # (n, 24, 24, 25)
    return cols.reshape(n, 576, 25).astype(jnp.bfloat16)


def prepare_params(p):
    """One-time: fold BN, permute/pad weights, build pool/gather matrices."""
    q = {}
    # conv1: (20,1,5,5) -> (25, 20) -> (25, 128).  K stays 25 (no XLA pad).
    w = jnp.transpose(p["conv1_w"], (2, 3, 1, 0)).reshape(25, 20)
    q["conv1_w"] = _pad_axis(w, 1, LANE).astype(jnp.bfloat16)
    q["bn1_s"], q["bn1_b"] = _prep_bn(None, None, p["bn1_mean"], p["bn1_var"],
                                      LANE)

    # conv2: (50,20,5,5) -> (25 taps, Cin 20->128, Cout 50->128).
    w = jnp.transpose(p["conv2_w"], (2, 3, 1, 0)).reshape(25, 20, 50)
    q["conv2_w"] = _pad_axis(_pad_axis(w, 1, LANE), 2, LANE).astype(jnp.bfloat16)
    q["bn2_s"], q["bn2_b"] = _prep_bn(p["bn2_gamma"], p["bn2_beta"],
                                      p["bn2_mean"], p["bn2_var"], LANE)

    # Constant pooling / conv2-gather matrices (values 0, 0.25, 1: exact bf16).
    q["pool1"] = jnp.asarray(_pool_matrix(24, 24), jnp.bfloat16)   # (144, 576)
    q["pool2"] = jnp.asarray(_pool_matrix(8, 8), jnp.bfloat16)     # (16, 64)
    q["gather2"] = jnp.asarray(_conv2_gather(), jnp.bfloat16)      # (25, 64, 144)

    # l1: (500, 800) with PyTorch NCHW flatten index c*16 + h*4 + w, re-laid
    # out to our (p = h*4 + w, padded-c) feature order -> (2048, 512).
    w = p["l1_w"].reshape(500, 50, 4, 4)             # (o, c, h, w)
    w = jnp.transpose(w, (2, 3, 1, 0)).reshape(16, 50, 500)
    w = _pad_axis(w, 1, LANE).reshape(16 * LANE, 500)
    q["l1_w"] = _pad_axis(w, 1, 512).astype(jnp.bfloat16)
    q["bn3_s"], q["bn3_b"] = _prep_bn(p["bn3_gamma"], p["bn3_beta"],
                                      p["bn3_mean"], p["bn3_var"], 512)

    # l2: (250, 500) -> (512, 256).
    q["l2_w"] = _pad_axis(_pad_axis(p["l2_w"].T, 0, 512), 1, 256).astype(
        jnp.bfloat16)
    q["bn4_s"], q["bn4_b"] = _prep_bn(p["bn4_gamma"], p["bn4_beta"],
                                      p["bn4_mean"], p["bn4_var"], 256)

    # l3: (10, 250) -> (256, 128).
    q["l3_w"] = _pad_axis(_pad_axis(p["l3_w"].T, 0, 256), 1, LANE).astype(
        jnp.bfloat16)
    return q


def lenet5_forward(x_nchw, q):
    # act_q / weight quantizers are identity at 32 bits (DoReFa default).
    n = x_nchw.shape[0]
    x = x_nchw.reshape(n, 28, 28).astype(jnp.float32)   # single channel
    cols = im2col_conv1(x)                               # (n, 576, 25) bf16
    feats = conv_stack(cols, q)                          # (n, 16, 128) bf16
    feats = feats.reshape(n, 16 * LANE)                  # free, contiguous
    logits = fc_stack(feats, q)                          # (n, 128) f32
    return logits[:, :10]


# ------------------------------ init params ---------------------------------

def init_params(key):
    ks = jax.random.split(key, 16)
    p = {}
    p["conv1_w"] = 0.1 * jax.random.normal(ks[0], (20, 1, 5, 5), jnp.float32)
    p["conv2_w"] = 0.1 * jax.random.normal(ks[1], (50, 20, 5, 5), jnp.float32)
    p["l1_w"] = 0.05 * jax.random.normal(ks[2], (500, 800), jnp.float32)
    p["l2_w"] = 0.05 * jax.random.normal(ks[3], (250, 500), jnp.float32)
    p["l3_w"] = 0.05 * jax.random.normal(ks[4], (10, 250), jnp.float32)
    p["bn1_mean"] = 0.01 * jax.random.normal(ks[5], (20,), jnp.float32)
    p["bn1_var"] = 0.5 + jax.random.uniform(ks[6], (20,), jnp.float32)
    p["bn2_gamma"] = 0.9 + 0.2 * jax.random.uniform(ks[7], (50,), jnp.float32)
    p["bn2_beta"] = 0.01 * jax.random.normal(ks[8], (50,), jnp.float32)
    p["bn2_mean"] = 0.01 * jax.random.normal(ks[9], (50,), jnp.float32)
    p["bn2_var"] = 0.5 + jax.random.uniform(ks[10], (50,), jnp.float32)
    p["bn3_gamma"] = 0.9 + 0.2 * jax.random.uniform(ks[11], (500,), jnp.float32)
    p["bn3_beta"] = 0.01 * jax.random.normal(ks[12], (500,), jnp.float32)
    p["bn3_mean"] = jnp.zeros((500,), jnp.float32)
    p["bn3_var"] = jnp.ones((500,), jnp.float32)
    p["bn4_gamma"] = 0.9 + 0.2 * jax.random.uniform(ks[13], (250,), jnp.float32)
    p["bn4_beta"] = 0.01 * jax.random.normal(ks[14], (250,), jnp.float32)
    p["bn4_mean"] = jnp.zeros((250,), jnp.float32)
    p["bn4_var"] = jnp.ones((250,), jnp.float32)
    return p


# ------------------------- pure-JAX reference (f32) --------------------------

def _avgpool_ref(y):   # NCHW
    n, c, h, w = y.shape
    return y.reshape(n, c, h // 2, 2, w // 2, 2).mean(axis=(3, 5))


def lenet5_reference(x_nchw, p):
    dn = ("NCHW", "OIHW", "NCHW")
    y = jax.lax.conv_general_dilated(x_nchw, p["conv1_w"], (1, 1), "VALID",
                                     dimension_numbers=dn)
    s, b = fold_bn(None, None, p["bn1_mean"], p["bn1_var"])
    y = jnp.maximum(y * s[None, :, None, None] + b[None, :, None, None], 0.0)
    y = _avgpool_ref(y)
    y = jax.lax.conv_general_dilated(y, p["conv2_w"], (1, 1), "VALID",
                                     dimension_numbers=dn)
    s, b = fold_bn(p["bn2_gamma"], p["bn2_beta"], p["bn2_mean"], p["bn2_var"])
    y = jnp.maximum(y * s[None, :, None, None] + b[None, :, None, None], 0.0)
    y = _avgpool_ref(y)
    y = y.reshape(y.shape[0], -1)
    s, b = fold_bn(p["bn3_gamma"], p["bn3_beta"], p["bn3_mean"], p["bn3_var"])
    y = jnp.maximum((y @ p["l1_w"].T) * s + b, 0.0)
    s, b = fold_bn(p["bn4_gamma"], p["bn4_beta"], p["bn4_mean"], p["bn4_var"])
    y = jnp.maximum((y @ p["l2_w"].T) * s + b, 0.0)
    return y @ p["l3_w"].T


if __name__ == "__main__":
    key = jax.random.PRNGKey(0)
    k_x, k_p = jax.random.split(key)
    # LeNet-5 input: MNIST-style (N, 1, 28, 28) -> flatten becomes 50*4*4 = 800.
    x = jax.random.normal(k_x, (2, 1, 28, 28), jnp.float32)
    params = init_params(k_p)
    prepped = prepare_params(params)        # one-time weight/BN preparation

    fwd = jax.jit(lenet5_forward)
    out = jax.block_until_ready(fwd(x, prepped))

    assert out.shape == (2, 10), out.shape
    assert bool(jnp.all(jnp.isfinite(out)))

    # Loose check vs f32 reference (kernel path uses bf16 MXU inputs).
    ref = lenet5_reference(x, params)
    err = float(jnp.max(jnp.abs(out.astype(jnp.float32) - ref)))
    tol = 0.05 * float(jnp.max(jnp.abs(ref))) + 5e-2
    assert err < tol, (err, tol)
    print("KERNEL_OK")
</pallas_src>

<mosaic_0001>
module attributes {stable_mosaic.version = 11 : i64} {
  func.func @_conv_stack_kernel(%arg0: i32, %arg1: memref<1x576x25xbf16, #tpu.memory_space<vmem>>, %arg2: memref<25x128xbf16, #tpu.memory_space<vmem>>, %arg3: memref<1x128xf32, #tpu.memory_space<vmem>>, %arg4: memref<1x128xf32, #tpu.memory_space<vmem>>, %arg5: memref<144x576xbf16, #tpu.memory_space<vmem>>, %arg6: memref<25x64x144xbf16, #tpu.memory_space<vmem>>, %arg7: memref<25x128x128xbf16, #tpu.memory_space<vmem>>, %arg8: memref<1x128xf32, #tpu.memory_space<vmem>>, %arg9: memref<1x128xf32, #tpu.memory_space<vmem>>, %arg10: memref<16x64xbf16, #tpu.memory_space<vmem>>, %arg11: memref<1x16x128xbf16, #tpu.memory_space<vmem>>) attributes {dimension_semantics = [#tpu.dimension_semantics<parallel>], iteration_bounds = array<i64: 2>, scalar_prefetch = 0 : i64, scratch_operands = 0 : i64, tpu.core_type = #tpu.core_type<tc>, window_params = [{transform_indices = @transform_0, window_bounds = array<i64: 1, 576, 25>}, {pipeline_mode = #tpu.pipeline_mode<synchronous>, transform_indices = @transform_1, window_bounds = array<i64: 25, 128>}, {pipeline_mode = #tpu.pipeline_mode<synchronous>, transform_indices = @transform_2, window_bounds = array<i64: 1, 128>}, {pipeline_mode = #tpu.pipeline_mode<synchronous>, transform_indices = @transform_3, window_bounds = array<i64: 1, 128>}, {pipeline_mode = #tpu.pipeline_mode<synchronous>, transform_indices = @transform_4, window_bounds = array<i64: 144, 576>}, {pipeline_mode = #tpu.pipeline_mode<synchronous>, transform_indices = @transform_5, window_bounds = array<i64: 25, 64, 144>}, {pipeline_mode = #tpu.pipeline_mode<synchronous>, transform_indices = @transform_6, window_bounds = array<i64: 25, 128, 128>}, {pipeline_mode = #tpu.pipeline_mode<synchronous>, transform_indices = @transform_7, window_bounds = array<i64: 1, 128>}, {pipeline_mode = #tpu.pipeline_mode<synchronous>, transform_indices = @transform_8, window_bounds = array<i64: 1, 128>}, {pipeline_mode = #tpu.pipeline_mode<synchronous>, transform_indices = @transform_9, window_bounds = array<i64: 16, 64>}, {transform_indices = @transform_10, window_bounds = array<i64: 1, 16, 128>}]} {
    %c0 = arith.constant 0 : index
    %c0_0 = arith.constant 0 : index
    %c0_1 = arith.constant 0 : index
    %0 = vector.load %arg1[%c0, %c0_0, %c0_1] : memref<1x576x25xbf16, #tpu.memory_space<vmem>>, vector<1x576x25xbf16>
    %1 = vector.shape_cast %0 : vector<1x576x25xbf16> to vector<576x25xbf16>
    %c0_2 = arith.constant 0 : index
    %c0_3 = arith.constant 0 : index
    %2 = vector.load %arg2[%c0_2, %c0_3] : memref<25x128xbf16, #tpu.memory_space<vmem>>, vector<25x128xbf16>
    %cst = arith.constant dense<0.000000e+00> : vector<576x128xf32>
    %3 = tpu.matmul %1, %2, %cst {dimension_numbers = #tpu.dot_dimension_numbers<[1], [0], [0], [1], [0, 0, 1, 1], [], []>} : vector<576x25xbf16>, vector<25x128xbf16>, vector<576x128xf32> -> vector<576x128xf32>
    %c0_4 = arith.constant 0 : index
    %c0_5 = arith.constant 0 : index
    %4 = vector.load %arg3[%c0_4, %c0_5] : memref<1x128xf32, #tpu.memory_space<vmem>>, vector<1x128xf32>
    %5 = vector.broadcast %4 : vector<1x128xf32> to vector<576x128xf32>
    %6 = arith.mulf %3, %5 : vector<576x128xf32>
    %c0_6 = arith.constant 0 : index
    %c0_7 = arith.constant 0 : index
    %7 = vector.load %arg4[%c0_6, %c0_7] : memref<1x128xf32, #tpu.memory_space<vmem>>, vector<1x128xf32>
    %8 = vector.broadcast %7 : vector<1x128xf32> to vector<576x128xf32>
    %9 = arith.addf %6, %8 : vector<576x128xf32>
    %cst_8 = arith.constant 0.000000e+00 : f32
    %10 = vector.broadcast %cst_8 : f32 to vector<576x128xf32>
    %11 = arith.maximumf %9, %10 : vector<576x128xf32>
    %12 = arith.truncf %11 : vector<576x128xf32> to vector<576x128xbf16>
    %c0_9 = arith.constant 0 : index
    %c0_10 = arith.constant 0 : index
    %13 = vector.load %arg5[%c0_9, %c0_10] : memref<144x576xbf16, #tpu.memory_space<vmem>>, vector<144x576xbf16>
    %cst_11 = arith.constant dense<0.000000e+00> : vector<144x128xf32>
    %14 = tpu.matmul %13, %12, %cst_11 {dimension_numbers = #tpu.dot_dimension_numbers<[1], [0], [0], [1], [0, 0, 1, 1], [], []>} : vector<144x576xbf16>, vector<576x128xbf16>, vector<144x128xf32> -> vector<144x128xf32>
    %15 = arith.truncf %14 : vector<144x128xf32> to vector<144x128xbf16>
    %cst_12 = arith.constant 0.000000e+00 : f32
    %16 = vector.broadcast %cst_12 : f32 to vector<64x128xf32>
    %c0_13 = arith.constant 0 : index
    %c0_14 = arith.constant 0 : index
    %c0_15 = arith.constant 0 : index
    %17 = vector.load %arg6[%c0_13, %c0_14, %c0_15] : memref<25x64x144xbf16, #tpu.memory_space<vmem>>, vector<1x64x144xbf16>
    %18 = vector.shape_cast %17 : vector<1x64x144xbf16> to vector<64x144xbf16>
    %cst_16 = arith.constant dense<0.000000e+00> : vector<64x128xf32>
    %19 = tpu.matmul %18, %15, %cst_16 {dimension_numbers = #tpu.dot_dimension_numbers<[1], [0], [0], [1], [0, 0, 1, 1], [], []>} : vector<64x144xbf16>, vector<144x128xbf16>, vector<64x128xf32> -> vector<64x128xf32>
    %20 = arith.truncf %19 : vector<64x128xf32> to vector<64x128xbf16>
    %c0_17 = arith.constant 0 : index
    %c0_18 = arith.constant 0 : index
    %c0_19 = arith.constant 0 : index
    %21 = vector.load %arg7[%c0_17, %c0_18, %c0_19] : memref<25x128x128xbf16, #tpu.memory_space<vmem>>, vector<1x128x128xbf16>
    %22 = vector.shape_cast %21 : vector<1x128x128xbf16> to vector<128x128xbf16>
    %cst_20 = arith.constant dense<0.000000e+00> : vector<64x128xf32>
    %23 = tpu.matmul %20, %22, %cst_20 {dimension_numbers = #tpu.dot_dimension_numbers<[1], [0], [0], [1], [0, 0, 1, 1], [], []>} : vector<64x128xbf16>, vector<128x128xbf16>, vector<64x128xf32> -> vector<64x128xf32>
    %24 = arith.addf %16, %23 : vector<64x128xf32>
    %c1 = arith.constant 1 : index
    %c0_21 = arith.constant 0 : index
    %c0_22 = arith.constant 0 : index
    %25 = vector.load %arg6[%c1, %c0_21, %c0_22] : memref<25x64x144xbf16, #tpu.memory_space<vmem>>, vector<1x64x144xbf16>
    %26 = vector.shape_cast %25 : vector<1x64x144xbf16> to vector<64x144xbf16>
    %cst_23 = arith.constant dense<0.000000e+00> : vector<64x128xf32>
    %27 = tpu.matmul %26, %15, %cst_23 {dimension_numbers = #tpu.dot_dimension_numbers<[1], [0], [0], [1], [0, 0, 1, 1], [], []>} : vector<64x144xbf16>, vector<144x128xbf16>, vector<64x128xf32> -> vector<64x128xf32>
    %28 = arith.truncf %27 : vector<64x128xf32> to vector<64x128xbf16>
    %c1_24 = arith.constant 1 : index
    %c0_25 = arith.constant 0 : index
    %c0_26 = arith.constant 0 : index
    %29 = vector.load %arg7[%c1_24, %c0_25, %c0_26] : memref<25x128x128xbf16, #tpu.memory_space<vmem>>, vector<1x128x128xbf16>
    %30 = vector.shape_cast %29 : vector<1x128x128xbf16> to vector<128x128xbf16>
    %cst_27 = arith.constant dense<0.000000e+00> : vector<64x128xf32>
    %31 = tpu.matmul %28, %30, %cst_27 {dimension_numbers = #tpu.dot_dimension_numbers<[1], [0], [0], [1], [0, 0, 1, 1], [], []>} : vector<64x128xbf16>, vector<128x128xbf16>, vector<64x128xf32> -> vector<64x128xf32>
    %32 = arith.addf %24, %31 : vector<64x128xf32>
    %c2 = arith.constant 2 : index
    %c0_28 = arith.constant 0 : index
    %c0_29 = arith.constant 0 : index
    %33 = vector.load %arg6[%c2, %c0_28, %c0_29] : memref<25x64x144xbf16, #tpu.memory_space<vmem>>, vector<1x64x144xbf16>
    %34 = vector.shape_cast %33 : vector<1x64x144xbf16> to vector<64x144xbf16>
    %cst_30 = arith.constant dense<0.000000e+00> : vector<64x128xf32>
    %35 = tpu.matmul %34, %15, %cst_30 {dimension_numbers = #tpu.dot_dimension_numbers<[1], [0], [0], [1], [0, 0, 1, 1], [], []>} : vector<64x144xbf16>, vector<144x128xbf16>, vector<64x128xf32> -> vector<64x128xf32>
    %36 = arith.truncf %35 : vector<64x128xf32> to vector<64x128xbf16>
    %c2_31 = arith.constant 2 : index
    %c0_32 = arith.constant 0 : index
    %c0_33 = arith.constant 0 : index
    %37 = vector.load %arg7[%c2_31, %c0_32, %c0_33] : memref<25x128x128xbf16, #tpu.memory_space<vmem>>, vector<1x128x128xbf16>
    %38 = vector.shape_cast %37 : vector<1x128x128xbf16> to vector<128x128xbf16>
    %cst_34 = arith.constant dense<0.000000e+00> : vector<64x128xf32>
    %39 = tpu.matmul %36, %38, %cst_34 {dimension_numbers = #tpu.dot_dimension_numbers<[1], [0], [0], [1], [0, 0, 1, 1], [], []>} : vector<64x128xbf16>, vector<128x128xbf16>, vector<64x128xf32> -> vector<64x128xf32>
    %40 = arith.addf %32, %39 : vector<64x128xf32>
    %c3 = arith.constant 3 : index
    %c0_35 = arith.constant 0 : index
    %c0_36 = arith.constant 0 : index
    %41 = vector.load %arg6[%c3, %c0_35, %c0_36] : memref<25x64x144xbf16, #tpu.memory_space<vmem>>, vector<1x64x144xbf16>
    %42 = vector.shape_cast %41 : vector<1x64x144xbf16> to vector<64x144xbf16>
    %cst_37 = arith.constant dense<0.000000e+00> : vector<64x128xf32>
    %43 = tpu.matmul %42, %15, %cst_37 {dimension_numbers = #tpu.dot_dimension_numbers<[1], [0], [0], [1], [0, 0, 1, 1], [], []>} : vector<64x144xbf16>, vector<144x128xbf16>, vector<64x128xf32> -> vector<64x128xf32>
    %44 = arith.truncf %43 : vector<64x128xf32> to vector<64x128xbf16>
    %c3_38 = arith.constant 3 : index
    %c0_39 = arith.constant 0 : index
    %c0_40 = arith.constant 0 : index
    %45 = vector.load %arg7[%c3_38, %c0_39, %c0_40] : memref<25x128x128xbf16, #tpu.memory_space<vmem>>, vector<1x128x128xbf16>
    %46 = vector.shape_cast %45 : vector<1x128x128xbf16> to vector<128x128xbf16>
    %cst_41 = arith.constant dense<0.000000e+00> : vector<64x128xf32>
    %47 = tpu.matmul %44, %46, %cst_41 {dimension_numbers = #tpu.dot_dimension_numbers<[1], [0], [0], [1], [0, 0, 1, 1], [], []>} : vector<64x128xbf16>, vector<128x128xbf16>, vector<64x128xf32> -> vector<64x128xf32>
    %48 = arith.addf %40, %47 : vector<64x128xf32>
    %c4 = arith.constant 4 : index
    %c0_42 = arith.constant 0 : index
    %c0_43 = arith.constant 0 : index
    %49 = vector.load %arg6[%c4, %c0_42, %c0_43] : memref<25x64x144xbf16, #tpu.memory_space<vmem>>, vector<1x64x144xbf16>
    %50 = vector.shape_cast %49 : vector<1x64x144xbf16> to vector<64x144xbf16>
    %cst_44 = arith.constant dense<0.000000e+00> : vector<64x128xf32>
    %51 = tpu.matmul %50, %15, %cst_44 {dimension_numbers = #tpu.dot_dimension_numbers<[1], [0], [0], [1], [0, 0, 1, 1], [], []>} : vector<64x144xbf16>, vector<144x128xbf16>, vector<64x128xf32> -> vector<64x128xf32>
    %52 = arith.truncf %51 : vector<64x128xf32> to vector<64x128xbf16>
    %c4_45 = arith.constant 4 : index
    %c0_46 = arith.constant 0 : index
    %c0_47 = arith.constant 0 : index
    %53 = vector.load %arg7[%c4_45, %c0_46, %c0_47] : memref<25x128x128xbf16, #tpu.memory_space<vmem>>, vector<1x128x128xbf16>
    %54 = vector.shape_cast %53 : vector<1x128x128xbf16> to vector<128x128xbf16>
    %cst_48 = arith.constant dense<0.000000e+00> : vector<64x128xf32>
    %55 = tpu.matmul %52, %54, %cst_48 {dimension_numbers = #tpu.dot_dimension_numbers<[1], [0], [0], [1], [0, 0, 1, 1], [], []>} : vector<64x128xbf16>, vector<128x128xbf16>, vector<64x128xf32> -> vector<64x128xf32>
    %56 = arith.addf %48, %55 : vector<64x128xf32>
    %c5 = arith.constant 5 : index
    %c0_49 = arith.constant 0 : index
    %c0_50 = arith.constant 0 : index
    %57 = vector.load %arg6[%c5, %c0_49, %c0_50] : memref<25x64x144xbf16, #tpu.memory_space<vmem>>, vector<1x64x144xbf16>
    %58 = vector.shape_cast %57 : vector<1x64x144xbf16> to vector<64x144xbf16>
    %cst_51 = arith.constant dense<0.000000e+00> : vector<64x128xf32>
    %59 = tpu.matmul %58, %15, %cst_51 {dimension_numbers = #tpu.dot_dimension_numbers<[1], [0], [0], [1], [0, 0, 1, 1], [], []>} : vector<64x144xbf16>, vector<144x128xbf16>, vector<64x128xf32> -> vector<64x128xf32>
    %60 = arith.truncf %59 : vector<64x128xf32> to vector<64x128xbf16>
    %c5_52 = arith.constant 5 : index
    %c0_53 = arith.constant 0 : index
    %c0_54 = arith.constant 0 : index
    %61 = vector.load %arg7[%c5_52, %c0_53, %c0_54] : memref<25x128x128xbf16, #tpu.memory_space<vmem>>, vector<1x128x128xbf16>
    %62 = vector.shape_cast %61 : vector<1x128x128xbf16> to vector<128x128xbf16>
    %cst_55 = arith.constant dense<0.000000e+00> : vector<64x128xf32>
    %63 = tpu.matmul %60, %62, %cst_55 {dimension_numbers = #tpu.dot_dimension_numbers<[1], [0], [0], [1], [0, 0, 1, 1], [], []>} : vector<64x128xbf16>, vector<128x128xbf16>, vector<64x128xf32> -> vector<64x128xf32>
    %64 = arith.addf %56, %63 : vector<64x128xf32>
    %c6 = arith.constant 6 : index
    %c0_56 = arith.constant 0 : index
    %c0_57 = arith.constant 0 : index
    %65 = vector.load %arg6[%c6, %c0_56, %c0_57] : memref<25x64x144xbf16, #tpu.memory_space<vmem>>, vector<1x64x144xbf16>
    %66 = vector.shape_cast %65 : vector<1x64x144xbf16> to vector<64x144xbf16>
    %cst_58 = arith.constant dense<0.000000e+00> : vector<64x128xf32>
    %67 = tpu.matmul %66, %15, %cst_58 {dimension_numbers = #tpu.dot_dimension_numbers<[1], [0], [0], [1], [0, 0, 1, 1], [], []>} : vector<64x144xbf16>, vector<144x128xbf16>, vector<64x128xf32> -> vector<64x128xf32>
    %68 = arith.truncf %67 : vector<64x128xf32> to vector<64x128xbf16>
    %c6_59 = arith.constant 6 : index
    %c0_60 = arith.constant 0 : index
    %c0_61 = arith.constant 0 : index
    %69 = vector.load %arg7[%c6_59, %c0_60, %c0_61] : memref<25x128x128xbf16, #tpu.memory_space<vmem>>, vector<1x128x128xbf16>
    %70 = vector.shape_cast %69 : vector<1x128x128xbf16> to vector<128x128xbf16>
    %cst_62 = arith.constant dense<0.000000e+00> : vector<64x128xf32>
    %71 = tpu.matmul %68, %70, %cst_62 {dimension_numbers = #tpu.dot_dimension_numbers<[1], [0], [0], [1], [0, 0, 1, 1], [], []>} : vector<64x128xbf16>, vector<128x128xbf16>, vector<64x128xf32> -> vector<64x128xf32>
    %72 = arith.addf %64, %71 : vector<64x128xf32>
    %c7 = arith.constant 7 : index
    %c0_63 = arith.constant 0 : index
    %c0_64 = arith.constant 0 : index
    %73 = vector.load %arg6[%c7, %c0_63, %c0_64] : memref<25x64x144xbf16, #tpu.memory_space<vmem>>, vector<1x64x144xbf16>
    %74 = vector.shape_cast %73 : vector<1x64x144xbf16> to vector<64x144xbf16>
    %cst_65 = arith.constant dense<0.000000e+00> : vector<64x128xf32>
    %75 = tpu.matmul %74, %15, %cst_65 {dimension_numbers = #tpu.dot_dimension_numbers<[1], [0], [0], [1], [0, 0, 1, 1], [], []>} : vector<64x144xbf16>, vector<144x128xbf16>, vector<64x128xf32> -> vector<64x128xf32>
    %76 = arith.truncf %75 : vector<64x128xf32> to vector<64x128xbf16>
    %c7_66 = arith.constant 7 : index
    %c0_67 = arith.constant 0 : index
    %c0_68 = arith.constant 0 : index
    %77 = vector.load %arg7[%c7_66, %c0_67, %c0_68] : memref<25x128x128xbf16, #tpu.memory_space<vmem>>, vector<1x128x128xbf16>
    %78 = vector.shape_cast %77 : vector<1x128x128xbf16> to vector<128x128xbf16>
    %cst_69 = arith.constant dense<0.000000e+00> : vector<64x128xf32>
    %79 = tpu.matmul %76, %78, %cst_69 {dimension_numbers = #tpu.dot_dimension_numbers<[1], [0], [0], [1], [0, 0, 1, 1], [], []>} : vector<64x128xbf16>, vector<128x128xbf16>, vector<64x128xf32> -> vector<64x128xf32>
    %80 = arith.addf %72, %79 : vector<64x128xf32>
    %c8 = arith.constant 8 : index
    %c0_70 = arith.constant 0 : index
    %c0_71 = arith.constant 0 : index
    %81 = vector.load %arg6[%c8, %c0_70, %c0_71] : memref<25x64x144xbf16, #tpu.memory_space<vmem>>, vector<1x64x144xbf16>
    %82 = vector.shape_cast %81 : vector<1x64x144xbf16> to vector<64x144xbf16>
    %cst_72 = arith.constant dense<0.000000e+00> : vector<64x128xf32>
    %83 = tpu.matmul %82, %15, %cst_72 {dimension_numbers = #tpu.dot_dimension_numbers<[1], [0], [0], [1], [0, 0, 1, 1], [], []>} : vector<64x144xbf16>, vector<144x128xbf16>, vector<64x128xf32> -> vector<64x128xf32>
    %84 = arith.truncf %83 : vector<64x128xf32> to vector<64x128xbf16>
    %c8_73 = arith.constant 8 : index
    %c0_74 = arith.constant 0 : index
    %c0_75 = arith.constant 0 : index
    %85 = vector.load %arg7[%c8_73, %c0_74, %c0_75] : memref<25x128x128xbf16, #tpu.memory_space<vmem>>, vector<1x128x128xbf16>
    %86 = vector.shape_cast %85 : vector<1x128x128xbf16> to vector<128x128xbf16>
    %cst_76 = arith.constant dense<0.000000e+00> : vector<64x128xf32>
    %87 = tpu.matmul %84, %86, %cst_76 {dimension_numbers = #tpu.dot_dimension_numbers<[1], [0], [0], [1], [0, 0, 1, 1], [], []>} : vector<64x128xbf16>, vector<128x128xbf16>, vector<64x128xf32> -> vector<64x128xf32>
    %88 = arith.addf %80, %87 : vector<64x128xf32>
    %c9 = arith.constant 9 : index
    %c0_77 = arith.constant 0 : index
    %c0_78 = arith.constant 0 : index
    %89 = vector.load %arg6[%c9, %c0_77, %c0_78] : memref<25x64x144xbf16, #tpu.memory_space<vmem>>, vector<1x64x144xbf16>
    %90 = vector.shape_cast %89 : vector<1x64x144xbf16> to vector<64x144xbf16>
    %cst_79 = arith.constant dense<0.000000e+00> : vector<64x128xf32>
    %91 = tpu.matmul %90, %15, %cst_79 {dimension_numbers = #tpu.dot_dimension_numbers<[1], [0], [0], [1], [0, 0, 1, 1], [], []>} : vector<64x144xbf16>, vector<144x128xbf16>, vector<64x128xf32> -> vector<64x128xf32>
    %92 = arith.truncf %91 : vector<64x128xf32> to vector<64x128xbf16>
    %c9_80 = arith.constant 9 : index
    %c0_81 = arith.constant 0 : index
    %c0_82 = arith.constant 0 : index
    %93 = vector.load %arg7[%c9_80, %c0_81, %c0_82] : memref<25x128x128xbf16, #tpu.memory_space<vmem>>, vector<1x128x128xbf16>
    %94 = vector.shape_cast %93 : vector<1x128x128xbf16> to vector<128x128xbf16>
    %cst_83 = arith.constant dense<0.000000e+00> : vector<64x128xf32>
    %95 = tpu.matmul %92, %94, %cst_83 {dimension_numbers = #tpu.dot_dimension_numbers<[1], [0], [0], [1], [0, 0, 1, 1], [], []>} : vector<64x128xbf16>, vector<128x128xbf16>, vector<64x128xf32> -> vector<64x128xf32>
    %96 = arith.addf %88, %95 : vector<64x128xf32>
    %c10 = arith.constant 10 : index
    %c0_84 = arith.constant 0 : index
    %c0_85 = arith.constant 0 : index
    %97 = vector.load %arg6[%c10, %c0_84, %c0_85] : memref<25x64x144xbf16, #tpu.memory_space<vmem>>, vector<1x64x144xbf16>
    %98 = vector.shape_cast %97 : vector<1x64x144xbf16> to vector<64x144xbf16>
    %cst_86 = arith.constant dense<0.000000e+00> : vector<64x128xf32>
    %99 = tpu.matmul %98, %15, %cst_86 {dimension_numbers = #tpu.dot_dimension_numbers<[1], [0], [0], [1], [0, 0, 1, 1], [], []>} : vector<64x144xbf16>, vector<144x128xbf16>, vector<64x128xf32> -> vector<64x128xf32>
    %100 = arith.truncf %99 : vector<64x128xf32> to vector<64x128xbf16>
    %c10_87 = arith.constant 10 : index
    %c0_88 = arith.constant 0 : index
    %c0_89 = arith.constant 0 : index
    %101 = vector.load %arg7[%c10_87, %c0_88, %c0_89] : memref<25x128x128xbf16, #tpu.memory_space<vmem>>, vector<1x128x128xbf16>
    %102 = vector.shape_cast %101 : vector<1x128x128xbf16> to vector<128x128xbf16>
    %cst_90 = arith.constant dense<0.000000e+00> : vector<64x128xf32>
    %103 = tpu.matmul %100, %102, %cst_90 {dimension_numbers = #tpu.dot_dimension_numbers<[1], [0], [0], [1], [0, 0, 1, 1], [], []>} : vector<64x128xbf16>, vector<128x128xbf16>, vector<64x128xf32> -> vector<64x128xf32>
    %104 = arith.addf %96, %103 : vector<64x128xf32>
    %c11 = arith.constant 11 : index
    %c0_91 = arith.constant 0 : index
    %c0_92 = arith.constant 0 : index
    %105 = vector.load %arg6[%c11, %c0_91, %c0_92] : memref<25x64x144xbf16, #tpu.memory_space<vmem>>, vector<1x64x144xbf16>
    %106 = vector.shape_cast %105 : vector<1x64x144xbf16> to vector<64x144xbf16>
    %cst_93 = arith.constant dense<0.000000e+00> : vector<64x128xf32>
    %107 = tpu.matmul %106, %15, %cst_93 {dimension_numbers = #tpu.dot_dimension_numbers<[1], [0], [0], [1], [0, 0, 1, 1], [], []>} : vector<64x144xbf16>, vector<144x128xbf16>, vector<64x128xf32> -> vector<64x128xf32>
    %108 = arith.truncf %107 : vector<64x128xf32> to vector<64x128xbf16>
    %c11_94 = arith.constant 11 : index
    %c0_95 = arith.constant 0 : index
    %c0_96 = arith.constant 0 : index
    %109 = vector.load %arg7[%c11_94, %c0_95, %c0_96] : memref<25x128x128xbf16, #tpu.memory_space<vmem>>, vector<1x128x128xbf16>
    %110 = vector.shape_cast %109 : vector<1x128x128xbf16> to vector<128x128xbf16>
    %cst_97 = arith.constant dense<0.000000e+00> : vector<64x128xf32>
    %111 = tpu.matmul %108, %110, %cst_97 {dimension_numbers = #tpu.dot_dimension_numbers<[1], [0], [0], [1], [0, 0, 1, 1], [], []>} : vector<64x128xbf16>, vector<128x128xbf16>, vector<64x128xf32> -> vector<64x128xf32>
    %112 = arith.addf %104, %111 : vector<64x128xf32>
    %c12 = arith.constant 12 : index
    %c0_98 = arith.constant 0 : index
    %c0_99 = arith.constant 0 : index
    %113 = vector.load %arg6[%c12, %c0_98, %c0_99] : memref<25x64x144xbf16, #tpu.memory_space<vmem>>, vector<1x64x144xbf16>
    %114 = vector.shape_cast %113 : vector<1x64x144xbf16> to vector<64x144xbf16>
    %cst_100 = arith.constant dense<0.000000e+00> : vector<64x128xf32>
    %115 = tpu.matmul %114, %15, %cst_100 {dimension_numbers = #tpu.dot_dimension_numbers<[1], [0], [0], [1], [0, 0, 1, 1], [], []>} : vector<64x144xbf16>, vector<144x128xbf16>, vector<64x128xf32> -> vector<64x128xf32>
    %116 = arith.truncf %115 : vector<64x128xf32> to vector<64x128xbf16>
    %c12_101 = arith.constant 12 : index
    %c0_102 = arith.constant 0 : index
    %c0_103 = arith.constant 0 : index
    %117 = vector.load %arg7[%c12_101, %c0_102, %c0_103] : memref<25x128x128xbf16, #tpu.memory_space<vmem>>, vector<1x128x128xbf16>
    %118 = vector.shape_cast %117 : vector<1x128x128xbf16> to vector<128x128xbf16>
    %cst_104 = arith.constant dense<0.000000e+00> : vector<64x128xf32>
    %119 = tpu.matmul %116, %118, %cst_104 {dimension_numbers = #tpu.dot_dimension_numbers<[1], [0], [0], [1], [0, 0, 1, 1], [], []>} : vector<64x128xbf16>, vector<128x128xbf16>, vector<64x128xf32> -> vector<64x128xf32>
    %120 = arith.addf %112, %119 : vector<64x128xf32>
    %c13 = arith.constant 13 : index
    %c0_105 = arith.constant 0 : index
    %c0_106 = arith.constant 0 : index
    %121 = vector.load %arg6[%c13, %c0_105, %c0_106] : memref<25x64x144xbf16, #tpu.memory_space<vmem>>, vector<1x64x144xbf16>
    %122 = vector.shape_cast %121 : vector<1x64x144xbf16> to vector<64x144xbf16>
    %cst_107 = arith.constant dense<0.000000e+00> : vector<64x128xf32>
    %123 = tpu.matmul %122, %15, %cst_107 {dimension_numbers = #tpu.dot_dimension_numbers<[1], [0], [0], [1], [0, 0, 1, 1], [], []>} : vector<64x144xbf16>, vector<144x128xbf16>, vector<64x128xf32> -> vector<64x128xf32>
    %124 = arith.truncf %123 : vector<64x128xf32> to vector<64x128xbf16>
    %c13_108 = arith.constant 13 : index
    %c0_109 = arith.constant 0 : index
    %c0_110 = arith.constant 0 : index
    %125 = vector.load %arg7[%c13_108, %c0_109, %c0_110] : memref<25x128x128xbf16, #tpu.memory_space<vmem>>, vector<1x128x128xbf16>
    %126 = vector.shape_cast %125 : vector<1x128x128xbf16> to vector<128x128xbf16>
    %cst_111 = arith.constant dense<0.000000e+00> : vector<64x128xf32>
    %127 = tpu.matmul %124, %126, %cst_111 {dimension_numbers = #tpu.dot_dimension_numbers<[1], [0], [0], [1], [0, 0, 1, 1], [], []>} : vector<64x128xbf16>, vector<128x128xbf16>, vector<64x128xf32> -> vector<64x128xf32>
    %128 = arith.addf %120, %127 : vector<64x128xf32>
    %c14 = arith.constant 14 : index
    %c0_112 = arith.constant 0 : index
    %c0_113 = arith.constant 0 : index
    %129 = vector.load %arg6[%c14, %c0_112, %c0_113] : memref<25x64x144xbf16, #tpu.memory_space<vmem>>, vector<1x64x144xbf16>
    %130 = vector.shape_cast %129 : vector<1x64x144xbf16> to vector<64x144xbf16>
    %cst_114 = arith.constant dense<0.000000e+00> : vector<64x128xf32>
    %131 = tpu.matmul %130, %15, %cst_114 {dimension_numbers = #tpu.dot_dimension_numbers<[1], [0], [0], [1], [0, 0, 1, 1], [], []>} : vector<64x144xbf16>, vector<144x128xbf16>, vector<64x128xf32> -> vector<64x128xf32>
    %132 = arith.truncf %131 : vector<64x128xf32> to vector<64x128xbf16>
    %c14_115 = arith.constant 14 : index
    %c0_116 = arith.constant 0 : index
    %c0_117 = arith.constant 0 : index
    %133 = vector.load %arg7[%c14_115, %c0_116, %c0_117] : memref<25x128x128xbf16, #tpu.memory_space<vmem>>, vector<1x128x128xbf16>
    %134 = vector.shape_cast %133 : vector<1x128x128xbf16> to vector<128x128xbf16>
    %cst_118 = arith.constant dense<0.000000e+00> : vector<64x128xf32>
    %135 = tpu.matmul %132, %134, %cst_118 {dimension_numbers = #tpu.dot_dimension_numbers<[1], [0], [0], [1], [0, 0, 1, 1], [], []>} : vector<64x128xbf16>, vector<128x128xbf16>, vector<64x128xf32> -> vector<64x128xf32>
    %136 = arith.addf %128, %135 : vector<64x128xf32>
    %c15 = arith.constant 15 : index
    %c0_119 = arith.constant 0 : index
    %c0_120 = arith.constant 0 : index
    %137 = vector.load %arg6[%c15, %c0_119, %c0_120] : memref<25x64x144xbf16, #tpu.memory_space<vmem>>, vector<1x64x144xbf16>
    %138 = vector.shape_cast %137 : vector<1x64x144xbf16> to vector<64x144xbf16>
    %cst_121 = arith.constant dense<0.000000e+00> : vector<64x128xf32>
    %139 = tpu.matmul %138, %15, %cst_121 {dimension_numbers = #tpu.dot_dimension_numbers<[1], [0], [0], [1], [0, 0, 1, 1], [], []>} : vector<64x144xbf16>, vector<144x128xbf16>, vector<64x128xf32> -> vector<64x128xf32>
    %140 = arith.truncf %139 : vector<64x128xf32> to vector<64x128xbf16>
    %c15_122 = arith.constant 15 : index
    %c0_123 = arith.constant 0 : index
    %c0_124 = arith.constant 0 : index
    %141 = vector.load %arg7[%c15_122, %c0_123, %c0_124] : memref<25x128x128xbf16, #tpu.memory_space<vmem>>, vector<1x128x128xbf16>
    %142 = vector.shape_cast %141 : vector<1x128x128xbf16> to vector<128x128xbf16>
    %cst_125 = arith.constant dense<0.000000e+00> : vector<64x128xf32>
    %143 = tpu.matmul %140, %142, %cst_125 {dimension_numbers = #tpu.dot_dimension_numbers<[1], [0], [0], [1], [0, 0, 1, 1], [], []>} : vector<64x128xbf16>, vector<128x128xbf16>, vector<64x128xf32> -> vector<64x128xf32>
    %144 = arith.addf %136, %143 : vector<64x128xf32>
    %c16 = arith.constant 16 : index
    %c0_126 = arith.constant 0 : index
    %c0_127 = arith.constant 0 : index
    %145 = vector.load %arg6[%c16, %c0_126, %c0_127] : memref<25x64x144xbf16, #tpu.memory_space<vmem>>, vector<1x64x144xbf16>
    %146 = vector.shape_cast %145 : vector<1x64x144xbf16> to vector<64x144xbf16>
    %cst_128 = arith.constant dense<0.000000e+00> : vector<64x128xf32>
    %147 = tpu.matmul %146, %15, %cst_128 {dimension_numbers = #tpu.dot_dimension_numbers<[1], [0], [0], [1], [0, 0, 1, 1], [], []>} : vector<64x144xbf16>, vector<144x128xbf16>, vector<64x128xf32> -> vector<64x128xf32>
    %148 = arith.truncf %147 : vector<64x128xf32> to vector<64x128xbf16>
    %c16_129 = arith.constant 16 : index
    %c0_130 = arith.constant 0 : index
    %c0_131 = arith.constant 0 : index
    %149 = vector.load %arg7[%c16_129, %c0_130, %c0_131] : memref<25x128x128xbf16, #tpu.memory_space<vmem>>, vector<1x128x128xbf16>
    %150 = vector.shape_cast %149 : vector<1x128x128xbf16> to vector<128x128xbf16>
    %cst_132 = arith.constant dense<0.000000e+00> : vector<64x128xf32>
    %151 = tpu.matmul %148, %150, %cst_132 {dimension_numbers = #tpu.dot_dimension_numbers<[1], [0], [0], [1], [0, 0, 1, 1], [], []>} : vector<64x128xbf16>, vector<128x128xbf16>, vector<64x128xf32> -> vector<64x128xf32>
    %152 = arith.addf %144, %151 : vector<64x128xf32>
    %c17 = arith.constant 17 : index
    %c0_133 = arith.constant 0 : index
    %c0_134 = arith.constant 0 : index
    %153 = vector.load %arg6[%c17, %c0_133, %c0_134] : memref<25x64x144xbf16, #tpu.memory_space<vmem>>, vector<1x64x144xbf16>
    %154 = vector.shape_cast %153 : vector<1x64x144xbf16> to vector<64x144xbf16>
    %cst_135 = arith.constant dense<0.000000e+00> : vector<64x128xf32>
    %155 = tpu.matmul %154, %15, %cst_135 {dimension_numbers = #tpu.dot_dimension_numbers<[1], [0], [0], [1], [0, 0, 1, 1], [], []>} : vector<64x144xbf16>, vector<144x128xbf16>, vector<64x128xf32> -> vector<64x128xf32>
    %156 = arith.truncf %155 : vector<64x128xf32> to vector<64x128xbf16>
    %c17_136 = arith.constant 17 : index
    %c0_137 = arith.constant 0 : index
    %c0_138 = arith.constant 0 : index
    %157 = vector.load %arg7[%c17_136, %c0_137, %c0_138] : memref<25x128x128xbf16, #tpu.memory_space<vmem>>, vector<1x128x128xbf16>
    %158 = vector.shape_cast %157 : vector<1x128x128xbf16> to vector<128x128xbf16>
    %cst_139 = arith.constant dense<0.000000e+00> : vector<64x128xf32>
    %159 = tpu.matmul %156, %158, %cst_139 {dimension_numbers = #tpu.dot_dimension_numbers<[1], [0], [0], [1], [0, 0, 1, 1], [], []>} : vector<64x128xbf16>, vector<128x128xbf16>, vector<64x128xf32> -> vector<64x128xf32>
    %160 = arith.addf %152, %159 : vector<64x128xf32>
    %c18 = arith.constant 18 : index
    %c0_140 = arith.constant 0 : index
    %c0_141 = arith.constant 0 : index
    %161 = vector.load %arg6[%c18, %c0_140, %c0_141] : memref<25x64x144xbf16, #tpu.memory_space<vmem>>, vector<1x64x144xbf16>
    %162 = vector.shape_cast %161 : vector<1x64x144xbf16> to vector<64x144xbf16>
    %cst_142 = arith.constant dense<0.000000e+00> : vector<64x128xf32>
    %163 = tpu.matmul %162, %15, %cst_142 {dimension_numbers = #tpu.dot_dimension_numbers<[1], [0], [0], [1], [0, 0, 1, 1], [], []>} : vector<64x144xbf16>, vector<144x128xbf16>, vector<64x128xf32> -> vector<64x128xf32>
    %164 = arith.truncf %163 : vector<64x128xf32> to vector<64x128xbf16>
    %c18_143 = arith.constant 18 : index
    %c0_144 = arith.constant 0 : index
    %c0_145 = arith.constant 0 : index
    %165 = vector.load %arg7[%c18_143, %c0_144, %c0_145] : memref<25x128x128xbf16, #tpu.memory_space<vmem>>, vector<1x128x128xbf16>
    %166 = vector.shape_cast %165 : vector<1x128x128xbf16> to vector<128x128xbf16>
    %cst_146 = arith.constant dense<0.000000e+00> : vector<64x128xf32>
    %167 = tpu.matmul %164, %166, %cst_146 {dimension_numbers = #tpu.dot_dimension_numbers<[1], [0], [0], [1], [0, 0, 1, 1], [], []>} : vector<64x128xbf16>, vector<128x128xbf16>, vector<64x128xf32> -> vector<64x128xf32>
    %168 = arith.addf %160, %167 : vector<64x128xf32>
    %c19 = arith.constant 19 : index
    %c0_147 = arith.constant 0 : index
    %c0_148 = arith.constant 0 : index
    %169 = vector.load %arg6[%c19, %c0_147, %c0_148] : memref<25x64x144xbf16, #tpu.memory_space<vmem>>, vector<1x64x144xbf16>
    %170 = vector.shape_cast %169 : vector<1x64x144xbf16> to vector<64x144xbf16>
    %cst_149 = arith.constant dense<0.000000e+00> : vector<64x128xf32>
    %171 = tpu.matmul %170, %15, %cst_149 {dimension_numbers = #tpu.dot_dimension_numbers<[1], [0], [0], [1], [0, 0, 1, 1], [], []>} : vector<64x144xbf16>, vector<144x128xbf16>, vector<64x128xf32> -> vector<64x128xf32>
    %172 = arith.truncf %171 : vector<64x128xf32> to vector<64x128xbf16>
    %c19_150 = arith.constant 19 : index
    %c0_151 = arith.constant 0 : index
    %c0_152 = arith.constant 0 : index
    %173 = vector.load %arg7[%c19_150, %c0_151, %c0_152] : memref<25x128x128xbf16, #tpu.memory_space<vmem>>, vector<1x128x128xbf16>
    %174 = vector.shape_cast %173 : vector<1x128x128xbf16> to vector<128x128xbf16>
    %cst_153 = arith.constant dense<0.000000e+00> : vector<64x128xf32>
    %175 = tpu.matmul %172, %174, %cst_153 {dimension_numbers = #tpu.dot_dimension_numbers<[1], [0], [0], [1], [0, 0, 1, 1], [], []>} : vector<64x128xbf16>, vector<128x128xbf16>, vector<64x128xf32> -> vector<64x128xf32>
    %176 = arith.addf %168, %175 : vector<64x128xf32>
    %c20 = arith.constant 20 : index
    %c0_154 = arith.constant 0 : index
    %c0_155 = arith.constant 0 : index
    %177 = vector.load %arg6[%c20, %c0_154, %c0_155] : memref<25x64x144xbf16, #tpu.memory_space<vmem>>, vector<1x64x144xbf16>
    %178 = vector.shape_cast %177 : vector<1x64x144xbf16> to vector<64x144xbf16>
    %cst_156 = arith.constant dense<0.000000e+00> : vector<64x128xf32>
    %179 = tpu.matmul %178, %15, %cst_156 {dimension_numbers = #tpu.dot_dimension_numbers<[1], [0], [0], [1], [0, 0, 1, 1], [], []>} : vector<64x144xbf16>, vector<144x128xbf16>, vector<64x128xf32> -> vector<64x128xf32>
    %180 = arith.truncf %179 : vector<64x128xf32> to vector<64x128xbf16>
    %c20_157 = arith.constant 20 : index
    %c0_158 = arith.constant 0 : index
    %c0_159 = arith.constant 0 : index
    %181 = vector.load %arg7[%c20_157, %c0_158, %c0_159] : memref<25x128x128xbf16, #tpu.memory_space<vmem>>, vector<1x128x128xbf16>
    %182 = vector.shape_cast %181 : vector<1x128x128xbf16> to vector<128x128xbf16>
    %cst_160 = arith.constant dense<0.000000e+00> : vector<64x128xf32>
    %183 = tpu.matmul %180, %182, %cst_160 {dimension_numbers = #tpu.dot_dimension_numbers<[1], [0], [0], [1], [0, 0, 1, 1], [], []>} : vector<64x128xbf16>, vector<128x128xbf16>, vector<64x128xf32> -> vector<64x128xf32>
    %184 = arith.addf %176, %183 : vector<64x128xf32>
    %c21 = arith.constant 21 : index
    %c0_161 = arith.constant 0 : index
    %c0_162 = arith.constant 0 : index
    %185 = vector.load %arg6[%c21, %c0_161, %c0_162] : memref<25x64x144xbf16, #tpu.memory_space<vmem>>, vector<1x64x144xbf16>
    %186 = vector.shape_cast %185 : vector<1x64x144xbf16> to vector<64x144xbf16>
    %cst_163 = arith.constant dense<0.000000e+00> : vector<64x128xf32>
    %187 = tpu.matmul %186, %15, %cst_163 {dimension_numbers = #tpu.dot_dimension_numbers<[1], [0], [0], [1], [0, 0, 1, 1], [], []>} : vector<64x144xbf16>, vector<144x128xbf16>, vector<64x128xf32> -> vector<64x128xf32>
    %188 = arith.truncf %187 : vector<64x128xf32> to vector<64x128xbf16>
    %c21_164 = arith.constant 21 : index
    %c0_165 = arith.constant 0 : index
    %c0_166 = arith.constant 0 : index
    %189 = vector.load %arg7[%c21_164, %c0_165, %c0_166] : memref<25x128x128xbf16, #tpu.memory_space<vmem>>, vector<1x128x128xbf16>
    %190 = vector.shape_cast %189 : vector<1x128x128xbf16> to vector<128x128xbf16>
    %cst_167 = arith.constant dense<0.000000e+00> : vector<64x128xf32>
    %191 = tpu.matmul %188, %190, %cst_167 {dimension_numbers = #tpu.dot_dimension_numbers<[1], [0], [0], [1], [0, 0, 1, 1], [], []>} : vector<64x128xbf16>, vector<128x128xbf16>, vector<64x128xf32> -> vector<64x128xf32>
    %192 = arith.addf %184, %191 : vector<64x128xf32>
    %c22 = arith.constant 22 : index
    %c0_168 = arith.constant 0 : index
    %c0_169 = arith.constant 0 : index
    %193 = vector.load %arg6[%c22, %c0_168, %c0_169] : memref<25x64x144xbf16, #tpu.memory_space<vmem>>, vector<1x64x144xbf16>
    %194 = vector.shape_cast %193 : vector<1x64x144xbf16> to vector<64x144xbf16>
    %cst_170 = arith.constant dense<0.000000e+00> : vector<64x128xf32>
    %195 = tpu.matmul %194, %15, %cst_170 {dimension_numbers = #tpu.dot_dimension_numbers<[1], [0], [0], [1], [0, 0, 1, 1], [], []>} : vector<64x144xbf16>, vector<144x128xbf16>, vector<64x128xf32> -> vector<64x128xf32>
    %196 = arith.truncf %195 : vector<64x128xf32> to vector<64x128xbf16>
    %c22_171 = arith.constant 22 : index
    %c0_172 = arith.constant 0 : index
    %c0_173 = arith.constant 0 : index
    %197 = vector.load %arg7[%c22_171, %c0_172, %c0_173] : memref<25x128x128xbf16, #tpu.memory_space<vmem>>, vector<1x128x128xbf16>
    %198 = vector.shape_cast %197 : vector<1x128x128xbf16> to vector<128x128xbf16>
    %cst_174 = arith.constant dense<0.000000e+00> : vector<64x128xf32>
    %199 = tpu.matmul %196, %198, %cst_174 {dimension_numbers = #tpu.dot_dimension_numbers<[1], [0], [0], [1], [0, 0, 1, 1], [], []>} : vector<64x128xbf16>, vector<128x128xbf16>, vector<64x128xf32> -> vector<64x128xf32>
    %200 = arith.addf %192, %199 : vector<64x128xf32>
    %c23 = arith.constant 23 : index
    %c0_175 = arith.constant 0 : index
    %c0_176 = arith.constant 0 : index
    %201 = vector.load %arg6[%c23, %c0_175, %c0_176] : memref<25x64x144xbf16, #tpu.memory_space<vmem>>, vector<1x64x144xbf16>
    %202 = vector.shape_cast %201 : vector<1x64x144xbf16> to vector<64x144xbf16>
    %cst_177 = arith.constant dense<0.000000e+00> : vector<64x128xf32>
    %203 = tpu.matmul %202, %15, %cst_177 {dimension_numbers = #tpu.dot_dimension_numbers<[1], [0], [0], [1], [0, 0, 1, 1], [], []>} : vector<64x144xbf16>, vector<144x128xbf16>, vector<64x128xf32> -> vector<64x128xf32>
    %204 = arith.truncf %203 : vector<64x128xf32> to vector<64x128xbf16>
    %c23_178 = arith.constant 23 : index
    %c0_179 = arith.constant 0 : index
    %c0_180 = arith.constant 0 : index
    %205 = vector.load %arg7[%c23_178, %c0_179, %c0_180] : memref<25x128x128xbf16, #tpu.memory_space<vmem>>, vector<1x128x128xbf16>
    %206 = vector.shape_cast %205 : vector<1x128x128xbf16> to vector<128x128xbf16>
    %cst_181 = arith.constant dense<0.000000e+00> : vector<64x128xf32>
    %207 = tpu.matmul %204, %206, %cst_181 {dimension_numbers = #tpu.dot_dimension_numbers<[1], [0], [0], [1], [0, 0, 1, 1], [], []>} : vector<64x128xbf16>, vector<128x128xbf16>, vector<64x128xf32> -> vector<64x128xf32>
    %208 = arith.addf %200, %207 : vector<64x128xf32>
    %c24 = arith.constant 24 : index
    %c0_182 = arith.constant 0 : index
    %c0_183 = arith.constant 0 : index
    %209 = vector.load %arg6[%c24, %c0_182, %c0_183] : memref<25x64x144xbf16, #tpu.memory_space<vmem>>, vector<1x64x144xbf16>
    %210 = vector.shape_cast %209 : vector<1x64x144xbf16> to vector<64x144xbf16>
    %cst_184 = arith.constant dense<0.000000e+00> : vector<64x128xf32>
    %211 = tpu.matmul %210, %15, %cst_184 {dimension_numbers = #tpu.dot_dimension_numbers<[1], [0], [0], [1], [0, 0, 1, 1], [], []>} : vector<64x144xbf16>, vector<144x128xbf16>, vector<64x128xf32> -> vector<64x128xf32>
    %212 = arith.truncf %211 : vector<64x128xf32> to vector<64x128xbf16>
    %c24_185 = arith.constant 24 : index
    %c0_186 = arith.constant 0 : index
    %c0_187 = arith.constant 0 : index
    %213 = vector.load %arg7[%c24_185, %c0_186, %c0_187] : memref<25x128x128xbf16, #tpu.memory_space<vmem>>, vector<1x128x128xbf16>
    %214 = vector.shape_cast %213 : vector<1x128x128xbf16> to vector<128x128xbf16>
    %cst_188 = arith.constant dense<0.000000e+00> : vector<64x128xf32>
    %215 = tpu.matmul %212, %214, %cst_188 {dimension_numbers = #tpu.dot_dimension_numbers<[1], [0], [0], [1], [0, 0, 1, 1], [], []>} : vector<64x128xbf16>, vector<128x128xbf16>, vector<64x128xf32> -> vector<64x128xf32>
    %216 = arith.addf %208, %215 : vector<64x128xf32>
    %c0_189 = arith.constant 0 : index
    %c0_190 = arith.constant 0 : index
    %217 = vector.load %arg8[%c0_189, %c0_190] : memref<1x128xf32, #tpu.memory_space<vmem>>, vector<1x128xf32>
    %218 = vector.broadcast %217 : vector<1x128xf32> to vector<64x128xf32>
    %219 = arith.mulf %216, %218 : vector<64x128xf32>
    %c0_191 = arith.constant 0 : index
    %c0_192 = arith.constant 0 : index
    %220 = vector.load %arg9[%c0_191, %c0_192] : memref<1x128xf32, #tpu.memory_space<vmem>>, vector<1x128xf32>
    %221 = vector.broadcast %220 : vector<1x128xf32> to vector<64x128xf32>
    %222 = arith.addf %219, %221 : vector<64x128xf32>
    %cst_193 = arith.constant 0.000000e+00 : f32
    %223 = vector.broadcast %cst_193 : f32 to vector<64x128xf32>
    %224 = arith.maximumf %222, %223 : vector<64x128xf32>
    %225 = arith.truncf %224 : vector<64x128xf32> to vector<64x128xbf16>
    %c0_194 = arith.constant 0 : index
    %c0_195 = arith.constant 0 : index
    %226 = vector.load %arg10[%c0_194, %c0_195] : memref<16x64xbf16, #tpu.memory_space<vmem>>, vector<16x64xbf16>
    %cst_196 = arith.constant dense<0.000000e+00> : vector<16x128xf32>
    %227 = tpu.matmul %226, %225, %cst_196 {dimension_numbers = #tpu.dot_dimension_numbers<[1], [0], [0], [1], [0, 0, 1, 1], [], []>} : vector<16x64xbf16>, vector<64x128xbf16>, vector<16x128xf32> -> vector<16x128xf32>
    %228 = arith.truncf %227 : vector<16x128xf32> to vector<16x128xbf16>
    %c0_197 = arith.constant 0 : index
    %c0_198 = arith.constant 0 : index
    %c0_199 = arith.constant 0 : index
    %229 = vector.load %arg11[%c0_197, %c0_198, %c0_199] : memref<1x16x128xbf16, #tpu.memory_space<vmem>>, vector<1x16x128xbf16>
    %230 = vector.shape_cast %229 : vector<1x16x128xbf16> to vector<16x128xbf16>
    %231 = vector.shape_cast %228 : vector<16x128xbf16> to vector<1x16x128xbf16>
    tpu.vector_store %arg11[%c0_197, %c0_198, %c0_199], %231 {strides = array<i32>} : memref<1x16x128xbf16, #tpu.memory_space<vmem>>, vector<1x16x128xbf16>,
    return
  }
  func.func @transform_0(%arg0: i32) -> (i32, i32, i32) {
    %c0_i32 = arith.constant 0 : i32
    %c0_i32_0 = arith.constant 0 : i32
    %c0_i32_1 = arith.constant 0 : i32
    return %arg0, %c0_i32, %c0_i32_0 : i32, i32, i32
  }
  func.func @transform_1(%arg0: i32) -> (i32, i32) {
    %c0_i32 = arith.constant 0 : i32
    %c0_i32_0 = arith.constant 0 : i32
    %c0_i32_1 = arith.constant 0 : i32
    return %c0_i32, %c0_i32_0 : i32, i32
  }
  func.func @transform_2(%arg0: i32) -> (i32, i32) {
    %c0_i32 = arith.constant 0 : i32
    %c0_i32_0 = arith.constant 0 : i32
    %c0_i32_1 = arith.constant 0 : i32
    return %c0_i32, %c0_i32_0 : i32, i32
  }
  func.func @transform_3(%arg0: i32) -> (i32, i32) {
    %c0_i32 = arith.constant 0 : i32
    %c0_i32_0 = arith.constant 0 : i32
    %c0_i32_1 = arith.constant 0 : i32
    return %c0_i32, %c0_i32_0 : i32, i32
  }
  func.func @transform_4(%arg0: i32) -> (i32, i32) {
    %c0_i32 = arith.constant 0 : i32
    %c0_i32_0 = arith.constant 0 : i32
    %c0_i32_1 = arith.constant 0 : i32
    return %c0_i32, %c0_i32_0 : i32, i32
  }
  func.func @transform_5(%arg0: i32) -> (i32, i32, i32) {
    %c0_i32 = arith.constant 0 : i32
    %c0_i32_0 = arith.constant 0 : i32
    %c0_i32_1 = arith.constant 0 : i32
    %c0_i32_2 = arith.constant 0 : i32
    return %c0_i32, %c0_i32_0, %c0_i32_1 : i32, i32, i32
  }
  func.func @transform_6(%arg0: i32) -> (i32, i32, i32) {
    %c0_i32 = arith.constant 0 : i32
    %c0_i32_0 = arith.constant 0 : i32
    %c0_i32_1 = arith.constant 0 : i32
    %c0_i32_2 = arith.constant 0 : i32
    return %c0_i32, %c0_i32_0, %c0_i32_1 : i32, i32, i32
  }
  func.func @transform_7(%arg0: i32) -> (i32, i32) {
    %c0_i32 = arith.constant 0 : i32
    %c0_i32_0 = arith.constant 0 : i32
    %c0_i32_1 = arith.constant 0 : i32
    return %c0_i32, %c0_i32_0 : i32, i32
  }
  func.func @transform_8(%arg0: i32) -> (i32, i32) {
    %c0_i32 = arith.constant 0 : i32
    %c0_i32_0 = arith.constant 0 : i32
    %c0_i32_1 = arith.constant 0 : i32
    return %c0_i32, %c0_i32_0 : i32, i32
  }
  func.func @transform_9(%arg0: i32) -> (i32, i32) {
    %c0_i32 = arith.constant 0 : i32
    %c0_i32_0 = arith.constant 0 : i32
    %c0_i32_1 = arith.constant 0 : i32
    return %c0_i32, %c0_i32_0 : i32, i32
  }
  func.func @transform_10(%arg0: i32) -> (i32, i32, i32) {
    %c0_i32 = arith.constant 0 : i32
    %c0_i32_0 = arith.constant 0 : i32
    %c0_i32_1 = arith.constant 0 : i32
    return %arg0, %c0_i32, %c0_i32_0 : i32, i32, i32
  }
}

module attributes {stable_mosaic.version = 11 : i64} {
  func.func @_fc_stack_kernel(%arg0: i32, %arg1: memref<2x2048xbf16, #tpu.memory_space<vmem>>, %arg2: memref<2048x512xbf16, #tpu.memory_space<vmem>>, %arg3: memref<1x512xf32, #tpu.memory_space<vmem>>, %arg4: memref<1x512xf32, #tpu.memory_space<vmem>>, %arg5: memref<512x256xbf16, #tpu.memory_space<vmem>>, %arg6: memref<1x256xf32, #tpu.memory_space<vmem>>, %arg7: memref<1x256xf32, #tpu.memory_space<vmem>>, %arg8: memref<256x128xbf16, #tpu.memory_space<vmem>>, %arg9: memref<2x128xf32, #tpu.memory_space<vmem>>) attributes {dimension_semantics = [#tpu.dimension_semantics<parallel>], iteration_bounds = array<i64: 1>, scalar_prefetch = 0 : i64, scratch_operands = 0 : i64, tpu.core_type = #tpu.core_type<tc>, window_params = [{transform_indices = @transform_0, window_bounds = array<i64: 2, 2048>}, {pipeline_mode = #tpu.pipeline_mode<synchronous>, transform_indices = @transform_1, window_bounds = array<i64: 2048, 512>}, {pipeline_mode = #tpu.pipeline_mode<synchronous>, transform_indices = @transform_2, window_bounds = array<i64: 1, 512>}, {pipeline_mode = #tpu.pipeline_mode<synchronous>, transform_indices = @transform_3, window_bounds = array<i64: 1, 512>}, {pipeline_mode = #tpu.pipeline_mode<synchronous>, transform_indices = @transform_4, window_bounds = array<i64: 512, 256>}, {pipeline_mode = #tpu.pipeline_mode<synchronous>, transform_indices = @transform_5, window_bounds = array<i64: 1, 256>}, {pipeline_mode = #tpu.pipeline_mode<synchronous>, transform_indices = @transform_6, window_bounds = array<i64: 1, 256>}, {pipeline_mode = #tpu.pipeline_mode<synchronous>, transform_indices = @transform_7, window_bounds = array<i64: 256, 128>}, {transform_indices = @transform_8, window_bounds = array<i64: 2, 128>}]} {
    %c0 = arith.constant 0 : index
    %c0_0 = arith.constant 0 : index
    %0 = vector.load %arg1[%c0, %c0_0] : memref<2x2048xbf16, #tpu.memory_space<vmem>>, vector<2x2048xbf16>
    %c0_1 = arith.constant 0 : index
    %c0_2 = arith.constant 0 : index
    %1 = vector.load %arg2[%c0_1, %c0_2] : memref<2048x512xbf16, #tpu.memory_space<vmem>>, vector<2048x512xbf16>
    %cst = arith.constant dense<0.000000e+00> : vector<2x512xf32>
    %2 = tpu.matmul %0, %1, %cst {dimension_numbers = #tpu.dot_dimension_numbers<[1], [0], [0], [1], [0, 0, 1, 1], [], []>} : vector<2x2048xbf16>, vector<2048x512xbf16>, vector<2x512xf32> -> vector<2x512xf32>
    %c0_3 = arith.constant 0 : index
    %c0_4 = arith.constant 0 : index
    %3 = vector.load %arg3[%c0_3, %c0_4] : memref<1x512xf32, #tpu.memory_space<vmem>>, vector<1x512xf32>
    %4 = vector.broadcast %3 : vector<1x512xf32> to vector<2x512xf32>
    %5 = arith.mulf %2, %4 : vector<2x512xf32>
    %c0_5 = arith.constant 0 : index
    %c0_6 = arith.constant 0 : index
    %6 = vector.load %arg4[%c0_5, %c0_6] : memref<1x512xf32, #tpu.memory_space<vmem>>, vector<1x512xf32>
    %7 = vector.broadcast %6 : vector<1x512xf32> to vector<2x512xf32>
    %8 = arith.addf %5, %7 : vector<2x512xf32>
    %cst_7 = arith.constant 0.000000e+00 : f32
    %9 = vector.broadcast %cst_7 : f32 to vector<2x512xf32>
    %10 = arith.maximumf %8, %9 : vector<2x512xf32>
    %11 = arith.truncf %10 : vector<2x512xf32> to vector<2x512xbf16>
    %c0_8 = arith.constant 0 : index
    %c0_9 = arith.constant 0 : index
    %12 = vector.load %arg5[%c0_8, %c0_9] : memref<512x256xbf16, #tpu.memory_space<vmem>>, vector<512x256xbf16>
    %cst_10 = arith.constant dense<0.000000e+00> : vector<2x256xf32>
    %13 = tpu.matmul %11, %12, %cst_10 {dimension_numbers = #tpu.dot_dimension_numbers<[1], [0], [0], [1], [0, 0, 1, 1], [], []>} : vector<2x512xbf16>, vector<512x256xbf16>, vector<2x256xf32> -> vector<2x256xf32>
    %c0_11 = arith.constant 0 : index
    %c0_12 = arith.constant 0 : index
    %14 = vector.load %arg6[%c0_11, %c0_12] : memref<1x256xf32, #tpu.memory_space<vmem>>, vector<1x256xf32>
    %15 = vector.broadcast %14 : vector<1x256xf32> to vector<2x256xf32>
    %16 = arith.mulf %13, %15 : vector<2x256xf32>
    %c0_13 = arith.constant 0 : index
    %c0_14 = arith.constant 0 : index
    %17 = vector.load %arg7[%c0_13, %c0_14] : memref<1x256xf32, #tpu.memory_space<vmem>>, vector<1x256xf32>
    %18 = vector.broadcast %17 : vector<1x256xf32> to vector<2x256xf32>
    %19 = arith.addf %16, %18 : vector<2x256xf32>
    %cst_15 = arith.constant 0.000000e+00 : f32
    %20 = vector.broadcast %cst_15 : f32 to vector<2x256xf32>
    %21 = arith.maximumf %19, %20 : vector<2x256xf32>
    %22 = arith.truncf %21 : vector<2x256xf32> to vector<2x256xbf16>
    %c0_16 = arith.constant 0 : index
    %c0_17 = arith.constant 0 : index
    %23 = vector.load %arg8[%c0_16, %c0_17] : memref<256x128xbf16, #tpu.memory_space<vmem>>, vector<256x128xbf16>
    %cst_18 = arith.constant dense<0.000000e+00> : vector<2x128xf32>
    %24 = tpu.matmul %22, %23, %cst_18 {dimension_numbers = #tpu.dot_dimension_numbers<[1], [0], [0], [1], [0, 0, 1, 1], [], []>} : vector<2x256xbf16>, vector<256x128xbf16>, vector<2x128xf32> -> vector<2x128xf32>
    %c0_19 = arith.constant 0 : index
    %c0_20 = arith.constant 0 : index
    %25 = vector.load %arg9[%c0_19, %c0_20] : memref<2x128xf32, #tpu.memory_space<vmem>>, vector<2x128xf32>
    tpu.vector_store %arg9[%c0_19, %c0_20], %24 {strides = array<i32>} : memref<2x128xf32, #tpu.memory_space<vmem>>, vector<2x128xf32>,
    return
  }
  func.func @transform_0(%arg0: i32) -> (i32, i32) {
    %c0_i32 = arith.constant 0 : i32
    %c0_i32_0 = arith.constant 0 : i32
    return %arg0, %c0_i32 : i32, i32
  }
  func.func @transform_1(%arg0: i32) -> (i32, i32) {
    %c0_i32 = arith.constant 0 : i32
    %c0_i32_0 = arith.constant 0 : i32
    %c0_i32_1 = arith.constant 0 : i32
    return %c0_i32, %c0_i32_0 : i32, i32
  }
  func.func @transform_2(%arg0: i32) -> (i32, i32) {
    %c0_i32 = arith.constant 0 : i32
    %c0_i32_0 = arith.constant 0 : i32
    %c0_i32_1 = arith.constant 0 : i32
    return %c0_i32, %c0_i32_0 : i32, i32
  }
  func.func @transform_3(%arg0: i32) -> (i32, i32) {
    %c0_i32 = arith.constant 0 : i32
    %c0_i32_0 = arith.constant 0 : i32
    %c0_i32_1 = arith.constant 0 : i32
    return %c0_i32, %c0_i32_0 : i32, i32
  }
  func.func @transform_4(%arg0: i32) -> (i32, i32) {
    %c0_i32 = arith.constant 0 : i32
    %c0_i32_0 = arith.constant 0 : i32
    %c0_i32_1 = arith.constant 0 : i32
    return %c0_i32, %c0_i32_0 : i32, i32
  }
  func.func @transform_5(%arg0: i32) -> (i32, i32) {
    %c0_i32 = arith.constant 0 : i32
    %c0_i32_0 = arith.constant 0 : i32
    %c0_i32_1 = arith.constant 0 : i32
    return %c0_i32, %c0_i32_0 : i32, i32
  }
  func.func @transform_6(%arg0: i32) -> (i32, i32) {
    %c0_i32 = arith.constant 0 : i32
    %c0_i32_0 = arith.constant 0 : i32
    %c0_i32_1 = arith.constant 0 : i32
    return %c0_i32, %c0_i32_0 : i32, i32
  }
  func.func @transform_7(%arg0: i32) -> (i32, i32) {
    %c0_i32 = arith.constant 0 : i32
    %c0_i32_0 = arith.constant 0 : i32
    %c0_i32_1 = arith.constant 0 : i32
    return %c0_i32, %c0_i32_0 : i32, i32
  }
  func.func @transform_8(%arg0: i32) -> (i32, i32) {
    %c0_i32 = arith.constant 0 : i32
    %c0_i32_0 = arith.constant 0 : i32
    return %arg0, %c0_i32 : i32, i32
  }
}

</mosaic_0001>

<bundles_post_ra>
// kernel: lenet5_forward.3
= control target key start
LH: loop header
LB: loop body
LE: loop exit
PB: predicated region body
PF: predicated region fallthrough
CT: control target
= control target key end

     0   :  { %v6198_v36 = vmov 1966171168   ;;  %v551_v38 = vlaneseq  ;;  %s8196_s0 = inlined_call_operand.vmem [shape: bf16[2,2048], index: 0, kind: input, shape index: {}]   ;;  %s8197_s1 = inlined_call_operand.vmem [shape: bf16[2048,512], index: 1, kind: input, shape index: {}]   ;;  %s8198_s2 = inlined_call_operand.vmem [shape: f32[1,512], index: 2, kind: input, shape index: {}]   ;;  %s8199_s3 = inlined_call_operand.vmem [shape: f32[1,512], index: 3, kind: input, shape index: {}]   ;;  %s8200_s4 = inlined_call_operand.vmem [shape: bf16[512,256], index: 4, kind: input, shape index: {}]   ;;  %s8201_s5 = inlined_call_operand.vmem [shape: f32[1,256], index: 5, kind: input, shape index: {}]   ;;  %s8202_s6 = inlined_call_operand.vmem [shape: f32[1,256], index: 6, kind: input, shape index: {}]   ;;  %s8203_s7 = inlined_call_operand.vmem [shape: bf16[256,128], index: 7, kind: input, shape index: {}]   ;;  %s8204_s8 = inlined_call_operand.hbm [shape: f32[2,128], index: 8, kind: output, shape index: {}]  }
   0x1   :  { %v5292_v0 = vld [vmem:[%s8197_s1 + $0x4] ss:$16 sps:$4 sm:$0xff]   ;;  %v5296_v2 = vld [vmem:[%s8197_s1] ss:$16 sps:$4 sm:$0xff]   ;;  %v549_v37 = vunpack.c.l.s4 %v6198_v36  ;;  %v5415_v36 = vld [vmem:[%s8197_s1 + $0x88] ss:$16 sps:$4 sm:$0xff]  }
   0x2   :  { %v5294_v1 = vld [vmem:[%s8197_s1 + $0x204] ss:$16 sps:$4 sm:$0xff]   ;;  %3221 = vmatprep.subr.bf16.mxu1 %v5292_v0  ;;  %v5297_v3 = vld [vmem:[%s8197_s1 + $0x200] ss:$16 sps:$4 sm:$0xff]   ;;  %v6362_v43 = vshrl.u32 %v551_v38, 7 }
   0x3   :  { %3262 = vmatprep.subr.bf16.mxu0 %v5294_v1  ;;  %v5298_v4 = vld [vmem:[%s8197_s1 + $0x24] ss:$16 sps:$4 sm:$0xff]   ;;  %3222 = vmatpush1.bf16.msra.mxu1 %v5296_v2  ;;  %v5302_v6 = vld [vmem:[%s8197_s1 + $0x20] ss:$16 sps:$4 sm:$0xff]   ;;  %v550_v42 = vunpack.c.0.s8 %v549_v37  ;;  %v5423_v38 = vld [vmem:[%s8197_s1 + $0xac] ss:$16 sps:$4 sm:$0xff]  }
   0x4   :  { %3263 = vmatpush1.bf16.msra.mxu0 %v5297_v3  ;;  %v5300_v5 = vld [vmem:[%s8197_s1 + $0x224] ss:$16 sps:$4 sm:$0xff]   ;;  %3223 = vmatprep.subr.bf16.mxu1 %v5298_v4  ;;  %v5303_v7 = vld [vmem:[%s8197_s1 + $0x220] ss:$16 sps:$4 sm:$0xff]  }
   0x5   :  { %3264 = vmatprep.subr.bf16.mxu0 %v5300_v5  ;;  %v5304_v8 = vld [vmem:[%s8197_s1 + $0x44] ss:$16 sps:$4 sm:$0xff]   ;;  %v5308_v10 = vld [vmem:[%s8197_s1 + $0x40] ss:$16 sps:$4 sm:$0xff]   ;;  %v6380_v49 = vsub.s32 %v550_v42, %v6362_v43  ;;  %v5429_v42 = vld [vmem:[%s8197_s1 + $0xcc] ss:$16 sps:$4 sm:$0xff]  }
   0x6   :  { %v5306_v9 = vld [vmem:[%s8197_s1 + $0x244] ss:$16 sps:$4 sm:$0xff]   ;;  %v5309_v11 = vld [vmem:[%s8197_s1 + $0x240] ss:$16 sps:$4 sm:$0xff]  }
   0x7   :  { %3224 = vmatpush1.bf16.msra.mxu1 %v5302_v6  ;;  %v5310_v12 = vld [vmem:[%s8197_s1 + $0x64] ss:$16 sps:$4 sm:$0xff]   ;;  %v5314_v14 = vld [vmem:[%s8197_s1 + $0x60] ss:$16 sps:$4 sm:$0xff]  }
   0x8   :  { %3265 = vmatpush1.bf16.msra.mxu0 %v5303_v7  ;;  %3225 = vmatprep.subr.bf16.mxu1 %v5304_v8  ;;  %v5312_v13 = vld [vmem:[%s8197_s1 + $0x264] ss:$16 sps:$4 sm:$0xff]   ;;  %v5315_v15 = vld [vmem:[%s8197_s1 + $0x260] ss:$16 sps:$4 sm:$0xff]  }
   0x9   :  { %3266 = vmatprep.subr.bf16.mxu0 %v5306_v9  ;;  %v5316_v16 = vld [vmem:[%s8197_s1 + $0x84] ss:$16 sps:$4 sm:$0xff]   ;;  %v5320_v18 = vld [vmem:[%s8197_s1 + $0x80] ss:$16 sps:$4 sm:$0xff]  }
   0xa   :  { %v5318_v17 = vld [vmem:[%s8197_s1 + $0x284] ss:$16 sps:$4 sm:$0xff]   ;;  %v5321_v19 = vld [vmem:[%s8197_s1 + $0x280] ss:$16 sps:$4 sm:$0xff]  }
   0xb   :  { %3226 = vmatpush1.bf16.msra.mxu1 %v5308_v10  ;;  %v5322_v20 = vld [vmem:[%s8197_s1 + $0xa4] ss:$16 sps:$4 sm:$0xff]   ;;  %v5326_v22 = vld [vmem:[%s8197_s1 + $0xa0] ss:$16 sps:$4 sm:$0xff]  }
   0xc   :  { %3267 = vmatpush1.bf16.msra.mxu0 %v5309_v11  ;;  %3227 = vmatprep.subr.bf16.mxu1 %v5310_v12  ;;  %v5324_v21 = vld [vmem:[%s8197_s1 + $0x2a4] ss:$16 sps:$4 sm:$0xff]   ;;  %v5327_v23 = vld [vmem:[%s8197_s1 + $0x2a0] ss:$16 sps:$4 sm:$0xff]  }
   0xd   :  { %3268 = vmatprep.subr.bf16.mxu0 %v5312_v13  ;;  %v5328_v24 = vld [vmem:[%s8197_s1 + $0xc4] ss:$16 sps:$4 sm:$0xff]   ;;  %v5332_v26 = vld [vmem:[%s8197_s1 + $0xc0] ss:$16 sps:$4 sm:$0xff]  }
   0xe   :  { %v5330_v25 = vld [vmem:[%s8197_s1 + $0x2c4] ss:$16 sps:$4 sm:$0xff]   ;;  %v5333_v27 = vld [vmem:[%s8197_s1 + $0x2c0] ss:$16 sps:$4 sm:$0xff]  }
   0xf   :  { %3228 = vmatpush1.bf16.msra.mxu1 %v5314_v14  ;;  %v5334_v28 = vld [vmem:[%s8197_s1 + $0xe4] ss:$16 sps:$4 sm:$0xff]   ;;  %v5338_v30 = vld [vmem:[%s8197_s1 + $0xe0] ss:$16 sps:$4 sm:$0xff]  }
  0x10   :  { %3269 = vmatpush1.bf16.msra.mxu0 %v5315_v15  ;;  %3229 = vmatprep.subr.bf16.mxu1 %v5316_v16  ;;  %v5336_v29 = vld [vmem:[%s8197_s1 + $0x2e4] ss:$16 sps:$4 sm:$0xff]   ;;  %v5339_v31 = vld [vmem:[%s8197_s1 + $0x2e0] ss:$16 sps:$4 sm:$0xff]   ;;  %v5393_v15 = vld [vmem:[%s8197_s1 + $0xc] ss:$16 sps:$4 sm:$0xff]  }
  0x11   :  { %3270 = vmatprep.subr.bf16.mxu0 %v5318_v17  ;;  %v5340_v32 = vld [vmem:[%s8197_s1 + $0x104] ss:$16 sps:$4 sm:$0xff]   ;;  %v5344_v34 = vld [vmem:[%s8197_s1 + $0x100] ss:$16 sps:$4 sm:$0xff]  }
  0x12   :  { %v5342_v33 = vld [vmem:[%s8197_s1 + $0x304] ss:$16 sps:$4 sm:$0xff]   ;;  %v5345_v35 = vld [vmem:[%s8197_s1 + $0x300] ss:$16 sps:$4 sm:$0xff]  }
  0x13   :  { %3230 = vmatpush1.bf16.msra.mxu1 %v5320_v18  ;;  %v5346_v39 = vld [vmem:[%s8197_s1 + $0x124] ss:$16 sps:$4 sm:$0xff]   ;;  %v5350_v41 = vld [vmem:[%s8197_s1 + $0x120] ss:$16 sps:$4 sm:$0xff]  }
  0x14   :  { %3271 = vmatpush1.bf16.msra.mxu0 %v5321_v19  ;;  %3231 = vmatprep.subr.bf16.mxu1 %v5322_v20  ;;  %v5348_v40 = vld [vmem:[%s8197_s1 + $0x324] ss:$16 sps:$4 sm:$0xff]   ;;  %v5351_v44 = vld [vmem:[%s8197_s1 + $0x320] ss:$16 sps:$4 sm:$0xff]   ;;  %v5391_v19 = vld [vmem:[%s8197_s1 + $0x8] ss:$16 sps:$4 sm:$0xff]  }
  0x15   :  { %3272 = vmatprep.subr.bf16.mxu0 %v5324_v21  ;;  %v5352_v45 = vld [vmem:[%s8197_s1 + $0x144] ss:$16 sps:$4 sm:$0xff]   ;;  %v5356_v47 = vld [vmem:[%s8197_s1 + $0x140] ss:$16 sps:$4 sm:$0xff]   ;;  %v5399_v21 = vld [vmem:[%s8197_s1 + $0x2c] ss:$16 sps:$4 sm:$0xff]  }
  0x16   :  { %v5354_v46 = vld [vmem:[%s8197_s1 + $0x344] ss:$16 sps:$4 sm:$0xff]   ;;  %v5357_v48 = vld [vmem:[%s8197_s1 + $0x340] ss:$16 sps:$4 sm:$0xff]  }
  0x17   :  { %3232 = vmatpush1.bf16.msra.mxu1 %v5326_v22  ;;  %v5358_v50 = vld [vmem:[%s8197_s1 + $0x164] ss:$16 sps:$4 sm:$0xff]   ;;  %v5362_v53 = vld [vmem:[%s8197_s1 + $0x160] ss:$16 sps:$4 sm:$0xff]  }
  0x18   :  { %3273 = vmatpush1.bf16.msra.mxu0 %v5327_v23  ;;  %3233 = vmatprep.subr.bf16.mxu1 %v5328_v24  ;;  %v5360_v51 = vld [vmem:[%s8197_s1 + $0x364] ss:$16 sps:$4 sm:$0xff]   ;;  %v5363_v55 = vld [vmem:[%s8197_s1 + $0x360] ss:$16 sps:$4 sm:$0xff]   ;;  %v5397_v24 = vld [vmem:[%s8197_s1 + $0x28] ss:$16 sps:$4 sm:$0xff]  }
  0x19   :  { %3274 = vmatprep.subr.bf16.mxu0 %v5330_v25  ;;  %v31_v52 = vld [vmem:[%s8196_s0] sm:$0xff] }
  0x1a   :  { %v554_v54 = vrot.slane %v31_v52, %v6380_v49  ;;  %v5364_v56 = vld [vmem:[%s8197_s1 + $0x184] ss:$16 sps:$4 sm:$0xff]   ;;  %v5368_v59 = vld [vmem:[%s8197_s1 + $0x180] ss:$16 sps:$4 sm:$0xff]   ;;  %v547_v5 = vcombine.high %v31_v52, %v31_v52  ;;  %v5441_v52 = vld [vmem:[%s8197_s1 + $0x10c] ss:$16 sps:$4 sm:$0xff]  }
  0x1b   :  { %3234 = vmatpush1.bf16.msra.mxu1 %v5332_v26  ;;  %v5366_v57 = vld [vmem:[%s8197_s1 + $0x384] ss:$16 sps:$4 sm:$0xff]   ;;  %v5369_v61 = vld [vmem:[%s8197_s1 + $0x380] ss:$16 sps:$4 sm:$0xff]   ;;  %v5405_v26 = vld [vmem:[%s8197_s1 + $0x4c] ss:$16 sps:$4 sm:$0xff]  }
  0x1c   :  { %3275 = vmatpush1.bf16.msra.mxu0 %v5333_v27  ;;  %3235 = vmatprep.subr.bf16.mxu1 %v5334_v28  ;;  %v562_v58 = vcombine.high %v554_v54, %v554_v54  ;;  %v5370_v62 = vld [vmem:[%s8197_s1 + $0x1a4] ss:$16 sps:$4 sm:$0xff]   ;;  %v5374_v1 = vld [vmem:[%s8197_s1 + $0x1a0] ss:$16 sps:$4 sm:$0xff]   ;;  %v6445_v10 = vrot.slane %v547_v5, %v6380_v49  ;;  %v6451_v12 = vrot.slane %v554_v54, %v6380_v49  ;;  %v5403_v28 = vld [vmem:[%s8197_s1 + $0x48] ss:$16 sps:$4 sm:$0xff]  }
  0x1d   :  { %3276 = vmatprep.subr.bf16.mxu0 %v5336_v29  ;;  %v5372_v63 = vld [vmem:[%s8197_s1 + $0x3a4] ss:$16 sps:$4 sm:$0xff]   ;;  %v5375_v2 = vld [vmem:[%s8197_s1 + $0x3a0] ss:$16 sps:$4 sm:$0xff]   ;;  %v5439_v54 = vld [vmem:[%s8197_s1 + $0x108] ss:$16 sps:$4 sm:$0xff]  }
  0x1e   :  { %v584_v60 = vrot.slane %v562_v58, %v6380_v49  ;;  %v5376_v3 = vld [vmem:[%s8197_s1 + $0x1c4] ss:$16 sps:$4 sm:$0xff]   ;;  %v5380_v6 = vld [vmem:[%s8197_s1 + $0x1c0] ss:$16 sps:$4 sm:$0xff]   ;;  %v563_v16 = vcombine.high %v6445_v10, %v6445_v10  ;;  %v6469_v18 = vcombine.high %v6451_v12, %v6451_v12  ;;  %v5445_v58 = vld [vmem:[%s8197_s1 + $0x128] ss:$16 sps:$4 sm:$0xff]  }
  0x1f   :  { %3236 = vmatpush1.bf16.msra.mxu1 %v5338_v30  ;;  %v5378_v4 = vld [vmem:[%s8197_s1 + $0x3c4] ss:$16 sps:$4 sm:$0xff]   ;;  %v5381_v7 = vld [vmem:[%s8197_s1 + $0x3c0] ss:$16 sps:$4 sm:$0xff]   ;;  %v5411_v30 = vld [vmem:[%s8197_s1 + $0x6c] ss:$16 sps:$4 sm:$0xff]  }
  0x20   :  { %3277 = vmatpush1.bf16.msra.mxu0 %v5339_v31  ;;  %3237 = vmatprep.subr.bf16.mxu1 %v5340_v32  ;;  %v6417_v0 = vcombine.high %v584_v60, %v584_v60  ;;  %v5382_v8 = vld [vmem:[%s8197_s1 + $0x1e4] ss:$16 sps:$4 sm:$0xff]   ;;  %v5386_v11 = vld [vmem:[%s8197_s1 + $0x1e0] ss:$16 sps:$4 sm:$0xff]   ;;  %v6481_v22 = vrot.slane %v563_v16, %v6380_v49  ;;  %v5409_v32 = vld [vmem:[%s8197_s1 + $0x68] ss:$16 sps:$4 sm:$0xff]  }
  0x21   :  { %3278 = vmatprep.subr.bf16.mxu0 %v5342_v33  ;;  %3253 = vmatprep.mubr.bf16.mxu1 %v584_v60  ;;  %v5384_v9 = vld [vmem:[%s8197_s1 + $0x3e4] ss:$16 sps:$4 sm:$0xff]   ;;  %v5387_v13 = vld [vmem:[%s8197_s1 + $0x3e0] ss:$16 sps:$4 sm:$0xff]   ;;  %v5465_v5 = vld [vmem:[%s8197_s1 + $0x18c] ss:$16 sps:$4 sm:$0xff]  }
  0x22   :  { %3294 = vmatprep.mubr.bf16.mxu0 %v6417_v0  ;;  %v5390_v14 = vld [vmem:[%s8197_s1 + $0x404] ss:$16 sps:$4 sm:$0xff]   ;;  %v5388_v17 = vld [vmem:[%s8197_s1 + $0x400] ss:$16 sps:$4 sm:$0xff]  }
  0x23   :  { %3238 = vmatpush1.bf16.msra.mxu1 %v5344_v34  ;;  %v5396_v20 = vld [vmem:[%s8197_s1 + $0x424] ss:$16 sps:$4 sm:$0xff]   ;;  %v5394_v23 = vld [vmem:[%s8197_s1 + $0x420] ss:$16 sps:$4 sm:$0xff]   ;;  %v5417_v34 = vld [vmem:[%s8197_s1 + $0x8c] ss:$16 sps:$4 sm:$0xff]  }
  0x24   :  { %3279 = vmatpush1.bf16.msra.mxu0 %v5345_v35  ;;  %3239 = vmatprep.subr.bf16.mxu1 %v5346_v39  ;;  %v5402_v25 = vld [vmem:[%s8197_s1 + $0x444] ss:$16 sps:$4 sm:$0xff]   ;;  %v5400_v27 = vld [vmem:[%s8197_s1 + $0x440] ss:$16 sps:$4 sm:$0xff]  }
  0x25   :  { %3280 = vmatprep.subr.bf16.mxu0 %v5348_v40  ;;  %v5408_v29 = vld [vmem:[%s8197_s1 + $0x464] ss:$16 sps:$4 sm:$0xff]   ;;  %v5406_v31 = vld [vmem:[%s8197_s1 + $0x460] ss:$16 sps:$4 sm:$0xff]   ;;  %v5421_v40 = vld [vmem:[%s8197_s1 + $0xa8] ss:$16 sps:$4 sm:$0xff]  }
  0x26   :  { %v5414_v33 = vld [vmem:[%s8197_s1 + $0x484] ss:$16 sps:$4 sm:$0xff]   ;;  %v5412_v35 = vld [vmem:[%s8197_s1 + $0x480] ss:$16 sps:$4 sm:$0xff]  }
  0x27   :  { %3240 = vmatpush1.bf16.msra.mxu1 %v5350_v41  ;;  %v5420_v37 = vld [vmem:[%s8197_s1 + $0x4a4] ss:$16 sps:$4 sm:$0xff]   ;;  %v5418_v39 = vld [vmem:[%s8197_s1 + $0x4a0] ss:$16 sps:$4 sm:$0xff]  }
  0x28   :  { %3281 = vmatpush1.bf16.msra.mxu0 %v5351_v44  ;;  %3241 = vmatprep.subr.bf16.mxu1 %v5352_v45  ;;  %v5426_v41 = vld [vmem:[%s8197_s1 + $0x4c4] ss:$16 sps:$4 sm:$0xff]   ;;  %v5424_v44 = vld [vmem:[%s8197_s1 + $0x4c0] ss:$16 sps:$4 sm:$0xff]   ;;  %v5427_v45 = vld [vmem:[%s8197_s1 + $0xc8] ss:$16 sps:$4 sm:$0xff]  }
  0x29   :  { %3282 = vmatprep.subr.bf16.mxu0 %v5354_v46  ;;  %v5432_v46 = vld [vmem:[%s8197_s1 + $0x4e4] ss:$16 sps:$4 sm:$0xff]   ;;  %v5472_v16 = vld [vmem:[%s8197_s1 + $0x5c0] ss:$16 sps:$4 sm:$0xff]  }
  0x2b   :  { %3242 = vmatpush1.bf16.msra.mxu1 %v5356_v47  ;;  %v5435_v47 = vld [vmem:[%s8197_s1 + $0xec] ss:$16 sps:$4 sm:$0xff]  }
  0x2c   :  { %3283 = vmatpush1.bf16.msra.mxu0 %v5357_v48  ;;  %3243 = vmatprep.subr.bf16.mxu1 %v5358_v50  ;;  %v5430_v48 = vld [vmem:[%s8197_s1 + $0x4e0] ss:$16 sps:$4 sm:$0xff]   ;;  %v5433_v50 = vld [vmem:[%s8197_s1 + $0xe8] ss:$16 sps:$4 sm:$0xff]  }
  0x2d   :  { %3284 = vmatprep.subr.bf16.mxu0 %v5360_v51  ;;  %v5438_v51 = vld [vmem:[%s8197_s1 + $0x504] ss:$16 sps:$4 sm:$0xff]  }
  0x2f   :  { %3244 = vmatpush1.bf16.msra.mxu1 %v5362_v53  ;;  %v5436_v53 = vld [vmem:[%s8197_s1 + $0x500] ss:$16 sps:$4 sm:$0xff]  }
  0x30   :  { %3285 = vmatpush1.bf16.msra.mxu0 %v5363_v55  ;;  %3245 = vmatprep.subr.bf16.mxu1 %v5364_v56  ;;  %v5444_v55 = vld [vmem:[%s8197_s1 + $0x524] ss:$16 sps:$4 sm:$0xff]   ;;  %v5447_v56 = vld [vmem:[%s8197_s1 + $0x12c] ss:$16 sps:$4 sm:$0xff]  }
  0x31   :  { %3286 = vmatprep.subr.bf16.mxu0 %v5366_v57  ;;  %v5442_v57 = vld [vmem:[%s8197_s1 + $0x520] ss:$16 sps:$4 sm:$0xff]  }
  0x33   :  { %3246 = vmatpush1.bf16.msra.mxu1 %v5368_v59  ;;  %v5450_v59 = vld [vmem:[%s8197_s1 + $0x544] ss:$16 sps:$4 sm:$0xff]  }
  0x34   :  { %3287 = vmatpush1.bf16.msra.mxu0 %v5369_v61  ;;  %3247 = vmatprep.subr.bf16.mxu1 %v5370_v62  ;;  %v5448_v61 = vld [vmem:[%s8197_s1 + $0x540] ss:$16 sps:$4 sm:$0xff]   ;;  %v5451_v62 = vld [vmem:[%s8197_s1 + $0x148] ss:$16 sps:$4 sm:$0xff]  }
  0x35   :  { %3288 = vmatprep.subr.bf16.mxu0 %v5372_v63  ;;  %v5456_v63 = vld [vmem:[%s8197_s1 + $0x564] ss:$16 sps:$4 sm:$0xff]  }
  0x37   :  { %3248 = vmatpush1.bf16.msra.mxu1 %v5374_v1  ;;  %v5459_v1 = vld [vmem:[%s8197_s1 + $0x16c] ss:$16 sps:$4 sm:$0xff]  }
  0x38   :  { %3289 = vmatpush1.bf16.msra.mxu0 %v5375_v2  ;;  %3249 = vmatprep.subr.bf16.mxu1 %v5376_v3  ;;  %v5454_v2 = vld [vmem:[%s8197_s1 + $0x560] ss:$16 sps:$4 sm:$0xff]   ;;  %v5457_v3 = vld [vmem:[%s8197_s1 + $0x168] ss:$16 sps:$4 sm:$0xff]  }
  0x39   :  { %3290 = vmatprep.subr.bf16.mxu0 %v5378_v4  ;;  %v5462_v4 = vld [vmem:[%s8197_s1 + $0x584] ss:$16 sps:$4 sm:$0xff]  }
  0x3b   :  { %3250 = vmatpush1.bf16.msra.mxu1 %v5380_v6  ;;  %v5460_v6 = vld [vmem:[%s8197_s1 + $0x580] ss:$16 sps:$4 sm:$0xff]  }
  0x3c   :  { %3291 = vmatpush1.bf16.msra.mxu0 %v5381_v7  ;;  %3251 = vmatprep.subr.bf16.mxu1 %v5382_v8  ;;  %v5463_v7 = vld [vmem:[%s8197_s1 + $0x188] ss:$16 sps:$4 sm:$0xff]   ;;  %v5468_v8 = vld [vmem:[%s8197_s1 + $0x5a4] ss:$16 sps:$4 sm:$0xff]  }
  0x3d   :  { %3292 = vmatprep.subr.bf16.mxu0 %v5384_v9  ;;  %v5471_v9 = vld [vmem:[%s8197_s1 + $0x1ac] ss:$16 sps:$4 sm:$0xff]  }
  0x3f   :  { %3252 = vmatpush1.bf16.msra.mxu1 %v5386_v11  ;;  %v5466_v11 = vld [vmem:[%s8197_s1 + $0x5a0] ss:$16 sps:$4 sm:$0xff]  }
  0x40   :  { %3293 = vmatpush1.bf16.msra.mxu0 %v5387_v13  ;;  %3549 = vmatprep.subr.bf16.mxu1 %v5393_v15  ;;  %v5469_v13 = vld [vmem:[%s8197_s1 + $0x1a8] ss:$16 sps:$4 sm:$0xff]   ;;  %v5477_v15 = vld [vmem:[%s8197_s1 + $0x1cc] ss:$16 sps:$4 sm:$0xff]  }
  0x41   :  { %3303 = vmatprep.subr.bf16.mxu0 %v5390_v14  ;;  %v5474_v14 = vld [vmem:[%s8197_s1 + $0x5c4] ss:$16 sps:$4 sm:$0xff]  }
  0x42   :  { %3254 = vmatmul.mubr.bf16.vlgmr.msra.gmra.mrb[0].mxu1 %v6451_v12 }
  0x43   :  { %3295 = vmatmul.mubr.bf16.vlgmr.msra.gmra.mrb[0].mxu0 %v6469_v18  ;;  %3550 = vmatpush1.bf16.msra.mxu1 %v5391_v19  ;;  %v5480_v19 = vld [vmem:[%s8197_s1 + $0x5e4] ss:$16 sps:$4 sm:$0xff]  }
  0x44   :  { %3304 = vmatpush1.bf16.msra.mxu0 %v5388_v17  ;;  %3551 = vmatprep.subr.bf16.mxu1 %v5399_v21  ;;  %v5475_v17 = vld [vmem:[%s8197_s1 + $0x1c8] ss:$16 sps:$4 sm:$0xff]   ;;  %v5478_v21 = vld [vmem:[%s8197_s1 + $0x5e0] ss:$16 sps:$4 sm:$0xff]  }
  0x45   :  { %3305 = vmatprep.subr.bf16.mxu0 %v5396_v20  ;;  %3335 = vmatprep.mubr.bf16.mxu0 %v6481_v22  ;;  %v5483_v20 = vld [vmem:[%s8197_s1 + $0x1ec] ss:$16 sps:$4 sm:$0xff]  }
  0x46   :  { %3581 = vmatprep.mubr.bf16.mxu1 %v584_v60  ;;  %v5453_v60 = vld [vmem:[%s8197_s1 + $0x14c] ss:$16 sps:$4 sm:$0xff]  }
  0x47   :  { %3552 = vmatpush1.bf16.msra.mxu1 %v5397_v24  ;;  %v5487_v24 = vld [vmem:[%s8197_s1 + $0x604] ss:$16 sps:$4 sm:$0xff]  }
  0x48   :  { %3306 = vmatpush1.bf16.msra.mxu0 %v5394_v23  ;;  %3553 = vmatprep.subr.bf16.mxu1 %v5405_v26  ;;  %v5481_v23 = vld [vmem:[%s8197_s1 + $0x1e8] ss:$16 sps:$4 sm:$0xff]   ;;  %v5485_v26 = vld [vmem:[%s8197_s1 + $0x600] ss:$16 sps:$4 sm:$0xff]  }
  0x49   :  { %3307 = vmatprep.subr.bf16.mxu0 %v5402_v25  ;;  %v5490_v25 = vld [vmem:[%s8197_s1 + $0x20c] ss:$16 sps:$4 sm:$0xff]  }
  0x4b   :  { %3554 = vmatpush1.bf16.msra.mxu1 %v5403_v28  ;;  %v5488_v28 = vld [vmem:[%s8197_s1 + $0x208] ss:$16 sps:$4 sm:$0xff]  }
  0x4c   :  { %3308 = vmatpush1.bf16.msra.mxu0 %v5400_v27  ;;  %3555 = vmatprep.subr.bf16.mxu1 %v5411_v30  ;;  %v6671_v27 = vrot.slane %v6445_v10, %v6380_v49  ;;  %v5496_v30 = vld [vmem:[%s8197_s1 + $0x22c] ss:$16 sps:$4 sm:$0xff]   ;;  %v6684_v10 = vcombine.high %v6481_v22, %v6481_v22 }
  0x4d   :  { %3309 = vmatprep.subr.bf16.mxu0 %v5408_v29  ;;  %v5493_v29 = vld [vmem:[%s8197_s1 + $0x624] ss:$16 sps:$4 sm:$0xff]  }
  0x4f   :  { %3556 = vmatpush1.bf16.msra.mxu1 %v5409_v32  ;;  %v5494_v32 = vld [vmem:[%s8197_s1 + $0x228] ss:$16 sps:$4 sm:$0xff]  }
  0x50   :  { %3310 = vmatpush1.bf16.msra.mxu0 %v5406_v31  ;;  %3557 = vmatprep.subr.bf16.mxu1 %v5417_v34  ;;  %v5491_v31 = vld [vmem:[%s8197_s1 + $0x620] ss:$16 sps:$4 sm:$0xff]  }
  0x51   :  { %3311 = vmatprep.subr.bf16.mxu0 %v5414_v33  ;;  %v5499_v33 = vld [vmem:[%s8197_s1 + $0x644] ss:$16 sps:$4 sm:$0xff]   ;;  %v5497_v34 = vld [vmem:[%s8197_s1 + $0x640] ss:$16 sps:$4 sm:$0xff]  }
  0x53   :  { %3558 = vmatpush1.bf16.msra.mxu1 %v5415_v36  ;;  %v5505_v36 = vld [vmem:[%s8197_s1 + $0x664] ss:$16 sps:$4 sm:$0xff]  }
  0x54   :  { %3312 = vmatpush1.bf16.msra.mxu0 %v5412_v35  ;;  %3559 = vmatprep.subr.bf16.mxu1 %v5423_v38  ;;  %v5500_v35 = vld [vmem:[%s8197_s1 + $0x248] ss:$16 sps:$4 sm:$0xff]  }
  0x55   :  { %3313 = vmatprep.subr.bf16.mxu0 %v5420_v37  ;;  %v5503_v37 = vld [vmem:[%s8197_s1 + $0x660] ss:$16 sps:$4 sm:$0xff]   ;;  %v5506_v38 = vld [vmem:[%s8197_s1 + $0x268] ss:$16 sps:$4 sm:$0xff]  }
  0x57   :  { %3560 = vmatpush1.bf16.msra.mxu1 %v5421_v40  ;;  %v5514_v40 = vld [vmem:[%s8197_s1 + $0x28c] ss:$16 sps:$4 sm:$0xff]  }
  0x58   :  { %3314 = vmatpush1.bf16.msra.mxu0 %v5418_v39  ;;  %3561 = vmatprep.subr.bf16.mxu1 %v5429_v42  ;;  %v5511_v39 = vld [vmem:[%s8197_s1 + $0x684] ss:$16 sps:$4 sm:$0xff]   ;;  %v5512_v42 = vld [vmem:[%s8197_s1 + $0x288] ss:$16 sps:$4 sm:$0xff]  }
  0x59   :  { %3315 = vmatprep.subr.bf16.mxu0 %v5426_v41  ;;  %v5509_v41 = vld [vmem:[%s8197_s1 + $0x680] ss:$16 sps:$4 sm:$0xff]  }
  0x5b   :  { %3562 = vmatpush1.bf16.msra.mxu1 %v5427_v45  ;;  %v5520_v45 = vld [vmem:[%s8197_s1 + $0x2ac] ss:$16 sps:$4 sm:$0xff]  }
  0x5c   :  { %3316 = vmatpush1.bf16.msra.mxu0 %v5424_v44  ;;  %3563 = vmatprep.subr.bf16.mxu1 %v5435_v47  ;;  %v5517_v44 = vld [vmem:[%s8197_s1 + $0x6a4] ss:$16 sps:$4 sm:$0xff]   ;;  %v5518_v47 = vld [vmem:[%s8197_s1 + $0x2a8] ss:$16 sps:$4 sm:$0xff]  }
  0x5d   :  { %3317 = vmatprep.subr.bf16.mxu0 %v5432_v46  ;;  %v5515_v46 = vld [vmem:[%s8197_s1 + $0x6a0] ss:$16 sps:$4 sm:$0xff]  }
  0x5f   :  { %3564 = vmatpush1.bf16.msra.mxu1 %v5433_v50  ;;  %v5526_v50 = vld [vmem:[%s8197_s1 + $0x2cc] ss:$16 sps:$4 sm:$0xff]  }
  0x60   :  { %3318 = vmatpush1.bf16.msra.mxu0 %v5430_v48  ;;  %3565 = vmatprep.subr.bf16.mxu1 %v5441_v52  ;;  %v5523_v48 = vld [vmem:[%s8197_s1 + $0x6c4] ss:$16 sps:$4 sm:$0xff]   ;;  %v5524_v52 = vld [vmem:[%s8197_s1 + $0x2c8] ss:$16 sps:$4 sm:$0xff]  }
  0x61   :  { %3319 = vmatprep.subr.bf16.mxu0 %v5438_v51  ;;  %v5521_v51 = vld [vmem:[%s8197_s1 + $0x6c0] ss:$16 sps:$4 sm:$0xff]  }
  0x63   :  { %3566 = vmatpush1.bf16.msra.mxu1 %v5439_v54  ;;  %v5532_v54 = vld [vmem:[%s8197_s1 + $0x2ec] ss:$16 sps:$4 sm:$0xff]  }
  0x64   :  { %3320 = vmatpush1.bf16.msra.mxu0 %v5436_v53  ;;  %3567 = vmatprep.subr.bf16.mxu1 %v5447_v56  ;;  %v5529_v53 = vld [vmem:[%s8197_s1 + $0x6e4] ss:$16 sps:$4 sm:$0xff]   ;;  %v5530_v56 = vld [vmem:[%s8197_s1 + $0x2e8] ss:$16 sps:$4 sm:$0xff]  }
  0x65   :  { %3321 = vmatprep.subr.bf16.mxu0 %v5444_v55  ;;  %v5527_v55 = vld [vmem:[%s8197_s1 + $0x6e0] ss:$16 sps:$4 sm:$0xff]  }
  0x67   :  { %3568 = vmatpush1.bf16.msra.mxu1 %v5445_v58  ;;  %v5538_v58 = vld [vmem:[%s8197_s1 + $0x30c] ss:$16 sps:$4 sm:$0xff]  }
  0x68   :  { %3322 = vmatpush1.bf16.msra.mxu0 %v5442_v57  ;;  %3569 = vmatprep.subr.bf16.mxu1 %v5453_v60  ;;  %v5535_v57 = vld [vmem:[%s8197_s1 + $0x704] ss:$16 sps:$4 sm:$0xff]   ;;  %v5536_v60 = vld [vmem:[%s8197_s1 + $0x308] ss:$16 sps:$4 sm:$0xff]  }
  0x69   :  { %3323 = vmatprep.subr.bf16.mxu0 %v5450_v59  ;;  %v5533_v59 = vld [vmem:[%s8197_s1 + $0x700] ss:$16 sps:$4 sm:$0xff]  }
  0x6b   :  { %3570 = vmatpush1.bf16.msra.mxu1 %v5451_v62  ;;  %v5544_v62 = vld [vmem:[%s8197_s1 + $0x32c] ss:$16 sps:$4 sm:$0xff]  }
  0x6c   :  { %3324 = vmatpush1.bf16.msra.mxu0 %v5448_v61  ;;  %3571 = vmatprep.subr.bf16.mxu1 %v5459_v1  ;;  %v5541_v61 = vld [vmem:[%s8197_s1 + $0x724] ss:$16 sps:$4 sm:$0xff]   ;;  %v5542_v1 = vld [vmem:[%s8197_s1 + $0x328] ss:$16 sps:$4 sm:$0xff]  }
  0x6d   :  { %3325 = vmatprep.subr.bf16.mxu0 %v5456_v63  ;;  %v5539_v63 = vld [vmem:[%s8197_s1 + $0x720] ss:$16 sps:$4 sm:$0xff]  }
  0x6f   :  { %3572 = vmatpush1.bf16.msra.mxu1 %v5457_v3  ;;  %v5550_v3 = vld [vmem:[%s8197_s1 + $0x34c] ss:$16 sps:$4 sm:$0xff]  }
  0x70   :  { %3326 = vmatpush1.bf16.msra.mxu0 %v5454_v2  ;;  %3573 = vmatprep.subr.bf16.mxu1 %v5465_v5  ;;  %v5547_v2 = vld [vmem:[%s8197_s1 + $0x744] ss:$16 sps:$4 sm:$0xff]   ;;  %v5548_v5 = vld [vmem:[%s8197_s1 + $0x348] ss:$16 sps:$4 sm:$0xff]  }
  0x71   :  { %3327 = vmatprep.subr.bf16.mxu0 %v5462_v4  ;;  %v5545_v4 = vld [vmem:[%s8197_s1 + $0x740] ss:$16 sps:$4 sm:$0xff]  }
  0x73   :  { %3574 = vmatpush1.bf16.msra.mxu1 %v5463_v7  ;;  %v5556_v7 = vld [vmem:[%s8197_s1 + $0x36c] ss:$16 sps:$4 sm:$0xff]  }
  0x74   :  { %3328 = vmatpush1.bf16.msra.mxu0 %v5460_v6  ;;  %3575 = vmatprep.subr.bf16.mxu1 %v5471_v9  ;;  %v5553_v6 = vld [vmem:[%s8197_s1 + $0x764] ss:$16 sps:$4 sm:$0xff]   ;;  %v5554_v9 = vld [vmem:[%s8197_s1 + $0x368] ss:$16 sps:$4 sm:$0xff]  }
  0x75   :  { %3329 = vmatprep.subr.bf16.mxu0 %v5468_v8  ;;  %v5551_v8 = vld [vmem:[%s8197_s1 + $0x760] ss:$16 sps:$4 sm:$0xff]  }
  0x77   :  { %3576 = vmatpush1.bf16.msra.mxu1 %v5469_v13  ;;  %v5562_v13 = vld [vmem:[%s8197_s1 + $0x38c] ss:$16 sps:$4 sm:$0xff]  }
  0x78   :  { %3330 = vmatpush1.bf16.msra.mxu0 %v5466_v11  ;;  %3577 = vmatprep.subr.bf16.mxu1 %v5477_v15  ;;  %v5559_v11 = vld [vmem:[%s8197_s1 + $0x784] ss:$16 sps:$4 sm:$0xff]   ;;  %v5560_v15 = vld [vmem:[%s8197_s1 + $0x388] ss:$16 sps:$4 sm:$0xff]  }
  0x79   :  { %3331 = vmatprep.subr.bf16.mxu0 %v5474_v14  ;;  %v5557_v14 = vld [vmem:[%s8197_s1 + $0x780] ss:$16 sps:$4 sm:$0xff]  }
  0x7b   :  { %3578 = vmatpush1.bf16.msra.mxu1 %v5475_v17  ;;  %v5568_v17 = vld [vmem:[%s8197_s1 + $0x3ac] ss:$16 sps:$4 sm:$0xff]  }
  0x7c   :  { %3332 = vmatpush1.bf16.msra.mxu0 %v5472_v16  ;;  %3579 = vmatprep.subr.bf16.mxu1 %v5483_v20  ;;  %v5565_v16 = vld [vmem:[%s8197_s1 + $0x7a4] ss:$16 sps:$4 sm:$0xff]   ;;  %v5566_v20 = vld [vmem:[%s8197_s1 + $0x3a8] ss:$16 sps:$4 sm:$0xff]  }
  0x7d   :  { %3333 = vmatprep.subr.bf16.mxu0 %v5480_v19  ;;  %v5563_v19 = vld [vmem:[%s8197_s1 + $0x7a0] ss:$16 sps:$4 sm:$0xff]  }
  0x7f   :  { %3580 = vmatpush1.bf16.msra.mxu1 %v5481_v23  ;;  %v5574_v23 = vld [vmem:[%s8197_s1 + $0x3cc] ss:$16 sps:$4 sm:$0xff]  }
  0x80   :  { %3334 = vmatpush1.bf16.msra.mxu0 %v5478_v21  ;;  %3590 = vmatprep.subr.bf16.mxu1 %v5490_v25  ;;  %v5571_v21 = vld [vmem:[%s8197_s1 + $0x7c4] ss:$16 sps:$4 sm:$0xff]   ;;  %v5569_v25 = vld [vmem:[%s8197_s1 + $0x7c0] ss:$16 sps:$4 sm:$0xff]  }
  0x81   :  { %3344 = vmatprep.subr.bf16.mxu0 %v5487_v24  ;;  %v6849_v24 = vld [vmem:[%s8196_s0 + $0x8] sm:$0xff] }
  0x82   :  { %3582 = vmatmul.mubr.bf16.vlgmr.msra.gmra.mrb[4].mxu1 %v6451_v12  ;;  %v5502_v12 = vld [vmem:[%s8197_s1 + $0x24c] ss:$16 sps:$4 sm:$0xff]  }
  0x83   :  { %3336 = vmatmul.mubr.bf16.vlgmr.msra.gmra.mrb[0].mxu0 %v6671_v27  ;;  %3591 = vmatpush1.bf16.msra.mxu1 %v5488_v28  ;;  %v5577_v28 = vld [vmem:[%s8197_s1 + $0x7e4] ss:$16 sps:$4 sm:$0xff]  }
  0x84   :  { %3345 = vmatpush1.bf16.msra.mxu0 %v5485_v26  ;;  %3592 = vmatprep.subr.bf16.mxu1 %v5496_v30  ;;  %v5572_v26 = vld [vmem:[%s8197_s1 + $0x3c8] ss:$16 sps:$4 sm:$0xff]   ;;  %v6865_v30 = vrot.slane %v6849_v24, %v6380_v49 }
  0x85   :  { %3346 = vmatprep.subr.bf16.mxu0 %v5493_v29  ;;  %3376 = vmatprep.mubr.bf16.mxu0 %v6684_v10  ;;  %v5580_v29 = vld [vmem:[%s8197_s1 + $0x3ec] ss:$16 sps:$4 sm:$0xff]  }
  0x86   :  { %3622 = vmatprep.mubr.bf16.mxu1 %v6417_v0  ;;  %v5508_v0 = vld [vmem:[%s8197_s1 + $0x26c] ss:$16 sps:$4 sm:$0xff]  }
  0x87   :  { %3593 = vmatpush1.bf16.msra.mxu1 %v5494_v32  ;;  %v5578_v32 = vld [vmem:[%s8197_s1 + $0x3e8] ss:$16 sps:$4 sm:$0xff]  }
  0x88   :  { %3347 = vmatpush1.bf16.msra.mxu0 %v5491_v31  ;;  %3594 = vmatprep.subr.bf16.mxu1 %v5502_v12  ;;  %v5575_v31 = vld [vmem:[%s8197_s1 + $0x7e0] ss:$16 sps:$4 sm:$0xff]   ;;  %v5586_v12 = vld [vmem:[%s8197_s1 + $0x40c] ss:$16 sps:$4 sm:$0xff]  }
  0x89   :  { %3348 = vmatprep.subr.bf16.mxu0 %v5499_v33  ;;  %v5583_v33 = vld [vmem:[%s8197_s1 + $0x804] ss:$16 sps:$4 sm:$0xff]  }
  0x8b   :  { %3595 = vmatpush1.bf16.msra.mxu1 %v5500_v35  ;;  %v6883_v35 = vcombine.high %v6671_v27, %v6671_v27 }
  0x8c   :  { %3349 = vmatpush1.bf16.msra.mxu0 %v5497_v34  ;;  %3596 = vmatprep.subr.bf16.mxu1 %v5508_v0  ;;  %v611_v34 = vcombine.high %v6865_v30, %v6865_v30  ;;  %v5584_v0 = vld [vmem:[%s8197_s1 + $0x408] ss:$16 sps:$4 sm:$0xff]  }
  0x8d   :  { %3350 = vmatprep.subr.bf16.mxu0 %v5505_v36  ;;  %v5581_v36 = vld [vmem:[%s8197_s1 + $0x800] ss:$16 sps:$4 sm:$0xff]  }
  0x8f   :  { %3597 = vmatpush1.bf16.msra.mxu1 %v5506_v38  ;;  %v5592_v38 = vld [vmem:[%s8197_s1 + $0x42c] ss:$16 sps:$4 sm:$0xff]  }
  0x90   :  { %3351 = vmatpush1.bf16.msra.mxu0 %v5503_v37  ;;  %3598 = vmatprep.subr.bf16.mxu1 %v5514_v40  ;;  %v5589_v37 = vld [vmem:[%s8197_s1 + $0x824] ss:$16 sps:$4 sm:$0xff]   ;;  %v5587_v40 = vld [vmem:[%s8197_s1 + $0x820] ss:$16 sps:$4 sm:$0xff]  }
  0x91   :  { %3352 = vmatprep.subr.bf16.mxu0 %v5511_v39  ;;  %v6898_v39 = vrot.slane %v611_v34, %v6380_v49  ;;  %v5670_v34 = vld [vmem:[%s8197_s1 + $0x5cc] ss:$16 sps:$4 sm:$0xff]  }
  0x93   :  { %3599 = vmatpush1.bf16.msra.mxu1 %v5512_v42  ;;  %v5595_v42 = vld [vmem:[%s8197_s1 + $0x844] ss:$16 sps:$4 sm:$0xff]  }
  0x94   :  { %3353 = vmatpush1.bf16.msra.mxu0 %v5509_v41  ;;  %3600 = vmatprep.subr.bf16.mxu1 %v5520_v45  ;;  %v5590_v41 = vld [vmem:[%s8197_s1 + $0x428] ss:$16 sps:$4 sm:$0xff]  }
  0x95   :  { %3354 = vmatprep.subr.bf16.mxu0 %v5517_v44  ;;  %v5593_v44 = vld [vmem:[%s8197_s1 + $0x840] ss:$16 sps:$4 sm:$0xff]   ;;  %v5596_v45 = vld [vmem:[%s8197_s1 + $0x448] ss:$16 sps:$4 sm:$0xff]  }
  0x97   :  { %3601 = vmatpush1.bf16.msra.mxu1 %v5518_v47  ;;  %v5599_v47 = vld [vmem:[%s8197_s1 + $0x860] ss:$16 sps:$4 sm:$0xff]  }
  0x98   :  { %3355 = vmatpush1.bf16.msra.mxu0 %v5515_v46  ;;  %3602 = vmatprep.subr.bf16.mxu1 %v5526_v50  ;;  %v5601_v46 = vld [vmem:[%s8197_s1 + $0x864] ss:$16 sps:$4 sm:$0xff]  }
  0x99   :  { %3356 = vmatprep.subr.bf16.mxu0 %v5523_v48  ;;  %v5602_v48 = vld [vmem:[%s8197_s1 + $0x468] ss:$16 sps:$4 sm:$0xff]   ;;  %v5607_v50 = vld [vmem:[%s8197_s1 + $0x884] ss:$16 sps:$4 sm:$0xff]  }
  0x9b   :  { %3603 = vmatpush1.bf16.msra.mxu1 %v5524_v52  ;;  %v5605_v52 = vld [vmem:[%s8197_s1 + $0x880] ss:$16 sps:$4 sm:$0xff]  }
  0x9c   :  { %3357 = vmatpush1.bf16.msra.mxu0 %v5521_v51  ;;  %3604 = vmatprep.subr.bf16.mxu1 %v5532_v54  ;;  %v5610_v51 = vld [vmem:[%s8197_s1 + $0x48c] ss:$16 sps:$4 sm:$0xff]   ;;  %v5613_v54 = vld [vmem:[%s8197_s1 + $0x8a4] ss:$16 sps:$4 sm:$0xff]  }
  0x9d   :  { %3358 = vmatprep.subr.bf16.mxu0 %v5529_v53  ;;  %v5608_v53 = vld [vmem:[%s8197_s1 + $0x488] ss:$16 sps:$4 sm:$0xff]  }
  0x9f   :  { %3605 = vmatpush1.bf16.msra.mxu1 %v5530_v56  ;;  %v5611_v56 = vld [vmem:[%s8197_s1 + $0x8a0] ss:$16 sps:$4 sm:$0xff]  }
  0xa0   :  { %3359 = vmatpush1.bf16.msra.mxu0 %v5527_v55  ;;  %3606 = vmatprep.subr.bf16.mxu1 %v5538_v58  ;;  %v5616_v55 = vld [vmem:[%s8197_s1 + $0x4ac] ss:$16 sps:$4 sm:$0xff]   ;;  %v5619_v58 = vld [vmem:[%s8197_s1 + $0x8c4] ss:$16 sps:$4 sm:$0xff]  }
  0xa1   :  { %3360 = vmatprep.subr.bf16.mxu0 %v5535_v57  ;;  %v5614_v57 = vld [vmem:[%s8197_s1 + $0x4a8] ss:$16 sps:$4 sm:$0xff]  }
  0xa3   :  { %3607 = vmatpush1.bf16.msra.mxu1 %v5536_v60  ;;  %v5617_v60 = vld [vmem:[%s8197_s1 + $0x8c0] ss:$16 sps:$4 sm:$0xff]  }
  0xa4   :  { %3361 = vmatpush1.bf16.msra.mxu0 %v5533_v59  ;;  %3608 = vmatprep.subr.bf16.mxu1 %v5544_v62  ;;  %v5622_v59 = vld [vmem:[%s8197_s1 + $0x4cc] ss:$16 sps:$4 sm:$0xff]   ;;  %v5625_v62 = vld [vmem:[%s8197_s1 + $0x8e4] ss:$16 sps:$4 sm:$0xff]  }
  0xa5   :  { %3362 = vmatprep.subr.bf16.mxu0 %v5541_v61  ;;  %v5620_v61 = vld [vmem:[%s8197_s1 + $0x4c8] ss:$16 sps:$4 sm:$0xff]  }
  0xa7   :  { %3609 = vmatpush1.bf16.msra.mxu1 %v5542_v1  ;;  %v5623_v1 = vld [vmem:[%s8197_s1 + $0x8e0] ss:$16 sps:$4 sm:$0xff]  }
  0xa8   :  { %3363 = vmatpush1.bf16.msra.mxu0 %v5539_v63  ;;  %3610 = vmatprep.subr.bf16.mxu1 %v5550_v3  ;;  %v5628_v63 = vld [vmem:[%s8197_s1 + $0x4ec] ss:$16 sps:$4 sm:$0xff]   ;;  %v5631_v3 = vld [vmem:[%s8197_s1 + $0x904] ss:$16 sps:$4 sm:$0xff]  }
  0xa9   :  { %3364 = vmatprep.subr.bf16.mxu0 %v5547_v2  ;;  %v5626_v2 = vld [vmem:[%s8197_s1 + $0x4e8] ss:$16 sps:$4 sm:$0xff]  }
  0xab   :  { %3611 = vmatpush1.bf16.msra.mxu1 %v5548_v5  ;;  %v5629_v5 = vld [vmem:[%s8197_s1 + $0x900] ss:$16 sps:$4 sm:$0xff]  }
  0xac   :  { %3365 = vmatpush1.bf16.msra.mxu0 %v5545_v4  ;;  %3612 = vmatprep.subr.bf16.mxu1 %v5556_v7  ;;  %v5634_v4 = vld [vmem:[%s8197_s1 + $0x50c] ss:$16 sps:$4 sm:$0xff]   ;;  %v5637_v7 = vld [vmem:[%s8197_s1 + $0x924] ss:$16 sps:$4 sm:$0xff]  }
  0xad   :  { %3366 = vmatprep.subr.bf16.mxu0 %v5553_v6  ;;  %v5632_v6 = vld [vmem:[%s8197_s1 + $0x508] ss:$16 sps:$4 sm:$0xff]  }
  0xaf   :  { %3613 = vmatpush1.bf16.msra.mxu1 %v5554_v9  ;;  %v5635_v9 = vld [vmem:[%s8197_s1 + $0x920] ss:$16 sps:$4 sm:$0xff]  }
  0xb0   :  { %3367 = vmatpush1.bf16.msra.mxu0 %v5551_v8  ;;  %3614 = vmatprep.subr.bf16.mxu1 %v5562_v13  ;;  %v5640_v8 = vld [vmem:[%s8197_s1 + $0x52c] ss:$16 sps:$4 sm:$0xff]   ;;  %v5643_v13 = vld [vmem:[%s8197_s1 + $0x944] ss:$16 sps:$4 sm:$0xff]  }
  0xb1   :  { %3368 = vmatprep.subr.bf16.mxu0 %v5559_v11  ;;  %v5638_v11 = vld [vmem:[%s8197_s1 + $0x528] ss:$16 sps:$4 sm:$0xff]  }
  0xb3   :  { %3615 = vmatpush1.bf16.msra.mxu1 %v5560_v15  ;;  %v5641_v15 = vld [vmem:[%s8197_s1 + $0x940] ss:$16 sps:$4 sm:$0xff]  }
  0xb4   :  { %3369 = vmatpush1.bf16.msra.mxu0 %v5557_v14  ;;  %3616 = vmatprep.subr.bf16.mxu1 %v5568_v17  ;;  %v5646_v14 = vld [vmem:[%s8197_s1 + $0x54c] ss:$16 sps:$4 sm:$0xff]   ;;  %v5649_v17 = vld [vmem:[%s8197_s1 + $0x964] ss:$16 sps:$4 sm:$0xff]  }
  0xb5   :  { %3370 = vmatprep.subr.bf16.mxu0 %v5565_v16  ;;  %v5644_v16 = vld [vmem:[%s8197_s1 + $0x548] ss:$16 sps:$4 sm:$0xff]  }
  0xb7   :  { %3617 = vmatpush1.bf16.msra.mxu1 %v5566_v20  ;;  %v5647_v20 = vld [vmem:[%s8197_s1 + $0x960] ss:$16 sps:$4 sm:$0xff]  }
  0xb8   :  { %3371 = vmatpush1.bf16.msra.mxu0 %v5563_v19  ;;  %3618 = vmatprep.subr.bf16.mxu1 %v5574_v23  ;;  %v5652_v19 = vld [vmem:[%s8197_s1 + $0x56c] ss:$16 sps:$4 sm:$0xff]   ;;  %v5655_v23 = vld [vmem:[%s8197_s1 + $0x984] ss:$16 sps:$4 sm:$0xff]  }
  0xb9   :  { %3372 = vmatprep.subr.bf16.mxu0 %v5571_v21  ;;  %v5650_v21 = vld [vmem:[%s8197_s1 + $0x568] ss:$16 sps:$4 sm:$0xff]  }
  0xbb   :  { %3619 = vmatpush1.bf16.msra.mxu1 %v5572_v26  ;;  %v5653_v26 = vld [vmem:[%s8197_s1 + $0x980] ss:$16 sps:$4 sm:$0xff]  }
  0xbc   :  { %3373 = vmatpush1.bf16.msra.mxu0 %v5569_v25  ;;  %3620 = vmatprep.subr.bf16.mxu1 %v5580_v29  ;;  %v5658_v25 = vld [vmem:[%s8197_s1 + $0x58c] ss:$16 sps:$4 sm:$0xff]   ;;  %v5661_v29 = vld [vmem:[%s8197_s1 + $0x9a4] ss:$16 sps:$4 sm:$0xff]  }
  0xbd   :  { %3374 = vmatprep.subr.bf16.mxu0 %v5577_v28  ;;  %v5656_v28 = vld [vmem:[%s8197_s1 + $0x588] ss:$16 sps:$4 sm:$0xff]  }
  0xbf   :  { %3621 = vmatpush1.bf16.msra.mxu1 %v5578_v32  ;;  %v5659_v32 = vld [vmem:[%s8197_s1 + $0x9a0] ss:$16 sps:$4 sm:$0xff]  }
  0xc0   :  { %3375 = vmatpush1.bf16.msra.mxu0 %v5575_v31  ;;  %3631 = vmatprep.subr.bf16.mxu1 %v5586_v12  ;;  %v5664_v31 = vld [vmem:[%s8197_s1 + $0x5ac] ss:$16 sps:$4 sm:$0xff]   ;;  %v5667_v12 = vld [vmem:[%s8197_s1 + $0x9c4] ss:$16 sps:$4 sm:$0xff]  }
  0xc1   :  { %3385 = vmatprep.subr.bf16.mxu0 %v5583_v33  ;;  %v5662_v33 = vld [vmem:[%s8197_s1 + $0x5a8] ss:$16 sps:$4 sm:$0xff]  }
  0xc2   :  { %3623 = vmatmul.mubr.bf16.vlgmr.msra.gmra.mrb[4].mxu1 %v6469_v18  ;;  %v5598_v18 = vld [vmem:[%s8197_s1 + $0x44c] ss:$16 sps:$4 sm:$0xff]  }
  0xc3   :  { %3377 = vmatmul.mubr.bf16.vlgmr.msra.gmra.mrb[0].mxu0 %v6883_v35  ;;  %3632 = vmatpush1.bf16.msra.mxu1 %v5584_v0  ;;  %v5668_v0 = vld [vmem:[%s8197_s1 + $0x5c8] ss:$16 sps:$4 sm:$0xff]  }
  0xc4   :  { %3386 = vmatpush1.bf16.msra.mxu0 %v5581_v36  ;;  %3633 = vmatprep.subr.bf16.mxu1 %v5592_v38  ;;  %v5665_v36 = vld [vmem:[%s8197_s1 + $0x9c0] ss:$16 sps:$4 sm:$0xff]   ;;  %v5676_v38 = vld [vmem:[%s8197_s1 + $0x5ec] ss:$16 sps:$4 sm:$0xff]  }
  0xc5   :  { %3387 = vmatprep.subr.bf16.mxu0 %v5589_v37  ;;  %3417 = vmatprep.mubr.bf16.mxu0 %v6898_v39  ;;  %v5673_v37 = vld [vmem:[%s8197_s1 + $0x9e4] ss:$16 sps:$4 sm:$0xff]  }
  0xc6   :  { %3663 = vmatprep.mubr.bf16.mxu1 %v6481_v22  ;;  %v5604_v22 = vld [vmem:[%s8197_s1 + $0x46c] ss:$16 sps:$4 sm:$0xff]  }
  0xc7   :  { %3634 = vmatpush1.bf16.msra.mxu1 %v5590_v41  ;;  %v5674_v41 = vld [vmem:[%s8197_s1 + $0x5e8] ss:$16 sps:$4 sm:$0xff]  }
  0xc8   :  { %3388 = vmatpush1.bf16.msra.mxu0 %v5587_v40  ;;  %3635 = vmatprep.subr.bf16.mxu1 %v5598_v18  ;;  %v5671_v40 = vld [vmem:[%s8197_s1 + $0x9e0] ss:$16 sps:$4 sm:$0xff]   ;;  %v5682_v18 = vld [vmem:[%s8197_s1 + $0x60c] ss:$16 sps:$4 sm:$0xff]  }
  0xc9   :  { %3389 = vmatprep.subr.bf16.mxu0 %v5595_v42  ;;  %v5679_v42 = vld [vmem:[%s8197_s1 + $0xa04] ss:$16 sps:$4 sm:$0xff]  }
  0xcb   :  { %3636 = vmatpush1.bf16.msra.mxu1 %v5596_v45  ;;  %v5677_v45 = vld [vmem:[%s8197_s1 + $0xa00] ss:$16 sps:$4 sm:$0xff]  }
  0xcc   :  { %3390 = vmatpush1.bf16.msra.mxu0 %v5593_v44  ;;  %3637 = vmatprep.subr.bf16.mxu1 %v5604_v22  ;;  %v7086_v44 = vrot.slane %v6865_v30, %v6380_v49  ;;  %v5685_v22 = vld [vmem:[%s8197_s1 + $0xa24] ss:$16 sps:$4 sm:$0xff]   ;;  %v5688_v30 = vld [vmem:[%s8197_s1 + $0x62c] ss:$16 sps:$4 sm:$0xff]  }
  0xcd   :  { %3391 = vmatprep.subr.bf16.mxu0 %v5601_v46  ;;  %v5680_v46 = vld [vmem:[%s8197_s1 + $0x608] ss:$16 sps:$4 sm:$0xff]  }
  0xcf   :  { %3638 = vmatpush1.bf16.msra.mxu1 %v5602_v48  ;;  %v5683_v48 = vld [vmem:[%s8197_s1 + $0xa20] ss:$16 sps:$4 sm:$0xff]  }
  0xd0   :  { %3392 = vmatpush1.bf16.msra.mxu0 %v5599_v47  ;;  %3639 = vmatprep.subr.bf16.mxu1 %v5610_v51  ;;  %v7102_v47 = vcombine.high %v6898_v39, %v6898_v39  ;;  %v5691_v51 = vld [vmem:[%s8197_s1 + $0xa44] ss:$16 sps:$4 sm:$0xff]  }
  0xd1   :  { %3393 = vmatprep.subr.bf16.mxu0 %v5607_v50  ;;  %v5686_v50 = vld [vmem:[%s8197_s1 + $0x628] ss:$16 sps:$4 sm:$0xff]  }
  0xd3   :  { %3640 = vmatpush1.bf16.msra.mxu1 %v5608_v53  ;;  %v5692_v53 = vld [vmem:[%s8197_s1 + $0x648] ss:$16 sps:$4 sm:$0xff]  }
  0xd4   :  { %3394 = vmatpush1.bf16.msra.mxu0 %v5605_v52  ;;  %3641 = vmatprep.subr.bf16.mxu1 %v5616_v55  ;;  %v5689_v52 = vld [vmem:[%s8197_s1 + $0xa40] ss:$16 sps:$4 sm:$0xff]  }
  0xd5   :  { %3395 = vmatprep.subr.bf16.mxu0 %v5613_v54  ;;  %v5697_v54 = vld [vmem:[%s8197_s1 + $0xa64] ss:$16 sps:$4 sm:$0xff]   ;;  %v5695_v55 = vld [vmem:[%s8197_s1 + $0xa60] ss:$16 sps:$4 sm:$0xff]  }
  0xd7   :  { %3642 = vmatpush1.bf16.msra.mxu1 %v5614_v57  ;;  %v5703_v57 = vld [vmem:[%s8197_s1 + $0xa84] ss:$16 sps:$4 sm:$0xff]  }
  0xd8   :  { %3396 = vmatpush1.bf16.msra.mxu0 %v5611_v56  ;;  %3643 = vmatprep.subr.bf16.mxu1 %v5622_v59  ;;  %v5698_v56 = vld [vmem:[%s8197_s1 + $0x668] ss:$16 sps:$4 sm:$0xff]   ;;  %v5701_v59 = vld [vmem:[%s8197_s1 + $0xa80] ss:$16 sps:$4 sm:$0xff]  }
  0xd9   :  { %3397 = vmatprep.subr.bf16.mxu0 %v5619_v58  ;;  %v5706_v58 = vld [vmem:[%s8197_s1 + $0x68c] ss:$16 sps:$4 sm:$0xff]  }
  0xdb   :  { %3644 = vmatpush1.bf16.msra.mxu1 %v5620_v61  ;;  %v5709_v61 = vld [vmem:[%s8197_s1 + $0xaa4] ss:$16 sps:$4 sm:$0xff]  }
  0xdc   :  { %3398 = vmatpush1.bf16.msra.mxu0 %v5617_v60  ;;  %3645 = vmatprep.subr.bf16.mxu1 %v5628_v63  ;;  %v5704_v60 = vld [vmem:[%s8197_s1 + $0x688] ss:$16 sps:$4 sm:$0xff]   ;;  %v5707_v63 = vld [vmem:[%s8197_s1 + $0xaa0] ss:$16 sps:$4 sm:$0xff]  }
  0xdd   :  { %3399 = vmatprep.subr.bf16.mxu0 %v5625_v62  ;;  %v5712_v62 = vld [vmem:[%s8197_s1 + $0x6ac] ss:$16 sps:$4 sm:$0xff]  }
  0xdf   :  { %3646 = vmatpush1.bf16.msra.mxu1 %v5626_v2  ;;  %v5715_v2 = vld [vmem:[%s8197_s1 + $0xac4] ss:$16 sps:$4 sm:$0xff]  }
  0xe0   :  { %3400 = vmatpush1.bf16.msra.mxu0 %v5623_v1  ;;  %3647 = vmatprep.subr.bf16.mxu1 %v5634_v4  ;;  %v5710_v1 = vld [vmem:[%s8197_s1 + $0x6a8] ss:$16 sps:$4 sm:$0xff]  }
  0xe1   :  { %3401 = vmatprep.subr.bf16.mxu0 %v5631_v3  ;;  %v5718_v3 = vld [vmem:[%s8197_s1 + $0x6cc] ss:$16 sps:$4 sm:$0xff]  }
  0xe3   :  { %3648 = vmatpush1.bf16.msra.mxu1 %v5632_v6 }
  0xe4   :  { %3402 = vmatpush1.bf16.msra.mxu0 %v5629_v5  ;;  %3649 = vmatprep.subr.bf16.mxu1 %v5640_v8  ;;  %v5716_v8 = vld [vmem:[%s8197_s1 + $0x6c8] ss:$16 sps:$4 sm:$0xff]  }
  0xe5   :  { %3403 = vmatprep.subr.bf16.mxu0 %v5637_v7  ;;  %v5713_v7 = vld [vmem:[%s8197_s1 + $0xac0] ss:$16 sps:$4 sm:$0xff]  }
  0xe7   :  { %3650 = vmatpush1.bf16.msra.mxu1 %v5638_v11  ;;  %v5721_v11 = vld [vmem:[%s8197_s1 + $0xae4] ss:$16 sps:$4 sm:$0xff]  }
  0xe8   :  { %3404 = vmatpush1.bf16.msra.mxu0 %v5635_v9  ;;  %3651 = vmatprep.subr.bf16.mxu1 %v5646_v14  ;;  %v5719_v14 = vld [vmem:[%s8197_s1 + $0xae0] ss:$16 sps:$4 sm:$0xff]  }
  0xe9   :  { %3405 = vmatprep.subr.bf16.mxu0 %v5643_v13  ;;  %v5724_v13 = vld [vmem:[%s8197_s1 + $0x6ec] ss:$16 sps:$4 sm:$0xff]  }
  0xeb   :  { %3652 = vmatpush1.bf16.msra.mxu1 %v5644_v16  ;;  %v5727_v16 = vld [vmem:[%s8197_s1 + $0xb04] ss:$16 sps:$4 sm:$0xff]  }
  0xec   :  { %3406 = vmatpush1.bf16.msra.mxu0 %v5641_v15  ;;  %3653 = vmatprep.subr.bf16.mxu1 %v5652_v19  ;;  %v5722_v15 = vld [vmem:[%s8197_s1 + $0x6e8] ss:$16 sps:$4 sm:$0xff]   ;;  %v5725_v19 = vld [vmem:[%s8197_s1 + $0xb00] ss:$16 sps:$4 sm:$0xff]  }
  0xed   :  { %3407 = vmatprep.subr.bf16.mxu0 %v5649_v17  ;;  %v5730_v17 = vld [vmem:[%s8197_s1 + $0x70c] ss:$16 sps:$4 sm:$0xff]  }
  0xef   :  { %3654 = vmatpush1.bf16.msra.mxu1 %v5650_v21  ;;  %v5733_v21 = vld [vmem:[%s8197_s1 + $0xb24] ss:$16 sps:$4 sm:$0xff]  }
  0xf0   :  { %3408 = vmatpush1.bf16.msra.mxu0 %v5647_v20  ;;  %3655 = vmatprep.subr.bf16.mxu1 %v5658_v25  ;;  %v5728_v20 = vld [vmem:[%s8197_s1 + $0x708] ss:$16 sps:$4 sm:$0xff]   ;;  %v5731_v25 = vld [vmem:[%s8197_s1 + $0xb20] ss:$16 sps:$4 sm:$0xff]  }
  0xf1   :  { %3409 = vmatprep.subr.bf16.mxu0 %v5655_v23  ;;  %v5736_v23 = vld [vmem:[%s8197_s1 + $0x72c] ss:$16 sps:$4 sm:$0xff]  }
  0xf3   :  { %3656 = vmatpush1.bf16.msra.mxu1 %v5656_v28  ;;  %v5739_v28 = vld [vmem:[%s8197_s1 + $0xb44] ss:$16 sps:$4 sm:$0xff]  }
  0xf4   :  { %3410 = vmatpush1.bf16.msra.mxu0 %v5653_v26  ;;  %3657 = vmatprep.subr.bf16.mxu1 %v5664_v31  ;;  %v5734_v26 = vld [vmem:[%s8197_s1 + $0x728] ss:$16 sps:$4 sm:$0xff]   ;;  %v5737_v31 = vld [vmem:[%s8197_s1 + $0xb40] ss:$16 sps:$4 sm:$0xff]  }
  0xf5   :  { %3411 = vmatprep.subr.bf16.mxu0 %v5661_v29  ;;  %v5742_v29 = vld [vmem:[%s8197_s1 + $0x74c] ss:$16 sps:$4 sm:$0xff]  }
  0xf7   :  { %3658 = vmatpush1.bf16.msra.mxu1 %v5662_v33  ;;  %v5745_v33 = vld [vmem:[%s8197_s1 + $0xb64] ss:$16 sps:$4 sm:$0xff]  }
  0xf8   :  { %3412 = vmatpush1.bf16.msra.mxu0 %v5659_v32  ;;  %3659 = vmatprep.subr.bf16.mxu1 %v5670_v34  ;;  %v5740_v32 = vld [vmem:[%s8197_s1 + $0x748] ss:$16 sps:$4 sm:$0xff]   ;;  %v5743_v34 = vld [vmem:[%s8197_s1 + $0xb60] ss:$16 sps:$4 sm:$0xff]  }
  0xf9   :  { %3413 = vmatprep.subr.bf16.mxu0 %v5667_v12  ;;  %v5748_v12 = vld [vmem:[%s8197_s1 + $0x76c] ss:$16 sps:$4 sm:$0xff]  }
  0xfb   :  { %3660 = vmatpush1.bf16.msra.mxu1 %v5668_v0  ;;  %v5751_v0 = vld [vmem:[%s8197_s1 + $0xb84] ss:$16 sps:$4 sm:$0xff]  }
  0xfc   :  { %3414 = vmatpush1.bf16.msra.mxu0 %v5665_v36  ;;  %3661 = vmatprep.subr.bf16.mxu1 %v5676_v38  ;;  %v5746_v36 = vld [vmem:[%s8197_s1 + $0x768] ss:$16 sps:$4 sm:$0xff]   ;;  %v5749_v38 = vld [vmem:[%s8197_s1 + $0xb80] ss:$16 sps:$4 sm:$0xff]  }
  0xfd   :  { %3415 = vmatprep.subr.bf16.mxu0 %v5673_v37  ;;  %v5754_v37 = vld [vmem:[%s8197_s1 + $0x78c] ss:$16 sps:$4 sm:$0xff]  }
  0xff   :  { %3662 = vmatpush1.bf16.msra.mxu1 %v5674_v41  ;;  %v5757_v41 = vld [vmem:[%s8197_s1 + $0xba4] ss:$16 sps:$4 sm:$0xff]  }
 0x100   :  { %3416 = vmatpush1.bf16.msra.mxu0 %v5671_v40  ;;  %3672 = vmatprep.subr.bf16.mxu1 %v5682_v18  ;;  %v5752_v40 = vld [vmem:[%s8197_s1 + $0x788] ss:$16 sps:$4 sm:$0xff]   ;;  %v5755_v18 = vld [vmem:[%s8197_s1 + $0xba0] ss:$16 sps:$4 sm:$0xff]  }
 0x101   :  { %3426 = vmatprep.subr.bf16.mxu0 %v5679_v42  ;;  %v5760_v42 = vld [vmem:[%s8197_s1 + $0x7ac] ss:$16 sps:$4 sm:$0xff]  }
 0x102   :  { %3664 = vmatmul.mubr.bf16.vlgmr.msra.gmra.mrb[4].mxu1 %v6671_v27  ;;  %v5694_v27 = vld [vmem:[%s8197_s1 + $0x64c] ss:$16 sps:$4 sm:$0xff]  }
 0x103   :  { %3418 = vmatmul.mubr.bf16.vlgmr.msra.gmra.mrb[0].mxu0 %v7086_v44  ;;  %3673 = vmatpush1.bf16.msra.mxu1 %v5680_v46  ;;  %v5763_v46 = vld [vmem:[%s8197_s1 + $0xbc4] ss:$16 sps:$4 sm:$0xff]  }
 0x104   :  { %3427 = vmatpush1.bf16.msra.mxu0 %v5677_v45  ;;  %3674 = vmatprep.subr.bf16.mxu1 %v5688_v30  ;;  %v5758_v45 = vld [vmem:[%s8197_s1 + $0x7a8] ss:$16 sps:$4 sm:$0xff]   ;;  %v596_v30 = vcombine.high %v6849_v24, %v6849_v24  ;;  %v5772_v24 = vld [vmem:[%s8197_s1 + $0x7ec] ss:$16 sps:$4 sm:$0xff]  }
 0x105   :  { %3428 = vmatprep.subr.bf16.mxu0 %v5685_v22  ;;  %3458 = vmatprep.mubr.bf16.mxu0 %v7102_v47  ;;  %v5766_v22 = vld [vmem:[%s8197_s1 + $0x7cc] ss:$16 sps:$4 sm:$0xff]  }
 0x106   :  { %3704 = vmatprep.mubr.bf16.mxu1 %v6684_v10  ;;  %v5700_v10 = vld [vmem:[%s8197_s1 + $0x66c] ss:$16 sps:$4 sm:$0xff]  }
 0x107   :  { %3675 = vmatpush1.bf16.msra.mxu1 %v5686_v50  ;;  %v5764_v50 = vld [vmem:[%s8197_s1 + $0x7c8] ss:$16 sps:$4 sm:$0xff]  }
 0x108   :  { %3429 = vmatpush1.bf16.msra.mxu0 %v5683_v48  ;;  %3676 = vmatprep.subr.bf16.mxu1 %v5694_v27  ;;  %v5761_v48 = vld [vmem:[%s8197_s1 + $0xbc0] ss:$16 sps:$4 sm:$0xff]   ;;  %v7283_v27 = vrot.slane %v596_v30, %v6380_v49 }
 0x109   :  { %3430 = vmatprep.subr.bf16.mxu0 %v5691_v51  ;;  %v5769_v51 = vld [vmem:[%s8197_s1 + $0xbe4] ss:$16 sps:$4 sm:$0xff]  }
 0x10b   :  { %3677 = vmatpush1.bf16.msra.mxu1 %v5692_v53  ;;  %v5770_v53 = vld [vmem:[%s8197_s1 + $0x7e8] ss:$16 sps:$4 sm:$0xff]  }
 0x10c   :  { %3431 = vmatpush1.bf16.msra.mxu0 %v5689_v52  ;;  %3678 = vmatprep.subr.bf16.mxu1 %v5700_v10  ;;  %v5767_v52 = vld [vmem:[%s8197_s1 + $0xbe0] ss:$16 sps:$4 sm:$0xff]   ;;  %v5778_v10 = vld [vmem:[%s8197_s1 + $0x80c] ss:$16 sps:$4 sm:$0xff]  }
 0x10d   :  { %3432 = vmatprep.subr.bf16.mxu0 %v5697_v54  ;;  %v5775_v54 = vld [vmem:[%s8197_s1 + $0xc04] ss:$16 sps:$4 sm:$0xff]  }
 0x10f   :  { %3679 = vmatpush1.bf16.msra.mxu1 %v5698_v56  ;;  %v5776_v56 = vld [vmem:[%s8197_s1 + $0x808] ss:$16 sps:$4 sm:$0xff]  }
 0x110   :  { %3433 = vmatpush1.bf16.msra.mxu0 %v5695_v55  ;;  %3680 = vmatprep.subr.bf16.mxu1 %v5706_v58  ;;  %v5773_v55 = vld [vmem:[%s8197_s1 + $0xc00] ss:$16 sps:$4 sm:$0xff]   ;;  %v7307_v58 = vcombine.high %v7086_v44, %v7086_v44 }
 0x111   :  { %3434 = vmatprep.subr.bf16.mxu0 %v5703_v57  ;;  %v612_v57 = vcombine.high %v7283_v27, %v7283_v27 }
 0x113   :  { %3681 = vmatpush1.bf16.msra.mxu1 %v5704_v60  ;;  %v5784_v60 = vld [vmem:[%s8197_s1 + $0x82c] ss:$16 sps:$4 sm:$0xff]  }
 0x114   :  { %3435 = vmatpush1.bf16.msra.mxu0 %v5701_v59  ;;  %3682 = vmatprep.subr.bf16.mxu1 %v5712_v62  ;;  %v5781_v59 = vld [vmem:[%s8197_s1 + $0xc24] ss:$16 sps:$4 sm:$0xff]   ;;  %v5782_v62 = vld [vmem:[%s8197_s1 + $0x828] ss:$16 sps:$4 sm:$0xff]  }
 0x115   :  { %3436 = vmatprep.subr.bf16.mxu0 %v5709_v61  ;;  %v7168_v4 = vpop.f32.mrb[0].mxu1  ;;  %v5779_v61 = vld [vmem:[%s8197_s1 + $0xc20] ss:$16 sps:$4 sm:$0xff]  }
 0x116   :  { %v7170_v5 = vpop.f32.mrb[1].mxu1 }
 0x117   :  { %v3259_v6 = vpop.f32.mrb[2].mxu1  ;;  %3683 = vmatpush1.bf16.msra.mxu1 %v5710_v1  ;;  %v5787_v1 = vld [vmem:[%s8197_s1 + $0xc44] ss:$16 sps:$4 sm:$0xff]  }
 0x118   :  { %3437 = vmatpush1.bf16.msra.mxu0 %v5707_v63  ;;  %v3260_v9 = vpop.f32.mrb[3].mxu1  ;;  %3684 = vmatprep.subr.bf16.mxu1 %v5718_v3  ;;  %v7322_v63 = vrot.slane %v612_v57, %v6380_v49  ;;  %v5785_v3 = vld [vmem:[%s8197_s1 + $0xc40] ss:$16 sps:$4 sm:$0xff]   ;;  %v5793_v6 = vld [vmem:[%s8197_s1 + $0xc64] ss:$16 sps:$4 sm:$0xff]  }
 0x119   :  { %3438 = vmatprep.subr.bf16.mxu0 %v5715_v2  ;;  %v5790_v2 = vld [vmem:[%s8197_s1 + $0x84c] ss:$16 sps:$4 sm:$0xff]   ;;  %v5799_v9 = vld [vmem:[%s8197_s1 + $0xc84] ss:$16 sps:$4 sm:$0xff]  }
 0x11b   :  { %3685 = vmatpush1.bf16.msra.mxu1 %v5716_v8  ;;  %v5791_v8 = vld [vmem:[%s8197_s1 + $0xc60] ss:$16 sps:$4 sm:$0xff]  }
 0x11c   :  { %3439 = vmatpush1.bf16.msra.mxu0 %v5713_v7  ;;  %3686 = vmatprep.subr.bf16.mxu1 %v5724_v13  ;;  %v5796_v7 = vld [vmem:[%s8197_s1 + $0x86c] ss:$16 sps:$4 sm:$0xff]   ;;  %v5797_v13 = vld [vmem:[%s8197_s1 + $0xc80] ss:$16 sps:$4 sm:$0xff]  }
 0x11d   :  { %3440 = vmatprep.subr.bf16.mxu0 %v5721_v11  ;;  %v5802_v11 = vld [vmem:[%s8197_s1 + $0x88c] ss:$16 sps:$4 sm:$0xff]  }
 0x11f   :  { %3687 = vmatpush1.bf16.msra.mxu1 %v5722_v15  ;;  %v5805_v15 = vld [vmem:[%s8197_s1 + $0xca4] ss:$16 sps:$4 sm:$0xff]  }
 0x120   :  { %3441 = vmatpush1.bf16.msra.mxu0 %v5719_v14  ;;  %3688 = vmatprep.subr.bf16.mxu1 %v5730_v17  ;;  %v5800_v14 = vld [vmem:[%s8197_s1 + $0x888] ss:$16 sps:$4 sm:$0xff]   ;;  %v5803_v17 = vld [vmem:[%s8197_s1 + $0xca0] ss:$16 sps:$4 sm:$0xff]  }
 0x121   :  { %3442 = vmatprep.subr.bf16.mxu0 %v5727_v16  ;;  %v5808_v16 = vld [vmem:[%s8197_s1 + $0x8ac] ss:$16 sps:$4 sm:$0xff]  }
 0x123   :  { %3689 = vmatpush1.bf16.msra.mxu1 %v5728_v20  ;;  %v5811_v20 = vld [vmem:[%s8197_s1 + $0xcc4] ss:$16 sps:$4 sm:$0xff]  }
 0x124   :  { %3443 = vmatpush1.bf16.msra.mxu0 %v5725_v19  ;;  %3690 = vmatprep.subr.bf16.mxu1 %v5736_v23  ;;  %v5806_v19 = vld [vmem:[%s8197_s1 + $0x8a8] ss:$16 sps:$4 sm:$0xff]   ;;  %v5809_v23 = vld [vmem:[%s8197_s1 + $0xcc0] ss:$16 sps:$4 sm:$0xff]  }
 0x125   :  { %3444 = vmatprep.subr.bf16.mxu0 %v5733_v21  ;;  %v5814_v21 = vld [vmem:[%s8197_s1 + $0x8cc] ss:$16 sps:$4 sm:$0xff]  }
 0x127   :  { %3691 = vmatpush1.bf16.msra.mxu1 %v5734_v26  ;;  %v5817_v26 = vld [vmem:[%s8197_s1 + $0xce4] ss:$16 sps:$4 sm:$0xff]  }
 0x128   :  { %3445 = vmatpush1.bf16.msra.mxu0 %v5731_v25  ;;  %3692 = vmatprep.subr.bf16.mxu1 %v5742_v29  ;;  %v5812_v25 = vld [vmem:[%s8197_s1 + $0x8c8] ss:$16 sps:$4 sm:$0xff]   ;;  %v5815_v29 = vld [vmem:[%s8197_s1 + $0xce0] ss:$16 sps:$4 sm:$0xff]  }
 0x129   :  { %3446 = vmatprep.subr.bf16.mxu0 %v5739_v28  ;;  %v5820_v28 = vld [vmem:[%s8197_s1 + $0x8ec] ss:$16 sps:$4 sm:$0xff]  }
 0x12b   :  { %3693 = vmatpush1.bf16.msra.mxu1 %v5740_v32  ;;  %v5823_v32 = vld [vmem:[%s8197_s1 + $0xd04] ss:$16 sps:$4 sm:$0xff]  }
 0x12c   :  { %3447 = vmatpush1.bf16.msra.mxu0 %v5737_v31  ;;  %3694 = vmatprep.subr.bf16.mxu1 %v5748_v12  ;;  %v5818_v31 = vld [vmem:[%s8197_s1 + $0x8e8] ss:$16 sps:$4 sm:$0xff]   ;;  %v5821_v12 = vld [vmem:[%s8197_s1 + $0xd00] ss:$16 sps:$4 sm:$0xff]  }
 0x12d   :  { %3448 = vmatprep.subr.bf16.mxu0 %v5745_v33  ;;  %v5826_v33 = vld [vmem:[%s8197_s1 + $0x90c] ss:$16 sps:$4 sm:$0xff]  }
 0x12f   :  { %3695 = vmatpush1.bf16.msra.mxu1 %v5746_v36  ;;  %v5829_v36 = vld [vmem:[%s8197_s1 + $0xd24] ss:$16 sps:$4 sm:$0xff]  }
 0x130   :  { %3449 = vmatpush1.bf16.msra.mxu0 %v5743_v34  ;;  %3696 = vmatprep.subr.bf16.mxu1 %v5754_v37  ;;  %v5824_v34 = vld [vmem:[%s8197_s1 + $0x908] ss:$16 sps:$4 sm:$0xff]   ;;  %v5827_v37 = vld [vmem:[%s8197_s1 + $0xd20] ss:$16 sps:$4 sm:$0xff]  }
 0x131   :  { %3450 = vmatprep.subr.bf16.mxu0 %v5751_v0  ;;  %v5832_v0 = vld [vmem:[%s8197_s1 + $0x92c] ss:$16 sps:$4 sm:$0xff]  }
 0x133   :  { %3697 = vmatpush1.bf16.msra.mxu1 %v5752_v40  ;;  %v5835_v40 = vld [vmem:[%s8197_s1 + $0xd44] ss:$16 sps:$4 sm:$0xff]  }
 0x134   :  { %3451 = vmatpush1.bf16.msra.mxu0 %v5749_v38  ;;  %3698 = vmatprep.subr.bf16.mxu1 %v5760_v42  ;;  %v5830_v38 = vld [vmem:[%s8197_s1 + $0x928] ss:$16 sps:$4 sm:$0xff]  }
 0x135   :  { %3452 = vmatprep.subr.bf16.mxu0 %v5757_v41  ;;  %v5838_v41 = vld [vmem:[%s8197_s1 + $0x94c] ss:$16 sps:$4 sm:$0xff]  }
 0x137   :  { %3699 = vmatpush1.bf16.msra.mxu1 %v5758_v45 }
 0x138   :  { %3453 = vmatpush1.bf16.msra.mxu0 %v5755_v18  ;;  %3700 = vmatprep.subr.bf16.mxu1 %v5766_v22 }
 0x139   :  { %3454 = vmatprep.subr.bf16.mxu0 %v5763_v46 }
 0x13b   :  { %3701 = vmatpush1.bf16.msra.mxu1 %v5764_v50 }
 0x13c   :  { %3455 = vmatpush1.bf16.msra.mxu0 %v5761_v48  ;;  %3702 = vmatprep.subr.bf16.mxu1 %v5772_v24 }
 0x13d   :  { %3456 = vmatprep.subr.bf16.mxu0 %v5769_v51 }
 0x13f   :  { %3703 = vmatpush1.bf16.msra.mxu1 %v5770_v53 }
 0x140   :  { %3457 = vmatpush1.bf16.msra.mxu0 %v5767_v52  ;;  %3713 = vmatprep.subr.bf16.mxu1 %v5778_v10 }
 0x141   :  { %3467 = vmatprep.subr.bf16.mxu0 %v5775_v54 }
 0x142   :  { %3705 = vmatmul.mubr.bf16.vlgmr.msra.gmra.mrb[4].mxu1 %v6883_v35  ;;  %v5788_v35 = vld [vmem:[%s8197_s1 + $0x848] ss:$16 sps:$4 sm:$0xff]  }
 0x143   :  { %3459 = vmatmul.mubr.bf16.vlgmr.msra.gmra.mrb[0].mxu0 %v7307_v58  ;;  %3714 = vmatpush1.bf16.msra.mxu1 %v5776_v56 }
 0x144   :  { %3468 = vmatpush1.bf16.msra.mxu0 %v5773_v55  ;;  %3715 = vmatprep.subr.bf16.mxu1 %v5784_v60 }
 0x145   :  { %3469 = vmatprep.subr.bf16.mxu0 %v5781_v59  ;;  %3499 = vmatprep.mubr.bf16.mxu0 %v7322_v63 }
 0x146   :  { %3745 = vmatprep.mubr.bf16.mxu1 %v6898_v39  ;;  %v5794_v39 = vld [vmem:[%s8197_s1 + $0x868] ss:$16 sps:$4 sm:$0xff]  }
 0x147   :  { %3716 = vmatpush1.bf16.msra.mxu1 %v5782_v62 }
 0x148   :  { %3470 = vmatpush1.bf16.msra.mxu0 %v5779_v61  ;;  %3717 = vmatprep.subr.bf16.mxu1 %v5790_v2 }
 0x149   :  { %3471 = vmatprep.subr.bf16.mxu0 %v5787_v1 }
 0x14b   :  { %3718 = vmatpush1.bf16.msra.mxu1 %v5788_v35 }
 0x14c   :  { %3472 = vmatpush1.bf16.msra.mxu0 %v5785_v3  ;;  %3719 = vmatprep.subr.bf16.mxu1 %v5796_v7 }
 0x14d   :  { %3473 = vmatprep.subr.bf16.mxu0 %v5793_v6 }
 0x14f   :  { %3720 = vmatpush1.bf16.msra.mxu1 %v5794_v39 }
 0x150   :  { %3474 = vmatpush1.bf16.msra.mxu0 %v5791_v8  ;;  %3721 = vmatprep.subr.bf16.mxu1 %v5802_v11 }
 0x151   :  { %3475 = vmatprep.subr.bf16.mxu0 %v5799_v9 }
 0x153   :  { %3722 = vmatpush1.bf16.msra.mxu1 %v5800_v14 }
 0x154   :  { %3476 = vmatpush1.bf16.msra.mxu0 %v5797_v13  ;;  %3723 = vmatprep.subr.bf16.mxu1 %v5808_v16 }
 0x155   :  { %3477 = vmatprep.subr.bf16.mxu0 %v5805_v15 }
 0x157   :  { %3724 = vmatpush1.bf16.msra.mxu1 %v5806_v19 }
 0x158   :  { %3478 = vmatpush1.bf16.msra.mxu0 %v5803_v17  ;;  %3725 = vmatprep.subr.bf16.mxu1 %v5814_v21 }
 0x159   :  { %3479 = vmatprep.subr.bf16.mxu0 %v5811_v20 }
 0x15b   :  { %3726 = vmatpush1.bf16.msra.mxu1 %v5812_v25 }
 0x15c   :  { %3480 = vmatpush1.bf16.msra.mxu0 %v5809_v23  ;;  %3727 = vmatprep.subr.bf16.mxu1 %v5820_v28 }
 0x15d   :  { %3481 = vmatprep.subr.bf16.mxu0 %v5817_v26 }
 0x15f   :  { %3728 = vmatpush1.bf16.msra.mxu1 %v5818_v31 }
 0x160   :  { %3482 = vmatpush1.bf16.msra.mxu0 %v5815_v29  ;;  %3729 = vmatprep.subr.bf16.mxu1 %v5826_v33 }
 0x161   :  { %3483 = vmatprep.subr.bf16.mxu0 %v5823_v32 }
 0x163   :  { %3730 = vmatpush1.bf16.msra.mxu1 %v5824_v34 }
 0x164   :  { %3484 = vmatpush1.bf16.msra.mxu0 %v5821_v12  ;;  %3731 = vmatprep.subr.bf16.mxu1 %v5832_v0 }
 0x165   :  { %3485 = vmatprep.subr.bf16.mxu0 %v5829_v36 }
 0x166   :  { %13 = vsyncpa [#allocation3], 0  ;;  %v5833_v42 = vld [vmem:[%s8197_s1 + $0xd40] ss:$16 sps:$4 sm:$0xff]   ;;  %v5836_v18 = vld [vmem:[%s8197_s1 + $0x948] ss:$16 sps:$4 sm:$0xff]   ;;  %v7504_v35 = vrot.slane %v7283_v27, %v6380_v49  ;;  %v7520_v27 = vcombine.high %v7322_v63, %v7322_v63 }
 0x167   :  { %3732 = vmatpush1.bf16.msra.mxu1 %v5830_v38  ;;  %v5841_v45 = vld [vmem:[%s8197_s1 + $0xd64] ss:$16 sps:$4 sm:$0xff]   ;;  %v5844_v46 = vld [vmem:[%s8197_s1 + $0x96c] ss:$16 sps:$4 sm:$0xff]   ;;  %v5839_v22 = vld [vmem:[%s8197_s1 + $0xd60] ss:$16 sps:$4 sm:$0xff]  }
 0x168   :  { %3486 = vmatpush1.bf16.msra.mxu0 %v5827_v37  ;;  %3733 = vmatprep.subr.bf16.mxu1 %v5838_v41  ;;  %v5842_v30 = vld [vmem:[%s8197_s1 + $0x968] ss:$16 sps:$4 sm:$0xff]   ;;  %v5847_v48 = vld [vmem:[%s8197_s1 + $0xd84] ss:$16 sps:$4 sm:$0xff]   ;;  %v5850_v50 = vld [vmem:[%s8197_s1 + $0x98c] ss:$16 sps:$4 sm:$0xff]  }
 0x169   :  { %3487 = vmatprep.subr.bf16.mxu0 %v5835_v40  ;;  %v5845_v51 = vld [vmem:[%s8197_s1 + $0xd80] ss:$16 sps:$4 sm:$0xff]   ;;  %v5848_v24 = vld [vmem:[%s8197_s1 + $0x988] ss:$16 sps:$4 sm:$0xff]   ;;  %v5853_v52 = vld [vmem:[%s8197_s1 + $0xda4] ss:$16 sps:$4 sm:$0xff]  }
 0x16a   :  { %v5856_v53 = vld [vmem:[%s8197_s1 + $0x9ac] ss:$16 sps:$4 sm:$0xff]   ;;  %v5851_v54 = vld [vmem:[%s8197_s1 + $0xda0] ss:$16 sps:$4 sm:$0xff]   ;;  %v5854_v10 = vld [vmem:[%s8197_s1 + $0x9a8] ss:$16 sps:$4 sm:$0xff]  }
 0x16b   :  { %3734 = vmatpush1.bf16.msra.mxu1 %v5836_v18  ;;  %v5859_v55 = vld [vmem:[%s8197_s1 + $0xdc4] ss:$16 sps:$4 sm:$0xff]   ;;  %v5862_v56 = vld [vmem:[%s8197_s1 + $0x9cc] ss:$16 sps:$4 sm:$0xff]   ;;  %v5857_v57 = vld [vmem:[%s8197_s1 + $0xdc0] ss:$16 sps:$4 sm:$0xff]  }
 0x16c   :  { %3488 = vmatpush1.bf16.msra.mxu0 %v5833_v42  ;;  %3735 = vmatprep.subr.bf16.mxu1 %v5844_v46  ;;  %v5860_v59 = vld [vmem:[%s8197_s1 + $0x9c8] ss:$16 sps:$4 sm:$0xff]   ;;  %v5865_v60 = vld [vmem:[%s8197_s1 + $0xde4] ss:$16 sps:$4 sm:$0xff]   ;;  %v5868_v61 = vld [vmem:[%s8197_s1 + $0x9ec] ss:$16 sps:$4 sm:$0xff]  }
 0x16d   :  { %3489 = vmatprep.subr.bf16.mxu0 %v5841_v45  ;;  %v5863_v62 = vld [vmem:[%s8197_s1 + $0xde0] ss:$16 sps:$4 sm:$0xff]   ;;  %v5866_v1 = vld [vmem:[%s8197_s1 + $0x9e8] ss:$16 sps:$4 sm:$0xff]   ;;  %v5872_v2 = vld [vmem:[%s8197_s1 + $0xe04] ss:$16 sps:$4 sm:$0xff]  }
 0x16e   :  { %v5875_v3 = vld [vmem:[%s8197_s1 + $0xa0c] ss:$16 sps:$4 sm:$0xff]   ;;  %v5870_v6 = vld [vmem:[%s8197_s1 + $0xe00] ss:$16 sps:$4 sm:$0xff]   ;;  %v5873_v7 = vld [vmem:[%s8197_s1 + $0xa08] ss:$16 sps:$4 sm:$0xff]  }
 0x16f   :  { %3736 = vmatpush1.bf16.msra.mxu1 %v5842_v30  ;;  %v5878_v8 = vld [vmem:[%s8197_s1 + $0xe24] ss:$16 sps:$4 sm:$0xff]   ;;  %v5881_v49 = vld [vmem:[%s8197_s1 + $0xa2c] ss:$16 sps:$4 sm:$0xff]   ;;  %v5876_v39 = vld [vmem:[%s8197_s1 + $0xe20] ss:$16 sps:$4 sm:$0xff]  }
 0x170   :  { %3490 = vmatpush1.bf16.msra.mxu0 %v5839_v22  ;;  %3737 = vmatprep.subr.bf16.mxu1 %v5850_v50  ;;  %v5879_v9 = vld [vmem:[%s8197_s1 + $0xa28] ss:$16 sps:$4 sm:$0xff]   ;;  %v5884_v11 = vld [vmem:[%s8197_s1 + $0xe44] ss:$16 sps:$4 sm:$0xff]   ;;  %v5882_v13 = vld [vmem:[%s8197_s1 + $0xe40] ss:$16 sps:$4 sm:$0xff]  }
 0x171   :  { %3491 = vmatprep.subr.bf16.mxu0 %v5847_v48  ;;  %v5885_v14 = vld [vmem:[%s8197_s1 + $0xa48] ss:$16 sps:$4 sm:$0xff]   ;;  %v5890_v15 = vld [vmem:[%s8197_s1 + $0xe64] ss:$16 sps:$4 sm:$0xff]   ;;  %v5888_v16 = vld [vmem:[%s8197_s1 + $0xe60] ss:$16 sps:$4 sm:$0xff]  }
 0x172   :  { %v5891_v17 = vld [vmem:[%s8197_s1 + $0xa68] ss:$16 sps:$4 sm:$0xff]   ;;  %v5896_v19 = vld [vmem:[%s8197_s1 + $0xe84] ss:$16 sps:$4 sm:$0xff]   ;;  %v5899_v20 = vld [vmem:[%s8197_s1 + $0xa8c] ss:$16 sps:$4 sm:$0xff]  }
 0x173   :  { %3738 = vmatpush1.bf16.msra.mxu1 %v5848_v24  ;;  %v5894_v21 = vld [vmem:[%s8197_s1 + $0xe80] ss:$16 sps:$4 sm:$0xff]   ;;  %v5897_v23 = vld [vmem:[%s8197_s1 + $0xa88] ss:$16 sps:$4 sm:$0xff]   ;;  %v5902_v25 = vld [vmem:[%s8197_s1 + $0xea4] ss:$16 sps:$4 sm:$0xff]  }
 0x174   :  { %3492 = vmatpush1.bf16.msra.mxu0 %v5845_v51  ;;  %3739 = vmatprep.subr.bf16.mxu1 %v5856_v53  ;;  %v5905_v26 = vld [vmem:[%s8197_s1 + $0xaac] ss:$16 sps:$4 sm:$0xff]   ;;  %v5900_v28 = vld [vmem:[%s8197_s1 + $0xea0] ss:$16 sps:$4 sm:$0xff]   ;;  %v5903_v29 = vld [vmem:[%s8197_s1 + $0xaa8] ss:$16 sps:$4 sm:$0xff]  }
 0x175   :  { %3493 = vmatprep.subr.bf16.mxu0 %v5853_v52  ;;  %v5908_v31 = vld [vmem:[%s8197_s1 + $0xec4] ss:$16 sps:$4 sm:$0xff]   ;;  %v5911_v32 = vld [vmem:[%s8197_s1 + $0xacc] ss:$16 sps:$4 sm:$0xff]   ;;  %v5906_v33 = vld [vmem:[%s8197_s1 + $0xec0] ss:$16 sps:$4 sm:$0xff]  }
 0x176   :  { %v5909_v12 = vld [vmem:[%s8197_s1 + $0xac8] ss:$16 sps:$4 sm:$0xff]   ;;  %v5914_v34 = vld [vmem:[%s8197_s1 + $0xee4] ss:$16 sps:$4 sm:$0xff]   ;;  %v5917_v36 = vld [vmem:[%s8197_s1 + $0xaec] ss:$16 sps:$4 sm:$0xff]  }
 0x177   :  { %3740 = vmatpush1.bf16.msra.mxu1 %v5854_v10  ;;  %v5912_v0 = vld [vmem:[%s8197_s1 + $0xee0] ss:$16 sps:$4 sm:$0xff]   ;;  %v5915_v37 = vld [vmem:[%s8197_s1 + $0xae8] ss:$16 sps:$4 sm:$0xff]   ;;  %v5920_v38 = vld [vmem:[%s8197_s1 + $0xf04] ss:$16 sps:$4 sm:$0xff]  }
 0x178   :  { %3494 = vmatpush1.bf16.msra.mxu0 %v5851_v54  ;;  %3741 = vmatprep.subr.bf16.mxu1 %v5862_v56  ;;  %v5923_v40 = vld [vmem:[%s8197_s1 + $0xb0c] ss:$16 sps:$4 sm:$0xff]   ;;  %v5918_v41 = vld [vmem:[%s8197_s1 + $0xf00] ss:$16 sps:$4 sm:$0xff]   ;;  %v5921_v42 = vld [vmem:[%s8197_s1 + $0xb08] ss:$16 sps:$4 sm:$0xff]  }
 0x179   :  { %3495 = vmatprep.subr.bf16.mxu0 %v5859_v55  ;;  %v5926_v18 = vld [vmem:[%s8197_s1 + $0xf24] ss:$16 sps:$4 sm:$0xff]   ;;  %v5929_v45 = vld [vmem:[%s8197_s1 + $0xb2c] ss:$16 sps:$4 sm:$0xff]   ;;  %v5924_v46 = vld [vmem:[%s8197_s1 + $0xf20] ss:$16 sps:$4 sm:$0xff]  }
 0x17a   :  { %v5927_v22 = vld [vmem:[%s8197_s1 + $0xb28] ss:$16 sps:$4 sm:$0xff]   ;;  %v5932_v30 = vld [vmem:[%s8197_s1 + $0xf44] ss:$16 sps:$4 sm:$0xff]   ;;  %v5935_v48 = vld [vmem:[%s8197_s1 + $0xb4c] ss:$16 sps:$4 sm:$0xff]  }
 0x17b   :  { %3742 = vmatpush1.bf16.msra.mxu1 %v5860_v59  ;;  %v5930_v50 = vld [vmem:[%s8197_s1 + $0xf40] ss:$16 sps:$4 sm:$0xff]   ;;  %v5933_v51 = vld [vmem:[%s8197_s1 + $0xb48] ss:$16 sps:$4 sm:$0xff]   ;;  %v5938_v24 = vld [vmem:[%s8197_s1 + $0xf64] ss:$16 sps:$4 sm:$0xff]  }
 0x17c   :  { %3496 = vmatpush1.bf16.msra.mxu0 %v5857_v57  ;;  %3743 = vmatprep.subr.bf16.mxu1 %v5868_v61  ;;  %v5941_v52 = vld [vmem:[%s8197_s1 + $0xb6c] ss:$16 sps:$4 sm:$0xff]   ;;  %v5936_v53 = vld [vmem:[%s8197_s1 + $0xf60] ss:$16 sps:$4 sm:$0xff]   ;;  %v5939_v54 = vld [vmem:[%s8197_s1 + $0xb68] ss:$16 sps:$4 sm:$0xff]  }
 0x17d   :  { %3497 = vmatprep.subr.bf16.mxu0 %v5865_v60  ;;  %v5944_v10 = vld [vmem:[%s8197_s1 + $0xf84] ss:$16 sps:$4 sm:$0xff]   ;;  %v5947_v55 = vld [vmem:[%s8197_s1 + $0xb8c] ss:$16 sps:$4 sm:$0xff]   ;;  %v5942_v56 = vld [vmem:[%s8197_s1 + $0xf80] ss:$16 sps:$4 sm:$0xff]  }
 0x17e   :  { %v5945_v57 = vld [vmem:[%s8197_s1 + $0xb88] ss:$16 sps:$4 sm:$0xff]   ;;  %v5950_v59 = vld [vmem:[%s8197_s1 + $0xfa4] ss:$16 sps:$4 sm:$0xff]   ;;  %v5953_v60 = vld [vmem:[%s8197_s1 + $0xbac] ss:$16 sps:$4 sm:$0xff]  }
 0x17f   :  { %3744 = vmatpush1.bf16.msra.mxu1 %v5866_v1  ;;  %v5948_v61 = vld [vmem:[%s8197_s1 + $0xfa0] ss:$16 sps:$4 sm:$0xff]   ;;  %v5956_v1 = vld [vmem:[%s8197_s1 + $0xfc4] ss:$16 sps:$4 sm:$0xff]  }
 0x180   :  { %3498 = vmatpush1.bf16.msra.mxu0 %v5863_v62  ;;  %3754 = vmatprep.subr.bf16.mxu1 %v5875_v3  ;;  %v5951_v62 = vld [vmem:[%s8197_s1 + $0xba8] ss:$16 sps:$4 sm:$0xff]   ;;  %v5954_v3 = vld [vmem:[%s8197_s1 + $0xfc0] ss:$16 sps:$4 sm:$0xff]  }
 0x181   :  { %3508 = vmatprep.subr.bf16.mxu0 %v5872_v2  ;;  %v5959_v2 = vld [vmem:[%s8197_s1 + $0xbcc] ss:$16 sps:$4 sm:$0xff]  }
 0x182   :  { %3746 = vmatmul.mubr.bf16.vlgmr.msra.gmra.mrb[4].mxu1 %v7086_v44  ;;  %v5887_v44 = vld [vmem:[%s8197_s1 + $0xa4c] ss:$16 sps:$4 sm:$0xff]  }
 0x183   :  { %3500 = vmatmul.mubr.bf16.vlgmr.msra.gmra.mrb[0].mxu0 %v7504_v35  ;;  %3755 = vmatpush1.bf16.msra.mxu1 %v5873_v7  ;;  %v5962_v7 = vld [vmem:[%s8197_s1 + $0xfe4] ss:$16 sps:$4 sm:$0xff]  }
 0x184   :  { %3509 = vmatpush1.bf16.msra.mxu0 %v5870_v6  ;;  %3756 = vmatprep.subr.bf16.mxu1 %v5881_v49  ;;  %v5957_v6 = vld [vmem:[%s8197_s1 + $0xbc8] ss:$16 sps:$4 sm:$0xff]   ;;  %v5960_v49 = vld [vmem:[%s8197_s1 + $0xfe0] ss:$16 sps:$4 sm:$0xff]  }
 0x185   :  { %3510 = vmatprep.subr.bf16.mxu0 %v5878_v8  ;;  %3540 = vmatprep.mubr.bf16.mxu0 %v7520_v27  ;;  %v5965_v8 = vld [vmem:[%s8197_s1 + $0xbec] ss:$16 sps:$4 sm:$0xff]  }
 0x186   :  { %3786 = vmatprep.mubr.bf16.mxu1 %v7102_v47  ;;  %v5893_v47 = vld [vmem:[%s8197_s1 + $0xa6c] ss:$16 sps:$4 sm:$0xff]  }
 0x187   :  { %3757 = vmatpush1.bf16.msra.mxu1 %v5879_v9  ;;  %v5968_v9 = vld [vmem:[%s8197_s1 + $0xc0c] ss:$16 sps:$4 sm:$0xff]  }
 0x188   :  { %3511 = vmatpush1.bf16.msra.mxu0 %v5876_v39  ;;  %3758 = vmatprep.subr.bf16.mxu1 %v5887_v44  ;;  %v5963_v39 = vld [vmem:[%s8197_s1 + $0xbe8] ss:$16 sps:$4 sm:$0xff]  }
 0x189   :  { %3512 = vmatprep.subr.bf16.mxu0 %v5884_v11  ;;  %v7705_v11 = vcombine.high %v7504_v35, %v7504_v35  ;;  %v5966_v44 = vld [vmem:[%s8197_s1 + $0xc08] ss:$16 sps:$4 sm:$0xff]  }
 0x18b   :  { %3759 = vmatpush1.bf16.msra.mxu1 %v5885_v14  ;;  %v6062_v14 = vld [vmem:[%s8200_s4] ss:$8 sps:$4 sm:$0xff]  }
 0x18c   :  { %3513 = vmatpush1.bf16.msra.mxu0 %v5882_v13  ;;  %3760 = vmatprep.subr.bf16.mxu1 %v5893_v47  ;;  %v5971_v13 = vld [vmem:[%s8197_s1 + $0xc2c] ss:$16 sps:$4 sm:$0xff]   ;;  %v5969_v47 = vld [vmem:[%s8197_s1 + $0xc28] ss:$16 sps:$4 sm:$0xff]  }
 0x18d   :  { %3514 = vmatprep.subr.bf16.mxu0 %v5890_v15  ;;  %v6064_v15 = vld [vmem:[%s8200_s4 + $0x4] ss:$8 sps:$4 sm:$0xff]  }
 0x18f   :  { %3761 = vmatpush1.bf16.msra.mxu1 %v5891_v17  ;;  %v6065_v17 = vld [vmem:[%s8200_s4 + $0x10] ss:$8 sps:$4 sm:$0xff]  }
 0x190   :  { %3515 = vmatpush1.bf16.msra.mxu0 %v5888_v16  ;;  %3762 = vmatprep.subr.bf16.mxu1 %v5899_v20  ;;  %v6067_v16 = vld [vmem:[%s8200_s4 + $0x14] ss:$8 sps:$4 sm:$0xff]  }
 0x191   :  { %3516 = vmatprep.subr.bf16.mxu0 %v5896_v19  ;;  %v5972_v19 = vld [vmem:[%s8197_s1 + $0xc48] ss:$16 sps:$4 sm:$0xff]   ;;  %v5977_v20 = vld [vmem:[%s8197_s1 + $0xc6c] ss:$16 sps:$4 sm:$0xff]  }
 0x193   :  { %3763 = vmatpush1.bf16.msra.mxu1 %v5897_v23  ;;  %v6073_v23 = vld [vmem:[%s8200_s4 + $0x34] ss:$8 sps:$4 sm:$0xff]  }
 0x194   :  { %3517 = vmatpush1.bf16.msra.mxu0 %v5894_v21  ;;  %3764 = vmatprep.subr.bf16.mxu1 %v5905_v26  ;;  %v6068_v21 = vld [vmem:[%s8200_s4 + $0x20] ss:$8 sps:$4 sm:$0xff]   ;;  %v5980_v26 = vld [vmem:[%s8197_s1 + $0xc8c] ss:$16 sps:$4 sm:$0xff]  }
 0x195   :  { %3518 = vmatprep.subr.bf16.mxu0 %v5902_v25  ;;  %v5975_v25 = vld [vmem:[%s8197_s1 + $0xc68] ss:$16 sps:$4 sm:$0xff]  }
 0x197   :  { %3765 = vmatpush1.bf16.msra.mxu1 %v5903_v29  ;;  %v6076_v29 = vld [vmem:[%s8200_s4 + $0x44] ss:$8 sps:$4 sm:$0xff]  }
 0x198   :  { %3519 = vmatpush1.bf16.msra.mxu0 %v5900_v28  ;;  %3766 = vmatprep.subr.bf16.mxu1 %v5911_v32  ;;  %v6071_v28 = vld [vmem:[%s8200_s4 + $0x30] ss:$8 sps:$4 sm:$0xff]   ;;  %v5983_v32 = vld [vmem:[%s8197_s1 + $0xcac] ss:$16 sps:$4 sm:$0xff]  }
 0x199   :  { %3520 = vmatprep.subr.bf16.mxu0 %v5908_v31  ;;  %v5978_v31 = vld [vmem:[%s8197_s1 + $0xc88] ss:$16 sps:$4 sm:$0xff]  }
 0x19b   :  { %3767 = vmatpush1.bf16.msra.mxu1 %v5909_v12  ;;  %v6079_v12 = vld [vmem:[%s8200_s4 + $0x54] ss:$8 sps:$4 sm:$0xff]  }
 0x19c   :  { %3521 = vmatpush1.bf16.msra.mxu0 %v5906_v33  ;;  %3768 = vmatprep.subr.bf16.mxu1 %v5917_v36  ;;  %v6074_v33 = vld [vmem:[%s8200_s4 + $0x40] ss:$8 sps:$4 sm:$0xff]   ;;  %v5986_v36 = vld [vmem:[%s8197_s1 + $0xccc] ss:$16 sps:$4 sm:$0xff]  }
 0x19d   :  { %3522 = vmatprep.subr.bf16.mxu0 %v5914_v34  ;;  %v5981_v34 = vld [vmem:[%s8197_s1 + $0xca8] ss:$16 sps:$4 sm:$0xff]  }
 0x19f   :  { %3769 = vmatpush1.bf16.msra.mxu1 %v5915_v37  ;;  %v6082_v37 = vld [vmem:[%s8200_s4 + $0x64] ss:$8 sps:$4 sm:$0xff]  }
 0x1a0   :  { %3523 = vmatpush1.bf16.msra.mxu0 %v5912_v0  ;;  %3770 = vmatprep.subr.bf16.mxu1 %v5923_v40  ;;  %v6077_v0 = vld [vmem:[%s8200_s4 + $0x50] ss:$8 sps:$4 sm:$0xff]   ;;  %v5989_v40 = vld [vmem:[%s8197_s1 + $0xcec] ss:$16 sps:$4 sm:$0xff]  }
 0x1a1   :  { %3524 = vmatprep.subr.bf16.mxu0 %v5920_v38  ;;  %v5984_v38 = vld [vmem:[%s8197_s1 + $0xcc8] ss:$16 sps:$4 sm:$0xff]  }
 0x1a3   :  { %3771 = vmatpush1.bf16.msra.mxu1 %v5921_v42  ;;  %v6085_v42 = vld [vmem:[%s8200_s4 + $0x74] ss:$8 sps:$4 sm:$0xff]  }
 0x1a4   :  { %3525 = vmatpush1.bf16.msra.mxu0 %v5918_v41  ;;  %3772 = vmatprep.subr.bf16.mxu1 %v5929_v45  ;;  %v6080_v41 = vld [vmem:[%s8200_s4 + $0x60] ss:$8 sps:$4 sm:$0xff]   ;;  %v5992_v45 = vld [vmem:[%s8197_s1 + $0xd0c] ss:$16 sps:$4 sm:$0xff]  }
 0x1a5   :  { %3526 = vmatprep.subr.bf16.mxu0 %v5926_v18  ;;  %v5987_v18 = vld [vmem:[%s8197_s1 + $0xce8] ss:$16 sps:$4 sm:$0xff]  }
 0x1a7   :  { %3773 = vmatpush1.bf16.msra.mxu1 %v5927_v22  ;;  %v6088_v22 = vld [vmem:[%s8200_s4 + $0x84] ss:$8 sps:$4 sm:$0xff]  }
 0x1a8   :  { %3527 = vmatpush1.bf16.msra.mxu0 %v5924_v46  ;;  %3774 = vmatprep.subr.bf16.mxu1 %v5935_v48  ;;  %v6083_v46 = vld [vmem:[%s8200_s4 + $0x70] ss:$8 sps:$4 sm:$0xff]   ;;  %v5995_v48 = vld [vmem:[%s8197_s1 + $0xd2c] ss:$16 sps:$4 sm:$0xff]  }
 0x1a9   :  { %3528 = vmatprep.subr.bf16.mxu0 %v5932_v30  ;;  %v5990_v30 = vld [vmem:[%s8197_s1 + $0xd08] ss:$16 sps:$4 sm:$0xff]  }
 0x1ab   :  { %3775 = vmatpush1.bf16.msra.mxu1 %v5933_v51  ;;  %v6091_v51 = vld [vmem:[%s8200_s4 + $0x94] ss:$8 sps:$4 sm:$0xff]  }
 0x1ac   :  { %3529 = vmatpush1.bf16.msra.mxu0 %v5930_v50  ;;  %3776 = vmatprep.subr.bf16.mxu1 %v5941_v52  ;;  %v6086_v50 = vld [vmem:[%s8200_s4 + $0x80] ss:$8 sps:$4 sm:$0xff]   ;;  %v5998_v52 = vld [vmem:[%s8197_s1 + $0xd4c] ss:$16 sps:$4 sm:$0xff]  }
 0x1ad   :  { %3530 = vmatprep.subr.bf16.mxu0 %v5938_v24  ;;  %v5993_v24 = vld [vmem:[%s8197_s1 + $0xd28] ss:$16 sps:$4 sm:$0xff]  }
 0x1af   :  { %3777 = vmatpush1.bf16.msra.mxu1 %v5939_v54  ;;  %v6094_v54 = vld [vmem:[%s8200_s4 + $0xa4] ss:$8 sps:$4 sm:$0xff]  }
 0x1b0   :  { %3531 = vmatpush1.bf16.msra.mxu0 %v5936_v53  ;;  %3778 = vmatprep.subr.bf16.mxu1 %v5947_v55  ;;  %v6089_v53 = vld [vmem:[%s8200_s4 + $0x90] ss:$8 sps:$4 sm:$0xff]   ;;  %v6001_v55 = vld [vmem:[%s8197_s1 + $0xd6c] ss:$16 sps:$4 sm:$0xff]  }
 0x1b1   :  { %3532 = vmatprep.subr.bf16.mxu0 %v5944_v10  ;;  %v5996_v10 = vld [vmem:[%s8197_s1 + $0xd48] ss:$16 sps:$4 sm:$0xff]  }
 0x1b3   :  { %3779 = vmatpush1.bf16.msra.mxu1 %v5945_v57  ;;  %v6097_v57 = vld [vmem:[%s8200_s4 + $0xb4] ss:$8 sps:$4 sm:$0xff]  }
 0x1b4   :  { %3533 = vmatpush1.bf16.msra.mxu0 %v5942_v56  ;;  %3780 = vmatprep.subr.bf16.mxu1 %v5953_v60  ;;  %v6092_v56 = vld [vmem:[%s8200_s4 + $0xa0] ss:$8 sps:$4 sm:$0xff]   ;;  %v6004_v60 = vld [vmem:[%s8197_s1 + $0xd8c] ss:$16 sps:$4 sm:$0xff]  }
 0x1b5   :  { %3534 = vmatprep.subr.bf16.mxu0 %v5950_v59  ;;  %v5999_v59 = vld [vmem:[%s8197_s1 + $0xd68] ss:$16 sps:$4 sm:$0xff]  }
 0x1b7   :  { %3781 = vmatpush1.bf16.msra.mxu1 %v5951_v62  ;;  %v6100_v62 = vld [vmem:[%s8200_s4 + $0xc4] ss:$8 sps:$4 sm:$0xff]  }
 0x1b8   :  { %3535 = vmatpush1.bf16.msra.mxu0 %v5948_v61  ;;  %3782 = vmatprep.subr.bf16.mxu1 %v5959_v2  ;;  %v6095_v61 = vld [vmem:[%s8200_s4 + $0xb0] ss:$8 sps:$4 sm:$0xff]   ;;  %v6007_v2 = vld [vmem:[%s8197_s1 + $0xdac] ss:$16 sps:$4 sm:$0xff]  }
 0x1b9   :  { %3536 = vmatprep.subr.bf16.mxu0 %v5956_v1  ;;  %v6002_v1 = vld [vmem:[%s8197_s1 + $0xd88] ss:$16 sps:$4 sm:$0xff]  }
 0x1bb   :  { %3783 = vmatpush1.bf16.msra.mxu1 %v5957_v6  ;;  %v6005_v6 = vld [vmem:[%s8197_s1 + $0xda8] ss:$16 sps:$4 sm:$0xff]  }
 0x1bc   :  { %3537 = vmatpush1.bf16.msra.mxu0 %v5954_v3  ;;  %3784 = vmatprep.subr.bf16.mxu1 %v5965_v8  ;;  %v6098_v3 = vld [vmem:[%s8200_s4 + $0xc0] ss:$8 sps:$4 sm:$0xff]  }
 0x1bd   :  { %3538 = vmatprep.subr.bf16.mxu0 %v5962_v7  ;;  %v6010_v7 = vld [vmem:[%s8197_s1 + $0xdcc] ss:$16 sps:$4 sm:$0xff]   ;;  %v6008_v8 = vld [vmem:[%s8197_s1 + $0xdc8] ss:$16 sps:$4 sm:$0xff]  }
 0x1bf   :  { %3785 = vmatpush1.bf16.msra.mxu1 %v5963_v39  ;;  %v6011_v39 = vld [vmem:[%s8197_s1 + $0xde8] ss:$16 sps:$4 sm:$0xff]  }
 0x1c0   :  { %3539 = vmatpush1.bf16.msra.mxu0 %v5960_v49  ;;  %3795 = vmatprep.subr.bf16.mxu1 %v5968_v9  ;;  %v6013_v49 = vld [vmem:[%s8197_s1 + $0xdec] ss:$16 sps:$4 sm:$0xff]  }
 0x1c1   :  { %4321 = vmatprep.subr.bf16.mxu0 %v6064_v15  ;;  %v6016_v9 = vld [vmem:[%s8197_s1 + $0xe0c] ss:$16 sps:$4 sm:$0xff]  }
 0x1c2   :  { %3787 = vmatmul.mubr.bf16.vlgmr.msra.gmra.mrb[4].mxu1 %v7307_v58  ;;  %v5974_v58 = vld [vmem:[%s8197_s1 + $0xc4c] ss:$16 sps:$4 sm:$0xff]  }
 0x1c3   :  { %3541 = vmatmul.mubr.bf16.vlgmr.msra.gmra.mrb[0].mxu0 %v7705_v11  ;;  %3796 = vmatpush1.bf16.msra.mxu1 %v5966_v44  ;;  %v6014_v44 = vld [vmem:[%s8197_s1 + $0xe08] ss:$16 sps:$4 sm:$0xff]   ;;  %v6022_v15 = vld [vmem:[%s8197_s1 + $0xe4c] ss:$16 sps:$4 sm:$0xff]  }
 0x1c4   :  { %3827 = vmatprep.mubr.bf16.mxu1 %v7322_v63  ;;  %3797 = vmatprep.subr.bf16.mxu1 %v5971_v13  ;;  %v6070_v63 = vld [vmem:[%s8200_s4 + $0x24] ss:$8 sps:$4 sm:$0xff]  }
 0x1c5   :  { %4322 = vmatpush1.bf16.msra.mxu0 %v6062_v14  ;;  %v6019_v13 = vld [vmem:[%s8197_s1 + $0xe2c] ss:$16 sps:$4 sm:$0xff]   ;;  %v6017_v14 = vld [vmem:[%s8197_s1 + $0xe28] ss:$16 sps:$4 sm:$0xff]  }
 0x1c6   :  { %4323 = vmatprep.subr.bf16.mxu0 %v6067_v16  ;;  %v6028_v16 = vld [vmem:[%s8197_s1 + $0xe8c] ss:$16 sps:$4 sm:$0xff]  }
 0x1c7   :  { %3798 = vmatpush1.bf16.msra.mxu1 %v5969_v47  ;;  %v6020_v47 = vld [vmem:[%s8197_s1 + $0xe48] ss:$16 sps:$4 sm:$0xff]  }
 0x1c8   :  { %3799 = vmatprep.subr.bf16.mxu1 %v5974_v58  ;;  %v6026_v58 = vld [vmem:[%s8197_s1 + $0xe88] ss:$16 sps:$4 sm:$0xff]  }
 0x1c9   :  { %4324 = vmatpush1.bf16.msra.mxu0 %v6065_v17  ;;  %v6031_v17 = vld [vmem:[%s8197_s1 + $0xeac] ss:$16 sps:$4 sm:$0xff]  }
 0x1ca   :  { %4325 = vmatprep.subr.bf16.mxu0 %v6070_v63  ;;  %v6029_v63 = vld [vmem:[%s8197_s1 + $0xea8] ss:$16 sps:$4 sm:$0xff]  }
 0x1cb   :  { %3800 = vmatpush1.bf16.msra.mxu1 %v5972_v19  ;;  %v6034_v19 = vld [vmem:[%s8197_s1 + $0xecc] ss:$16 sps:$4 sm:$0xff]  }
 0x1cc   :  { %3801 = vmatprep.subr.bf16.mxu1 %v5977_v20  ;;  %v6103_v20 = vld [vmem:[%s8200_s4 + $0xd4] ss:$8 sps:$4 sm:$0xff]  }
 0x1cd   :  { %4326 = vmatpush1.bf16.msra.mxu0 %v6068_v21  ;;  %v6101_v21 = vld [vmem:[%s8200_s4 + $0xd0] ss:$8 sps:$4 sm:$0xff]  }
 0x1ce   :  { %4327 = vmatprep.subr.bf16.mxu0 %v6073_v23  ;;  %v6032_v23 = vld [vmem:[%s8197_s1 + $0xec8] ss:$16 sps:$4 sm:$0xff]  }
 0x1cf   :  { %3802 = vmatpush1.bf16.msra.mxu1 %v5975_v25  ;;  %v6037_v25 = vld [vmem:[%s8197_s1 + $0xeec] ss:$16 sps:$4 sm:$0xff]  }
 0x1d0   :  { %3803 = vmatprep.subr.bf16.mxu1 %v5980_v26  ;;  %v6106_v26 = vld [vmem:[%s8200_s4 + $0xe4] ss:$8 sps:$4 sm:$0xff]  }
 0x1d1   :  { %4328 = vmatpush1.bf16.msra.mxu0 %v6071_v28  ;;  %v6104_v28 = vld [vmem:[%s8200_s4 + $0xe0] ss:$8 sps:$4 sm:$0xff]  }
 0x1d2   :  { %4329 = vmatprep.subr.bf16.mxu0 %v6076_v29  ;;  %v6035_v29 = vld [vmem:[%s8197_s1 + $0xee8] ss:$16 sps:$4 sm:$0xff]  }
 0x1d3   :  { %3804 = vmatpush1.bf16.msra.mxu1 %v5978_v31  ;;  %v6040_v31 = vld [vmem:[%s8197_s1 + $0xf0c] ss:$16 sps:$4 sm:$0xff]  }
 0x1d4   :  { %3805 = vmatprep.subr.bf16.mxu1 %v5983_v32  ;;  %v6109_v32 = vld [vmem:[%s8200_s4 + $0xf4] ss:$8 sps:$4 sm:$0xff]  }
 0x1d5   :  { %4330 = vmatpush1.bf16.msra.mxu0 %v6074_v33  ;;  %v6107_v33 = vld [vmem:[%s8200_s4 + $0xf0] ss:$8 sps:$4 sm:$0xff]  }
 0x1d6   :  { %4331 = vmatprep.subr.bf16.mxu0 %v6079_v12  ;;  %v6038_v12 = vld [vmem:[%s8197_s1 + $0xf08] ss:$16 sps:$4 sm:$0xff]  }
 0x1d7   :  { %3806 = vmatpush1.bf16.msra.mxu1 %v5981_v34  ;;  %v6043_v34 = vld [vmem:[%s8197_s1 + $0xf2c] ss:$16 sps:$4 sm:$0xff]  }
 0x1d8   :  { %3807 = vmatprep.subr.bf16.mxu1 %v5986_v36  ;;  %v6112_v36 = vld [vmem:[%s8200_s4 + $0x104] ss:$8 sps:$4 sm:$0xff]  }
 0x1d9   :  { %4332 = vmatpush1.bf16.msra.mxu0 %v6077_v0  ;;  %v6041_v0 = vld [vmem:[%s8197_s1 + $0xf28] ss:$16 sps:$4 sm:$0xff]  }
 0x1da   :  { %4333 = vmatprep.subr.bf16.mxu0 %v6082_v37  ;;  %v6046_v37 = vld [vmem:[%s8197_s1 + $0xf4c] ss:$16 sps:$4 sm:$0xff]  }
 0x1db   :  { %3808 = vmatpush1.bf16.msra.mxu1 %v5984_v38  ;;  %v6044_v38 = vld [vmem:[%s8197_s1 + $0xf48] ss:$16 sps:$4 sm:$0xff]  }
 0x1dc   :  { %3809 = vmatprep.subr.bf16.mxu1 %v5989_v40  ;;  %v6049_v40 = vld [vmem:[%s8197_s1 + $0xf6c] ss:$16 sps:$4 sm:$0xff]  }
 0x1dd   :  { %4334 = vmatpush1.bf16.msra.mxu0 %v6080_v41  ;;  %v6047_v41 = vld [vmem:[%s8197_s1 + $0xf68] ss:$16 sps:$4 sm:$0xff]  }
 0x1de   :  { %4335 = vmatprep.subr.bf16.mxu0 %v6085_v42  ;;  %v6052_v42 = vld [vmem:[%s8197_s1 + $0xf8c] ss:$16 sps:$4 sm:$0xff]  }
 0x1df   :  { %3810 = vmatpush1.bf16.msra.mxu1 %v5987_v18  ;;  %v6050_v18 = vld [vmem:[%s8197_s1 + $0xf88] ss:$16 sps:$4 sm:$0xff]  }
 0x1e0   :  { %3811 = vmatprep.subr.bf16.mxu1 %v5992_v45  ;;  %v6055_v45 = vld [vmem:[%s8197_s1 + $0xfac] ss:$16 sps:$4 sm:$0xff]  }
 0x1e1   :  { %4336 = vmatpush1.bf16.msra.mxu0 %v6083_v46  ;;  %v6053_v46 = vld [vmem:[%s8197_s1 + $0xfa8] ss:$16 sps:$4 sm:$0xff]  }
 0x1e2   :  { %4337 = vmatprep.subr.bf16.mxu0 %v6088_v22  ;;  %v6058_v22 = vld [vmem:[%s8197_s1 + $0xfcc] ss:$16 sps:$4 sm:$0xff]  }
 0x1e3   :  { %3812 = vmatpush1.bf16.msra.mxu1 %v5990_v30  ;;  %v6056_v30 = vld [vmem:[%s8197_s1 + $0xfc8] ss:$16 sps:$4 sm:$0xff]  }
 0x1e4   :  { %3813 = vmatprep.subr.bf16.mxu1 %v5995_v48  ;;  %v6061_v48 = vld [vmem:[%s8197_s1 + $0xfec] ss:$16 sps:$4 sm:$0xff]  }
 0x1e5   :  { %4338 = vmatpush1.bf16.msra.mxu0 %v6086_v50  ;;  %v6059_v50 = vld [vmem:[%s8197_s1 + $0xfe8] ss:$16 sps:$4 sm:$0xff]  }
 0x1e6   :  { %4339 = vmatprep.subr.bf16.mxu0 %v6091_v51  ;;  %v8002_v51 = vsub.s32 0, %v6362_v43 }
 0x1e7   :  { %3814 = vmatpush1.bf16.msra.mxu1 %v5993_v24  ;;  %v8007_v24 = vld [vmem:[%s8198_s2] sm:$0xf] }
 0x1e8   :  { %3815 = vmatprep.subr.bf16.mxu1 %v5998_v52  ;;  %v8010_v52 = vsub.s32 1, %v6362_v43 }
 0x1e9   :  { %4340 = vmatpush1.bf16.msra.mxu0 %v6089_v53  ;;  %v8015_v53 = vld [vmem:[%s8199_s3] sm:$0xf] }
 0x1ea   :  { %4341 = vmatprep.subr.bf16.mxu0 %v6094_v54  ;;  %v3882_v54 = vrot.slane %v8007_v24, %v8002_v51 }
 0x1eb   :  { %3816 = vmatpush1.bf16.msra.mxu1 %v5996_v10  ;;  %v3886_v10 = vrot.slane %v8007_v24, %v8010_v52 }
 0x1ec   :  { %3817 = vmatprep.subr.bf16.mxu1 %v6001_v55 }
 0x1ed   :  { %4342 = vmatpush1.bf16.msra.mxu0 %v6092_v56  ;;  %v3908_v56 = vrot.slane %v8015_v53, %v8002_v51 }
 0x1ee   :  { %4343 = vmatprep.subr.bf16.mxu0 %v6097_v57 }
 0x1ef   :  { %3818 = vmatpush1.bf16.msra.mxu1 %v5999_v59 }
 0x1f0   :  { %3819 = vmatprep.subr.bf16.mxu1 %v6004_v60  ;;  %v3912_v60 = vrot.slane %v8015_v53, %v8010_v52 }
 0x1f1   :  { %4344 = vmatpush1.bf16.msra.mxu0 %v6095_v61 }
 0x1f2   :  { %4345 = vmatprep.subr.bf16.mxu0 %v6100_v62 }
 0x1f3   :  { %3820 = vmatpush1.bf16.msra.mxu1 %v6002_v1 }
 0x1f4   :  { %3821 = vmatprep.subr.bf16.mxu1 %v6007_v2 }
 0x1f5   :  { %4346 = vmatpush1.bf16.msra.mxu0 %v6098_v3 }
 0x1f6   :  { %4347 = vmatprep.subr.bf16.mxu0 %v6103_v20  ;;  %v6124_v20 = vld [vmem:[%s8200_s4 + $0x144] ss:$8 sps:$4 sm:$0xff]  }
 0x1f7   :  { %3822 = vmatpush1.bf16.msra.mxu1 %v6005_v6 }
 0x1f8   :  { %3823 = vmatprep.subr.bf16.mxu1 %v6010_v7 }
 0x1f9   :  { %4348 = vmatpush1.bf16.msra.mxu0 %v6101_v21  ;;  %v6166_v21 = vld [vmem:[%s8203_s7 + $0x60] sm:$0xff]  }
 0x1fa   :  { %4349 = vmatprep.subr.bf16.mxu0 %v6106_v26  ;;  %v6127_v26 = vld [vmem:[%s8200_s4 + $0x154] ss:$8 sps:$4 sm:$0xff]  }
 0x1fb   :  { %3824 = vmatpush1.bf16.msra.mxu1 %v6008_v8 }
 0x1fc   :  { %3825 = vmatprep.subr.bf16.mxu1 %v6013_v49 }
 0x1fd   :  { %4350 = vmatpush1.bf16.msra.mxu0 %v6104_v28  ;;  %v6168_v28 = vld [vmem:[%s8203_s7 + $0x68] sm:$0xff]  }
 0x1fe   :  { %4351 = vmatprep.subr.bf16.mxu0 %v6109_v32  ;;  %v6128_v32 = vld [vmem:[%s8200_s4 + $0x160] ss:$8 sps:$4 sm:$0xff]  }
 0x1ff   :  { %3826 = vmatpush1.bf16.msra.mxu1 %v6011_v39 }
 0x200   :  { %3836 = vmatprep.subr.bf16.mxu1 %v6016_v9  ;;  %v6158_v9 = vld [vmem:[%s8203_s7 + $0x40] sm:$0xff]  }
 0x201   :  { %4352 = vmatpush1.bf16.msra.mxu0 %v6107_v33  ;;  %v6133_v33 = vld [vmem:[%s8200_s4 + $0x174] ss:$8 sps:$4 sm:$0xff]  }
 0x202   :  { %3828 = vmatmul.mubr.bf16.vlgmr.msra.gmra.mrb[4].mxu1 %v7504_v35  ;;  %v6025_v35 = vld [vmem:[%s8197_s1 + $0xe6c] ss:$16 sps:$4 sm:$0xff]   ;;  %4362 = vmatprep.subr.bf16.mxu0 %v6112_v36  ;;  %v6134_v36 = vld [vmem:[%s8200_s4 + $0x180] ss:$8 sps:$4 sm:$0xff]  }
 0x203   :  { %3837 = vmatpush1.bf16.msra.mxu1 %v6014_v44  ;;  %3868 = vmatprep.mubr.bf16.mxu1 %v7520_v27  ;;  %v6023_v27 = vld [vmem:[%s8197_s1 + $0xe68] ss:$16 sps:$4 sm:$0xff]   ;;  %v6159_v44 = vld [vmem:[%s8203_s7] sm:$0xff]  }
 0x204   :  { %3838 = vmatprep.subr.bf16.mxu1 %v6019_v13  ;;  %v6160_v13 = vld [vmem:[%s8203_s7 + $0x48] sm:$0xff]  }
 0x207   :  { %3839 = vmatpush1.bf16.msra.mxu1 %v6017_v14  ;;  %v6113_v14 = vld [vmem:[%s8200_s4 + $0x110] ss:$8 sps:$4 sm:$0xff]  }
 0x208   :  { %3840 = vmatprep.subr.bf16.mxu1 %v6022_v15  ;;  %v6161_v15 = vld [vmem:[%s8203_s7 + $0x8] sm:$0xff]  }
 0x20b   :  { %3841 = vmatpush1.bf16.msra.mxu1 %v6020_v47  ;;  %v6118_v47 = vld [vmem:[%s8200_s4 + $0x124] ss:$8 sps:$4 sm:$0xff]  }
 0x20c   :  { %3842 = vmatprep.subr.bf16.mxu1 %v6025_v35  ;;  %v6162_v35 = vld [vmem:[%s8203_s7 + $0x50] sm:$0xff]  }
 0x20f   :  { %3843 = vmatpush1.bf16.msra.mxu1 %v6023_v27  ;;  %v6116_v27 = vld [vmem:[%s8200_s4 + $0x120] ss:$8 sps:$4 sm:$0xff]  }
 0x210   :  { %3844 = vmatprep.subr.bf16.mxu1 %v6028_v16  ;;  %v6163_v16 = vld [vmem:[%s8203_s7 + $0x10] sm:$0xff]  }
 0x213   :  { %3845 = vmatpush1.bf16.msra.mxu1 %v6026_v58  ;;  %v6121_v58 = vld [vmem:[%s8200_s4 + $0x134] ss:$8 sps:$4 sm:$0xff]  }
 0x214   :  { %3846 = vmatprep.subr.bf16.mxu1 %v6031_v17  ;;  %v6164_v17 = vld [vmem:[%s8203_s7 + $0x58] sm:$0xff]  }
 0x217   :  { %3847 = vmatpush1.bf16.msra.mxu1 %v6029_v63  ;;  %v6119_v63 = vld [vmem:[%s8200_s4 + $0x130] ss:$8 sps:$4 sm:$0xff]  }
 0x218   :  { %3848 = vmatprep.subr.bf16.mxu1 %v6034_v19  ;;  %v6165_v19 = vld [vmem:[%s8203_s7 + $0x18] sm:$0xff]  }
 0x21b   :  { %3849 = vmatpush1.bf16.msra.mxu1 %v6032_v23  ;;  %v6122_v23 = vld [vmem:[%s8200_s4 + $0x140] ss:$8 sps:$4 sm:$0xff]  }
 0x21c   :  { %3850 = vmatprep.subr.bf16.mxu1 %v6037_v25  ;;  %v6167_v25 = vld [vmem:[%s8203_s7 + $0x20] sm:$0xff]  }
 0x21f   :  { %3851 = vmatpush1.bf16.msra.mxu1 %v6035_v29  ;;  %v6125_v29 = vld [vmem:[%s8200_s4 + $0x150] ss:$8 sps:$4 sm:$0xff]  }
 0x220   :  { %3852 = vmatprep.subr.bf16.mxu1 %v6040_v31  ;;  %v6130_v31 = vld [vmem:[%s8200_s4 + $0x164] ss:$8 sps:$4 sm:$0xff]  }
 0x223   :  { %3853 = vmatpush1.bf16.msra.mxu1 %v6038_v12  ;;  %v6131_v12 = vld [vmem:[%s8200_s4 + $0x170] ss:$8 sps:$4 sm:$0xff]  }
 0x224   :  { %3854 = vmatprep.subr.bf16.mxu1 %v6043_v34  ;;  %v6136_v34 = vld [vmem:[%s8200_s4 + $0x184] ss:$8 sps:$4 sm:$0xff]  }
 0x227   :  { %3855 = vmatpush1.bf16.msra.mxu1 %v6041_v0  ;;  %v6139_v0 = vld [vmem:[%s8200_s4 + $0x194] ss:$8 sps:$4 sm:$0xff]  }
 0x228   :  { %3856 = vmatprep.subr.bf16.mxu1 %v6046_v37  ;;  %v6137_v37 = vld [vmem:[%s8200_s4 + $0x190] ss:$8 sps:$4 sm:$0xff]  }
 0x22b   :  { %3857 = vmatpush1.bf16.msra.mxu1 %v6044_v38  ;;  %v6142_v38 = vld [vmem:[%s8200_s4 + $0x1a4] ss:$8 sps:$4 sm:$0xff]  }
 0x22c   :  { %3858 = vmatprep.subr.bf16.mxu1 %v6049_v40  ;;  %v6140_v40 = vld [vmem:[%s8200_s4 + $0x1a0] ss:$8 sps:$4 sm:$0xff]  }
 0x22f   :  { %3859 = vmatpush1.bf16.msra.mxu1 %v6047_v41  ;;  %v6145_v41 = vld [vmem:[%s8200_s4 + $0x1b4] ss:$8 sps:$4 sm:$0xff]  }
 0x230   :  { %3860 = vmatprep.subr.bf16.mxu1 %v6052_v42  ;;  %v6143_v42 = vld [vmem:[%s8200_s4 + $0x1b0] ss:$8 sps:$4 sm:$0xff]  }
 0x233   :  { %3861 = vmatpush1.bf16.msra.mxu1 %v6050_v18  ;;  %v6148_v18 = vld [vmem:[%s8200_s4 + $0x1c4] ss:$8 sps:$4 sm:$0xff]  }
 0x234   :  { %3862 = vmatprep.subr.bf16.mxu1 %v6055_v45  ;;  %v6146_v45 = vld [vmem:[%s8200_s4 + $0x1c0] ss:$8 sps:$4 sm:$0xff]  }
 0x237   :  { %3863 = vmatpush1.bf16.msra.mxu1 %v6053_v46  ;;  %v6151_v46 = vld [vmem:[%s8200_s4 + $0x1d4] ss:$8 sps:$4 sm:$0xff]  }
 0x238   :  { %3864 = vmatprep.subr.bf16.mxu1 %v6058_v22  ;;  %v6149_v22 = vld [vmem:[%s8200_s4 + $0x1d0] ss:$8 sps:$4 sm:$0xff]  }
 0x23b   :  { %3865 = vmatpush1.bf16.msra.mxu1 %v6056_v30  ;;  %v6154_v30 = vld [vmem:[%s8200_s4 + $0x1e4] ss:$8 sps:$4 sm:$0xff]  }
 0x23c   :  { %3866 = vmatprep.subr.bf16.mxu1 %v6061_v48  ;;  %v6152_v48 = vld [vmem:[%s8200_s4 + $0x1e0] ss:$8 sps:$4 sm:$0xff]  }
 0x23f   :  { %3867 = vmatpush1.bf16.msra.mxu1 %v6059_v50  ;;  %v6157_v50 = vld [vmem:[%s8200_s4 + $0x1f4] ss:$8 sps:$4 sm:$0xff]  }
 0x240   :  { %5210 = vmatprep.subr.bf16.mxu1 %v6158_v9  ;;  %v6173_v9 = vld [vmem:[%s8203_s7 + $0x38] sm:$0xff]  }
 0x242   :  { %3869 = vmatmul.mubr.bf16.vlgmr.msra.gmra.mrb[4].mxu1 %v7705_v11 }
 0x243   :  { %5211 = vmatpush3.bf16.msra.mxu1 %v6159_v44  ;;  %v4403_v44 = vld [vmem:[%s8201_s5] sm:$0x3]  ;;  %s6199_s5 = smov [#allocation2]  }
 0x244   :  { %5212 = vmatprep.subr.bf16.mxu1 %v6160_v13  ;;  %v4417_v13 = vld [vmem:[%s8202_s6] sm:$0x3]  ;;  %s4610_s6 = sshll.u32 %s6199_s5, 4  ;;  %s4611_s6 = int_to_ptr.vmem [resolvable:$true] %s4610_s6 }
 0x245   :  { %p6179_p1 = scmp.lt.s32.totalorder %s4611_s6, %s4611_s6 }
 0x247   :  { %5213 = vmatpush3.bf16.msra.mxu1 %v6161_v15  ;;  %v4412_v15 = vrot.slane %v4403_v44, %v8010_v52 }
 0x248   :  { %5214 = vmatprep.subr.bf16.mxu1 %v6162_v35 }
 0x24b   :  { %5215 = vmatpush3.bf16.msra.mxu1 %v6163_v16 }
 0x24c   :  { %5216 = vmatprep.subr.bf16.mxu1 %v6164_v17 }
 0x24f   :  { %5217 = vmatpush3.bf16.msra.mxu1 %v6165_v19 }
 0x250   :  { %5218 = vmatprep.subr.bf16.mxu1 %v6166_v21 }
 0x253   :  { %5219 = vmatpush3.bf16.msra.mxu1 %v6167_v25 }
 0x254   :  { %5220 = vmatprep.subr.bf16.mxu1 %v6168_v28 }
 0x296   :  { %v3542_v11 = vpop.f32.mrb[0].mxu0 }
 0x297   :  { %v5232_v55 = vadd.f32 %v3542_v11, %v7168_v4  ;;  %v3544_v57 = vpop.f32.mrb[1].mxu0  ;;  %v6110_v4 = vld [vmem:[%s8200_s4 + $0x100] ss:$8 sps:$4 sm:$0xff]   ;;  %v3889_v11 = vsub.s32 2, %v6362_v43 }
 0x298   :  { %v5233_v59 = vadd.f32 %v3544_v57, %v7170_v5  ;;  %v3546_v61 = vpop.f32.mrb[2].mxu0  ;;  %v6115_v5 = vld [vmem:[%s8200_s4 + $0x114] ss:$8 sps:$4 sm:$0xff]  }
 0x299   :  { %v3899_v62 = vmul.f32 %v5232_v55, %v3882_v54  ;;  %v3547_v1 = vpop.f32.mrb[3].mxu0  ;;  %v6155_v54 = vld [vmem:[%s8200_s4 + $0x1f0] ss:$8 sps:$4 sm:$0xff]   ;;  %v3890_v55 = vrot.slane %v8007_v24, %v3889_v11  ;;  %v3916_v57 = vrot.slane %v8015_v53, %v3889_v11 }
 0x29a   :  { %v3900_v2 = vmul.f32 %v5233_v59, %v3886_v10  ;;  %v3893_v10 = vsub.s32 3, %v6362_v43 }
 0x29b   :  { %v3925_v3 = vadd.f32 %v3908_v56, %v3899_v62 }
 0x29c   :  { %v3926_v6 = vadd.f32 %v3912_v60, %v3900_v2  ;;  %v3894_v56 = vrot.slane %v8007_v24, %v3893_v10  ;;  %v3920_v60 = vrot.slane %v8015_v53, %v3893_v10  ;;  %v6169_v24 = vld [vmem:[%s8203_s7 + $0x28] sm:$0xff]   ;;  %v6170_v53 = vld [vmem:[%s8203_s7 + $0x70] sm:$0xff]  }
 0x29d   :  { %v3929_v7 = vmax.f32 %v3925_v3, 0.0  ;;  %5221 = vmatpush3.bf16.msra.mxu1 %v6169_v24 }
 0x29e   :  { %v3930_v8 = vmax.f32 %v3926_v6, 0.0  ;;  %5222 = vmatprep.subr.bf16.mxu1 %v6170_v53 }
 0x29f   :  { %v3933_v39 = vpack.c.bf16 %v3929_v7, %v3929_v7 }
 0x2a0   :  { %v3934_v49 = vpack.c.bf16 %v3930_v8, %v3930_v8 }
 0x2a2   :  { %4353 = vmatprep.mubr.bf16.mxu0 %v3934_v49 }
 0x2a3   :  { %4354 = vmatmul.mubr.bf16.vlgmr.msra.gmra.mrb[4].mxu0 %v3933_v39  ;;  %v6172_v39 = vld [vmem:[%s8203_s7 + $0x78] sm:$0xff]  }
 0x2a4   :  { %4363 = vmatpush1.bf16.msra.mxu0 %v6110_v4 }
 0x2a5   :  { %4364 = vmatprep.subr.bf16.mxu0 %v6115_v5  ;;  %v6171_v5 = vld [vmem:[%s8203_s7 + $0x30] sm:$0xff]   ;;  %s6174_s7 = scalar_lea.vmem %s4611_s6, 32 }
 0x2a6   :  { %5223 = vmatpush3.bf16.msra.mxu1 %v6171_v5  ;;  %p6175_p0 = scmp.ne.s32.totalorder %s4611_s6, %s6174_s7  ;;  %p6180_p2 = scmp.lt.s32.totalorder %s6174_s7, %s6174_s7 }
 0x2a7   :  { %5224 = vmatprep.subr.bf16.mxu1 %v6172_v39 }
 0x2a8   :  { %4365 = vmatpush1.bf16.msra.mxu0 %v6113_v14  ;;  %v4408_v14 = vrot.slane %v4403_v44, %v8002_v51  ;;  %p6181_p3 = por %p6180_p2, %p6179_p1 }
 0x2a9   :  { %4366 = vmatprep.subr.bf16.mxu0 %v6118_v47  ;;  %v4422_v47 = vrot.slane %v4417_v13, %v8002_v51 }
 0x2aa   :  { %5225 = vmatpush3.bf16.msra.mxu1 %v6173_v9  ;;  %p6182_p4 = pnand %p6181_p3, %p6175_p0 }
 0x2ac   :  { %4367 = vmatpush1.bf16.msra.mxu0 %v6116_v27  ;;  %v4426_v27 = vrot.slane %v4417_v13, %v8010_v52 }
 0x2ad   :  { %4368 = vmatprep.subr.bf16.mxu0 %v6121_v58 }
 0x2b0   :  { %4369 = vmatpush1.bf16.msra.mxu0 %v6119_v63 }
 0x2b1   :  { %4370 = vmatprep.subr.bf16.mxu0 %v6124_v20 }
 0x2b4   :  { %4371 = vmatpush1.bf16.msra.mxu0 %v6122_v23 }
 0x2b5   :  { %4372 = vmatprep.subr.bf16.mxu0 %v6127_v26 }
 0x2b8   :  { %4373 = vmatpush1.bf16.msra.mxu0 %v6125_v29 }
 0x2b9   :  { %4374 = vmatprep.subr.bf16.mxu0 %v6130_v31 }
 0x2bc   :  { %4375 = vmatpush1.bf16.msra.mxu0 %v6128_v32 }
 0x2bd   :  { %4376 = vmatprep.subr.bf16.mxu0 %v6133_v33 }
 0x2c0   :  { %4377 = vmatpush1.bf16.msra.mxu0 %v6131_v12 }
 0x2c1   :  { %4378 = vmatprep.subr.bf16.mxu0 %v6136_v34 }
 0x2c4   :  { %4379 = vmatpush1.bf16.msra.mxu0 %v6134_v36 }
 0x2c5   :  { %4380 = vmatprep.subr.bf16.mxu0 %v6139_v0 }
 0x2c8   :  { %4381 = vmatpush1.bf16.msra.mxu0 %v6137_v37 }
 0x2c9   :  { %4382 = vmatprep.subr.bf16.mxu0 %v6142_v38 }
 0x2cc   :  { %4383 = vmatpush1.bf16.msra.mxu0 %v6140_v40 }
 0x2cd   :  { %4384 = vmatprep.subr.bf16.mxu0 %v6145_v41 }
 0x2d0   :  { %4385 = vmatpush1.bf16.msra.mxu0 %v6143_v42 }
 0x2d1   :  { %4386 = vmatprep.subr.bf16.mxu0 %v6148_v18 }
 0x2d4   :  { %4387 = vmatpush1.bf16.msra.mxu0 %v6146_v45 }
 0x2d5   :  { %4388 = vmatprep.subr.bf16.mxu0 %v6151_v46 }
 0x2d8   :  { %4389 = vmatpush1.bf16.msra.mxu0 %v6149_v22 }
 0x2d9   :  { %4390 = vmatprep.subr.bf16.mxu0 %v6154_v30 }
 0x2dc   :  { %4391 = vmatpush1.bf16.msra.mxu0 %v6152_v48 }
 0x2dd   :  { %4392 = vmatprep.subr.bf16.mxu0 %v6157_v50 }
 0x2e0   :  { %4393 = vmatpush1.bf16.msra.mxu0 %v6155_v54 }
 0x315   :  { %v3870_v59 = vpop.f32.mrb[4].mxu1 }
 0x316   :  { %v3901_v61 = vmul.f32 %v3890_v55, %v3870_v59  ;;  %v3872_v62 = vpop.f32.mrb[5].mxu1 }
 0x317   :  { %v3902_v1 = vmul.f32 %v3894_v56, %v3872_v62  ;;  %v3874_v2 = vpop.f32.mrb[6].mxu1 }
 0x318   :  { %v3927_v3 = vadd.f32 %v3916_v57, %v3901_v61  ;;  %v3875_v6 = vpop.f32.mrb[7].mxu1 }
 0x319   :  { %v3928_v7 = vadd.f32 %v3920_v60, %v3902_v1 }
 0x31a   :  { %v3931_v8 = vmax.f32 %v3927_v3, 0.0 }
 0x31b   :  { %v3932_v49 = vmax.f32 %v3928_v7, 0.0 }
 0x31c   :  { %v3935_v43 = vpack.c.bf16 %v3931_v8, %v3931_v8 }
 0x31d   :  { %v3936_v4 = vpack.c.bf16 %v3932_v49, %v3932_v49 }
 0x31f   :  { %4394 = vmatprep.mubr.bf16.mxu0 %v3936_v4 }
 0x320   :  { %4395 = vmatmul.mubr.bf16.vlgmr.msra.gmra.mrb[4].mxu0 %v3935_v43 }
 0x3f3   :  { %v4396_v35 = vpop.f32.mrb[4].mxu0 }
 0x3f4   :  { %v4415_v16 = vmul.f32 %v4408_v14, %v4396_v35  ;;  %v4398_v58 = vpop.f32.mrb[5].mxu0 }
 0x3f5   :  { %v4416_v17 = vmul.f32 %v4412_v15, %v4398_v58  ;;  %v4400_v63 = vpop.f32.mrb[6].mxu0 }
 0x3f6   :  { %v4429_v19 = vadd.f32 %v4422_v47, %v4415_v16  ;;  %v4401_v20 = vpop.f32.mrb[7].mxu0 }
 0x3f7   :  { %v4430_v21 = vadd.f32 %v4426_v27, %v4416_v17 }
 0x3f8   :  { %v4431_v23 = vmax.f32 %v4429_v19, 0.0 }
 0x3f9   :  { %v4432_v25 = vmax.f32 %v4430_v21, 0.0 }
 0x3fa   :  { %v4433_v28 = vpack.c.bf16 %v4431_v23, %v4431_v23 }
 0x3fb   :  { %v4434_v26 = vpack.c.bf16 %v4432_v25, %v4432_v25 }
 0x3fd   :  { %4595 = vmatprep.mubr.bf16.mxu1 %v4434_v26 }
 0x3fe   :  { %4596 = vmatmul.mubr.bf16.vlgmr.msra.gmra.mrb[8].mxu1 %v4433_v28 }
 0x4d1   :  { %v5226_v29 = vpop.f32.mrb[8].mxu1 }
 0x4d2   :  { %v5227_v51 = vpop.f32.mrb[9].mxu1 }
 0x4d3   :  { %v5228_v31 = vadd.f32 %v5227_v51, %v5226_v29  ;;  %v5229_v32 = vpop.f32.mrb[10].mxu1 }
 0x4d4   :  { %v5230_v52 = vpop.f32.mrb[11].mxu1 }
 0x4d5   :  { %4603 = vst [vmem:[#allocation2] sm:$0x3] %v5228_v31 }
 0x4d6   :  { %6185 = shalt.err (!%p6182_p4)
}
 0x4d7   :  { %s6186_s11 = scalar_lea.hbm %s8204_s8, 32 }
 0x4d8   :  { %p6187_p5 = scmp.ne.s32.totalorder %s8204_s8, %s6186_s11  ;;  %p6190_p6 = scmp.lt.u32.totalorder %s6186_s11, %s8204_s8 }
 0x4da   :  { %p6192_p7 = pnand %p6190_p6, %p6187_p5 }
 0x4dc   :  { %6195 = shalt.err (!%p6192_p7)
}
 0x4dd   :  { %4613 = dma.vmem_to_hbm [thread:$0]  %s4611_s6, 32, %s8204_s8, [#allocation3]  }
 0x4de   :  { %6196 = dma.done.wait [#allocation3], 32  }
 0x4df   :  { %6197 = vsyncadd [#allocation3], 4294967264 }
 0x4e0   :  { %4617 = vsyncpa [#allocation3], 1 }

// kernel: lenet5_forward.2
= control target key start
LH: loop header
LB: loop body
LE: loop exit
PB: predicated region body
PF: predicated region fallthrough
CT: control target
= control target key end

     0   :  { %s12037_s13 = smov 0   ;;  %s14795_s0 = inlined_call_operand.vmem [shape: bf16[2,576,25], index: 0, kind: input, shape index: {}]   ;;  %s14796_s1 = inlined_call_operand.vmem [shape: bf16[25,128], index: 1, kind: input, shape index: {}]   ;;  %s14797_s2 = inlined_call_operand.vmem [shape: f32[1,128], index: 2, kind: input, shape index: {}]   ;;  %s14798_s3 = inlined_call_operand.vmem [shape: f32[1,128], index: 3, kind: input, shape index: {}]   ;;  %s14799_s4 = inlined_call_operand.vmem [shape: bf16[144,576], index: 4, kind: input, shape index: {}]   ;;  %s14800_s5 = inlined_call_operand.vmem [shape: bf16[25,64,144], index: 5, kind: input, shape index: {}]   ;;  %s14801_s6 = inlined_call_operand.vmem [shape: bf16[25,128,128], index: 6, kind: input, shape index: {}]   ;;  %s14802_s7 = inlined_call_operand.vmem [shape: f32[1,128], index: 7, kind: input, shape index: {}]   ;;  %s14803_s8 = inlined_call_operand.vmem [shape: f32[1,128], index: 8, kind: input, shape index: {}]   ;;  %s14804_s9 = inlined_call_operand.vmem [shape: bf16[16,64], index: 9, kind: input, shape index: {}]   ;;  %s14805_s10 = inlined_call_operand.vmem [shape: bf16[2,16,128], index: 10, kind: output, shape index: {}]  }
   0x1 LB: > { %s8703_s14 = sadd.s32 4294967295, %s11976_s13   ;;  %p8707_p0 = scmp.ge.s32.totalorder %s11976_s13, 1  ;;  %s11976_s13 = sphi %s12037_s13, %s20_s13  }
   0x2   : > { %p312_p1 = scmp.lt.s32.totalorder %s11976_s13, 3 }
   0x4   : > { %p313_p2 = pnand %p8707_p0, %p312_p1 }
   0x5   : > { %v11366_v0 = vld [vmem:[%s14796_s1] sm:$0xff] (!%p313_p2)   ;;  %vm737_vm0 = vcmask (!%p313_p2), 1043456   ;;  %v11367_v1 = vld [vmem:[%s14796_s1 + $0x8] sm:$0x1f] (!%p313_p2)   ;;  %vm738_vm1 = vcmask (!%p313_p2), 1044480   ;;  %p350_p3 = scmp.lt.s32.totalorder (!%p313_p2), %s8703_s14, 1 }
   0x6   : > { %316 = sbr.rel (%p313_p2) target bundleno = 2393 (0x959), region = 60  ;;  %10429 = vmatprep.subr.bf16.mxu0 (!%p313_p2), %v11366_v0  ;;  %v11978_v2 = vmov (!%p313_p2), 65535   ;;  %vm628_vm2 = vcmask (!%p313_p2), 203776   ;;  %v11406_v42 = vld [vmem:[%s14799_s4 + $0x4] ss:$20 sps:$4 sm:$0xff] (!%p313_p2)   ;;  %vm11980_vm3 = vmmov (!%p313_p2), 0  }
   0x7   : > { %10430 = vmatpush3.bf16.msra.mxu0 (!%p313_p2), %v11366_v0  ;;  %v739_v3 = vsel (!%p313_p2), %vm737_vm0, 4294967295, %v11978_v2  ;;  %1670 = vmatprep.mubr.bf16.mxu1 (!%p313_p2), %v11406_v42  ;;  %v12137_v43 = vld [vmem:[%s14797_s2] ss:$0 sm:$0xff] (!%p313_p2)  ;;  %vm1610_vm4 = vcmask (!%p313_p2), 523264   ;;  %vm2006_vm5 = vcmask (!%p313_p2), 130048  }
   0x8   : > { %v740_v4 = vsel (!%p313_p2), %vm738_vm1, %v739_v3, 0  ;;  %v12142_v44 = vld [vmem:[%s14798_s3] ss:$0 sm:$0xff] (!%p313_p2) }
   0x9   : > { %v742_v5 = vand.u32 (!%p313_p2), %v11367_v1, %v740_v4 }
   0xb   : > { %10431 = vmatprep.subr.bf16.mxu0 (!%p313_p2), %v742_v5 }
   0xc   : > { %10432 = vmatpush3.bf16.msra.mxu0 (!%p313_p2), %v742_v5 }
   0xd   : > { %s14813_s14 = smov (!%p350_p3, %s8703_s14), 1 }
   0xe   : > { %s11353_s19 = smul.u32 288, %s14813_s14  ;;  %s9925_s27 = sshll.u32 %s14813_s14, 3 }
   0xf   : > { %s359_s30 = scalar_lea.vmem %s14805_s10, %s9925_s27 }
  0x10   : > { %s12057_s22 = scalar_lea.vmem %s14795_s0, %s11353_s19 }
  0x11   : > { %v11368_v6 = vld [vmem:[%s12057_s22] sm:$0xff]   ;;  %v11369_v7 = vld [vmem:[%s12057_s22 + $0x8] sm:$0xff]   ;;  %v11370_v8 = vld [vmem:[%s12057_s22 + $0x10] sm:$0xff]  }
  0x12   : > { %10433 = vmatprep.mubr.msk.bf16.mxu0 %vm628_vm2, %v11368_v6  ;;  %v11371_v9 = vld [vmem:[%s12057_s22 + $0x18] sm:$0xff]   ;;  %v11372_v10 = vld [vmem:[%s12057_s22 + $0x20] sm:$0xff]   ;;  %v11373_v11 = vld [vmem:[%s12057_s22 + $0x28] sm:$0xff]  }
  0x13   : > { %10434 = vmatmul.mubr.msk.bf16.vlgmr.msra.gmra.mrb[0].mxu0 %vm628_vm2, %v11369_v7  ;;  %v11374_v12 = vld [vmem:[%s12057_s22 + $0x30] sm:$0xff]   ;;  %v11375_v13 = vld [vmem:[%s12057_s22 + $0x38] sm:$0xff]   ;;  %v11376_v14 = vld [vmem:[%s12057_s22 + $0x40] sm:$0xff]   ;;  %v11979_v7 = vmov 0.0  }
  0x14   : > { %10437 = vmatprep.mubr.msk.bf16.mxu0 %vm628_vm2, %v11370_v8  ;;  %v11377_v15 = vld [vmem:[%s12057_s22 + $0x48] sm:$0xff]   ;;  %v11378_v16 = vld [vmem:[%s12057_s22 + $0x50] sm:$0xff]   ;;  %v11379_v17 = vld [vmem:[%s12057_s22 + $0x58] sm:$0xff]   ;;  %10505 = vmatprep.subr.bf16.mxu0 %v11979_v7 }
  0x15   : > { %v11380_v18 = vld [vmem:[%s12057_s22 + $0x60] sm:$0xff]   ;;  %v11381_v19 = vld [vmem:[%s12057_s22 + $0x68] sm:$0xff]   ;;  %v11382_v20 = vld [vmem:[%s12057_s22 + $0x70] sm:$0xff]  }
  0x16   : > { %v11383_v21 = vld [vmem:[%s12057_s22 + $0x78] sm:$0xff]   ;;  %v11384_v22 = vld [vmem:[%s12057_s22 + $0x80] sm:$0xff]   ;;  %v11385_v23 = vld [vmem:[%s12057_s22 + $0x88] sm:$0xff]  }
  0x17   : > { %v11386_v24 = vld [vmem:[%s12057_s22 + $0x90] sm:$0xff]   ;;  %v11387_v25 = vld [vmem:[%s12057_s22 + $0x98] sm:$0xff]   ;;  %v11388_v26 = vld [vmem:[%s12057_s22 + $0xa0] sm:$0xff]  }
  0x18   : > { %v11389_v27 = vld [vmem:[%s12057_s22 + $0xa8] sm:$0xff]   ;;  %v11390_v28 = vld [vmem:[%s12057_s22 + $0xb0] sm:$0xff]   ;;  %v11391_v29 = vld [vmem:[%s12057_s22 + $0xb8] sm:$0xff]  }
  0x19   : > { %v11392_v30 = vld [vmem:[%s12057_s22 + $0xc0] sm:$0xff]   ;;  %v11393_v31 = vld [vmem:[%s12057_s22 + $0xc8] sm:$0xff]   ;;  %v11394_v32 = vld [vmem:[%s12057_s22 + $0xd0] sm:$0xff]  }
  0x1a   : > { %v11395_v33 = vld [vmem:[%s12057_s22 + $0xd8] sm:$0xff]   ;;  %v11396_v34 = vld [vmem:[%s12057_s22 + $0xe0] sm:$0xff]   ;;  %v11397_v35 = vld [vmem:[%s12057_s22 + $0xe8] sm:$0xff]  }
  0x1b   : > { %10438 = vmatmul.mubr.msk.bf16.gmra.mrb[4].mxu0 %vm628_vm2, %v11371_v9  ;;  %v11398_v36 = vld [vmem:[%s12057_s22 + $0xf0] sm:$0xff]   ;;  %v11399_v37 = vld [vmem:[%s12057_s22 + $0xf8] sm:$0xff]   ;;  %v11400_v38 = vld [vmem:[%s12057_s22 + $0x100] sm:$0xff]  }
  0x1c   : > { %10441 = vmatprep.mubr.msk.bf16.mxu0 %vm628_vm2, %v11372_v10  ;;  %v11401_v39 = vld [vmem:[%s12057_s22 + $0x108] sm:$0xff]   ;;  %v11402_v40 = vld [vmem:[%s12057_s22 + $0x110] sm:$0xff]   ;;  %v11403_v41 = vld [vmem:[%s12057_s22 + $0x118] sm:$0xff]  }
  0x23   : > { %10442 = vmatmul.mubr.msk.bf16.gmra.mrb[8].mxu0 %vm628_vm2, %v11373_v11 }
  0x24   : > { %10445 = vmatprep.mubr.msk.bf16.mxu0 %vm628_vm2, %v11374_v12 }
  0x2b   : > { %10446 = vmatmul.mubr.msk.bf16.gmra.mrb[12].mxu0 %vm628_vm2, %v11375_v13 }
  0x2c   : > { %10449 = vmatprep.mubr.msk.bf16.mxu0 %vm628_vm2, %v11376_v14 }
  0x33   : > { %10450 = vmatmul.mubr.msk.bf16.gmra.mrb[16].mxu0 %vm628_vm2, %v11377_v15 }
  0x34   : > { %10453 = vmatprep.mubr.msk.bf16.mxu0 %vm628_vm2, %v11378_v16 }
  0x3b   : > { %10454 = vmatmul.mubr.msk.bf16.gmra.mrb[20].mxu0 %vm628_vm2, %v11379_v17 }
  0x3c   : > { %10457 = vmatprep.mubr.msk.bf16.mxu0 %vm628_vm2, %v11380_v18 }
  0x43   : > { %10458 = vmatmul.mubr.msk.bf16.gmra.mrb[24].mxu0 %vm628_vm2, %v11381_v19 }
  0x44   : > { %10461 = vmatprep.mubr.msk.bf16.mxu0 %vm628_vm2, %v11382_v20 }
  0x4b   : > { %10462 = vmatmul.mubr.msk.bf16.gmra.mrb[28].mxu0 %vm628_vm2, %v11383_v21 }
  0x4c   : > { %10465 = vmatprep.mubr.msk.bf16.mxu0 %vm628_vm2, %v11384_v22 }
  0x53   : > { %10466 = vmatmul.mubr.msk.bf16.gmra.mrb[32].mxu0 %vm628_vm2, %v11385_v23 }
  0x54   : > { %10469 = vmatprep.mubr.msk.bf16.mxu0 %vm628_vm2, %v11386_v24 }
  0x5b   : > { %10470 = vmatmul.mubr.msk.bf16.gmra.mrb[36].mxu0 %vm628_vm2, %v11387_v25 }
  0x5c   : > { %10473 = vmatprep.mubr.msk.bf16.mxu0 %vm628_vm2, %v11388_v26 }
  0x63   : > { %10474 = vmatmul.mubr.msk.bf16.gmra.mrb[40].mxu0 %vm628_vm2, %v11389_v27 }
  0x64   : > { %10477 = vmatprep.mubr.msk.bf16.mxu0 %vm628_vm2, %v11390_v28 }
  0x6b   : > { %10478 = vmatmul.mubr.msk.bf16.gmra.mrb[44].mxu0 %vm628_vm2, %v11391_v29 }
  0x6c   : > { %10481 = vmatprep.mubr.msk.bf16.mxu0 %vm628_vm2, %v11392_v30 }
  0x73   : > { %10482 = vmatmul.mubr.msk.bf16.gmra.mrb[48].mxu0 %vm628_vm2, %v11393_v31 }
  0x74   : > { %10485 = vmatprep.mubr.msk.bf16.mxu0 %vm628_vm2, %v11394_v32 }
  0x7b   : > { %10486 = vmatmul.mubr.msk.bf16.gmra.mrb[52].mxu0 %vm628_vm2, %v11395_v33 }
  0x7c   : > { %10489 = vmatprep.mubr.msk.bf16.mxu0 %vm628_vm2, %v11396_v34 }
  0x83   : > { %10490 = vmatmul.mubr.msk.bf16.gmra.mrb[56].mxu0 %vm628_vm2, %v11397_v35 }
  0x84   : > { %10493 = vmatprep.mubr.msk.bf16.mxu0 %vm628_vm2, %v11398_v36 }
  0x8b   : > { %10494 = vmatmul.mubr.msk.bf16.gmra.mrb[60].mxu0 %vm628_vm2, %v11399_v37 }
  0x8c   : > { %10497 = vmatprep.mubr.msk.bf16.mxu0 %vm628_vm2, %v11400_v38 }
  0x93   : > { %10498 = vmatmul.mubr.msk.bf16.gmra.mrb[64].mxu0 %vm628_vm2, %v11401_v39 }
  0x94   : > { %10501 = vmatprep.mubr.msk.bf16.mxu0 %vm628_vm2, %v11402_v40 }
  0x9b   : > { %10502 = vmatmul.mubr.msk.bf16.gmra.mrb[68].mxu0 %vm628_vm2, %v11403_v41 }
  0x9c   : > { %10513 = vmatprep.mubr.msk.bf16.mxu0 %vm11980_vm3, %v11979_v7 }
  0xe6   : > { %v10435_v45 = vpop.f32.mrb[0].mxu0 }
  0xe7   : > { %v1074_v46 = vmul.f32 %v10435_v45, %v12137_v43  ;;  %v778_v47 = vpop.f32.mrb[1].mxu0 }
  0xe8   : > { %v1072_v48 = vmul.f32 %v12137_v43, %v778_v47  ;;  %v10436_v49 = vpop.f32.mrb[2].mxu0 }
  0xe9   : > { %v1153_v50 = vadd.f32 %v12142_v44, %v1074_v46  ;;  %v1075_v51 = vmul.f32 %v10436_v49, %v12137_v43  ;;  %v781_v52 = vpop.f32.mrb[3].mxu0 }
  0xea   : > { %v1151_v53 = vadd.f32 %v12142_v44, %v1072_v48  ;;  %v1073_v54 = vmul.f32 %v12137_v43, %v781_v52 }
  0xeb   : > { %v1154_v55 = vadd.f32 %v12142_v44, %v1075_v51  ;;  %v1225_v56 = vmax.f32 %v1153_v50, 0.0 }
  0xec   : > { %v1152_v57 = vadd.f32 %v12142_v44, %v1073_v54  ;;  %v1223_v58 = vmax.f32 %v1151_v53, 0.0 }
  0xed   : > { %v1226_v59 = vmax.f32 %v1154_v55, 0.0 }
  0xee   : > { %v1224_v60 = vmax.f32 %v1152_v57, 0.0  ;;  %v10439_v61 = vpop.f32.mrb[4].mxu0 }
  0xef   : > { %v1078_v62 = vmul.f32 %v10439_v61, %v12137_v43  ;;  %v794_v63 = vpop.f32.mrb[5].mxu0  ;;  %v12153_v0 = vpack.c.bf16 %v1226_v59, %v1225_v56 }
  0xf0   : > { %v1076_v1 = vmul.f32 %v12137_v43, %v794_v63  ;;  %v10440_v2 = vpop.f32.mrb[6].mxu0  ;;  %v12156_v3 = vpack.c.bf16 %v1224_v60, %v1223_v58 }
  0xf1   : > { %v1157_v4 = vadd.f32 %v12142_v44, %v1078_v62  ;;  %v1079_v5 = vmul.f32 %v10440_v2, %v12137_v43  ;;  %v797_v6 = vpop.f32.mrb[7].mxu0 }
  0xf2   : > { %v1155_v8 = vadd.f32 %v12142_v44, %v1076_v1  ;;  %v1077_v9 = vmul.f32 %v12137_v43, %v797_v6 }
  0xf3   : > { %v1158_v10 = vadd.f32 %v12142_v44, %v1079_v5  ;;  %v1229_v11 = vmax.f32 %v1157_v4, 0.0 }
  0xf4   : > { %v1156_v12 = vadd.f32 %v12142_v44, %v1077_v9  ;;  %v1227_v13 = vmax.f32 %v1155_v8, 0.0 }
  0xf5   : > { %v1230_v14 = vmax.f32 %v1158_v10, 0.0 }
  0xf6   : > { %v1228_v15 = vmax.f32 %v1156_v12, 0.0  ;;  %v10443_v16 = vpop.f32.mrb[8].mxu0 }
  0xf7   : > { %v1082_v17 = vmul.f32 %v10443_v16, %v12137_v43  ;;  %v810_v18 = vpop.f32.mrb[9].mxu0  ;;  %v12166_v19 = vpack.c.bf16 %v1230_v14, %v1229_v11 }
  0xf8   : > { %v1080_v20 = vmul.f32 %v12137_v43, %v810_v18  ;;  %v10444_v21 = vpop.f32.mrb[10].mxu0  ;;  %v12169_v22 = vpack.c.bf16 %v1228_v15, %v1227_v13 }
  0xf9   : > { %v1161_v23 = vadd.f32 %v12142_v44, %v1082_v17  ;;  %v1083_v24 = vmul.f32 %v10444_v21, %v12137_v43  ;;  %v813_v25 = vpop.f32.mrb[11].mxu0 }
  0xfa   : > { %v1159_v26 = vadd.f32 %v12142_v44, %v1080_v20  ;;  %v1081_v27 = vmul.f32 %v12137_v43, %v813_v25 }
  0xfb   : > { %v1162_v28 = vadd.f32 %v12142_v44, %v1083_v24  ;;  %v1233_v30 = vmax.f32 %v1161_v23, 0.0 }
  0xfc   : > { %v1160_v29 = vadd.f32 %v12142_v44, %v1081_v27  ;;  %v1231_v32 = vmax.f32 %v1159_v26, 0.0 }
  0xfd   : > { %v1234_v31 = vmax.f32 %v1162_v28, 0.0 }
  0xfe   : > { %v1232_v33 = vmax.f32 %v1160_v29, 0.0  ;;  %v10447_v34 = vpop.f32.mrb[12].mxu0 }
  0xff   : > { %v1086_v35 = vmul.f32 %v10447_v34, %v12137_v43  ;;  %v826_v36 = vpop.f32.mrb[13].mxu0  ;;  %v12178_v37 = vpack.c.bf16 %v1234_v31, %v1233_v30 }
 0x100   : > { %v1084_v38 = vmul.f32 %v12137_v43, %v826_v36  ;;  %v10448_v39 = vpop.f32.mrb[14].mxu0  ;;  %v12183_v40 = vpack.c.bf16 %v1232_v33, %v1231_v32 }
 0x101   : > { %v1165_v41 = vadd.f32 %v12142_v44, %v1086_v35  ;;  %v1087_v42 = vmul.f32 %v10448_v39, %v12137_v43  ;;  %v829_v45 = vpop.f32.mrb[15].mxu0 }
 0x102   : > { %v1163_v46 = vadd.f32 %v12142_v44, %v1084_v38  ;;  %v1085_v47 = vmul.f32 %v12137_v43, %v829_v45 }
 0x103   : > { %v1166_v48 = vadd.f32 %v12142_v44, %v1087_v42  ;;  %v1237_v49 = vmax.f32 %v1165_v41, 0.0 }
 0x104   : > { %v1164_v50 = vadd.f32 %v12142_v44, %v1085_v47  ;;  %v1235_v51 = vmax.f32 %v1163_v46, 0.0 }
 0x105   : > { %v1238_v52 = vmax.f32 %v1166_v48, 0.0 }
 0x106   : > { %v1236_v53 = vmax.f32 %v1164_v50, 0.0  ;;  %v10451_v54 = vpop.f32.mrb[16].mxu0 }
 0x107   : > { %v1090_v55 = vmul.f32 %v10451_v54, %v12137_v43  ;;  %v842_v56 = vpop.f32.mrb[17].mxu0  ;;  %v12192_v57 = vpack.c.bf16 %v1238_v52, %v1237_v49 }
 0x108   : > { %v1088_v58 = vmul.f32 %v12137_v43, %v842_v56  ;;  %v10452_v59 = vpop.f32.mrb[18].mxu0  ;;  %v12195_v60 = vpack.c.bf16 %v1236_v53, %v1235_v51 }
 0x109   : > { %v1169_v61 = vadd.f32 %v12142_v44, %v1090_v55  ;;  %v1091_v62 = vmul.f32 %v10452_v59, %v12137_v43  ;;  %v845_v63 = vpop.f32.mrb[19].mxu0 }
 0x10a   : > { %v1089_v1 = vmul.f32 %v12137_v43, %v845_v63  ;;  %v1167_v2 = vadd.f32 %v12142_v44, %v1088_v58 }
 0x10b   : > { %v1170_v4 = vadd.f32 %v12142_v44, %v1091_v62  ;;  %v1241_v5 = vmax.f32 %v1169_v61, 0.0 }
 0x10c   : > { %v1168_v6 = vadd.f32 %v12142_v44, %v1089_v1  ;;  %v1239_v9 = vmax.f32 %v1167_v2, 0.0 }
 0x10d   : > { %v1242_v8 = vmax.f32 %v1170_v4, 0.0 }
 0x10e   : > { %v10455_v10 = vpop.f32.mrb[20].mxu0  ;;  %v1240_v11 = vmax.f32 %v1168_v6, 0.0 }
 0x10f   : > { %v1094_v12 = vmul.f32 %v10455_v10, %v12137_v43  ;;  %v858_v13 = vpop.f32.mrb[21].mxu0  ;;  %v1304_v14 = vpack.c.bf16 %v1242_v8, %v1241_v5 }
 0x110   : > { %v1092_v15 = vmul.f32 %v12137_v43, %v858_v13  ;;  %v10456_v16 = vpop.f32.mrb[22].mxu0  ;;  %v1303_v17 = vpack.c.bf16 %v1240_v11, %v1239_v9 }
 0x111   : > { %v1173_v18 = vadd.f32 %v12142_v44, %v1094_v12  ;;  %v1095_v20 = vmul.f32 %v10456_v16, %v12137_v43  ;;  %v861_v21 = vpop.f32.mrb[23].mxu0 }
 0x112   : > { %v1171_v23 = vadd.f32 %v12142_v44, %v1092_v15  ;;  %v1093_v24 = vmul.f32 %v12137_v43, %v861_v21  ;;  %9971 = vmatprep.subr.bf16.mxu1 %v1303_v17 }
 0x113   : > { %v1174_v25 = vadd.f32 %v12142_v44, %v1095_v20  ;;  %9972 = vmatpush3.bf16.msra.mxu1 %v12156_v3  ;;  %v1245_v26 = vmax.f32 %v1173_v18, 0.0 }
 0x114   : > { %v1172_v27 = vadd.f32 %v12142_v44, %v1093_v24  ;;  %9973 = vmatprep.subr.bf16.mxu1 %v1304_v14  ;;  %v1243_v28 = vmax.f32 %v1171_v23, 0.0 }
 0x115   : > { %v1246_v29 = vmax.f32 %v1174_v25, 0.0 }
 0x116   : > { %v1244_v30 = vmax.f32 %v1172_v27, 0.0  ;;  %v10459_v31 = vpop.f32.mrb[24].mxu0  ;;  %v11404_v27 = vld [vmem:[%s14799_s4] ss:$20 sps:$4 sm:$0xff]  }
 0x117   : > { %v1098_v32 = vmul.f32 %v10459_v31, %v12137_v43  ;;  %v874_v33 = vpop.f32.mrb[25].mxu0  ;;  %9974 = vmatpush3.bf16.msra.mxu1 %v12153_v0  ;;  %v1306_v34 = vpack.c.bf16 %v1246_v29, %v1245_v26 }
 0x118   : > { %v1096_v35 = vmul.f32 %v12137_v43, %v874_v33  ;;  %v10460_v36 = vpop.f32.mrb[26].mxu0  ;;  %v1305_v38 = vpack.c.bf16 %v1244_v30, %v1243_v28 }
 0x119   : > { %v1177_v3 = vadd.f32 %v12142_v44, %v1098_v32  ;;  %v1099_v39 = vmul.f32 %v10460_v36, %v12137_v43  ;;  %v877_v41 = vpop.f32.mrb[27].mxu0 }
 0x11a   : > { %v1175_v42 = vadd.f32 %v12142_v44, %v1096_v35  ;;  %v1097_v45 = vmul.f32 %v12137_v43, %v877_v41  ;;  %9975 = vmatprep.subr.bf16.mxu1 %v1305_v38 }
 0x11b   : > { %v1178_v46 = vadd.f32 %v12142_v44, %v1099_v39  ;;  %9976 = vmatpush3.bf16.msra.mxu1 %v12169_v22  ;;  %v1249_v0 = vmax.f32 %v1177_v3, 0.0 }
 0x11c   : > { %v1176_v47 = vadd.f32 %v12142_v44, %v1097_v45  ;;  %9977 = vmatprep.subr.bf16.mxu1 %v1306_v34  ;;  %v1247_v48 = vmax.f32 %v1175_v42, 0.0 }
 0x11d   : > { %v1250_v49 = vmax.f32 %v1178_v46, 0.0 }
 0x11e   : > { %v1248_v50 = vmax.f32 %v1176_v47, 0.0  ;;  %v10463_v51 = vpop.f32.mrb[28].mxu0  ;;  %v11409_v47 = vld [vmem:[%s14799_s4 + $0x28] ss:$20 sps:$4 sm:$0xff]  }
 0x11f   : > { %v1102_v52 = vmul.f32 %v10463_v51, %v12137_v43  ;;  %v890_v53 = vpop.f32.mrb[29].mxu0  ;;  %9978 = vmatpush3.bf16.msra.mxu1 %v12166_v19  ;;  %v1308_v54 = vpack.c.bf16 %v1250_v49, %v1249_v0  ;;  %v11410_v51 = vld [vmem:[%s14799_s4 + $0x54] ss:$20 sps:$4 sm:$0xff]  }
 0x120   : > { %v1100_v55 = vmul.f32 %v12137_v43, %v890_v53  ;;  %v10464_v56 = vpop.f32.mrb[30].mxu0  ;;  %v1307_v58 = vpack.c.bf16 %v1248_v50, %v1247_v48 }
 0x121   : > { %v1181_v22 = vadd.f32 %v12142_v44, %v1102_v52  ;;  %v1103_v59 = vmul.f32 %v10464_v56, %v12137_v43  ;;  %v893_v61 = vpop.f32.mrb[31].mxu0 }
 0x122   : > { %v1179_v62 = vadd.f32 %v12142_v44, %v1100_v55  ;;  %v1101_v63 = vmul.f32 %v12137_v43, %v893_v61  ;;  %9979 = vmatprep.subr.bf16.mxu1 %v1307_v58 }
 0x123   : > { %v1182_v1 = vadd.f32 %v12142_v44, %v1103_v59  ;;  %9980 = vmatpush3.bf16.msra.mxu1 %v12183_v40  ;;  %v1253_v2 = vmax.f32 %v1181_v22, 0.0 }
 0x124   : > { %v1180_v19 = vadd.f32 %v12142_v44, %v1101_v63  ;;  %9981 = vmatprep.subr.bf16.mxu1 %v1308_v54  ;;  %v1251_v5 = vmax.f32 %v1179_v62, 0.0 }
 0x125   : > { %v1254_v4 = vmax.f32 %v1182_v1, 0.0 }
 0x126   : > { %v1252_v6 = vmax.f32 %v1180_v19, 0.0  ;;  %v10467_v8 = vpop.f32.mrb[32].mxu0 }
 0x127   : > { %v1106_v9 = vmul.f32 %v10467_v8, %v12137_v43  ;;  %v906_v10 = vpop.f32.mrb[33].mxu0  ;;  %9982 = vmatpush3.bf16.msra.mxu1 %v12178_v37  ;;  %v1310_v11 = vpack.c.bf16 %v1254_v4, %v1253_v2 }
 0x128   : > { %v1104_v12 = vmul.f32 %v12137_v43, %v906_v10  ;;  %v10468_v13 = vpop.f32.mrb[34].mxu0  ;;  %v1309_v14 = vpack.c.bf16 %v1252_v6, %v1251_v5  ;;  %v11412_v5 = vld [vmem:[%s14799_s4 + $0x50] ss:$20 sps:$4 sm:$0xff]  }
 0x129   : > { %v1185_v40 = vadd.f32 %v12142_v44, %v1106_v9  ;;  %v1107_v15 = vmul.f32 %v10468_v13, %v12137_v43  ;;  %v909_v16 = vpop.f32.mrb[35].mxu0  ;;  %v11413_v10 = vld [vmem:[%s14799_s4 + $0x7c] ss:$20 sps:$4 sm:$0xff]  }
 0x12a   : > { %v1183_v17 = vadd.f32 %v12142_v44, %v1104_v12  ;;  %v1105_v18 = vmul.f32 %v12137_v43, %v909_v16  ;;  %9983 = vmatprep.subr.bf16.mxu1 %v1309_v14 }
 0x12b   : > { %v1186_v20 = vadd.f32 %v12142_v44, %v1107_v15  ;;  %9984 = vmatpush3.bf16.msra.mxu1 %v12195_v60  ;;  %v1257_v21 = vmax.f32 %v1185_v40, 0.0  ;;  %v11407_v60 = vld [vmem:[%s14799_s4 + $0x2c] ss:$20 sps:$4 sm:$0xff]  }
 0x12c   : > { %v1184_v37 = vadd.f32 %v12142_v44, %v1105_v18  ;;  %9985 = vmatprep.subr.bf16.mxu1 %v1310_v11  ;;  %v1255_v24 = vmax.f32 %v1183_v17, 0.0 }
 0x12d   : > { %v1258_v23 = vmax.f32 %v1186_v20, 0.0 }
 0x12e   : > { %v1256_v25 = vmax.f32 %v1184_v37, 0.0  ;;  %v10471_v26 = vpop.f32.mrb[36].mxu0 }
 0x12f   : > { %v12245_v28 = vpack.c.bf16 %v1258_v23, %v1257_v21  ;;  %v1110_v29 = vmul.f32 %v10471_v26, %v12137_v43  ;;  %v922_v30 = vpop.f32.mrb[37].mxu0  ;;  %9986 = vmatpush3.bf16.msra.mxu1 %v12192_v57  ;;  %v11415_v26 = vld [vmem:[%s14799_s4 + $0x78] ss:$20 sps:$4 sm:$0xff]  }
 0x130   : > { %v12252_v31 = vpack.c.bf16 %v1256_v25, %v1255_v24  ;;  %v1108_v32 = vmul.f32 %v12137_v43, %v922_v30  ;;  %v10472_v33 = vpop.f32.mrb[38].mxu0 }
 0x131   : > { %v1189_v34 = vadd.f32 %v12142_v44, %v1110_v29  ;;  %v1111_v35 = vmul.f32 %v10472_v33, %v12137_v43  ;;  %v925_v36 = vpop.f32.mrb[39].mxu0 }
 0x132   : > { %v1187_v38 = vadd.f32 %v12142_v44, %v1108_v32  ;;  %v1109_v3 = vmul.f32 %v12137_v43, %v925_v36  ;;  %1671 = vmatmul.mubr.bf16.vlgmr.msra.gmra.mrb[0].mxu1 %v11404_v27 }
 0x133   : > { %v1190_v57 = vadd.f32 %v12142_v44, %v1111_v35  ;;  %1678 = vmatprep.mubr.bf16.mxu1 %v11407_v60  ;;  %v1261_v41 = vmax.f32 %v1189_v34, 0.0  ;;  %v11416_v60 = vld [vmem:[%s14799_s4 + $0xa4] ss:$20 sps:$4 sm:$0xff]  }
 0x134   : > { %v1188_v39 = vadd.f32 %v12142_v44, %v1109_v3  ;;  %v1259_v45 = vmax.f32 %v1187_v38, 0.0 }
 0x135   : > { %v1262_v42 = vmax.f32 %v1190_v57, 0.0 }
 0x136   : > { %v1260_v46 = vmax.f32 %v1188_v39, 0.0  ;;  %v10475_v0 = vpop.f32.mrb[40].mxu0 }
 0x137   : > { %v12264_v48 = vpack.c.bf16 %v1262_v42, %v1261_v41  ;;  %v1114_v49 = vmul.f32 %v10475_v0, %v12137_v43  ;;  %v938_v50 = vpop.f32.mrb[41].mxu0 }
 0x138   : > { %v12270_v52 = vpack.c.bf16 %v1260_v46, %v1259_v45  ;;  %v1112_v53 = vmul.f32 %v12137_v43, %v938_v50  ;;  %v10476_v54 = vpop.f32.mrb[42].mxu0 }
 0x139   : > { %v1193_v55 = vadd.f32 %v12142_v44, %v1114_v49  ;;  %v1115_v56 = vmul.f32 %v10476_v54, %v12137_v43  ;;  %v941_v58 = vpop.f32.mrb[43].mxu0  ;;  %v11418_v49 = vld [vmem:[%s14799_s4 + $0xa0] ss:$20 sps:$4 sm:$0xff]  }
 0x13a   : > { %v1191_v22 = vadd.f32 %v12142_v44, %v1112_v53  ;;  %v1113_v59 = vmul.f32 %v12137_v43, %v941_v58  ;;  %1679 = vmatmul.mubr.bf16.gmra.mrb[4].mxu1 %v11409_v47  ;;  %v11419_v54 = vld [vmem:[%s14799_s4 + $0xcc] ss:$20 sps:$4 sm:$0xff]  }
 0x13b   : > { %v1194_v61 = vadd.f32 %v12142_v44, %v1115_v56  ;;  %1686 = vmatprep.mubr.bf16.mxu1 %v11410_v51  ;;  %v1265_v63 = vmax.f32 %v1193_v55, 0.0 }
 0x13c   : > { %v1192_v62 = vadd.f32 %v12142_v44, %v1113_v59  ;;  %v1263_v19 = vmax.f32 %v1191_v22, 0.0 }
 0x13d   : > { %v1266_v1 = vmax.f32 %v1194_v61, 0.0 }
 0x13e   : > { %v1264_v2 = vmax.f32 %v1192_v62, 0.0  ;;  %v10479_v4 = vpop.f32.mrb[44].mxu0 }
 0x13f   : > { %v12282_v6 = vpack.c.bf16 %v1266_v1, %v1265_v63  ;;  %v1118_v8 = vmul.f32 %v10479_v4, %v12137_v43  ;;  %v954_v9 = vpop.f32.mrb[45].mxu0 }
 0x140   : > { %v12288_v11 = vpack.c.bf16 %v1264_v2, %v1263_v19  ;;  %v1116_v12 = vmul.f32 %v12137_v43, %v954_v9  ;;  %v10480_v13 = vpop.f32.mrb[46].mxu0 }
 0x141   : > { %v1197_v14 = vadd.f32 %v12142_v44, %v1118_v8  ;;  %v1119_v40 = vmul.f32 %v10480_v13, %v12137_v43  ;;  %v957_v15 = vpop.f32.mrb[47].mxu0 }
 0x142   : > { %v1195_v16 = vadd.f32 %v12142_v44, %v1116_v12  ;;  %v1117_v17 = vmul.f32 %v12137_v43, %v957_v15  ;;  %1687 = vmatmul.mubr.bf16.gmra.mrb[8].mxu1 %v11412_v5 }
 0x143   : > { %v1198_v18 = vadd.f32 %v12142_v44, %v1119_v40  ;;  %1694 = vmatprep.mubr.bf16.mxu1 %v11413_v10  ;;  %v1269_v37 = vmax.f32 %v1197_v14, 0.0  ;;  %v11421_v10 = vld [vmem:[%s14799_s4 + $0xc8] ss:$20 sps:$4 sm:$0xff]  }
 0x144   : > { %v1196_v20 = vadd.f32 %v12142_v44, %v1117_v17  ;;  %v1267_v23 = vmax.f32 %v1195_v16, 0.0 }
 0x145   : > { %v1270_v21 = vmax.f32 %v1198_v18, 0.0 }
 0x146   : > { %v1268_v24 = vmax.f32 %v1196_v20, 0.0  ;;  %v10483_v25 = vpop.f32.mrb[48].mxu0 }
 0x147   : > { %v12300_v27 = vpack.c.bf16 %v1270_v21, %v1269_v37  ;;  %v1122_v29 = vmul.f32 %v10483_v25, %v12137_v43  ;;  %v970_v30 = vpop.f32.mrb[49].mxu0 }
 0x148   : > { %v12306_v32 = vpack.c.bf16 %v1268_v24, %v1267_v23  ;;  %v1120_v33 = vmul.f32 %v12137_v43, %v970_v30  ;;  %v10484_v34 = vpop.f32.mrb[50].mxu0 }
 0x149   : > { %v1201_v35 = vadd.f32 %v12142_v44, %v1122_v29  ;;  %v1123_v36 = vmul.f32 %v10484_v34, %v12137_v43  ;;  %v973_v38 = vpop.f32.mrb[51].mxu0 }
 0x14a   : > { %v1199_v3 = vadd.f32 %v12142_v44, %v1120_v33  ;;  %v1121_v57 = vmul.f32 %v12137_v43, %v973_v38  ;;  %1695 = vmatmul.mubr.bf16.gmra.mrb[12].mxu1 %v11415_v26 }
 0x14b   : > { %v1202_v39 = vadd.f32 %v12142_v44, %v1123_v36  ;;  %1702 = vmatprep.mubr.bf16.mxu1 %v11416_v60  ;;  %v1273_v42 = vmax.f32 %v1201_v35, 0.0  ;;  %v11424_v60 = vld [vmem:[%s14799_s4 + $0xf0] ss:$20 sps:$4 sm:$0xff]  }
 0x14c   : > { %v1200_v41 = vadd.f32 %v12142_v44, %v1121_v57  ;;  %v1271_v46 = vmax.f32 %v1199_v3, 0.0 }
 0x14d   : > { %v1274_v45 = vmax.f32 %v1202_v39, 0.0 }
 0x14e   : > { %v1272_v0 = vmax.f32 %v1200_v41, 0.0  ;;  %v10487_v47 = vpop.f32.mrb[52].mxu0 }
 0x14f   : > { %v1126_v50 = vmul.f32 %v10487_v47, %v12137_v43  ;;  %v986_v51 = vpop.f32.mrb[53].mxu0  ;;  %v1320_v53 = vpack.c.bf16 %v1274_v45, %v1273_v42 }
 0x150   : > { %v1124_v55 = vmul.f32 %v12137_v43, %v986_v51  ;;  %v10488_v56 = vpop.f32.mrb[54].mxu0  ;;  %v1319_v58 = vpack.c.bf16 %v1272_v0, %v1271_v46 }
 0x151   : > { %v1205_v22 = vadd.f32 %v12142_v44, %v1126_v50  ;;  %v1127_v59 = vmul.f32 %v10488_v56, %v12137_v43  ;;  %v989_v61 = vpop.f32.mrb[55].mxu0 }
 0x152   : > { %v1203_v62 = vadd.f32 %v12142_v44, %v1124_v55  ;;  %v1125_v63 = vmul.f32 %v12137_v43, %v989_v61  ;;  %10041 = vmatprep.subr.bf16.mxu1 %v1319_v58  ;;  %1703 = vmatmul.mubr.bf16.gmra.mrb[16].mxu1 %v11418_v49 }
 0x153   : > { %v1206_v1 = vadd.f32 %v12142_v44, %v1127_v59  ;;  %10042 = vmatpush3.bf16.msra.mxu1 %v12252_v31  ;;  %1710 = vmatprep.mubr.bf16.mxu1 %v11419_v54  ;;  %v1277_v2 = vmax.f32 %v1205_v22, 0.0  ;;  %v11422_v31 = vld [vmem:[%s14799_s4 + $0xf4] ss:$20 sps:$4 sm:$0xff]  }
 0x154   : > { %v1204_v19 = vadd.f32 %v12142_v44, %v1125_v63  ;;  %10043 = vmatprep.subr.bf16.mxu1 %v1320_v53  ;;  %v1275_v5 = vmax.f32 %v1203_v62, 0.0  ;;  %v11427_v53 = vld [vmem:[%s14799_s4 + $0x118] ss:$20 sps:$4 sm:$0xff]  }
 0x155   : > { %v1278_v4 = vmax.f32 %v1206_v1, 0.0 }
 0x156   : > { %v1276_v8 = vmax.f32 %v1204_v19, 0.0  ;;  %v10491_v9 = vpop.f32.mrb[56].mxu0 }
 0x157   : > { %v1130_v12 = vmul.f32 %v10491_v9, %v12137_v43  ;;  %v1002_v13 = vpop.f32.mrb[57].mxu0  ;;  %10044 = vmatpush3.bf16.msra.mxu1 %v12245_v28  ;;  %v1322_v14 = vpack.c.bf16 %v1278_v4, %v1277_v2 }
 0x158   : > { %v1128_v40 = vmul.f32 %v12137_v43, %v1002_v13  ;;  %v10492_v15 = vpop.f32.mrb[58].mxu0  ;;  %v1321_v16 = vpack.c.bf16 %v1276_v8, %v1275_v5 }
 0x159   : > { %v1209_v17 = vadd.f32 %v12142_v44, %v1130_v12  ;;  %v1131_v18 = vmul.f32 %v10492_v15, %v12137_v43  ;;  %v1005_v20 = vpop.f32.mrb[59].mxu0  ;;  %v11430_v12 = vld [vmem:[%s14799_s4 + $0x140] ss:$20 sps:$4 sm:$0xff]  }
 0x15a   : > { %v1207_v37 = vadd.f32 %v12142_v44, %v1128_v40  ;;  %v1129_v21 = vmul.f32 %v12137_v43, %v1005_v20  ;;  %10045 = vmatprep.subr.bf16.mxu1 %v1321_v16  ;;  %1711 = vmatmul.mubr.bf16.gmra.mrb[20].mxu1 %v11421_v10 }
 0x15b   : > { %v1210_v28 = vadd.f32 %v12142_v44, %v1131_v18  ;;  %10046 = vmatpush3.bf16.msra.mxu1 %v12270_v52  ;;  %1718 = vmatprep.mubr.bf16.mxu1 %v11422_v31  ;;  %v1281_v24 = vmax.f32 %v1209_v17, 0.0  ;;  %v11425_v52 = vld [vmem:[%s14799_s4 + $0x11c] ss:$20 sps:$4 sm:$0xff]   ;;  %v11968_v18 = vld [vmem:[%s14797_s2] ss:$0 sm:$0xff] }
 0x15c   : > { %v1208_v23 = vadd.f32 %v12142_v44, %v1129_v21  ;;  %10047 = vmatprep.subr.bf16.mxu1 %v1322_v14  ;;  %v1279_v26 = vmax.f32 %v1207_v37, 0.0 }
 0x15d   : > { %v1282_v25 = vmax.f32 %v1210_v28, 0.0 }
 0x15e   : > { %v1280_v29 = vmax.f32 %v1208_v23, 0.0  ;;  %v10495_v30 = vpop.f32.mrb[60].mxu0 }
 0x15f   : > { %v1134_v33 = vmul.f32 %v10495_v30, %v12137_v43  ;;  %v1018_v34 = vpop.f32.mrb[61].mxu0  ;;  %10048 = vmatpush3.bf16.msra.mxu1 %v12264_v48  ;;  %v1324_v35 = vpack.c.bf16 %v1282_v25, %v1281_v24 }
 0x160   : > { %v1132_v36 = vmul.f32 %v12137_v43, %v1018_v34  ;;  %v10496_v38 = vpop.f32.mrb[62].mxu0  ;;  %v1323_v3 = vpack.c.bf16 %v1280_v29, %v1279_v26  ;;  %v11434_v34 = vld [vmem:[%s14799_s4 + $0x10] ss:$20 sps:$4 sm:$0xff]  }
 0x161   : > { %v1213_v57 = vadd.f32 %v12142_v44, %v1134_v33  ;;  %v1135_v39 = vmul.f32 %v10496_v38, %v12137_v43  ;;  %v1021_v41 = vpop.f32.mrb[63].mxu0  ;;  %v11441_v38 = vld [vmem:[%s14799_s4 + $0x58] ss:$20 sps:$4 sm:$0xff]  }
 0x162   : > { %v1211_v42 = vadd.f32 %v12142_v44, %v1132_v36  ;;  %v1133_v45 = vmul.f32 %v12137_v43, %v1021_v41  ;;  %10049 = vmatprep.subr.bf16.mxu1 %v1323_v3  ;;  %1719 = vmatmul.mubr.bf16.gmra.mrb[24].mxu1 %v11424_v60  ;;  %v11435_v60 = vld [vmem:[%s14799_s4 + $0x34] ss:$20 sps:$4 sm:$0xff]   ;;  %v11438_v36 = vld [vmem:[%s14799_s4 + $0x38] ss:$20 sps:$4 sm:$0xff]  }
 0x163   : > { %v1214_v48 = vadd.f32 %v12142_v44, %v1135_v39  ;;  %10050 = vmatpush3.bf16.msra.mxu1 %v12288_v11  ;;  %1726 = vmatprep.mubr.bf16.mxu1 %v11425_v52  ;;  %v1285_v0 = vmax.f32 %v1213_v57, 0.0  ;;  %v11428_v11 = vld [vmem:[%s14799_s4 + $0x144] ss:$20 sps:$4 sm:$0xff]   ;;  %v11439_v52 = vld [vmem:[%s14799_s4 + $0x5c] ss:$20 sps:$4 sm:$0xff]  }
 0x164   : > { %v1212_v46 = vadd.f32 %v12142_v44, %v1133_v45  ;;  %10051 = vmatprep.subr.bf16.mxu1 %v1324_v35  ;;  %v1283_v49 = vmax.f32 %v1211_v42, 0.0  ;;  %v11437_v35 = vld [vmem:[%s14799_s4 + $0x30] ss:$20 sps:$4 sm:$0xff]   ;;  %v11442_v57 = vld [vmem:[%s14799_s4 + $0x60] ss:$20 sps:$4 sm:$0xff]  }
 0x165   : > { %v1286_v47 = vmax.f32 %v1214_v48, 0.0  ;;  %v11443_v3 = vld [vmem:[%s14799_s4 + $0x84] ss:$20 sps:$4 sm:$0xff]   ;;  %v11445_v39 = vld [vmem:[%s14799_s4 + $0x80] ss:$20 sps:$4 sm:$0xff]  }
 0x166   : > { %v1284_v50 = vmax.f32 %v1212_v46, 0.0  ;;  %v10499_v51 = vpop.f32.mrb[64].mxu0  ;;  %v11447_v41 = vld [vmem:[%s14799_s4 + $0xac] ss:$20 sps:$4 sm:$0xff]   ;;  %v11446_v42 = vld [vmem:[%s14799_s4 + $0x88] ss:$20 sps:$4 sm:$0xff]  }
 0x167   : > { %v1138_v54 = vmul.f32 %v10499_v51, %v12137_v43  ;;  %v1034_v55 = vpop.f32.mrb[65].mxu0  ;;  %10052 = vmatpush3.bf16.msra.mxu1 %v12282_v6  ;;  %v1326_v56 = vpack.c.bf16 %v1286_v47, %v1285_v0  ;;  %v11449_v45 = vld [vmem:[%s14799_s4 + $0xa8] ss:$20 sps:$4 sm:$0xff]   ;;  %v11450_v46 = vld [vmem:[%s14799_s4 + $0xb0] ss:$20 sps:$4 sm:$0xff]  }
 0x168   : > { %v1136_v58 = vmul.f32 %v12137_v43, %v1034_v55  ;;  %v10500_v22 = vpop.f32.mrb[66].mxu0  ;;  %v1325_v59 = vpack.c.bf16 %v1284_v50, %v1283_v49  ;;  %v11451_v48 = vld [vmem:[%s14799_s4 + $0xd4] ss:$20 sps:$4 sm:$0xff]   ;;  %v11453_v0 = vld [vmem:[%s14799_s4 + $0xd0] ss:$20 sps:$4 sm:$0xff]  }
 0x169   : > { %v1217_v61 = vadd.f32 %v12142_v44, %v1138_v54  ;;  %v1139_v62 = vmul.f32 %v10500_v22, %v12137_v43  ;;  %v1037_v63 = vpop.f32.mrb[67].mxu0  ;;  %v11455_v47 = vld [vmem:[%s14799_s4 + $0xfc] ss:$20 sps:$4 sm:$0xff]   ;;  %v11454_v49 = vld [vmem:[%s14799_s4 + $0xd8] ss:$20 sps:$4 sm:$0xff]   ;;  %v11981_v22 = vmov 0  }
 0x16a   : > { %v1215_v1 = vadd.f32 %v12142_v44, %v1136_v58  ;;  %v1137_v19 = vmul.f32 %v12137_v43, %v1037_v63  ;;  %10053 = vmatprep.subr.bf16.mxu1 %v1325_v59  ;;  %1727 = vmatmul.mubr.bf16.gmra.mrb[28].mxu1 %v11427_v53  ;;  %v11457_v50 = vld [vmem:[%s14799_s4 + $0xf8] ss:$20 sps:$4 sm:$0xff]   ;;  %v11458_v53 = vld [vmem:[%s14799_s4 + $0x100] ss:$20 sps:$4 sm:$0xff]   ;;  %v11466_v58 = vld [vmem:[%s14799_s4 + $0x150] ss:$20 sps:$4 sm:$0xff]  }
 0x16b   : > { %v1218_v6 = vadd.f32 %v12142_v44, %v1139_v62  ;;  %10054 = vmatpush3.bf16.msra.mxu1 %v12306_v32  ;;  %1734 = vmatprep.mubr.bf16.mxu1 %v11428_v11  ;;  %v1289_v4 = vmax.f32 %v1217_v61, 0.0  ;;  %v11433_v32 = vld [vmem:[%s14799_s4 + $0xc] ss:$20 sps:$4 sm:$0xff]   ;;  %v11459_v51 = vld [vmem:[%s14799_s4 + $0x124] ss:$20 sps:$4 sm:$0xff]  }
 0x16c   : > { %v1216_v2 = vadd.f32 %v12142_v44, %v1137_v19  ;;  %10055 = vmatprep.subr.bf16.mxu1 %v1326_v56  ;;  %v1287_v8 = vmax.f32 %v1215_v1, 0.0  ;;  %v11461_v54 = vld [vmem:[%s14799_s4 + $0x120] ss:$20 sps:$4 sm:$0xff]   ;;  %v11462_v56 = vld [vmem:[%s14799_s4 + $0x128] ss:$20 sps:$4 sm:$0xff]  }
 0x16d   : > { %v1290_v5 = vmax.f32 %v1218_v6, 0.0  ;;  %v11463_v55 = vld [vmem:[%s14799_s4 + $0x14c] ss:$20 sps:$4 sm:$0xff]   ;;  %v11465_v11 = vld [vmem:[%s14799_s4 + $0x148] ss:$20 sps:$4 sm:$0xff]  }
 0x16e   : > { %v1288_v9 = vmax.f32 %v1216_v2, 0.0  ;;  %v10503_v10 = vpop.f32.mrb[68].mxu0 }
 0x16f   : > { %v1328_v13 = vpack.c.bf16 %v1290_v5, %v1289_v4  ;;  %v1142_v14 = vmul.f32 %v10503_v10, %v12137_v43  ;;  %v1050_v31 = vpop.f32.mrb[69].mxu0  ;;  %10056 = vmatpush3.bf16.msra.mxu1 %v12300_v27  ;;  %v11969_v27 = vld [vmem:[%s14798_s3] ss:$0 sm:$0xff] }
 0x170   : > { %v1327_v40 = vpack.c.bf16 %v1288_v9, %v1287_v8  ;;  %v1140_v15 = vmul.f32 %v12137_v43, %v1050_v31  ;;  %v10504_v16 = vpop.f32.mrb[70].mxu0  ;;  %2019 = vmatprep.subr.bf16.mxu1 %v11981_v22 }
 0x171   : > { %v1221_v17 = vadd.f32 %v12142_v44, %v1142_v14  ;;  %v1143_v20 = vmul.f32 %v11968_v18, %v10504_v16  ;;  %v1053_v37 = vpop.f32.mrb[71].mxu0 }
 0x172   : > { %v1219_v21 = vadd.f32 %v12142_v44, %v1140_v15  ;;  %v1141_v28 = vmul.f32 %v11968_v18, %v1053_v37  ;;  %10506 = vmatpush3.bf16.msra.mxu0 %v1327_v40  ;;  %1735 = vmatmul.mubr.bf16.gmra.mrb[32].mxu1 %v11430_v12  ;;  %v11431_v44 = vld [vmem:[%s14799_s4 + $0x8] ss:$20 sps:$4 sm:$0xff]   ;;  %v11469_v40 = vld [vmem:[%s14800_s5 + $0x4] ss:$8 sps:$4 sm:$0xff]  }
 0x173   : > { %v1222_v23 = vadd.f32 %v11969_v27, %v1143_v20  ;;  %10507 = vmatprep.subr.bf16.mxu0 %v11979_v7  ;;  %1775 = vmatprep.mubr.bf16.mxu1 %v11433_v32  ;;  %v1293_v24 = vmax.f32 %v1221_v17, 0.0 }
 0x174   : > { %v1220_v43 = vadd.f32 %v11969_v27, %v1141_v28  ;;  %v1291_v26 = vmax.f32 %v1219_v21, 0.0 }
 0x175   : > { %v1294_v25 = vmax.f32 %v1222_v23, 0.0 }
 0x176   : > { %v1292_v29 = vmax.f32 %v1220_v43, 0.0  ;;  %10508 = vmatpush3.bf16.msra.mxu0 %v1328_v13 }
 0x177   : > { %v1330_v30 = vpack.c.bf16 %v1294_v25, %v1293_v24  ;;  %10509 = vmatprep.subr.bf16.mxu0 %v11979_v7 }
 0x178   : > { %v1329_v33 = vpack.c.bf16 %v1292_v29, %v1291_v26 }
 0x17a   : > { %10510 = vmatpush3.bf16.msra.mxu0 %v1329_v33  ;;  %1776 = vmatmul.mubr.bf16.vlgmr.msra.gmra.mrb[36].mxu1 %v11431_v44 }
 0x17b   : > { %10511 = vmatprep.subr.bf16.mxu0 %v11979_v7  ;;  %1783 = vmatprep.mubr.bf16.mxu1 %v11435_v60 }
 0x17e   : > { %10512 = vmatpush3.bf16.msra.mxu0 %v1330_v30 }
 0x181   : > { %10514 = vmatmul.mubr.msk.bf16.vlgmr.msra.gmra.mrb[72].mxu0 %vm1610_vm4, %v11434_v34 }
 0x182   : > { %1784 = vmatmul.mubr.bf16.gmra.mrb[40].mxu1 %v11437_v35  ;;  %10517 = vmatprep.mubr.msk.bf16.mxu0 %vm11980_vm3, %v11979_v7 }
 0x183   : > { %1791 = vmatprep.mubr.bf16.mxu1 %v11439_v52 }
 0x189   : > { %10518 = vmatmul.mubr.msk.bf16.gmra.mrb[76].mxu0 %vm1610_vm4, %v11438_v36 }
 0x18a   : > { %1792 = vmatmul.mubr.bf16.gmra.mrb[44].mxu1 %v11441_v38  ;;  %10521 = vmatprep.mubr.msk.bf16.mxu0 %vm11980_vm3, %v11979_v7 }
 0x18b   : > { %1799 = vmatprep.mubr.bf16.mxu1 %v11443_v3 }
 0x191   : > { %10522 = vmatmul.mubr.msk.bf16.gmra.mrb[80].mxu0 %vm1610_vm4, %v11442_v57 }
 0x192   : > { %1800 = vmatmul.mubr.bf16.gmra.mrb[48].mxu1 %v11445_v39  ;;  %10525 = vmatprep.mubr.msk.bf16.mxu0 %vm11980_vm3, %v11979_v7 }
 0x193   : > { %1807 = vmatprep.mubr.bf16.mxu1 %v11447_v41 }
 0x199   : > { %10526 = vmatmul.mubr.msk.bf16.gmra.mrb[84].mxu0 %vm1610_vm4, %v11446_v42 }
 0x19a   : > { %1808 = vmatmul.mubr.bf16.gmra.mrb[52].mxu1 %v11449_v45  ;;  %10529 = vmatprep.mubr.msk.bf16.mxu0 %vm11980_vm3, %v11979_v7 }
 0x19b   : > { %1815 = vmatprep.mubr.bf16.mxu1 %v11451_v48 }
 0x1a1   : > { %10530 = vmatmul.mubr.msk.bf16.gmra.mrb[88].mxu0 %vm1610_vm4, %v11450_v46 }
 0x1a2   : > { %1816 = vmatmul.mubr.bf16.gmra.mrb[56].mxu1 %v11453_v0  ;;  %10533 = vmatprep.mubr.msk.bf16.mxu0 %vm11980_vm3, %v11979_v7 }
 0x1a3   : > { %1823 = vmatprep.mubr.bf16.mxu1 %v11455_v47 }
 0x1a9   : > { %10534 = vmatmul.mubr.msk.bf16.gmra.mrb[92].mxu0 %vm1610_vm4, %v11454_v49 }
 0x1aa   : > { %1824 = vmatmul.mubr.bf16.gmra.mrb[60].mxu1 %v11457_v50  ;;  %10537 = vmatprep.mubr.msk.bf16.mxu0 %vm11980_vm3, %v11979_v7 }
 0x1ab   : > { %1831 = vmatprep.mubr.bf16.mxu1 %v11459_v51 }
 0x1b1   : > { %10538 = vmatmul.mubr.msk.bf16.gmra.mrb[96].mxu0 %vm1610_vm4, %v11458_v53 }
 0x1b2   : > { %1832 = vmatmul.mubr.bf16.gmra.mrb[64].mxu1 %v11461_v54  ;;  %10541 = vmatprep.mubr.msk.bf16.mxu0 %vm11980_vm3, %v11979_v7 }
 0x1b3   : > { %1839 = vmatprep.mubr.bf16.mxu1 %v11463_v55 }
 0x1b9   : > { %10542 = vmatmul.mubr.msk.bf16.gmra.mrb[100].mxu0 %vm1610_vm4, %v11462_v56 }
 0x1ba   : > { %1840 = vmatmul.mubr.bf16.gmra.mrb[68].mxu1 %v11465_v11  ;;  %10545 = vmatprep.mubr.msk.bf16.mxu0 %vm11980_vm3, %v11979_v7 }
 0x1bb   : > { %8849 = vmatprep.mubr.msk.bf16.mxu1 %vm2006_vm5, %v11469_v40 }
 0x1c1   : > { %10546 = vmatmul.mubr.msk.bf16.gmra.mrb[104].mxu0 %vm1610_vm4, %v11466_v58 }
 0x205   : > { %v9987_v59 = vpop.f32.mrb[0].mxu1 }
 0x206   : > { %v9988_v61 = vpop.f32.mrb[1].mxu1 }
 0x207   : > { %v9989_v62 = vadd.f32 %v9988_v61, %v9987_v59  ;;  %v9990_v63 = vpop.f32.mrb[2].mxu1 }
 0x208   : > { %v9991_v1 = vpop.f32.mrb[3].mxu1 }
 0x209   : > { %v9992_v19 = vadd.f32 %v9991_v1, %v9990_v63 }
 0x20d   : > { %v9993_v6 = vpop.f32.mrb[4].mxu1 }
 0x20e   : > { %v9994_v2 = vpop.f32.mrb[5].mxu1 }
 0x20f   : > { %v12502_v4 = vadd.f32 %v9994_v2, %v9993_v6  ;;  %v9996_v5 = vpop.f32.mrb[6].mxu1 }
 0x210   : > { %v9997_v8 = vpop.f32.mrb[7].mxu1 }
 0x211   : > { %v12504_v9 = vadd.f32 %v9997_v8, %v9996_v5 }
 0x215   : > { %v9999_v10 = vpop.f32.mrb[8].mxu1 }
 0x216   : > { %v10000_v12 = vpop.f32.mrb[9].mxu1 }
 0x217   : > { %v12506_v13 = vadd.f32 %v10000_v12, %v9999_v10  ;;  %v10002_v14 = vpop.f32.mrb[10].mxu1 }
 0x218   : > { %v10003_v31 = vpop.f32.mrb[11].mxu1 }
 0x219   : > { %v12508_v32 = vadd.f32 %v10003_v31, %v10002_v14 }
 0x21d   : > { %v10005_v15 = vpop.f32.mrb[12].mxu1 }
 0x21e   : > { %v10006_v16 = vpop.f32.mrb[13].mxu1 }
 0x21f   : > { %v12514_v17 = vadd.f32 %v10006_v16, %v10005_v15  ;;  %v10008_v18 = vpop.f32.mrb[14].mxu1 }
 0x220   : > { %v10009_v20 = vpop.f32.mrb[15].mxu1 }
 0x221   : > { %v12516_v37 = vadd.f32 %v10009_v20, %v10008_v18 }
 0x225   : > { %v10011_v21 = vpop.f32.mrb[16].mxu1 }
 0x226   : > { %v10012_v28 = vpop.f32.mrb[17].mxu1 }
 0x227   : > { %v12518_v27 = vadd.f32 %v10012_v28, %v10011_v21  ;;  %v10014_v23 = vpop.f32.mrb[18].mxu1 }
 0x228   : > { %v10015_v43 = vpop.f32.mrb[19].mxu1 }
 0x229   : > { %v12520_v24 = vadd.f32 %v10015_v43, %v10014_v23 }
 0x22d   : > { %v10017_v25 = vpop.f32.mrb[20].mxu1 }
 0x22e   : > { %v10018_v26 = vpop.f32.mrb[21].mxu1 }
 0x22f   : > { %v12522_v29 = vadd.f32 %v10018_v26, %v10017_v25  ;;  %v10020_v44 = vpop.f32.mrb[22].mxu1 }
 0x230   : > { %v10021_v30 = vpop.f32.mrb[23].mxu1 }
 0x231   : > { %v12524_v60 = vadd.f32 %v10021_v30, %v10020_v44 }
 0x235   : > { %v10023_v33 = vpop.f32.mrb[24].mxu1 }
 0x236   : > { %v10024_v34 = vpop.f32.mrb[25].mxu1 }
 0x237   : > { %v12526_v35 = vadd.f32 %v10024_v34, %v10023_v33  ;;  %v10026_v52 = vpop.f32.mrb[26].mxu1 }
 0x238   : > { %v10027_v36 = vpop.f32.mrb[27].mxu1 }
 0x239   : > { %v12528_v38 = vadd.f32 %v10027_v36, %v10026_v52 }
 0x23d   : > { %v10029_v3 = vpop.f32.mrb[28].mxu1 }
 0x23e   : > { %v10030_v57 = vpop.f32.mrb[29].mxu1 }
 0x23f   : > { %v12530_v39 = vadd.f32 %v10030_v57, %v10029_v3  ;;  %v10032_v41 = vpop.f32.mrb[30].mxu1 }
 0x240   : > { %v10033_v42 = vpop.f32.mrb[31].mxu1 }
 0x241   : > { %v12532_v45 = vadd.f32 %v10033_v42, %v10032_v41 }
 0x245   : > { %v10035_v48 = vpop.f32.mrb[32].mxu1 }
 0x246   : > { %v10036_v46 = vpop.f32.mrb[33].mxu1 }
 0x247   : > { %v12534_v0 = vadd.f32 %v10036_v46, %v10035_v48  ;;  %v10038_v47 = vpop.f32.mrb[34].mxu1 }
 0x248   : > { %v10039_v49 = vpop.f32.mrb[35].mxu1 }
 0x249   : > { %v12536_v50 = vadd.f32 %v10039_v49, %v10038_v47 }
 0x24d   : > { %v10057_v51 = vpop.f32.mrb[36].mxu1 }
 0x24e   : > { %v10058_v53 = vpop.f32.mrb[37].mxu1 }
 0x24f   : > { %v10059_v54 = vadd.f32 %v10058_v53, %v10057_v51  ;;  %v10060_v55 = vpop.f32.mrb[38].mxu1 }
 0x250   : > { %v10061_v56 = vpop.f32.mrb[39].mxu1 }
 0x251   : > { %v10062_v11 = vadd.f32 %v10061_v56, %v10060_v55  ;;  %v1778_v58 = vadd.f32 %v10059_v54, %v9989_v62 }
 0x253   : > { %v1781_v59 = vadd.f32 %v10062_v11, %v9992_v19 }
 0x254   : > { %v1882_v61 = vpop.f32.mrb[72].mxu0 }
 0x255   : > { %v10063_v63 = vpop.f32.mrb[40].mxu1  ;;  %v1883_v1 = vadd.f32 %v1882_v61, %v1778_v58  ;;  %v10515_v6 = vpop.f32.mrb[73].mxu0 }
 0x256   : > { %v10064_v2 = vpop.f32.mrb[41].mxu1  ;;  %v1885_v5 = vpop.f32.mrb[74].mxu0 }
 0x257   : > { %v10065_v8 = vadd.f32 %v10064_v2, %v10063_v63  ;;  %v10066_v10 = vpop.f32.mrb[42].mxu1  ;;  %v1886_v12 = vadd.f32 %v1885_v5, %v1781_v59  ;;  %v10516_v14 = vpop.f32.mrb[75].mxu0 }
 0x258   : > { %v10067_v31 = vpop.f32.mrb[43].mxu1 }
 0x259   : > { %v10068_v40 = vadd.f32 %v10067_v31, %v10066_v10  ;;  %v12538_v15 = vpack.c.bf16 %v1886_v12, %v1883_v1  ;;  %v1786_v16 = vadd.f32 %v10065_v8, %v12502_v4 }
 0x25b   : > { %v1789_v18 = vadd.f32 %v10068_v40, %v12504_v9  ;;  %2020 = vmatpush1.bf16.msra.mxu1 %v12538_v15 }
 0x25c   : > { %v1890_v62 = vpop.f32.mrb[76].mxu0  ;;  %2021 = vmatprep.subr.bf16.mxu1 %v11981_v22 }
 0x25d   : > { %v10069_v19 = vpop.f32.mrb[44].mxu1  ;;  %v1891_v20 = vadd.f32 %v1890_v62, %v1786_v16  ;;  %v10519_v21 = vpop.f32.mrb[77].mxu0 }
 0x25e   : > { %v10070_v28 = vpop.f32.mrb[45].mxu1  ;;  %v1893_v23 = vpop.f32.mrb[78].mxu0 }
 0x25f   : > { %v10071_v43 = vadd.f32 %v10070_v28, %v10069_v19  ;;  %v10072_v25 = vpop.f32.mrb[46].mxu1  ;;  %v1894_v26 = vadd.f32 %v1893_v23, %v1789_v18  ;;  %v10520_v44 = vpop.f32.mrb[79].mxu0 }
 0x260   : > { %v10073_v30 = vpop.f32.mrb[47].mxu1 }
 0x261   : > { %v10074_v33 = vadd.f32 %v10073_v30, %v10072_v25  ;;  %v12544_v34 = vpack.c.bf16 %v1894_v26, %v1891_v20  ;;  %v1794_v4 = vadd.f32 %v10071_v43, %v12506_v13 }
 0x263   : > { %v1797_v9 = vadd.f32 %v10074_v33, %v12508_v32  ;;  %2022 = vmatpush1.bf16.msra.mxu1 %v12544_v34 }
 0x264   : > { %v1898_v52 = vpop.f32.mrb[80].mxu0  ;;  %2023 = vmatprep.subr.bf16.mxu1 %v11981_v22 }
 0x265   : > { %v10075_v36 = vpop.f32.mrb[48].mxu1  ;;  %v1899_v3 = vadd.f32 %v1898_v52, %v1794_v4  ;;  %v10523_v57 = vpop.f32.mrb[81].mxu0 }
 0x266   : > { %v10076_v41 = vpop.f32.mrb[49].mxu1  ;;  %v1901_v42 = vpop.f32.mrb[82].mxu0 }
 0x267   : > { %v10077_v48 = vadd.f32 %v10076_v41, %v10075_v36  ;;  %v10078_v46 = vpop.f32.mrb[50].mxu1  ;;  %v1902_v47 = vadd.f32 %v1901_v42, %v1797_v9  ;;  %v10524_v49 = vpop.f32.mrb[83].mxu0 }
 0x268   : > { %v10079_v51 = vpop.f32.mrb[51].mxu1 }
 0x269   : > { %v10080_v53 = vadd.f32 %v10079_v51, %v10078_v46  ;;  %v12550_v54 = vpack.c.bf16 %v1902_v47, %v1899_v3  ;;  %v1802_v13 = vadd.f32 %v10077_v48, %v12514_v17 }
 0x26b   : > { %v1805_v32 = vadd.f32 %v10080_v53, %v12516_v37  ;;  %2024 = vmatpush1.bf16.msra.mxu1 %v12550_v54 }
 0x26c   : > { %v1906_v55 = vpop.f32.mrb[84].mxu0  ;;  %2025 = vmatprep.subr.bf16.mxu1 %v11981_v22 }
 0x26d   : > { %v10081_v56 = vpop.f32.mrb[52].mxu1  ;;  %v1907_v11 = vadd.f32 %v1906_v55, %v1802_v13  ;;  %v10527_v58 = vpop.f32.mrb[85].mxu0 }
 0x26e   : > { %v10082_v59 = vpop.f32.mrb[53].mxu1  ;;  %v1909_v61 = vpop.f32.mrb[86].mxu0 }
 0x26f   : > { %v10083_v63 = vadd.f32 %v10082_v59, %v10081_v56  ;;  %v10084_v1 = vpop.f32.mrb[54].mxu1  ;;  %v1910_v6 = vadd.f32 %v1909_v61, %v1805_v32  ;;  %v10528_v2 = vpop.f32.mrb[87].mxu0 }
 0x270   : > { %v10085_v5 = vpop.f32.mrb[55].mxu1 }
 0x271   : > { %v10086_v8 = vadd.f32 %v10085_v5, %v10084_v1  ;;  %v12556_v10 = vpack.c.bf16 %v1910_v6, %v1907_v11  ;;  %v1810_v17 = vadd.f32 %v10083_v63, %v12518_v27 }
 0x273   : > { %v1813_v37 = vadd.f32 %v10086_v8, %v12520_v24  ;;  %2026 = vmatpush1.bf16.msra.mxu1 %v12556_v10 }
 0x274   : > { %v1914_v12 = vpop.f32.mrb[88].mxu0  ;;  %2027 = vmatprep.subr.bf16.mxu1 %v11981_v22 }
 0x275   : > { %v10087_v14 = vpop.f32.mrb[56].mxu1  ;;  %v1915_v31 = vadd.f32 %v1914_v12, %v1810_v17  ;;  %v10531_v40 = vpop.f32.mrb[89].mxu0 }
 0x276   : > { %v10088_v16 = vpop.f32.mrb[57].mxu1  ;;  %v1917_v18 = vpop.f32.mrb[90].mxu0 }
 0x277   : > { %v10089_v62 = vadd.f32 %v10088_v16, %v10087_v14  ;;  %v10090_v19 = vpop.f32.mrb[58].mxu1  ;;  %v1918_v20 = vadd.f32 %v1917_v18, %v1813_v37  ;;  %v10532_v21 = vpop.f32.mrb[91].mxu0 }
 0x278   : > { %v10091_v28 = vpop.f32.mrb[59].mxu1 }
 0x279   : > { %v10092_v23 = vadd.f32 %v10091_v28, %v10090_v19  ;;  %v12562_v43 = vpack.c.bf16 %v1918_v20, %v1915_v31  ;;  %v1818_v27 = vadd.f32 %v10089_v62, %v12522_v29 }
 0x27b   : > { %v1821_v24 = vadd.f32 %v10092_v23, %v12524_v60  ;;  %2028 = vmatpush1.bf16.msra.mxu1 %v12562_v43  ;;  %v11467_v23 = vld [vmem:[%s14800_s5] ss:$8 sps:$4 sm:$0xff]  }
 0x27c   : > { %v1922_v25 = vpop.f32.mrb[92].mxu0  ;;  %2029 = vmatprep.subr.bf16.mxu1 %v11981_v22 }
 0x27d   : > { %v10093_v26 = vpop.f32.mrb[60].mxu1  ;;  %v1923_v44 = vadd.f32 %v1922_v25, %v1818_v27  ;;  %v10535_v30 = vpop.f32.mrb[93].mxu0  ;;  %v11473_v27 = vld [vmem:[%s14800_s5 + $0x24] ss:$8 sps:$4 sm:$0xff]   ;;  %v11476_v25 = vld [vmem:[%s14800_s5 + $0x34] ss:$8 sps:$4 sm:$0xff]  }
 0x27e   : > { %v10094_v33 = vpop.f32.mrb[61].mxu1  ;;  %v1925_v4 = vpop.f32.mrb[94].mxu0  ;;  %v11479_v30 = vld [vmem:[%s14800_s5 + $0x40] ss:$8 sps:$4 sm:$0xff]  }
 0x27f   : > { %v10095_v9 = vadd.f32 %v10094_v33, %v10093_v26  ;;  %v10096_v52 = vpop.f32.mrb[62].mxu1  ;;  %v1926_v36 = vadd.f32 %v1925_v4, %v1821_v24  ;;  %v10536_v3 = vpop.f32.mrb[95].mxu0  ;;  %v11475_v24 = vld [vmem:[%s14800_s5 + $0x20] ss:$8 sps:$4 sm:$0xff]   ;;  %v11478_v26 = vld [vmem:[%s14800_s5 + $0x30] ss:$8 sps:$4 sm:$0xff]  }
 0x280   : > { %v10097_v57 = vpop.f32.mrb[63].mxu1  ;;  %v11482_v33 = vld [vmem:[%s14800_s5 + $0x54] ss:$8 sps:$4 sm:$0xff]   ;;  %v11484_v4 = vld [vmem:[%s14800_s5 + $0x50] ss:$8 sps:$4 sm:$0xff]  }
 0x281   : > { %v10098_v41 = vadd.f32 %v10097_v57, %v10096_v52  ;;  %v12568_v42 = vpack.c.bf16 %v1926_v36, %v1923_v44  ;;  %v1826_v29 = vadd.f32 %v10095_v9, %v12526_v35  ;;  %v11481_v44 = vld [vmem:[%s14800_s5 + $0x44] ss:$8 sps:$4 sm:$0xff]   ;;  %v11487_v52 = vld [vmem:[%s14800_s5 + $0x60] ss:$8 sps:$4 sm:$0xff]   ;;  %v11488_v36 = vld [vmem:[%s14800_s5 + $0x74] ss:$8 sps:$4 sm:$0xff]  }
 0x282   : > { %v11485_v9 = vld [vmem:[%s14800_s5 + $0x64] ss:$8 sps:$4 sm:$0xff]   ;;  %v11490_v3 = vld [vmem:[%s14800_s5 + $0x70] ss:$8 sps:$4 sm:$0xff]  }
 0x283   : > { %v1829_v60 = vadd.f32 %v10098_v41, %v12528_v38  ;;  %2030 = vmatpush1.bf16.msra.mxu1 %v12568_v42  ;;  %v11493_v57 = vld [vmem:[%s14800_s5 + $0x84] ss:$8 sps:$4 sm:$0xff]   ;;  %v11491_v41 = vld [vmem:[%s14800_s5 + $0x80] ss:$8 sps:$4 sm:$0xff]  }
 0x284   : > { %v1930_v48 = vpop.f32.mrb[96].mxu0  ;;  %2031 = vmatprep.subr.bf16.mxu1 %v11981_v22 }
 0x285   : > { %v10099_v46 = vpop.f32.mrb[64].mxu1  ;;  %v1931_v47 = vadd.f32 %v1930_v48, %v1826_v29  ;;  %v10539_v49 = vpop.f32.mrb[97].mxu0  ;;  %v11494_v29 = vld [vmem:[%s14800_s5 + $0x94] ss:$8 sps:$4 sm:$0xff]   ;;  %v11497_v48 = vld [vmem:[%s14800_s5 + $0xa4] ss:$8 sps:$4 sm:$0xff]  }
 0x286   : > { %v10100_v51 = vpop.f32.mrb[65].mxu1  ;;  %v1933_v53 = vpop.f32.mrb[98].mxu0  ;;  %v11502_v49 = vld [vmem:[%s14800_s5 + $0xb0] ss:$8 sps:$4 sm:$0xff]  }
 0x287   : > { %v10101_v13 = vadd.f32 %v10100_v51, %v10099_v46  ;;  %v10102_v32 = vpop.f32.mrb[66].mxu1  ;;  %v1934_v55 = vadd.f32 %v1933_v53, %v1829_v60  ;;  %v10540_v56 = vpop.f32.mrb[99].mxu0  ;;  %v11496_v60 = vld [vmem:[%s14800_s5 + $0x90] ss:$8 sps:$4 sm:$0xff]   ;;  %v11499_v46 = vld [vmem:[%s14800_s5 + $0xa0] ss:$8 sps:$4 sm:$0xff]  }
 0x288   : > { %v10103_v11 = vpop.f32.mrb[67].mxu1  ;;  %v11505_v51 = vld [vmem:[%s14800_s5 + $0xc4] ss:$8 sps:$4 sm:$0xff]   ;;  %v11553_v56 = vld [vmem:[%s14801_s6 + $0x50] sm:$0xff]  }
 0x289   : > { %v10104_v58 = vadd.f32 %v10103_v11, %v10102_v32  ;;  %v12574_v59 = vpack.c.bf16 %v1934_v55, %v1931_v47  ;;  %v1834_v35 = vadd.f32 %v10101_v13, %v12530_v39  ;;  %v11500_v47 = vld [vmem:[%s14800_s5 + $0xb4] ss:$8 sps:$4 sm:$0xff]   ;;  %v11548_v53 = vld [vmem:[%s14801_s6 + $0x40] sm:$0xff]   ;;  %v11549_v13 = vld [vmem:[%s14801_s6 + $0x48] sm:$0xff]  }
 0x28a   : > { %10549 = vmatprep.subr.bf16.mxu0 %v11548_v53  ;;  %v11503_v32 = vld [vmem:[%s14800_s5 + $0xc0] ss:$8 sps:$4 sm:$0xff]   ;;  %v11506_v55 = vld [vmem:[%s14800_s5 + $0xd4] ss:$8 sps:$4 sm:$0xff]  }
 0x28b   : > { %v1837_v38 = vadd.f32 %v10104_v58, %v12532_v45  ;;  %2032 = vmatpush1.bf16.msra.mxu1 %v12574_v59  ;;  %10550 = vmatpush3.bf16.msra.mxu0 %v11548_v53  ;;  %v11554_v11 = vld [vmem:[%s14801_s6 + $0x58] sm:$0xff]  }
 0x28c   : > { %v1938_v61 = vpop.f32.mrb[100].mxu0  ;;  %2033 = vmatprep.subr.bf16.mxu1 %v11981_v22  ;;  %10551 = vmatprep.subr.bf16.mxu0 %v11549_v13  ;;  %v11508_v58 = vld [vmem:[%s14800_s5 + $0xd0] ss:$8 sps:$4 sm:$0xff]  }
 0x28d   : > { %v10105_v63 = vpop.f32.mrb[68].mxu1  ;;  %v1939_v1 = vadd.f32 %v1938_v61, %v1834_v35  ;;  %v10543_v6 = vpop.f32.mrb[101].mxu0  ;;  %v11509_v35 = vld [vmem:[%s14800_s5 + $0xe4] ss:$8 sps:$4 sm:$0xff]  }
 0x28e   : > { %v10106_v2 = vpop.f32.mrb[69].mxu1  ;;  %v1941_v5 = vpop.f32.mrb[102].mxu0  ;;  %v11559_v61 = vld [vmem:[%s14801_s6 + $0x68] sm:$0xff]   ;;  %v11560_v6 = vld [vmem:[%s14801_s6 + $0x70] sm:$0xff]  }
 0x28f   : > { %v10107_v8 = vadd.f32 %v10106_v2, %v10105_v63  ;;  %v10108_v17 = vpop.f32.mrb[70].mxu1  ;;  %v1942_v37 = vadd.f32 %v1941_v5, %v1837_v38  ;;  %v10544_v12 = vpop.f32.mrb[103].mxu0  ;;  %10552 = vmatpush3.bf16.msra.mxu0 %v11549_v13  ;;  %v11558_v38 = vld [vmem:[%s14801_s6 + $0x60] sm:$0xff]   ;;  %v11564_v2 = vld [vmem:[%s14801_s6 + $0x78] sm:$0xff]  }
 0x290   : > { %v10109_v14 = vpop.f32.mrb[71].mxu1  ;;  %10553 = vmatprep.subr.bf16.mxu0 %v11553_v56  ;;  %v11511_v63 = vld [vmem:[%s14800_s5 + $0xe0] ss:$8 sps:$4 sm:$0xff]   ;;  %v11514_v5 = vld [vmem:[%s14800_s5 + $0xf0] ss:$8 sps:$4 sm:$0xff]  }
 0x291   : > { %v10110_v31 = vadd.f32 %v10109_v14, %v10108_v17  ;;  %v12580_v40 = vpack.c.bf16 %v1942_v37, %v1939_v1  ;;  %v1842_v39 = vadd.f32 %v10107_v8, %v12534_v0  ;;  %v11470_v0 = vld [vmem:[%s14800_s5 + $0x14] ss:$8 sps:$4 sm:$0xff]   ;;  %v11517_v8 = vld [vmem:[%s14800_s5 + $0x104] ss:$8 sps:$4 sm:$0xff]   ;;  %v11515_v37 = vld [vmem:[%s14800_s5 + $0x100] ss:$8 sps:$4 sm:$0xff]  }
 0x292   : > { %v11512_v1 = vld [vmem:[%s14800_s5 + $0xf4] ss:$8 sps:$4 sm:$0xff]   ;;  %v12793_v17 = vld [vmem:[%s14801_s6] sm:$0xff]   ;;  %v11520_v14 = vld [vmem:[%s14800_s5 + $0x110] ss:$8 sps:$4 sm:$0xff]  }
 0x293   : > { %v1845_v45 = vadd.f32 %v10110_v31, %v12536_v50  ;;  %2034 = vmatpush1.bf16.msra.mxu1 %v12580_v40  ;;  %v11472_v50 = vld [vmem:[%s14800_s5 + $0x10] ss:$8 sps:$4 sm:$0xff]   ;;  %10554 = vmatpush3.bf16.msra.mxu0 %v11553_v56  ;;  %v11518_v12 = vld [vmem:[%s14800_s5 + $0x114] ss:$8 sps:$4 sm:$0xff]   ;;  %v11521_v31 = vld [vmem:[%s14800_s5 + $0x124] ss:$8 sps:$4 sm:$0xff]  }
 0x294   : > { %v1946_v16 = vpop.f32.mrb[104].mxu0  ;;  %2035 = vmatprep.subr.bf16.mxu1 %v11981_v22  ;;  %10555 = vmatprep.subr.bf16.mxu0 %v11554_v11  ;;  %v11557_v56 = vld [vmem:[%s14800_s5 + $0x1c4] ss:$8 sps:$4 sm:$0xff]  }
 0x295   : > { %v1947_v18 = vadd.f32 %v1946_v16, %v1842_v39  ;;  %v10547_v62 = vpop.f32.mrb[105].mxu0  ;;  %v11523_v39 = vld [vmem:[%s14800_s5 + $0x120] ss:$8 sps:$4 sm:$0xff]   ;;  %v11526_v16 = vld [vmem:[%s14800_s5 + $0x130] ss:$8 sps:$4 sm:$0xff]  }
 0x296   : > { %v1949_v19 = vpop.f32.mrb[106].mxu0  ;;  %v11527_v62 = vld [vmem:[%s14800_s5 + $0x140] ss:$8 sps:$4 sm:$0xff]  }
 0x297   : > { %v1950_v20 = vadd.f32 %v1949_v19, %v1845_v45  ;;  %v10548_v21 = vpop.f32.mrb[107].mxu0  ;;  %10556 = vmatpush3.bf16.msra.mxu0 %v11554_v11  ;;  %v11524_v45 = vld [vmem:[%s14800_s5 + $0x134] ss:$8 sps:$4 sm:$0xff]  }
 0x298   : > { %10557 = vmatprep.subr.bf16.mxu0 %v11558_v38  ;;  %v11530_v19 = vld [vmem:[%s14800_s5 + $0x154] ss:$8 sps:$4 sm:$0xff]   ;;  %v11533_v21 = vld [vmem:[%s14800_s5 + $0x164] ss:$8 sps:$4 sm:$0xff]  }
 0x299   : > { %v12586_v28 = vpack.c.bf16 %v1950_v20, %v1947_v18  ;;  %v11529_v18 = vld [vmem:[%s14800_s5 + $0x144] ss:$8 sps:$4 sm:$0xff]   ;;  %v11532_v20 = vld [vmem:[%s14800_s5 + $0x150] ss:$8 sps:$4 sm:$0xff]  }
 0x29b   : > { %2036 = vmatpush1.bf16.msra.mxu1 %v12586_v28  ;;  %10558 = vmatpush3.bf16.msra.mxu0 %v11558_v38 }
 0x29c   : > { %2161 = vmatprep.subr.bf16.mxu1 %v11981_v22  ;;  %10559 = vmatprep.subr.bf16.mxu0 %v11559_v61 }
 0x29e   : > { %2052 = vmatmul.mubr.bf16.vlgmr.msra.gmra.mrb[72].mxu1 %v11467_v23  ;;  %v11535_v23 = vld [vmem:[%s14800_s5 + $0x160] ss:$8 sps:$4 sm:$0xff]  }
 0x29f   : > { %2162 = vmatpush1.bf16.msra.mxu1 %v12538_v15  ;;  %8850 = vmatprep.mubr.msk.bf16.mxu1 %vm2006_vm5, %v11470_v0  ;;  %v11536_v0 = vld [vmem:[%s14800_s5 + $0x174] ss:$8 sps:$4 sm:$0xff]  }
 0x2a0   : > { %2163 = vmatprep.subr.bf16.mxu1 %v11981_v22  ;;  %10560 = vmatpush3.bf16.msra.mxu0 %v11559_v61  ;;  %v11555_v61 = vld [vmem:[%s14800_s5 + $0x1c0] ss:$8 sps:$4 sm:$0xff]  }
 0x2a1   : > { %10561 = vmatprep.subr.bf16.mxu0 %v11560_v6 }
 0x2a3   : > { %2164 = vmatpush1.bf16.msra.mxu1 %v12544_v34 }
 0x2a4   : > { %2165 = vmatprep.subr.bf16.mxu1 %v11981_v22  ;;  %10562 = vmatpush3.bf16.msra.mxu0 %v11560_v6 }
 0x2a5   : > { %10563 = vmatprep.subr.bf16.mxu0 %v11564_v2 }
 0x2a6   : > { %2060 = vmatmul.mubr.bf16.gmra.mrb[76].mxu1 %v11472_v50  ;;  %v11538_v50 = vld [vmem:[%s14800_s5 + $0x170] ss:$8 sps:$4 sm:$0xff]  }
 0x2a7   : > { %2166 = vmatpush1.bf16.msra.mxu1 %v12550_v54  ;;  %8851 = vmatprep.mubr.msk.bf16.mxu1 %vm2006_vm5, %v11473_v27  ;;  %v11541_v27 = vld [vmem:[%s14800_s5 + $0x184] ss:$8 sps:$4 sm:$0xff]  }
 0x2a8   : > { %2167 = vmatprep.subr.bf16.mxu1 %v11981_v22  ;;  %10564 = vmatpush3.bf16.msra.mxu0 %v11564_v2 }
 0x2a9   : > { %10573 = vmatprep.subr.bf16.mxu0 %v12793_v17 }
 0x2ab   : > { %2168 = vmatpush1.bf16.msra.mxu1 %v12556_v10 }
 0x2ac   : > { %2169 = vmatprep.subr.bf16.mxu1 %v11981_v22 }
 0x2ae   : > { %2068 = vmatmul.mubr.bf16.gmra.mrb[80].mxu1 %v11475_v24 }
 0x2af   : > { %2170 = vmatpush1.bf16.msra.mxu1 %v12562_v43  ;;  %8852 = vmatprep.mubr.msk.bf16.mxu1 %vm2006_vm5, %v11476_v25  ;;  %v11539_v25 = vld [vmem:[%s14800_s5 + $0x180] ss:$8 sps:$4 sm:$0xff]  }
 0x2b0   : > { %2171 = vmatprep.subr.bf16.mxu1 %v11981_v22 }
 0x2b3   : > { %2172 = vmatpush1.bf16.msra.mxu1 %v12568_v42 }
 0x2b4   : > { %2173 = vmatprep.subr.bf16.mxu1 %v11981_v22 }
 0x2b6   : > { %2076 = vmatmul.mubr.bf16.gmra.mrb[84].mxu1 %v11478_v26 }
 0x2b7   : > { %2174 = vmatpush1.bf16.msra.mxu1 %v12574_v59  ;;  %8869 = vmatprep.mubr.msk.bf16.mxu1 %vm2006_vm5, %v11481_v44  ;;  %v11542_v44 = vld [vmem:[%s14800_s5 + $0x194] ss:$8 sps:$4 sm:$0xff]  }
 0x2b8   : > { %2175 = vmatprep.subr.bf16.mxu1 %v11981_v22 }
 0x2bb   : > { %2176 = vmatpush1.bf16.msra.mxu1 %v12580_v40 }
 0x2bc   : > { %2177 = vmatprep.subr.bf16.mxu1 %v11981_v22 }
 0x2bf   : > { %2178 = vmatpush1.bf16.msra.mxu1 %v12586_v28 }
 0x2c0   : > { %2530 = vmatprep.subr.bf16.mxu1 %v11981_v22 }
 0x2c2   : > { %2194 = vmatmul.mubr.bf16.vlgmr.msra.gmra.mrb[88].mxu1 %v11479_v30 }
 0x2c3   : > { %2531 = vmatpush1.bf16.msra.mxu1 %v12538_v15  ;;  %8870 = vmatprep.mubr.msk.bf16.mxu1 %vm2006_vm5, %v11482_v33 }
 0x2c4   : > { %2532 = vmatprep.subr.bf16.mxu1 %v11981_v22 }
 0x2c7   : > { %2533 = vmatpush1.bf16.msra.mxu1 %v12544_v34 }
 0x2c8   : > { %2534 = vmatprep.subr.bf16.mxu1 %v11981_v22 }
 0x2ca   : > { %2202 = vmatmul.mubr.bf16.gmra.mrb[92].mxu1 %v11484_v4 }
 0x2cb   : > { %2535 = vmatpush1.bf16.msra.mxu1 %v12550_v54  ;;  %8871 = vmatprep.mubr.msk.bf16.mxu1 %vm2006_vm5, %v11485_v9 }
 0x2cc   : > { %2536 = vmatprep.subr.bf16.mxu1 %v11981_v22 }
 0x2cf   : > { %2537 = vmatpush1.bf16.msra.mxu1 %v12556_v10 }
 0x2d0   : > { %2538 = vmatprep.subr.bf16.mxu1 %v11981_v22 }
 0x2d2   : > { %2210 = vmatmul.mubr.bf16.gmra.mrb[96].mxu1 %v11487_v52  ;;  %v11544_v52 = vld [vmem:[%s14800_s5 + $0x190] ss:$8 sps:$4 sm:$0xff]  }
 0x2d3   : > { %2539 = vmatpush1.bf16.msra.mxu1 %v12562_v43  ;;  %8872 = vmatprep.mubr.msk.bf16.mxu1 %vm2006_vm5, %v11488_v36 }
 0x2d4   : > { %2540 = vmatprep.subr.bf16.mxu1 %v11981_v22 }
 0x2d7   : > { %2541 = vmatpush1.bf16.msra.mxu1 %v12568_v42 }
 0x2d8   : > { %2542 = vmatprep.subr.bf16.mxu1 %v11981_v22 }
 0x2da   : > { %2218 = vmatmul.mubr.bf16.gmra.mrb[100].mxu1 %v11490_v3  ;;  %v11545_v3 = vld [vmem:[%s14800_s5 + $0x1a4] ss:$8 sps:$4 sm:$0xff]  }
 0x2db   : > { %2543 = vmatpush1.bf16.msra.mxu1 %v12574_v59  ;;  %8921 = vmatprep.mubr.msk.bf16.mxu1 %vm2006_vm5, %v11493_v57 }
 0x2dc   : > { %2544 = vmatprep.subr.bf16.mxu1 %v11981_v22 }
 0x2df   : > { %2545 = vmatpush1.bf16.msra.mxu1 %v12580_v40 }
 0x2e0   : > { %2546 = vmatprep.subr.bf16.mxu1 %v11981_v22 }
 0x2e3   : > { %2547 = vmatpush1.bf16.msra.mxu1 %v12586_v28 }
 0x2e4   : > { %2794 = vmatprep.subr.bf16.mxu1 %v11981_v22 }
 0x2e6   : > { %2563 = vmatmul.mubr.bf16.vlgmr.msra.gmra.mrb[104].mxu1 %v11491_v41 }
 0x2e7   : > { %2795 = vmatpush1.bf16.msra.mxu1 %v12538_v15  ;;  %8922 = vmatprep.mubr.msk.bf16.mxu1 %vm2006_vm5, %v11494_v29 }
 0x2e8   : > { %2796 = vmatprep.subr.bf16.mxu1 %v11981_v22 }
 0x2eb   : > { %2797 = vmatpush1.bf16.msra.mxu1 %v12544_v34 }
 0x2ec   : > { %2798 = vmatprep.subr.bf16.mxu1 %v11981_v22 }
 0x2ee   : > { %2571 = vmatmul.mubr.bf16.gmra.mrb[108].mxu1 %v11496_v60 }
 0x2ef   : > { %2799 = vmatpush1.bf16.msra.mxu1 %v12550_v54  ;;  %8923 = vmatprep.mubr.msk.bf16.mxu1 %vm2006_vm5, %v11497_v48  ;;  %v11547_v48 = vld [vmem:[%s14800_s5 + $0x1a0] ss:$8 sps:$4 sm:$0xff]  }
 0x2f0   : > { %2800 = vmatprep.subr.bf16.mxu1 %v11981_v22 }
 0x2f3   : > { %2801 = vmatpush1.bf16.msra.mxu1 %v12556_v10 }
 0x2f4   : > { %2802 = vmatprep.subr.bf16.mxu1 %v11981_v22 }
 0x2f6   : > { %2579 = vmatmul.mubr.bf16.gmra.mrb[112].mxu1 %v11499_v46 }
 0x2f7   : > { %2803 = vmatpush1.bf16.msra.mxu1 %v12562_v43  ;;  %8924 = vmatprep.mubr.msk.bf16.mxu1 %vm2006_vm5, %v11500_v47  ;;  %v11550_v47 = vld [vmem:[%s14800_s5 + $0x1b4] ss:$8 sps:$4 sm:$0xff]  }
 0x2f8   : > { %2804 = vmatprep.subr.bf16.mxu1 %v11981_v22 }
 0x2fb   : > { %2805 = vmatpush1.bf16.msra.mxu1 %v12568_v42 }
 0x2fc   : > { %2806 = vmatprep.subr.bf16.mxu1 %v11981_v22 }
 0x2fe   : > { %2587 = vmatmul.mubr.bf16.gmra.mrb[116].mxu1 %v11502_v49 }
 0x2ff   : > { %2807 = vmatpush1.bf16.msra.mxu1 %v12574_v59  ;;  %8965 = vmatprep.mubr.msk.bf16.mxu1 %vm2006_vm5, %v11505_v51 }
 0x300   : > { %2808 = vmatprep.subr.bf16.mxu1 %v11981_v22 }
 0x303   : > { %2809 = vmatpush1.bf16.msra.mxu1 %v12580_v40 }
 0x304   : > { %2810 = vmatprep.subr.bf16.mxu1 %v11981_v22 }
 0x307   : > { %2811 = vmatpush1.bf16.msra.mxu1 %v12586_v28 }
 0x308   : > { %3058 = vmatprep.subr.bf16.mxu1 %v11981_v22 }
 0x30a   : > { %2827 = vmatmul.mubr.bf16.vlgmr.msra.gmra.mrb[120].mxu1 %v11503_v32  ;;  %v11552_v32 = vld [vmem:[%s14800_s5 + $0x1b0] ss:$8 sps:$4 sm:$0xff]  }
 0x30b   : > { %3059 = vmatpush1.bf16.msra.mxu1 %v12538_v15  ;;  %8966 = vmatprep.mubr.msk.bf16.mxu1 %vm2006_vm5, %v11506_v55 }
 0x30c   : > { %3060 = vmatprep.subr.bf16.mxu1 %v11981_v22 }
 0x30f   : > { %3061 = vmatpush1.bf16.msra.mxu1 %v12544_v34 }
 0x310   : > { %3062 = vmatprep.subr.bf16.mxu1 %v11981_v22 }
 0x312   : > { %2835 = vmatmul.mubr.bf16.gmra.mrb[124].mxu1 %v11508_v58 }
 0x313   : > { %3063 = vmatpush1.bf16.msra.mxu1 %v12550_v54  ;;  %8967 = vmatprep.mubr.msk.bf16.mxu1 %vm2006_vm5, %v11509_v35 }
 0x314   : > { %3064 = vmatprep.subr.bf16.mxu1 %v11981_v22 }
 0x317   : > { %3065 = vmatpush1.bf16.msra.mxu1 %v12556_v10 }
 0x318   : > { %3066 = vmatprep.subr.bf16.mxu1 %v11981_v22 }
 0x31a   : > { %2843 = vmatmul.mubr.bf16.gmra.mrb[128].mxu1 %v11511_v63 }
 0x31b   : > { %3067 = vmatpush1.bf16.msra.mxu1 %v12562_v43  ;;  %8968 = vmatprep.mubr.msk.bf16.mxu1 %vm2006_vm5, %v11512_v1  ;;  %v11561_v1 = vld [vmem:[%s14800_s5 + $0x1d4] ss:$8 sps:$4 sm:$0xff]  }
 0x31c   : > { %3068 = vmatprep.subr.bf16.mxu1 %v11981_v22 }
 0x31f   : > { %3069 = vmatpush1.bf16.msra.mxu1 %v12568_v42 }
 0x320   : > { %3070 = vmatprep.subr.bf16.mxu1 %v11981_v22 }
 0x322   : > { %2851 = vmatmul.mubr.bf16.gmra.mrb[132].mxu1 %v11514_v5 }
 0x323   : > { %3071 = vmatpush1.bf16.msra.mxu1 %v12574_v59  ;;  %9009 = vmatprep.mubr.msk.bf16.mxu1 %vm2006_vm5, %v11517_v8 }
 0x324   : > { %3072 = vmatprep.subr.bf16.mxu1 %v11981_v22 }
 0x327   : > { %3073 = vmatpush1.bf16.msra.mxu1 %v12580_v40 }
 0x328   : > { %3074 = vmatprep.subr.bf16.mxu1 %v11981_v22 }
 0x32b   : > { %3075 = vmatpush1.bf16.msra.mxu1 %v12586_v28 }
 0x32c   : > { %3322 = vmatprep.subr.bf16.mxu1 %v11981_v22 }
 0x32e   : > { %3091 = vmatmul.mubr.bf16.vlgmr.msra.gmra.mrb[136].mxu1 %v11515_v37  ;;  %v11563_v37 = vld [vmem:[%s14800_s5 + $0x1d0] ss:$8 sps:$4 sm:$0xff]  }
 0x32f   : > { %3323 = vmatpush1.bf16.msra.mxu1 %v12538_v15  ;;  %9010 = vmatprep.mubr.msk.bf16.mxu1 %vm2006_vm5, %v11518_v12 }
 0x330   : > { %3324 = vmatprep.subr.bf16.mxu1 %v11981_v22 }
 0x333   : > { %3325 = vmatpush1.bf16.msra.mxu1 %v12544_v34 }
 0x334   : > { %3326 = vmatprep.subr.bf16.mxu1 %v11981_v22 }
 0x336   : > { %3099 = vmatmul.mubr.bf16.gmra.mrb[140].mxu1 %v11520_v14 }
 0x337   : > { %3327 = vmatpush1.bf16.msra.mxu1 %v12550_v54  ;;  %9011 = vmatprep.mubr.msk.bf16.mxu1 %vm2006_vm5, %v11521_v31 }
 0x338   : > { %3328 = vmatprep.subr.bf16.mxu1 %v11981_v22 }
 0x33b   : > { %3329 = vmatpush1.bf16.msra.mxu1 %v12556_v10 }
 0x33c   : > { %3330 = vmatprep.subr.bf16.mxu1 %v11981_v22 }
 0x33e   : > { %3107 = vmatmul.mubr.bf16.gmra.mrb[144].mxu1 %v11523_v39  ;;  %v11566_v39 = vld [vmem:[%s14800_s5 + $0x1e4] ss:$8 sps:$4 sm:$0xff]  }
 0x33f   : > { %3331 = vmatpush1.bf16.msra.mxu1 %v12562_v43  ;;  %9012 = vmatprep.mubr.msk.bf16.mxu1 %vm2006_vm5, %v11524_v45 }
 0x340   : > { %3332 = vmatprep.subr.bf16.mxu1 %v11981_v22 }
 0x343   : > { %3333 = vmatpush1.bf16.msra.mxu1 %v12568_v42 }
 0x344   : > { %3334 = vmatprep.subr.bf16.mxu1 %v11981_v22 }
 0x346   : > { %3115 = vmatmul.mubr.bf16.gmra.mrb[148].mxu1 %v11526_v16  ;;  %v11569_v16 = vld [vmem:[%s14801_s6 + $0x8] sm:$0xff]  }
 0x347   : > { %3335 = vmatpush1.bf16.msra.mxu1 %v12574_v59  ;;  %9053 = vmatprep.mubr.msk.bf16.mxu1 %vm2006_vm5, %v11529_v18  ;;  %v11570_v18 = vld [vmem:[%s14801_s6 + $0x10] sm:$0xff]  }
 0x348   : > { %3336 = vmatprep.subr.bf16.mxu1 %v11981_v22 }
 0x34b   : > { %3337 = vmatpush1.bf16.msra.mxu1 %v12580_v40 }
 0x34c   : > { %3338 = vmatprep.subr.bf16.mxu1 %v11981_v22 }
 0x34f   : > { %3339 = vmatpush1.bf16.msra.mxu1 %v12586_v28 }
 0x350   : > { %3586 = vmatprep.subr.bf16.mxu1 %v11981_v22 }
 0x352   : > { %3355 = vmatmul.mubr.bf16.vlgmr.msra.gmra.mrb[152].mxu1 %v11527_v62 }
 0x353   : > { %3587 = vmatpush1.bf16.msra.mxu1 %v12538_v15  ;;  %9054 = vmatprep.mubr.msk.bf16.mxu1 %vm2006_vm5, %v11530_v19  ;;  %v11568_v19 = vld [vmem:[%s14800_s5 + $0x1e0] ss:$8 sps:$4 sm:$0xff]  }
 0x354   : > { %3588 = vmatprep.subr.bf16.mxu1 %v11981_v22 }
 0x357   : > { %3589 = vmatpush1.bf16.msra.mxu1 %v12544_v34 }
 0x358   : > { %3590 = vmatprep.subr.bf16.mxu1 %v11981_v22 }
 0x35a   : > { %3363 = vmatmul.mubr.bf16.gmra.mrb[156].mxu1 %v11532_v20 }
 0x35b   : > { %3591 = vmatpush1.bf16.msra.mxu1 %v12550_v54  ;;  %9055 = vmatprep.mubr.msk.bf16.mxu1 %vm2006_vm5, %v11533_v21 }
 0x35c   : > { %3592 = vmatprep.subr.bf16.mxu1 %v11981_v22 }
 0x35f   : > { %3593 = vmatpush1.bf16.msra.mxu1 %v12556_v10 }
 0x360   : > { %3594 = vmatprep.subr.bf16.mxu1 %v11981_v22 }
 0x362   : > { %3371 = vmatmul.mubr.bf16.gmra.mrb[160].mxu1 %v11535_v23 }
 0x363   : > { %3595 = vmatpush1.bf16.msra.mxu1 %v12562_v43  ;;  %9056 = vmatprep.mubr.msk.bf16.mxu1 %vm2006_vm5, %v11536_v0 }
 0x364   : > { %3596 = vmatprep.subr.bf16.mxu1 %v11981_v22 }
 0x367   : > { %3597 = vmatpush1.bf16.msra.mxu1 %v12568_v42 }
 0x368   : > { %3598 = vmatprep.subr.bf16.mxu1 %v11981_v22 }
 0x36a   : > { %3379 = vmatmul.mubr.bf16.gmra.mrb[164].mxu1 %v11538_v50  ;;  %v11574_v50 = vld [vmem:[%s14801_s6 + $0x18] sm:$0xff]  }
 0x36b   : > { %3599 = vmatpush1.bf16.msra.mxu1 %v12574_v59  ;;  %9097 = vmatprep.mubr.msk.bf16.mxu1 %vm2006_vm5, %v11541_v27  ;;  %v11575_v27 = vld [vmem:[%s14801_s6 + $0x20] sm:$0xff]  }
 0x36c   : > { %3600 = vmatprep.subr.bf16.mxu1 %v11981_v22 }
 0x36f   : > { %3601 = vmatpush1.bf16.msra.mxu1 %v12580_v40 }
 0x370   : > { %3602 = vmatprep.subr.bf16.mxu1 %v11981_v22 }
 0x371   : > { %v12894_v24 = vpop.f32.mrb[72].mxu1 }
 0x372   : > { %v2055_v26 = vpop.f32.mrb[73].mxu1 }
 0x373   : > { %3603 = vmatpush1.bf16.msra.mxu1 %v12586_v28  ;;  %v12903_v30 = vpop.f32.mrb[74].mxu1  ;;  %v11573_v26 = vld [vmem:[%s14800_s5 + $0x1f0] ss:$8 sps:$4 sm:$0xff]  }
 0x374   : > { %3850 = vmatprep.subr.bf16.mxu1 %v11981_v22  ;;  %v2084_v33 = vpack.c.bf16 %v12903_v30, %v12894_v24  ;;  %v2058_v4 = vpop.f32.mrb[75].mxu1  ;;  %v11582_v30 = vld [vmem:[%s14800_s5 + $0x214] ss:$8 sps:$4 sm:$0xff]  }
 0x376   : > { %3619 = vmatmul.mubr.bf16.vlgmr.msra.gmra.mrb[168].mxu1 %v11539_v25 }
 0x377   : > { %3851 = vmatpush1.bf16.msra.mxu1 %v12538_v15  ;;  %9098 = vmatprep.mubr.msk.bf16.mxu1 %vm2006_vm5, %v11542_v44 }
 0x378   : > { %3852 = vmatprep.subr.bf16.mxu1 %v11981_v22 }
 0x379   : > { %v12911_v9 = vpop.f32.mrb[76].mxu1 }
 0x37a   : > { %v2063_v36 = vpop.f32.mrb[77].mxu1 }
 0x37b   : > { %3853 = vmatpush1.bf16.msra.mxu1 %v12544_v34  ;;  %v12920_v57 = vpop.f32.mrb[78].mxu1 }
 0x37c   : > { %3854 = vmatprep.subr.bf16.mxu1 %v11981_v22  ;;  %v2085_v41 = vpack.c.bf16 %v12920_v57, %v12911_v9  ;;  %v2066_v29 = vpop.f32.mrb[79].mxu1  ;;  %v11590_v9 = vld [vmem:[%s14801_s6 + $0x90] sm:$0xff]   ;;  %v11591_v57 = vld [vmem:[%s14801_s6 + $0x98] sm:$0xff]  }
 0x37d   : > { %v11579_v29 = vld [vmem:[%s14801_s6 + $0x28] sm:$0xff]  }
 0x37e   : > { %3627 = vmatmul.mubr.bf16.gmra.mrb[172].mxu1 %v11544_v52  ;;  %v11578_v52 = vld [vmem:[%s14800_s5 + $0x204] ss:$8 sps:$4 sm:$0xff]  }
 0x37f   : > { %3855 = vmatpush1.bf16.msra.mxu1 %v12550_v54  ;;  %9099 = vmatprep.mubr.msk.bf16.mxu1 %vm2006_vm5, %v11545_v3 }
 0x380   : > { %3856 = vmatprep.subr.bf16.mxu1 %v11981_v22 }
 0x381   : > { %v12928_v60 = vpop.f32.mrb[80].mxu1 }
 0x382   : > { %v2071_v46 = vpop.f32.mrb[81].mxu1 }
 0x383   : > { %3857 = vmatpush1.bf16.msra.mxu1 %v12556_v10  ;;  %v12937_v49 = vpop.f32.mrb[82].mxu1  ;;  %v11581_v46 = vld [vmem:[%s14801_s6 + $0x38] sm:$0xff]  }
 0x384   : > { %3858 = vmatprep.subr.bf16.mxu1 %v11981_v22  ;;  %v2086_v51 = vpack.c.bf16 %v12937_v49, %v12928_v60  ;;  %v2074_v53 = vpop.f32.mrb[83].mxu1  ;;  %v11589_v60 = vld [vmem:[%s14800_s5 + $0x220] ss:$8 sps:$4 sm:$0xff]  }
 0x385   : > { %v11576_v53 = vld [vmem:[%s14800_s5 + $0x200] ss:$8 sps:$4 sm:$0xff]  }
 0x386   : > { %3635 = vmatmul.mubr.bf16.gmra.mrb[176].mxu1 %v11547_v48  ;;  %v11580_v48 = vld [vmem:[%s14801_s6 + $0x30] sm:$0xff]  }
 0x387   : > { %3859 = vmatpush1.bf16.msra.mxu1 %v12562_v43  ;;  %9100 = vmatprep.mubr.msk.bf16.mxu1 %vm2006_vm5, %v11550_v47 }
 0x388   : > { %3860 = vmatprep.subr.bf16.mxu1 %v11981_v22 }
 0x389   : > { %v12945_v13 = vpop.f32.mrb[84].mxu1 }
 0x38a   : > { %v2079_v55 = vpop.f32.mrb[85].mxu1 }
 0x38b   : > { %3861 = vmatpush1.bf16.msra.mxu1 %v12568_v42  ;;  %v12954_v11 = vpop.f32.mrb[86].mxu1 }
 0x38c   : > { %3862 = vmatprep.subr.bf16.mxu1 %v11981_v22  ;;  %v2087_v58 = vpack.c.bf16 %v12954_v11, %v12945_v13  ;;  %v2082_v35 = vpop.f32.mrb[87].mxu1  ;;  %v11595_v13 = vld [vmem:[%s14801_s6 + $0xa0] sm:$0xff]   ;;  %v11596_v11 = vld [vmem:[%s14801_s6 + $0xa8] sm:$0xff]  }
 0x38d   : > { %v11586_v35 = vld [vmem:[%s14801_s6 + $0x88] sm:$0xff]  }
 0x38e   : > { %3643 = vmatmul.mubr.bf16.gmra.mrb[180].mxu1 %v11552_v32 }
 0x38f   : > { %3863 = vmatpush1.bf16.msra.mxu1 %v12574_v59  ;;  %9141 = vmatprep.mubr.msk.bf16.mxu1 %vm2006_vm5, %v11557_v56  ;;  %v11585_v56 = vld [vmem:[%s14801_s6 + $0x80] sm:$0xff]  }
 0x390   : > { %3864 = vmatprep.subr.bf16.mxu1 %v11981_v22 }
 0x393   : > { %3865 = vmatpush1.bf16.msra.mxu1 %v12580_v40 }
 0x394   : > { %3866 = vmatprep.subr.bf16.mxu1 %v11981_v22 }
 0x395   : > { %v2195_v38 = vpop.f32.mrb[88].mxu1 }
 0x396   : > { %v2197_v63 = vpop.f32.mrb[89].mxu1 }
 0x397   : > { %3867 = vmatpush1.bf16.msra.mxu1 %v12586_v28  ;;  %v2198_v6 = vpop.f32.mrb[90].mxu1 }
 0x398   : > { %4114 = vmatprep.subr.bf16.mxu1 %v11981_v22  ;;  %v2226_v2 = vpack.c.bf16 %v2198_v6, %v2195_v38  ;;  %v2200_v5 = vpop.f32.mrb[91].mxu1  ;;  %v11587_v6 = vld [vmem:[%s14800_s5 + $0x224] ss:$8 sps:$4 sm:$0xff]  }
 0x39a   : > { %3883 = vmatmul.mubr.bf16.vlgmr.msra.gmra.mrb[184].mxu1 %v11555_v61  ;;  %10565 = vmatprep.mubr.bf16.mxu0 %v2226_v2  ;;  %v11584_v61 = vld [vmem:[%s14800_s5 + $0x210] ss:$8 sps:$4 sm:$0xff]  }
 0x39b   : > { %4115 = vmatpush1.bf16.msra.mxu1 %v12538_v15  ;;  %9142 = vmatprep.mubr.msk.bf16.mxu1 %vm2006_vm5, %v11561_v1 }
 0x39c   : > { %4116 = vmatprep.subr.bf16.mxu1 %v11981_v22 }
 0x39d   : > { %v2203_v8 = vpop.f32.mrb[92].mxu1 }
 0x39e   : > { %v2205_v12 = vpop.f32.mrb[93].mxu1 }
 0x39f   : > { %4117 = vmatpush1.bf16.msra.mxu1 %v12544_v34  ;;  %v2206_v14 = vpop.f32.mrb[94].mxu1 }
 0x3a0   : > { %4118 = vmatprep.subr.bf16.mxu1 %v11981_v22  ;;  %v2227_v31 = vpack.c.bf16 %v2206_v14, %v2203_v8  ;;  %v2208_v45 = vpop.f32.mrb[95].mxu1  ;;  %v11592_v8 = vld [vmem:[%s14800_s5 + $0x234] ss:$8 sps:$4 sm:$0xff]   ;;  %v11594_v14 = vld [vmem:[%s14800_s5 + $0x230] ss:$8 sps:$4 sm:$0xff]  }
 0x3a1   : > { %v11599_v45 = vld [vmem:[%s14800_s5 + $0x244] ss:$8 sps:$4 sm:$0xff]  }
 0x3a2   : > { %3891 = vmatmul.mubr.bf16.gmra.mrb[188].mxu1 %v11563_v37  ;;  %10566 = vmatmul.mubr.bf16.vlgmr.msra.gmra.mrb[108].mxu0 %v2227_v31 }
 0x3a3   : > { %4119 = vmatpush1.bf16.msra.mxu1 %v12550_v54  ;;  %10574 = vmatpush3.bf16.msra.mxu0 %v12793_v17  ;;  %v11571_v17 = vld [vmem:[%s14800_s5 + $0x1f4] ss:$8 sps:$4 sm:$0xff]  }
 0x3a4   : > { %4120 = vmatprep.subr.bf16.mxu1 %v11981_v22  ;;  %9143 = vmatprep.mubr.msk.bf16.mxu1 %vm2006_vm5, %v11566_v39 }
 0x3a5   : > { %10575 = vmatprep.subr.bf16.mxu0 %v11569_v16  ;;  %v2211_v62 = vpop.f32.mrb[96].mxu1 }
 0x3a6   : > { %v2213_v20 = vpop.f32.mrb[97].mxu1 }
 0x3a7   : > { %4121 = vmatpush1.bf16.msra.mxu1 %v12556_v10  ;;  %10576 = vmatpush3.bf16.msra.mxu0 %v11569_v16  ;;  %v2214_v21 = vpop.f32.mrb[98].mxu1  ;;  %v11602_v20 = vld [vmem:[%s14801_s6 + $0xc0] sm:$0xff]  }
 0x3a8   : > { %4122 = vmatprep.subr.bf16.mxu1 %v11981_v22  ;;  %10577 = vmatprep.subr.bf16.mxu0 %v11570_v18  ;;  %v2228_v23 = vpack.c.bf16 %v2214_v21, %v2211_v62  ;;  %v2216_v0 = vpop.f32.mrb[99].mxu1  ;;  %v11600_v62 = vld [vmem:[%s14801_s6 + $0xb0] sm:$0xff]  }
 0x3aa   : > { %3899 = vmatmul.mubr.bf16.gmra.mrb[192].mxu1 %v11568_v19  ;;  %10569 = vmatprep.mubr.bf16.mxu0 %v2228_v23  ;;  %v11601_v19 = vld [vmem:[%s14801_s6 + $0xb8] sm:$0xff]  }
 0x3ab   : > { %4123 = vmatpush1.bf16.msra.mxu1 %v12562_v43  ;;  %10578 = vmatpush3.bf16.msra.mxu0 %v11570_v18 }
 0x3ac   : > { %4124 = vmatprep.subr.bf16.mxu1 %v11981_v22  ;;  %9144 = vmatprep.mubr.msk.bf16.mxu1 %vm2006_vm5, %v11571_v17  ;;  %v11597_v17 = vld [vmem:[%s14800_s5 + $0x240] ss:$8 sps:$4 sm:$0xff]  }
 0x3ad   : > { %10579 = vmatprep.subr.bf16.mxu0 %v11574_v50  ;;  %v2219_v25 = vpop.f32.mrb[100].mxu1 }
 0x3ae   : > { %v2221_v44 = vpop.f32.mrb[101].mxu1 }
 0x3af   : > { %4125 = vmatpush1.bf16.msra.mxu1 %v12568_v42  ;;  %10580 = vmatpush3.bf16.msra.mxu0 %v11574_v50  ;;  %v2222_v4 = vpop.f32.mrb[102].mxu1  ;;  %v11603_v50 = vld [vmem:[%s14800_s5 + $0x254] ss:$8 sps:$4 sm:$0xff]  }
 0x3b0   : > { %4126 = vmatprep.subr.bf16.mxu1 %v11981_v22  ;;  %10581 = vmatprep.subr.bf16.mxu0 %v11575_v27  ;;  %v2229_v36 = vpack.c.bf16 %v2222_v4, %v2219_v25  ;;  %v2224_v3 = vpop.f32.mrb[103].mxu1  ;;  %v11607_v44 = vld [vmem:[%s14801_s6 + $0xd0] sm:$0xff]  }
 0x3b2   : > { %3907 = vmatmul.mubr.bf16.gmra.mrb[196].mxu1 %v11573_v26  ;;  %10570 = vmatmul.mubr.bf16.gmra.mrb[112].mxu0 %v2229_v36  ;;  %v11606_v26 = vld [vmem:[%s14801_s6 + $0xc8] sm:$0xff]  }
 0x3b3   : > { %4127 = vmatpush1.bf16.msra.mxu1 %v12574_v59  ;;  %10582 = vmatpush3.bf16.msra.mxu0 %v11575_v27 }
 0x3b4   : > { %4128 = vmatprep.subr.bf16.mxu1 %v11981_v22  ;;  %9185 = vmatprep.mubr.msk.bf16.mxu1 %vm2006_vm5, %v11578_v52  ;;  %v11605_v52 = vld [vmem:[%s14800_s5 + $0x250] ss:$8 sps:$4 sm:$0xff]  }
 0x3b5   : > { %10583 = vmatprep.subr.bf16.mxu0 %v11579_v29  ;;  %10589 = vmatprep.mubr.bf16.mxu0 %v2084_v33 }
 0x3b7   : > { %4129 = vmatpush1.bf16.msra.mxu1 %v12580_v40  ;;  %10584 = vmatpush3.bf16.msra.mxu0 %v11579_v29  ;;  %v11608_v29 = vld [vmem:[%s14800_s5 + $0x264] ss:$8 sps:$4 sm:$0xff]  }
 0x3b8   : > { %4130 = vmatprep.subr.bf16.mxu1 %v11981_v22  ;;  %10585 = vmatprep.subr.bf16.mxu0 %v11580_v48 }
 0x3b9   : > { %v2564_v47 = vpop.f32.mrb[104].mxu1 }
 0x3ba   : > { %v2566_v32 = vpop.f32.mrb[105].mxu1 }
 0x3bb   : > { %4131 = vmatpush1.bf16.msra.mxu1 %v12586_v28  ;;  %10586 = vmatpush3.bf16.msra.mxu0 %v11580_v48  ;;  %v2567_v24 = vpop.f32.mrb[106].mxu1 }
 0x3bc   : > { %4378 = vmatprep.subr.bf16.mxu1 %v11981_v22  ;;  %10587 = vmatprep.subr.bf16.mxu0 %v11581_v46  ;;  %v2595_v33 = vpack.c.bf16 %v2567_v24, %v2564_v47  ;;  %v2569_v55 = vpop.f32.mrb[107].mxu1  ;;  %v11611_v47 = vld [vmem:[%s14801_s6 + $0xd8] sm:$0xff]   ;;  %v11610_v24 = vld [vmem:[%s14800_s5 + $0x260] ss:$8 sps:$4 sm:$0xff]  }
 0x3bd   : > { %v11613_v55 = vld [vmem:[%s14800_s5 + $0x274] ss:$8 sps:$4 sm:$0xff]  }
 0x3be   : > { %4147 = vmatmul.mubr.bf16.vlgmr.msra.gmra.mrb[200].mxu1 %v11576_v53  ;;  %v11612_v53 = vld [vmem:[%s14801_s6 + $0xe0] sm:$0xff]  }
 0x3bf   : > { %4379 = vmatpush1.bf16.msra.mxu1 %v12538_v15  ;;  %10588 = vmatpush3.bf16.msra.mxu0 %v11581_v46 }
 0x3c0   : > { %4380 = vmatprep.subr.bf16.mxu1 %v11981_v22  ;;  %9186 = vmatprep.mubr.msk.bf16.mxu1 %vm2006_vm5, %v11582_v30 }
 0x3c1   : > { %10597 = vmatprep.subr.bf16.mxu0 %v11585_v56  ;;  %v13052_v38 = vpop.f32.mrb[108].mxu1 }
 0x3c2   : > { %10590 = vmatmul.mubr.bf16.vlgmr.msra.gmra.mrb[108].mxu0 %v2085_v41  ;;  %v2574_v63 = vpop.f32.mrb[109].mxu1 }
 0x3c3   : > { %4381 = vmatpush1.bf16.msra.mxu1 %v12544_v34  ;;  %10598 = vmatpush3.bf16.msra.mxu0 %v11585_v56  ;;  %v13061_v1 = vpop.f32.mrb[110].mxu1 }
 0x3c4   : > { %4382 = vmatprep.subr.bf16.mxu1 %v11981_v22  ;;  %10599 = vmatprep.subr.bf16.mxu0 %v11586_v35  ;;  %v2596_v2 = vpack.c.bf16 %v13061_v1, %v13052_v38  ;;  %v2577_v5 = vpop.f32.mrb[111].mxu1  ;;  %v11616_v38 = vld [vmem:[%s14801_s6 + $0xe8] sm:$0xff]   ;;  %v11615_v1 = vld [vmem:[%s14800_s5 + $0x270] ss:$8 sps:$4 sm:$0xff]  }
 0x3c5   : > { %10593 = vmatprep.mubr.bf16.mxu0 %v2086_v51  ;;  %v11620_v5 = vld [vmem:[%s14800_s5 + $0x284] ss:$8 sps:$4 sm:$0xff]  }
 0x3c6   : > { %4155 = vmatmul.mubr.bf16.gmra.mrb[204].mxu1 %v11584_v61  ;;  %v11617_v61 = vld [vmem:[%s14801_s6 + $0xf0] sm:$0xff]  }
 0x3c7   : > { %4383 = vmatpush1.bf16.msra.mxu1 %v12550_v54  ;;  %10600 = vmatpush3.bf16.msra.mxu0 %v11586_v35 }
 0x3c8   : > { %4384 = vmatprep.subr.bf16.mxu1 %v11981_v22  ;;  %9187 = vmatprep.mubr.msk.bf16.mxu1 %vm2006_vm5, %v11587_v6 }
 0x3c9   : > { %10601 = vmatprep.subr.bf16.mxu0 %v11590_v9  ;;  %v13081_v41 = vpop.f32.mrb[112].mxu1 }
 0x3ca   : > { %10594 = vmatmul.mubr.bf16.gmra.mrb[112].mxu0 %v2087_v58  ;;  %v2582_v49 = vpop.f32.mrb[113].mxu1 }
 0x3cb   : > { %4385 = vmatpush1.bf16.msra.mxu1 %v12556_v10  ;;  %10602 = vmatpush3.bf16.msra.mxu0 %v11590_v9  ;;  %v2583_v51 = vpop.f32.mrb[114].mxu1  ;;  %v11623_v49 = vld [vmem:[%s14801_s6 + $0x108] sm:$0xff]  }
 0x3cc   : > { %4386 = vmatprep.subr.bf16.mxu1 %v11981_v22  ;;  %10603 = vmatprep.subr.bf16.mxu0 %v11591_v57  ;;  %v2597_v37 = vpack.c.bf16 %v2583_v51, %v13081_v41  ;;  %v2585_v12 = vpop.f32.mrb[115].mxu1  ;;  %v11621_v41 = vld [vmem:[%s14801_s6 + $0xf8] sm:$0xff]  }
 0x3cd   : > { %10613 = vmatprep.mubr.bf16.mxu0 %v2595_v33 }
 0x3ce   : > { %4163 = vmatmul.mubr.bf16.gmra.mrb[208].mxu1 %v11589_v60  ;;  %v11622_v60 = vld [vmem:[%s14801_s6 + $0x100] sm:$0xff]  }
 0x3cf   : > { %4387 = vmatpush1.bf16.msra.mxu1 %v12562_v43  ;;  %10604 = vmatpush3.bf16.msra.mxu0 %v11591_v57 }
 0x3d0   : > { %4388 = vmatprep.subr.bf16.mxu1 %v11981_v22  ;;  %9188 = vmatprep.mubr.msk.bf16.mxu1 %vm2006_vm5, %v11592_v8  ;;  %v11618_v8 = vld [vmem:[%s14800_s5 + $0x280] ss:$8 sps:$4 sm:$0xff]  }
 0x3d1   : > { %10605 = vmatprep.subr.bf16.mxu0 %v11595_v13  ;;  %v2588_v58 = vpop.f32.mrb[116].mxu1 }
 0x3d2   : > { %v2590_v31 = vpop.f32.mrb[117].mxu1 }
 0x3d3   : > { %4389 = vmatpush1.bf16.msra.mxu1 %v12568_v42  ;;  %10606 = vmatpush3.bf16.msra.mxu0 %v11595_v13  ;;  %v2591_v39 = vpop.f32.mrb[118].mxu1  ;;  %v11624_v13 = vld [vmem:[%s14800_s5 + $0x294] ss:$8 sps:$4 sm:$0xff]  }
 0x3d4   : > { %4390 = vmatprep.subr.bf16.mxu1 %v11981_v22  ;;  %10607 = vmatprep.subr.bf16.mxu0 %v11596_v11  ;;  %v2598_v16 = vpack.c.bf16 %v2591_v39, %v2588_v58  ;;  %v2593_v18 = vpop.f32.mrb[119].mxu1  ;;  %v11628_v31 = vld [vmem:[%s14801_s6 + $0x118] sm:$0xff]  }
 0x3d6   : > { %4171 = vmatmul.mubr.bf16.gmra.mrb[212].mxu1 %v11594_v14  ;;  %v11627_v14 = vld [vmem:[%s14801_s6 + $0x110] sm:$0xff]  }
 0x3d7   : > { %4391 = vmatpush1.bf16.msra.mxu1 %v12574_v59  ;;  %10608 = vmatpush3.bf16.msra.mxu0 %v11596_v11 }
 0x3d8   : > { %4392 = vmatprep.subr.bf16.mxu1 %v11981_v22  ;;  %9229 = vmatprep.mubr.msk.bf16.mxu1 %vm2006_vm5, %v11599_v45  ;;  %v11626_v45 = vld [vmem:[%s14800_s5 + $0x290] ss:$8 sps:$4 sm:$0xff]  }
 0x3d9   : > { %10609 = vmatprep.subr.bf16.mxu0 %v11600_v62 }
 0x3db   : > { %4393 = vmatpush1.bf16.msra.mxu1 %v12580_v40  ;;  %10610 = vmatpush3.bf16.msra.mxu0 %v11600_v62  ;;  %v11629_v62 = vld [vmem:[%s14800_s5 + $0x2a4] ss:$8 sps:$4 sm:$0xff]  }
 0x3dc   : > { %4394 = vmatprep.subr.bf16.mxu1 %v11981_v22  ;;  %10611 = vmatprep.subr.bf16.mxu0 %v11601_v19 }
 0x3dd   : > { %v2828_v21 = vpop.f32.mrb[120].mxu1 }
 0x3de   : > { %v2830_v23 = vpop.f32.mrb[121].mxu1 }
 0x3df   : > { %4395 = vmatpush1.bf16.msra.mxu1 %v12586_v28  ;;  %10612 = vmatpush3.bf16.msra.mxu0 %v11601_v19  ;;  %v2831_v0 = vpop.f32.mrb[122].mxu1 }
 0x3e0   : > { %4642 = vmatprep.subr.bf16.mxu1 %v11981_v22  ;;  %10621 = vmatprep.subr.bf16.mxu0 %v11602_v20  ;;  %v2859_v27 = vpack.c.bf16 %v2831_v0, %v2828_v21  ;;  %v2833_v25 = vpop.f32.mrb[123].mxu1  ;;  %v11632_v21 = vld [vmem:[%s14801_s6 + $0x120] sm:$0xff]  }
 0x3e1   : > { %v11631_v0 = vld [vmem:[%s14800_s5 + $0x2a0] ss:$8 sps:$4 sm:$0xff]   ;;  %v11634_v25 = vld [vmem:[%s14800_s5 + $0x2b4] ss:$8 sps:$4 sm:$0xff]  }
 0x3e2   : > { %4411 = vmatmul.mubr.bf16.vlgmr.msra.gmra.mrb[216].mxu1 %v11597_v17  ;;  %10614 = vmatmul.mubr.bf16.vlgmr.msra.gmra.mrb[108].mxu0 %v2596_v2  ;;  %v11633_v17 = vld [vmem:[%s14801_s6 + $0x128] sm:$0xff]  }
 0x3e3   : > { %4643 = vmatpush1.bf16.msra.mxu1 %v12538_v15  ;;  %10622 = vmatpush3.bf16.msra.mxu0 %v11602_v20 }
 0x3e4   : > { %4644 = vmatprep.subr.bf16.mxu1 %v11981_v22  ;;  %9230 = vmatprep.mubr.msk.bf16.mxu1 %vm2006_vm5, %v11603_v50 }
 0x3e5   : > { %10623 = vmatprep.subr.bf16.mxu0 %v11606_v26  ;;  %10617 = vmatprep.mubr.bf16.mxu0 %v2597_v37  ;;  %v13146_v4 = vpop.f32.mrb[124].mxu1 }
 0x3e6   : > { %v2838_v36 = vpop.f32.mrb[125].mxu1 }
 0x3e7   : > { %4645 = vmatpush1.bf16.msra.mxu1 %v12544_v34  ;;  %10624 = vmatpush3.bf16.msra.mxu0 %v11606_v26  ;;  %v2839_v3 = vpop.f32.mrb[126].mxu1 }
 0x3e8   : > { %4646 = vmatprep.subr.bf16.mxu1 %v11981_v22  ;;  %10625 = vmatprep.subr.bf16.mxu0 %v11607_v44  ;;  %v2860_v48 = vpack.c.bf16 %v2839_v3, %v13146_v4  ;;  %v2841_v46 = vpop.f32.mrb[127].mxu1  ;;  %v11637_v4 = vld [vmem:[%s14801_s6 + $0x130] sm:$0xff]  }
 0x3e9   : > { %v11636_v3 = vld [vmem:[%s14800_s5 + $0x2b0] ss:$8 sps:$4 sm:$0xff]   ;;  %v11641_v46 = vld [vmem:[%s14800_s5 + $0x2c4] ss:$8 sps:$4 sm:$0xff]  }
 0x3ea   : > { %4419 = vmatmul.mubr.bf16.gmra.mrb[220].mxu1 %v11605_v52  ;;  %10618 = vmatmul.mubr.bf16.gmra.mrb[112].mxu0 %v2598_v16  ;;  %v11638_v52 = vld [vmem:[%s14801_s6 + $0x138] sm:$0xff]  }
 0x3eb   : > { %4647 = vmatpush1.bf16.msra.mxu1 %v12550_v54  ;;  %10626 = vmatpush3.bf16.msra.mxu0 %v11607_v44 }
 0x3ec   : > { %4648 = vmatprep.subr.bf16.mxu1 %v11981_v22  ;;  %9231 = vmatprep.mubr.msk.bf16.mxu1 %vm2006_vm5, %v11608_v29 }
 0x3ed   : > { %10627 = vmatprep.subr.bf16.mxu0 %v11611_v47  ;;  %10637 = vmatprep.mubr.bf16.mxu0 %v2859_v27  ;;  %v2844_v32 = vpop.f32.mrb[128].mxu1 }
 0x3ee   : > { %v2846_v30 = vpop.f32.mrb[129].mxu1 }
 0x3ef   : > { %4649 = vmatpush1.bf16.msra.mxu1 %v12556_v10  ;;  %10628 = vmatpush3.bf16.msra.mxu0 %v11611_v47  ;;  %v2847_v33 = vpop.f32.mrb[130].mxu1  ;;  %v11644_v30 = vld [vmem:[%s14801_s6 + $0x150] sm:$0xff]  }
 0x3f0   : > { %4650 = vmatprep.subr.bf16.mxu1 %v11981_v22  ;;  %10629 = vmatprep.subr.bf16.mxu0 %v11612_v53  ;;  %v2861_v56 = vpack.c.bf16 %v2847_v33, %v2844_v32  ;;  %v2849_v35 = vpop.f32.mrb[131].mxu1  ;;  %v11642_v32 = vld [vmem:[%s14801_s6 + $0x140] sm:$0xff]  }
 0x3f1   : > { %v11645_v35 = vld [vmem:[%s14800_s5 + $0x2d4] ss:$8 sps:$4 sm:$0xff]  }
 0x3f2   : > { %4427 = vmatmul.mubr.bf16.gmra.mrb[224].mxu1 %v11610_v24  ;;  %v11643_v24 = vld [vmem:[%s14801_s6 + $0x148] sm:$0xff]  }
 0x3f3   : > { %4651 = vmatpush1.bf16.msra.mxu1 %v12562_v43  ;;  %10630 = vmatpush3.bf16.msra.mxu0 %v11612_v53 }
 0x3f4   : > { %4652 = vmatprep.subr.bf16.mxu1 %v11981_v22  ;;  %9232 = vmatprep.mubr.msk.bf16.mxu1 %vm2006_vm5, %v11613_v55  ;;  %v11639_v55 = vld [vmem:[%s14800_s5 + $0x2c0] ss:$8 sps:$4 sm:$0xff]  }
 0x3f5   : > { %10631 = vmatprep.subr.bf16.mxu0 %v11616_v38  ;;  %v2852_v63 = vpop.f32.mrb[132].mxu1 }
 0x3f6   : > { %v2854_v6 = vpop.f32.mrb[133].mxu1 }
 0x3f7   : > { %4653 = vmatpush1.bf16.msra.mxu1 %v12568_v42  ;;  %10632 = vmatpush3.bf16.msra.mxu0 %v11616_v38  ;;  %v2855_v2 = vpop.f32.mrb[134].mxu1  ;;  %v11649_v6 = vld [vmem:[%s14801_s6 + $0x160] sm:$0xff]  }
 0x3f8   : > { %4654 = vmatprep.subr.bf16.mxu1 %v11981_v22  ;;  %10633 = vmatprep.subr.bf16.mxu0 %v11617_v61  ;;  %v2862_v9 = vpack.c.bf16 %v2855_v2, %v2852_v63  ;;  %v2857_v57 = vpop.f32.mrb[135].mxu1 }
 0x3f9   : > { %v11652_v57 = vld [vmem:[%s14800_s5 + $0x2e4] ss:$8 sps:$4 sm:$0xff]  }
 0x3fa   : > { %4435 = vmatmul.mubr.bf16.gmra.mrb[228].mxu1 %v11615_v1  ;;  %v11648_v1 = vld [vmem:[%s14801_s6 + $0x158] sm:$0xff]  }
 0x3fb   : > { %4655 = vmatpush1.bf16.msra.mxu1 %v12574_v59  ;;  %10634 = vmatpush3.bf16.msra.mxu0 %v11617_v61 }
 0x3fc   : > { %4656 = vmatprep.subr.bf16.mxu1 %v11981_v22  ;;  %9273 = vmatprep.mubr.msk.bf16.mxu1 %vm2006_vm5, %v11620_v5  ;;  %v11647_v5 = vld [vmem:[%s14800_s5 + $0x2d0] ss:$8 sps:$4 sm:$0xff]  }
 0x3fd   : > { %10635 = vmatprep.subr.bf16.mxu0 %v11621_v41 }
 0x3ff   : > { %4657 = vmatpush1.bf16.msra.mxu1 %v12580_v40  ;;  %10636 = vmatpush3.bf16.msra.mxu0 %v11621_v41 }
 0x400   : > { %4658 = vmatprep.subr.bf16.mxu1 %v11981_v22  ;;  %10645 = vmatprep.subr.bf16.mxu0 %v11622_v60 }
 0x401   : > { %v3092_v51 = vpop.f32.mrb[136].mxu1 }
 0x402   : > { %10638 = vmatmul.mubr.bf16.vlgmr.msra.gmra.mrb[108].mxu0 %v2860_v48  ;;  %v3094_v37 = vpop.f32.mrb[137].mxu1 }
 0x403   : > { %4659 = vmatpush1.bf16.msra.mxu1 %v12586_v28  ;;  %10646 = vmatpush3.bf16.msra.mxu0 %v11622_v60  ;;  %v3095_v12 = vpop.f32.mrb[138].mxu1 }
 0x404   : > { %4906 = vmatprep.subr.bf16.mxu1 %v11981_v22  ;;  %10647 = vmatprep.subr.bf16.mxu0 %v11623_v49  ;;  %v3123_v11 = vpack.c.bf16 %v3095_v12, %v3092_v51  ;;  %v3097_v58 = vpop.f32.mrb[139].mxu1  ;;  %v11653_v51 = vld [vmem:[%s14801_s6 + $0x168] sm:$0xff]  }
 0x405   : > { %10641 = vmatprep.mubr.bf16.mxu0 %v2861_v56  ;;  %v11650_v12 = vld [vmem:[%s14800_s5 + $0x2e0] ss:$8 sps:$4 sm:$0xff]  }
 0x406   : > { %4675 = vmatmul.mubr.bf16.vlgmr.msra.gmra.mrb[232].mxu1 %v11618_v8  ;;  %v11654_v8 = vld [vmem:[%s14801_s6 + $0x170] sm:$0xff]  }
 0x407   : > { %4907 = vmatpush1.bf16.msra.mxu1 %v12538_v15  ;;  %10648 = vmatpush3.bf16.msra.mxu0 %v11623_v49 }
 0x408   : > { %4908 = vmatprep.subr.bf16.mxu1 %v11981_v22  ;;  %9274 = vmatprep.mubr.msk.bf16.mxu1 %vm2006_vm5, %v11624_v13 }
 0x409   : > { %10649 = vmatprep.subr.bf16.mxu0 %v11627_v14  ;;  %v3100_v39 = vpop.f32.mrb[140].mxu1 }
 0x40a   : > { %10642 = vmatmul.mubr.bf16.gmra.mrb[112].mxu0 %v2862_v9  ;;  %v3102_v16 = vpop.f32.mrb[141].mxu1 }
 0x40b   : > { %4909 = vmatpush1.bf16.msra.mxu1 %v12544_v34  ;;  %10650 = vmatpush3.bf16.msra.mxu0 %v11627_v14  ;;  %v3103_v18 = vpop.f32.mrb[142].mxu1 }
 0x40c   : > { %4910 = vmatprep.subr.bf16.mxu1 %v11981_v22  ;;  %10651 = vmatprep.subr.bf16.mxu0 %v11628_v31  ;;  %v3124_v19 = vpack.c.bf16 %v3103_v18, %v3100_v39  ;;  %v3105_v20 = vpop.f32.mrb[143].mxu1  ;;  %v11658_v39 = vld [vmem:[%s14801_s6 + $0x178] sm:$0xff]  }
 0x40d   : > { %10661 = vmatprep.mubr.bf16.mxu0 %v3123_v11  ;;  %v11657_v11 = vld [vmem:[%s14800_s5 + $0x2f4] ss:$8 sps:$4 sm:$0xff]   ;;  %v11655_v18 = vld [vmem:[%s14800_s5 + $0x2f0] ss:$8 sps:$4 sm:$0xff]  }
 0x40e   : > { %4683 = vmatmul.mubr.bf16.gmra.mrb[236].mxu1 %v11626_v45  ;;  %v11659_v45 = vld [vmem:[%s14801_s6 + $0x180] sm:$0xff]  }
 0x40f   : > { %4911 = vmatpush1.bf16.msra.mxu1 %v12550_v54  ;;  %10652 = vmatpush3.bf16.msra.mxu0 %v11628_v31 }
 0x410   : > { %4912 = vmatprep.subr.bf16.mxu1 %v11981_v22  ;;  %9275 = vmatprep.mubr.msk.bf16.mxu1 %vm2006_vm5, %v11629_v62 }
 0x411   : > { %10653 = vmatprep.subr.bf16.mxu0 %v11632_v21  ;;  %v3108_v23 = vpop.f32.mrb[144].mxu1 }
 0x412   : > { %v3110_v50 = vpop.f32.mrb[145].mxu1 }
 0x413   : > { %4913 = vmatpush1.bf16.msra.mxu1 %v12556_v10  ;;  %10654 = vmatpush3.bf16.msra.mxu0 %v11632_v21  ;;  %v3111_v27 = vpop.f32.mrb[146].mxu1 }
 0x414   : > { %4914 = vmatprep.subr.bf16.mxu1 %v11981_v22  ;;  %10655 = vmatprep.subr.bf16.mxu0 %v11633_v17  ;;  %v3125_v26 = vpack.c.bf16 %v3111_v27, %v3108_v23  ;;  %v3113_v44 = vpop.f32.mrb[147].mxu1  ;;  %v11663_v23 = vld [vmem:[%s14801_s6 + $0x188] sm:$0xff]  }
 0x415   : > { %v11660_v27 = vld [vmem:[%s14800_s5 + $0x300] ss:$8 sps:$4 sm:$0xff]   ;;  %v11667_v44 = vld [vmem:[%s14800_s5 + $0x314] ss:$8 sps:$4 sm:$0xff]  }
 0x416   : > { %4691 = vmatmul.mubr.bf16.gmra.mrb[240].mxu1 %v11631_v0  ;;  %v11664_v0 = vld [vmem:[%s14801_s6 + $0x190] sm:$0xff]  }
 0x417   : > { %4915 = vmatpush1.bf16.msra.mxu1 %v12562_v43  ;;  %10656 = vmatpush3.bf16.msra.mxu0 %v11633_v17 }
 0x418   : > { %4916 = vmatprep.subr.bf16.mxu1 %v11981_v22  ;;  %9276 = vmatprep.mubr.msk.bf16.mxu1 %vm2006_vm5, %v11634_v25  ;;  %v11668_v25 = vld [vmem:[%s14801_s6 + $0x198] sm:$0xff]  }
 0x419   : > { %10657 = vmatprep.subr.bf16.mxu0 %v11637_v4  ;;  %v3116_v36 = vpop.f32.mrb[148].mxu1 }
 0x41a   : > { %v3118_v29 = vpop.f32.mrb[149].mxu1 }
 0x41b   : > { %4917 = vmatpush1.bf16.msra.mxu1 %v12568_v42  ;;  %10658 = vmatpush3.bf16.msra.mxu0 %v11637_v4  ;;  %v3119_v48 = vpop.f32.mrb[150].mxu1 }
 0x41c   : > { %4918 = vmatprep.subr.bf16.mxu1 %v11981_v22  ;;  %10659 = vmatprep.subr.bf16.mxu0 %v11638_v52  ;;  %v3126_v47 = vpack.c.bf16 %v3119_v48, %v3116_v36  ;;  %v3121_v53 = vpop.f32.mrb[151].mxu1  ;;  %v11665_v48 = vld [vmem:[%s14800_s5 + $0x310] ss:$8 sps:$4 sm:$0xff]  }
 0x41d   : > { %v11673_v53 = vld [vmem:[%s14800_s5 + $0x324] ss:$8 sps:$4 sm:$0xff]  }
 0x41e   : > { %4699 = vmatmul.mubr.bf16.gmra.mrb[244].mxu1 %v11636_v3  ;;  %v11669_v3 = vld [vmem:[%s14801_s6 + $0x1a0] sm:$0xff]  }
 0x41f   : > { %4919 = vmatpush1.bf16.msra.mxu1 %v12574_v59  ;;  %10660 = vmatpush3.bf16.msra.mxu0 %v11638_v52 }
 0x420   : > { %4920 = vmatprep.subr.bf16.mxu1 %v11981_v22  ;;  %9317 = vmatprep.mubr.msk.bf16.mxu1 %vm2006_vm5, %v11641_v46  ;;  %v11670_v46 = vld [vmem:[%s14801_s6 + $0x1a8] sm:$0xff]  }
 0x421   : > { %10669 = vmatprep.subr.bf16.mxu0 %v11642_v32 }
 0x422   : > { %10662 = vmatmul.mubr.bf16.vlgmr.msra.gmra.mrb[108].mxu0 %v3124_v19  ;;  %v11662_v19 = vld [vmem:[%s14800_s5 + $0x304] ss:$8 sps:$4 sm:$0xff]  }
 0x423   : > { %4921 = vmatpush1.bf16.msra.mxu1 %v12580_v40  ;;  %10670 = vmatpush3.bf16.msra.mxu0 %v11642_v32 }
 0x424   : > { %4922 = vmatprep.subr.bf16.mxu1 %v11981_v22  ;;  %10671 = vmatprep.subr.bf16.mxu0 %v11643_v24 }
 0x425   : > { %10665 = vmatprep.mubr.bf16.mxu0 %v3125_v26  ;;  %v3356_v33 = vpop.f32.mrb[152].mxu1 }
 0x426   : > { %v3358_v56 = vpop.f32.mrb[153].mxu1 }
 0x427   : > { %4923 = vmatpush1.bf16.msra.mxu1 %v12586_v28  ;;  %10672 = vmatpush3.bf16.msra.mxu0 %v11643_v24  ;;  %v3359_v38 = vpop.f32.mrb[154].mxu1  ;;  %v11671_v56 = vld [vmem:[%s14800_s5 + $0x320] ss:$8 sps:$4 sm:$0xff]  }
 0x428   : > { %5170 = vmatprep.subr.bf16.mxu1 %v11981_v22  ;;  %10673 = vmatprep.subr.bf16.mxu0 %v11644_v30  ;;  %v3387_v61 = vpack.c.bf16 %v3359_v38, %v3356_v33  ;;  %v3361_v63 = vpop.f32.mrb[155].mxu1  ;;  %v11674_v33 = vld [vmem:[%s14801_s6 + $0x1b0] sm:$0xff]  }
 0x42a   : > { %4939 = vmatmul.mubr.bf16.vlgmr.msra.gmra.mrb[248].mxu1 %v11639_v55  ;;  %10666 = vmatmul.mubr.bf16.gmra.mrb[112].mxu0 %v3126_v47 }
 0x42b   : > { %5171 = vmatpush1.bf16.msra.mxu1 %v12538_v15  ;;  %9318 = vmatprep.mubr.msk.bf16.mxu1 %vm2006_vm5, %v11645_v35  ;;  %v11675_v35 = vld [vmem:[%s14801_s6 + $0x1b8] sm:$0xff]  }
 0x42c   : > { %5172 = vmatprep.subr.bf16.mxu1 %v11981_v22  ;;  %10674 = vmatpush3.bf16.msra.mxu0 %v11644_v30 }
 0x42d   : > { %10675 = vmatprep.subr.bf16.mxu0 %v11648_v1  ;;  %v3364_v2 = vpop.f32.mrb[156].mxu1  ;;  %10685 = vmatprep.mubr.bf16.mxu0 %v3387_v61  ;;  %v11678_v61 = vld [vmem:[%s14800_s5 + $0x334] ss:$8 sps:$4 sm:$0xff]  }
 0x42e   : > { %v3366_v9 = vpop.f32.mrb[157].mxu1 }
 0x42f   : > { %5173 = vmatpush1.bf16.msra.mxu1 %v12544_v34  ;;  %v3367_v41 = vpop.f32.mrb[158].mxu1  ;;  %v11676_v9 = vld [vmem:[%s14800_s5 + $0x330] ss:$8 sps:$4 sm:$0xff]  }
 0x430   : > { %5174 = vmatprep.subr.bf16.mxu1 %v11981_v22  ;;  %10676 = vmatpush3.bf16.msra.mxu0 %v11648_v1  ;;  %v3388_v60 = vpack.c.bf16 %v3367_v41, %v3364_v2  ;;  %v3369_v49 = vpop.f32.mrb[159].mxu1  ;;  %v11679_v2 = vld [vmem:[%s14801_s6 + $0x1c0] sm:$0xff]  }
 0x431   : > { %10677 = vmatprep.subr.bf16.mxu0 %v11649_v6 }
 0x432   : > { %4947 = vmatmul.mubr.bf16.gmra.mrb[252].mxu1 %v11647_v5 }
 0x433   : > { %5175 = vmatpush1.bf16.msra.mxu1 %v12550_v54  ;;  %9319 = vmatprep.mubr.msk.bf16.mxu1 %vm2006_vm5, %v11652_v57  ;;  %v11680_v57 = vld [vmem:[%s14801_s6 + $0x1c8] sm:$0xff]  }
 0x434   : > { %5176 = vmatprep.subr.bf16.mxu1 %v11981_v22  ;;  %10678 = vmatpush3.bf16.msra.mxu0 %v11649_v6 }
 0x435   : > { %10679 = vmatprep.subr.bf16.mxu0 %v11653_v51  ;;  %v3372_v37 = vpop.f32.mrb[160].mxu1 }
 0x436   : > { %v3374_v13 = vpop.f32.mrb[161].mxu1 }
 0x437   : > { %5177 = vmatpush1.bf16.msra.mxu1 %v12556_v10  ;;  %v3375_v58 = vpop.f32.mrb[162].mxu1 }
 0x438   : > { %5178 = vmatprep.subr.bf16.mxu1 %v11981_v22  ;;  %10680 = vmatpush3.bf16.msra.mxu0 %v11653_v51  ;;  %v3389_v14 = vpack.c.bf16 %v3375_v58, %v3372_v37  ;;  %v3377_v31 = vpop.f32.mrb[163].mxu1  ;;  %v11684_v37 = vld [vmem:[%s14801_s6 + $0x1d0] sm:$0xff]   ;;  %v11686_v58 = vld [vmem:[%s14801_s6 + $0x1e0] sm:$0xff]  }
 0x439   : > { %10681 = vmatprep.subr.bf16.mxu0 %v11654_v8  ;;  %v11689_v31 = vld [vmem:[%s14800_s5 + $0x394] ss:$8 sps:$4 sm:$0xff]  }
 0x43a   : > { %4955 = vmatmul.mubr.bf16.gmra.mrb[0].mxu1 %v11650_v12  ;;  %v11685_v12 = vld [vmem:[%s14801_s6 + $0x1d8] sm:$0xff]  }
 0x43b   : > { %5179 = vmatpush1.bf16.msra.mxu1 %v12562_v43  ;;  %9320 = vmatprep.mubr.msk.bf16.mxu1 %vm2006_vm5, %v11657_v11  ;;  %v11681_v11 = vld [vmem:[%s14800_s5 + $0x380] ss:$8 sps:$4 sm:$0xff]  }
 0x43c   : > { %5180 = vmatprep.subr.bf16.mxu1 %v11981_v22  ;;  %10682 = vmatpush3.bf16.msra.mxu0 %v11654_v8 }
 0x43d   : > { %10683 = vmatprep.subr.bf16.mxu0 %v11658_v39  ;;  %v3380_v16 = vpop.f32.mrb[164].mxu1 }
 0x43e   : > { %v3382_v62 = vpop.f32.mrb[165].mxu1 }
 0x43f   : > { %5181 = vmatpush1.bf16.msra.mxu1 %v12568_v42  ;;  %v3383_v20 = vpop.f32.mrb[166].mxu1 }
 0x440   : > { %5182 = vmatprep.subr.bf16.mxu1 %v11981_v22  ;;  %10684 = vmatpush3.bf16.msra.mxu0 %v11658_v39  ;;  %v3390_v21 = vpack.c.bf16 %v3383_v20, %v3380_v16  ;;  %v3385_v17 = vpop.f32.mrb[167].mxu1  ;;  %v11691_v20 = vld [vmem:[%s14801_s6 + $0x1f0] sm:$0xff]  }
 0x441   : > { %10693 = vmatprep.subr.bf16.mxu0 %v11659_v45  ;;  %v11694_v17 = vld [vmem:[%s14800_s5 + $0x3a4] ss:$8 sps:$4 sm:$0xff]  }
 0x442   : > { %4963 = vmatmul.mubr.bf16.gmra.mrb[4].mxu1 %v11655_v18  ;;  %v11690_v18 = vld [vmem:[%s14801_s6 + $0x1e8] sm:$0xff]  }
 0x443   : > { %5183 = vmatpush1.bf16.msra.mxu1 %v12574_v59  ;;  %9361 = vmatprep.mubr.msk.bf16.mxu1 %vm2006_vm5, %v11662_v19  ;;  %v11687_v19 = vld [vmem:[%s14800_s5 + $0x390] ss:$8 sps:$4 sm:$0xff]  }
 0x444   : > { %5184 = vmatprep.subr.bf16.mxu1 %v11981_v22  ;;  %10686 = vmatmul.mubr.bf16.vlgmr.msra.gmra.mrb[108].mxu0 %v3388_v60  ;;  %v11683_v60 = vld [vmem:[%s14800_s5 + $0x384] ss:$8 sps:$4 sm:$0xff]  }
 0x445   : > { %10694 = vmatpush3.bf16.msra.mxu0 %v11659_v45  ;;  %10689 = vmatprep.mubr.bf16.mxu0 %v3389_v14 }
 0x446   : > { %10695 = vmatprep.subr.bf16.mxu0 %v11663_v23 }
 0x447   : > { %5185 = vmatpush1.bf16.msra.mxu1 %v12580_v40 }
 0x448   : > { %5186 = vmatprep.subr.bf16.mxu1 %v11981_v22 }
 0x449   : > { %10696 = vmatpush3.bf16.msra.mxu0 %v11663_v23  ;;  %v3620_v50 = vpop.f32.mrb[168].mxu1 }
 0x44a   : > { %10697 = vmatprep.subr.bf16.mxu0 %v11664_v0  ;;  %v3622_v26 = vpop.f32.mrb[169].mxu1 }
 0x44b   : > { %5187 = vmatpush1.bf16.msra.mxu1 %v12586_v28  ;;  %v3623_v4 = vpop.f32.mrb[170].mxu1  ;;  %v11692_v26 = vld [vmem:[%s14800_s5 + $0x3a0] ss:$8 sps:$4 sm:$0xff]  }
 0x44c   : > { %5698 = vmatprep.subr.bf16.mxu1 %v11981_v22  ;;  %10690 = vmatmul.mubr.bf16.gmra.mrb[112].mxu0 %v3390_v21  ;;  %v3651_v52 = vpack.c.bf16 %v3623_v4, %v3620_v50  ;;  %v3625_v36 = vpop.f32.mrb[171].mxu1 }
 0x44d   : > { %10698 = vmatpush3.bf16.msra.mxu0 %v11664_v0 }
 0x44e   : > { %5203 = vmatmul.mubr.bf16.vlgmr.msra.gmra.mrb[8].mxu1 %v11660_v27  ;;  %10699 = vmatprep.subr.bf16.mxu0 %v11668_v25  ;;  %v11695_v27 = vld [vmem:[%s14801_s6 + $0x1f8] sm:$0xff]  }
 0x44f   : > { %5699 = vmatpush1.bf16.msra.mxu1 %v12538_v15  ;;  %9362 = vmatprep.mubr.msk.bf16.mxu1 %vm2006_vm5, %v11667_v44  ;;  %v11696_v44 = vld [vmem:[%s14801_s6 + $0x200] sm:$0xff]  }
 0x450   : > { %5700 = vmatprep.subr.bf16.mxu1 %v11981_v22  ;;  %10709 = vmatprep.mubr.bf16.mxu0 %v3651_v52  ;;  %v11699_v52 = vld [vmem:[%s14800_s5 + $0x3b4] ss:$8 sps:$4 sm:$0xff]  }
 0x451   : > { %10700 = vmatpush3.bf16.msra.mxu0 %v11668_v25  ;;  %v3628_v29 = vpop.f32.mrb[172].mxu1 }
 0x452   : > { %10701 = vmatprep.subr.bf16.mxu0 %v11669_v3  ;;  %v3630_v47 = vpop.f32.mrb[173].mxu1 }
 0x453   : > { %5701 = vmatpush1.bf16.msra.mxu1 %v12544_v34  ;;  %v3631_v32 = vpop.f32.mrb[174].mxu1  ;;  %v11697_v47 = vld [vmem:[%s14800_s5 + $0x3b0] ss:$8 sps:$4 sm:$0xff]  }
 0x454   : > { %5702 = vmatprep.subr.bf16.mxu1 %v11981_v22  ;;  %v3652_v24 = vpack.c.bf16 %v3631_v32, %v3628_v29  ;;  %v3633_v30 = vpop.f32.mrb[175].mxu1 }
 0x455   : > { %10702 = vmatpush3.bf16.msra.mxu0 %v11669_v3 }
 0x456   : > { %5211 = vmatmul.mubr.bf16.gmra.mrb[12].mxu1 %v11665_v48  ;;  %10703 = vmatprep.subr.bf16.mxu0 %v11670_v46  ;;  %v11700_v48 = vld [vmem:[%s14801_s6 + $0x208] sm:$0xff]  }
 0x457   : > { %5703 = vmatpush1.bf16.msra.mxu1 %v12550_v54  ;;  %9363 = vmatprep.mubr.msk.bf16.mxu1 %vm2006_vm5, %v11673_v53  ;;  %v11701_v53 = vld [vmem:[%s14801_s6 + $0x210] sm:$0xff]  }
 0x458   : > { %5704 = vmatprep.subr.bf16.mxu1 %v11981_v22 }
 0x459   : > { %10704 = vmatpush3.bf16.msra.mxu0 %v11670_v46  ;;  %v3636_v55 = vpop.f32.mrb[176].mxu1 }
 0x45a   : > { %10705 = vmatprep.subr.bf16.mxu0 %v11674_v33  ;;  %v3638_v38 = vpop.f32.mrb[177].mxu1 }
 0x45b   : > { %5705 = vmatpush1.bf16.msra.mxu1 %v12556_v10  ;;  %v3639_v63 = vpop.f32.mrb[178].mxu1 }
 0x45c   : > { %5706 = vmatprep.subr.bf16.mxu1 %v11981_v22  ;;  %v3653_v1 = vpack.c.bf16 %v3639_v63, %v3636_v55  ;;  %v3641_v6 = vpop.f32.mrb[179].mxu1  ;;  %v11707_v63 = vld [vmem:[%s14801_s6 + $0x228] sm:$0xff]  }
 0x45d   : > { %10706 = vmatpush3.bf16.msra.mxu0 %v11674_v33  ;;  %v11710_v6 = vld [vmem:[%s14800_s5 + $0x3d4] ss:$8 sps:$4 sm:$0xff]  }
 0x45e   : > { %5219 = vmatmul.mubr.bf16.gmra.mrb[16].mxu1 %v11671_v56  ;;  %10707 = vmatprep.subr.bf16.mxu0 %v11675_v35  ;;  %v11705_v56 = vld [vmem:[%s14801_s6 + $0x218] sm:$0xff]  }
 0x45f   : > { %5707 = vmatpush1.bf16.msra.mxu1 %v12562_v43  ;;  %9364 = vmatprep.mubr.msk.bf16.mxu1 %vm2006_vm5, %v11678_v61  ;;  %v11702_v61 = vld [vmem:[%s14800_s5 + $0x3c0] ss:$8 sps:$4 sm:$0xff]  }
 0x460   : > { %5708 = vmatprep.subr.bf16.mxu1 %v11981_v22 }
 0x461   : > { %10708 = vmatpush3.bf16.msra.mxu0 %v11675_v35  ;;  %v3644_v5 = vpop.f32.mrb[180].mxu1  ;;  %v11706_v35 = vld [vmem:[%s14801_s6 + $0x220] sm:$0xff]  }
 0x462   : > { %10717 = vmatprep.subr.bf16.mxu0 %v11679_v2  ;;  %v3646_v41 = vpop.f32.mrb[181].mxu1 }
 0x463   : > { %5709 = vmatpush1.bf16.msra.mxu1 %v12568_v42  ;;  %v3647_v49 = vpop.f32.mrb[182].mxu1 }
 0x464   : > { %5710 = vmatprep.subr.bf16.mxu1 %v11981_v22  ;;  %10710 = vmatmul.mubr.bf16.vlgmr.msra.gmra.mrb[108].mxu0 %v3652_v24  ;;  %v3654_v51 = vpack.c.bf16 %v3647_v49, %v3644_v5  ;;  %v3649_v8 = vpop.f32.mrb[183].mxu1  ;;  %v11704_v24 = vld [vmem:[%s14800_s5 + $0x3c4] ss:$8 sps:$4 sm:$0xff]   ;;  %v11712_v49 = vld [vmem:[%s14801_s6 + $0x238] sm:$0xff]  }
 0x465   : > { %10718 = vmatpush3.bf16.msra.mxu0 %v11679_v2  ;;  %10713 = vmatprep.mubr.bf16.mxu0 %v3653_v1  ;;  %v11715_v8 = vld [vmem:[%s14800_s5 + $0x3e4] ss:$8 sps:$4 sm:$0xff]  }
 0x466   : > { %5227 = vmatmul.mubr.bf16.gmra.mrb[20].mxu1 %v11676_v9  ;;  %10719 = vmatprep.subr.bf16.mxu0 %v11680_v57 }
 0x467   : > { %5711 = vmatpush1.bf16.msra.mxu1 %v12574_v59  ;;  %9449 = vmatprep.mubr.msk.bf16.mxu1 %vm2006_vm5, %v11683_v60  ;;  %v11708_v60 = vld [vmem:[%s14800_s5 + $0x3d0] ss:$8 sps:$4 sm:$0xff]  }
 0x468   : > { %5712 = vmatprep.subr.bf16.mxu1 %v11981_v22 }
 0x469   : > { %10720 = vmatpush3.bf16.msra.mxu0 %v11680_v57  ;;  %v11711_v57 = vld [vmem:[%s14801_s6 + $0x230] sm:$0xff]  }
 0x46a   : > { %10721 = vmatprep.subr.bf16.mxu0 %v11684_v37 }
 0x46b   : > { %5713 = vmatpush1.bf16.msra.mxu1 %v12580_v40 }
 0x46c   : > { %5714 = vmatprep.subr.bf16.mxu1 %v11981_v22  ;;  %10714 = vmatmul.mubr.bf16.gmra.mrb[112].mxu0 %v3654_v51 }
 0x46d   : > { %10722 = vmatpush3.bf16.msra.mxu0 %v11684_v37  ;;  %v3884_v13 = vpop.f32.mrb[184].mxu1 }
 0x46e   : > { %10723 = vmatprep.subr.bf16.mxu0 %v11685_v12  ;;  %v3886_v14 = vpop.f32.mrb[185].mxu1 }
 0x46f   : > { %5715 = vmatpush1.bf16.msra.mxu1 %v12586_v28  ;;  %v3887_v39 = vpop.f32.mrb[186].mxu1  ;;  %v11713_v14 = vld [vmem:[%s14800_s5 + $0x3e0] ss:$8 sps:$4 sm:$0xff]  }
 0x470   : > { %5962 = vmatprep.subr.bf16.mxu1 %v11981_v22  ;;  %v3915_v45 = vpack.c.bf16 %v3887_v39, %v3884_v13  ;;  %v3889_v16 = vpop.f32.mrb[187].mxu1 }
 0x471   : > { %10724 = vmatpush3.bf16.msra.mxu0 %v11685_v12 }
 0x472   : > { %5731 = vmatmul.mubr.bf16.vlgmr.msra.gmra.mrb[24].mxu1 %v11681_v11  ;;  %10725 = vmatprep.subr.bf16.mxu0 %v11686_v58  ;;  %v11716_v11 = vld [vmem:[%s14801_s6 + $0x240] sm:$0xff]  }
 0x473   : > { %5963 = vmatpush1.bf16.msra.mxu1 %v12538_v15  ;;  %9450 = vmatprep.mubr.msk.bf16.mxu1 %vm2006_vm5, %v11689_v31  ;;  %v11717_v31 = vld [vmem:[%s14801_s6 + $0x248] sm:$0xff]  }
 0x474   : > { %5964 = vmatprep.subr.bf16.mxu1 %v11981_v22  ;;  %10733 = vmatprep.mubr.bf16.mxu0 %v3915_v45  ;;  %v11720_v45 = vld [vmem:[%s14800_s5 + $0x3f4] ss:$8 sps:$4 sm:$0xff]  }
 0x475   : > { %10726 = vmatpush3.bf16.msra.mxu0 %v11686_v58  ;;  %v3892_v62 = vpop.f32.mrb[188].mxu1 }
 0x476   : > { %10727 = vmatprep.subr.bf16.mxu0 %v11690_v18  ;;  %v3894_v21 = vpop.f32.mrb[189].mxu1 }
 0x477   : > { %5965 = vmatpush1.bf16.msra.mxu1 %v12544_v34  ;;  %v3895_v23 = vpop.f32.mrb[190].mxu1  ;;  %v11718_v21 = vld [vmem:[%s14800_s5 + $0x3f0] ss:$8 sps:$4 sm:$0xff]  }
 0x478   : > { %5966 = vmatprep.subr.bf16.mxu1 %v11981_v22  ;;  %v3916_v0 = vpack.c.bf16 %v3895_v23, %v3892_v62  ;;  %v3897_v50 = vpop.f32.mrb[191].mxu1 }
 0x479   : > { %10728 = vmatpush3.bf16.msra.mxu0 %v11690_v18 }
 0x47a   : > { %5739 = vmatmul.mubr.bf16.gmra.mrb[28].mxu1 %v11687_v19  ;;  %10729 = vmatprep.subr.bf16.mxu0 %v11691_v20  ;;  %v11721_v19 = vld [vmem:[%s14801_s6 + $0x250] sm:$0xff]  }
 0x47b   : > { %5967 = vmatpush1.bf16.msra.mxu1 %v12550_v54  ;;  %9451 = vmatprep.mubr.msk.bf16.mxu1 %vm2006_vm5, %v11694_v17  ;;  %v11722_v17 = vld [vmem:[%s14801_s6 + $0x258] sm:$0xff]  }
 0x47c   : > { %5968 = vmatprep.subr.bf16.mxu1 %v11981_v22 }
 0x47d   : > { %10730 = vmatpush3.bf16.msra.mxu0 %v11691_v20  ;;  %v3900_v25 = vpop.f32.mrb[192].mxu1 }
 0x47e   : > { %10731 = vmatprep.subr.bf16.mxu0 %v11695_v27  ;;  %v3902_v4 = vpop.f32.mrb[193].mxu1 }
 0x47f   : > { %5969 = vmatpush1.bf16.msra.mxu1 %v12556_v10  ;;  %v3903_v36 = vpop.f32.mrb[194].mxu1 }
 0x480   : > { %5970 = vmatprep.subr.bf16.mxu1 %v11981_v22  ;;  %v3917_v3 = vpack.c.bf16 %v3903_v36, %v3900_v25  ;;  %v3905_v29 = vpop.f32.mrb[195].mxu1  ;;  %v11728_v36 = vld [vmem:[%s14801_s6 + $0x270] sm:$0xff]  }
 0x481   : > { %10732 = vmatpush3.bf16.msra.mxu0 %v11695_v27  ;;  %v11731_v29 = vld [vmem:[%s14800_s5 + $0x414] ss:$8 sps:$4 sm:$0xff]  }
 0x482   : > { %5747 = vmatmul.mubr.bf16.gmra.mrb[32].mxu1 %v11692_v26  ;;  %10741 = vmatprep.subr.bf16.mxu0 %v11696_v44  ;;  %v11726_v26 = vld [vmem:[%s14801_s6 + $0x260] sm:$0xff]  }
 0x483   : > { %5971 = vmatpush1.bf16.msra.mxu1 %v12562_v43  ;;  %9452 = vmatprep.mubr.msk.bf16.mxu1 %vm2006_vm5, %v11699_v52  ;;  %v11723_v52 = vld [vmem:[%s14800_s5 + $0x400] ss:$8 sps:$4 sm:$0xff]  }
 0x484   : > { %5972 = vmatprep.subr.bf16.mxu1 %v11981_v22  ;;  %10734 = vmatmul.mubr.bf16.vlgmr.msra.gmra.mrb[108].mxu0 %v3916_v0  ;;  %v11725_v0 = vld [vmem:[%s14800_s5 + $0x404] ss:$8 sps:$4 sm:$0xff]  }
 0x485   : > { %10742 = vmatpush3.bf16.msra.mxu0 %v11696_v44  ;;  %v3908_v46 = vpop.f32.mrb[196].mxu1  ;;  %10737 = vmatprep.mubr.bf16.mxu0 %v3917_v3  ;;  %v11727_v44 = vld [vmem:[%s14801_s6 + $0x268] sm:$0xff]  }
 0x486   : > { %10743 = vmatprep.subr.bf16.mxu0 %v11700_v48  ;;  %v3910_v32 = vpop.f32.mrb[197].mxu1 }
 0x487   : > { %5973 = vmatpush1.bf16.msra.mxu1 %v12568_v42  ;;  %v3911_v30 = vpop.f32.mrb[198].mxu1 }
 0x488   : > { %5974 = vmatprep.subr.bf16.mxu1 %v11981_v22  ;;  %v3918_v33 = vpack.c.bf16 %v3911_v30, %v3908_v46  ;;  %v3913_v55 = vpop.f32.mrb[199].mxu1 }
 0x489   : > { %10744 = vmatpush3.bf16.msra.mxu0 %v11700_v48 }
 0x48a   : > { %5755 = vmatmul.mubr.bf16.gmra.mrb[36].mxu1 %v11697_v47  ;;  %10745 = vmatprep.subr.bf16.mxu0 %v11701_v53 }
 0x48b   : > { %5975 = vmatpush1.bf16.msra.mxu1 %v12574_v59  ;;  %9493 = vmatprep.mubr.msk.bf16.mxu1 %vm2006_vm5, %v11704_v24  ;;  %v11729_v24 = vld [vmem:[%s14800_s5 + $0x410] ss:$8 sps:$4 sm:$0xff]  }
 0x48c   : > { %5976 = vmatprep.subr.bf16.mxu1 %v11981_v22  ;;  %10738 = vmatmul.mubr.bf16.gmra.mrb[112].mxu0 %v3918_v33  ;;  %v11733_v33 = vld [vmem:[%s14801_s6 + $0x280] sm:$0xff]  }
 0x48d   : > { %10746 = vmatpush3.bf16.msra.mxu0 %v11701_v53  ;;  %v11732_v53 = vld [vmem:[%s14801_s6 + $0x278] sm:$0xff]  }
 0x48e   : > { %10747 = vmatprep.subr.bf16.mxu0 %v11705_v56 }
 0x48f   : > { %5977 = vmatpush1.bf16.msra.mxu1 %v12580_v40 }
 0x490   : > { %5978 = vmatprep.subr.bf16.mxu1 %v11981_v22 }
 0x491   : > { %10748 = vmatpush3.bf16.msra.mxu0 %v11705_v56  ;;  %v4148_v38 = vpop.f32.mrb[200].mxu1  ;;  %v11736_v56 = vld [vmem:[%s14800_s5 + $0x424] ss:$8 sps:$4 sm:$0xff]  }
 0x492   : > { %10749 = vmatprep.subr.bf16.mxu0 %v11706_v35  ;;  %v4150_v1 = vpop.f32.mrb[201].mxu1 }
 0x493   : > { %5979 = vmatpush1.bf16.msra.mxu1 %v12586_v28  ;;  %v4151_v2 = vpop.f32.mrb[202].mxu1  ;;  %v11734_v1 = vld [vmem:[%s14800_s5 + $0x420] ss:$8 sps:$4 sm:$0xff]  }
 0x494   : > { %6226 = vmatprep.subr.bf16.mxu1 %v11981_v22  ;;  %v4179_v5 = vpack.c.bf16 %v4151_v2, %v4148_v38  ;;  %v4153_v9 = vpop.f32.mrb[203].mxu1 }
 0x495   : > { %10750 = vmatpush3.bf16.msra.mxu0 %v11706_v35 }
 0x496   : > { %5995 = vmatmul.mubr.bf16.vlgmr.msra.gmra.mrb[40].mxu1 %v11702_v61  ;;  %10751 = vmatprep.subr.bf16.mxu0 %v11707_v63  ;;  %v11737_v61 = vld [vmem:[%s14801_s6 + $0x288] sm:$0xff]  }
 0x497   : > { %6227 = vmatpush1.bf16.msra.mxu1 %v12538_v15  ;;  %9494 = vmatprep.mubr.msk.bf16.mxu1 %vm2006_vm5, %v11710_v6  ;;  %v11738_v6 = vld [vmem:[%s14801_s6 + $0x290] sm:$0xff]  }
 0x498   : > { %6228 = vmatprep.subr.bf16.mxu1 %v11981_v22  ;;  %10757 = vmatprep.mubr.bf16.mxu0 %v4179_v5  ;;  %v11741_v5 = vld [vmem:[%s14800_s5 + $0x434] ss:$8 sps:$4 sm:$0xff]  }
 0x499   : > { %10752 = vmatpush3.bf16.msra.mxu0 %v11707_v63  ;;  %v4156_v41 = vpop.f32.mrb[204].mxu1 }
 0x49a   : > { %10753 = vmatprep.subr.bf16.mxu0 %v11711_v57  ;;  %v4158_v51 = vpop.f32.mrb[205].mxu1 }
 0x49b   : > { %6229 = vmatpush1.bf16.msra.mxu1 %v12544_v34  ;;  %v4159_v37 = vpop.f32.mrb[206].mxu1  ;;  %v11739_v51 = vld [vmem:[%s14800_s5 + $0x430] ss:$8 sps:$4 sm:$0xff]  }
 0x49c   : > { %6230 = vmatprep.subr.bf16.mxu1 %v11981_v22  ;;  %v4180_v12 = vpack.c.bf16 %v4159_v37, %v4156_v41  ;;  %v4161_v13 = vpop.f32.mrb[207].mxu1 }
 0x49d   : > { %10754 = vmatpush3.bf16.msra.mxu0 %v11711_v57 }
 0x49e   : > { %6003 = vmatmul.mubr.bf16.gmra.mrb[44].mxu1 %v11708_v60  ;;  %10755 = vmatprep.subr.bf16.mxu0 %v11712_v49  ;;  %v11742_v60 = vld [vmem:[%s14801_s6 + $0x298] sm:$0xff]  }
 0x49f   : > { %6231 = vmatpush1.bf16.msra.mxu1 %v12550_v54  ;;  %9495 = vmatprep.mubr.msk.bf16.mxu1 %vm2006_vm5, %v11715_v8  ;;  %v11743_v8 = vld [vmem:[%s14801_s6 + $0x2a0] sm:$0xff]  }
 0x4a0   : > { %6232 = vmatprep.subr.bf16.mxu1 %v11981_v22 }
 0x4a1   : > { %10756 = vmatpush3.bf16.msra.mxu0 %v11712_v49  ;;  %v4164_v58 = vpop.f32.mrb[208].mxu1 }
 0x4a2   : > { %10765 = vmatprep.subr.bf16.mxu0 %v11716_v11  ;;  %v4166_v39 = vpop.f32.mrb[209].mxu1 }
 0x4a3   : > { %6233 = vmatpush1.bf16.msra.mxu1 %v12556_v10  ;;  %v4167_v16 = vpop.f32.mrb[210].mxu1 }
 0x4a4   : > { %6234 = vmatprep.subr.bf16.mxu1 %v11981_v22  ;;  %10758 = vmatmul.mubr.bf16.vlgmr.msra.gmra.mrb[108].mxu0 %v4180_v12  ;;  %v4181_v18 = vpack.c.bf16 %v4167_v16, %v4164_v58  ;;  %v4169_v62 = vpop.f32.mrb[211].mxu1  ;;  %v11746_v12 = vld [vmem:[%s14800_s5 + $0x444] ss:$8 sps:$4 sm:$0xff]  }
 0x4a5   : > { %10766 = vmatpush3.bf16.msra.mxu0 %v11716_v11 }
 0x4a6   : > { %6011 = vmatmul.mubr.bf16.gmra.mrb[48].mxu1 %v11713_v14  ;;  %10767 = vmatprep.subr.bf16.mxu0 %v11717_v31  ;;  %v11747_v14 = vld [vmem:[%s14801_s6 + $0x2a8] sm:$0xff]  }
 0x4a7   : > { %6235 = vmatpush1.bf16.msra.mxu1 %v12562_v43  ;;  %9496 = vmatprep.mubr.msk.bf16.mxu1 %vm2006_vm5, %v11720_v45  ;;  %v11744_v45 = vld [vmem:[%s14800_s5 + $0x440] ss:$8 sps:$4 sm:$0xff]  }
 0x4a8   : > { %6236 = vmatprep.subr.bf16.mxu1 %v11981_v22  ;;  %10761 = vmatprep.mubr.bf16.mxu0 %v4181_v18  ;;  %v11749_v18 = vld [vmem:[%s14801_s6 + $0x2b8] sm:$0xff]  }
 0x4a9   : > { %10768 = vmatpush3.bf16.msra.mxu0 %v11717_v31  ;;  %v4172_v20 = vpop.f32.mrb[212].mxu1  ;;  %v11748_v31 = vld [vmem:[%s14801_s6 + $0x2b0] sm:$0xff]  }
 0x4aa   : > { %10769 = vmatprep.subr.bf16.mxu0 %v11721_v19  ;;  %v4174_v23 = vpop.f32.mrb[213].mxu1 }
 0x4ab   : > { %6237 = vmatpush1.bf16.msra.mxu1 %v12568_v42  ;;  %v4175_v50 = vpop.f32.mrb[214].mxu1 }
 0x4ac   : > { %6238 = vmatprep.subr.bf16.mxu1 %v11981_v22  ;;  %v4182_v27 = vpack.c.bf16 %v4175_v50, %v4172_v20  ;;  %v4177_v25 = vpop.f32.mrb[215].mxu1  ;;  %v11750_v50 = vld [vmem:[%s14800_s5 + $0x450] ss:$8 sps:$4 sm:$0xff]  }
 0x4ad   : > { %10770 = vmatpush3.bf16.msra.mxu0 %v11721_v19  ;;  %v11752_v19 = vld [vmem:[%s14800_s5 + $0x454] ss:$8 sps:$4 sm:$0xff]  }
 0x4ae   : > { %6019 = vmatmul.mubr.bf16.gmra.mrb[52].mxu1 %v11718_v21  ;;  %10771 = vmatprep.subr.bf16.mxu0 %v11722_v17 }
 0x4af   : > { %6239 = vmatpush1.bf16.msra.mxu1 %v12574_v59  ;;  %9537 = vmatprep.mubr.msk.bf16.mxu1 %vm2006_vm5, %v11725_v0 }
 0x4b0   : > { %6240 = vmatprep.subr.bf16.mxu1 %v11981_v22  ;;  %10762 = vmatmul.mubr.bf16.gmra.mrb[112].mxu0 %v4182_v27 }
 0x4b1   : > { %10772 = vmatpush3.bf16.msra.mxu0 %v11722_v17  ;;  %v11753_v17 = vld [vmem:[%s14801_s6 + $0x2c0] sm:$0xff]  }
 0x4b2   : > { %10773 = vmatprep.subr.bf16.mxu0 %v11726_v26 }
 0x4b3   : > { %6241 = vmatpush1.bf16.msra.mxu1 %v12580_v40 }
 0x4b4   : > { %6242 = vmatprep.subr.bf16.mxu1 %v11981_v22 }
 0x4b5   : > { %10774 = vmatpush3.bf16.msra.mxu0 %v11726_v26  ;;  %v4412_v4 = vpop.f32.mrb[216].mxu1  ;;  %v11754_v26 = vld [vmem:[%s14801_s6 + $0x2c8] sm:$0xff]  }
 0x4b6   : > { %10775 = vmatprep.subr.bf16.mxu0 %v11727_v44  ;;  %v4414_v3 = vpop.f32.mrb[217].mxu1 }
 0x4b7   : > { %6243 = vmatpush1.bf16.msra.mxu1 %v12586_v28  ;;  %v4415_v48 = vpop.f32.mrb[218].mxu1  ;;  %v11755_v3 = vld [vmem:[%s14800_s5 + $0x460] ss:$8 sps:$4 sm:$0xff]  }
 0x4b8   : > { %6490 = vmatprep.subr.bf16.mxu1 %v11981_v22  ;;  %v4443_v46 = vpack.c.bf16 %v4415_v48, %v4412_v4  ;;  %v4417_v47 = vpop.f32.mrb[219].mxu1  ;;  %v11757_v4 = vld [vmem:[%s14800_s5 + $0x464] ss:$8 sps:$4 sm:$0xff]  }
 0x4b9   : > { %10776 = vmatpush3.bf16.msra.mxu0 %v11727_v44 }
 0x4ba   : > { %6259 = vmatmul.mubr.bf16.vlgmr.msra.gmra.mrb[56].mxu1 %v11723_v52  ;;  %10777 = vmatprep.subr.bf16.mxu0 %v11728_v36  ;;  %v11758_v52 = vld [vmem:[%s14801_s6 + $0x2d0] sm:$0xff]  }
 0x4bb   : > { %6491 = vmatpush1.bf16.msra.mxu1 %v12538_v15  ;;  %9538 = vmatprep.mubr.msk.bf16.mxu1 %vm2006_vm5, %v11731_v29 }
 0x4bc   : > { %6492 = vmatprep.subr.bf16.mxu1 %v11981_v22  ;;  %10781 = vmatprep.mubr.bf16.mxu0 %v4443_v46  ;;  %v11759_v46 = vld [vmem:[%s14801_s6 + $0x2d8] sm:$0xff]  }
 0x4bd   : > { %10778 = vmatpush3.bf16.msra.mxu0 %v11728_v36  ;;  %v4420_v32 = vpop.f32.mrb[220].mxu1 }
 0x4be   : > { %10779 = vmatprep.subr.bf16.mxu0 %v11732_v53  ;;  %v4422_v30 = vpop.f32.mrb[221].mxu1 }
 0x4bf   : > { %6493 = vmatpush1.bf16.msra.mxu1 %v12544_v34  ;;  %v4423_v55 = vpop.f32.mrb[222].mxu1 }
 0x4c0   : > { %6494 = vmatprep.subr.bf16.mxu1 %v11981_v22  ;;  %v4444_v35 = vpack.c.bf16 %v4423_v55, %v4420_v32  ;;  %v4425_v38 = vpop.f32.mrb[223].mxu1  ;;  %v11762_v32 = vld [vmem:[%s14800_s5 + $0x474] ss:$8 sps:$4 sm:$0xff]  }
 0x4c1   : > { %10780 = vmatpush3.bf16.msra.mxu0 %v11732_v53 }
 0x4c2   : > { %6267 = vmatmul.mubr.bf16.gmra.mrb[60].mxu1 %v11729_v24  ;;  %10789 = vmatprep.subr.bf16.mxu0 %v11733_v33  ;;  %v11763_v24 = vld [vmem:[%s14801_s6 + $0x2e0] sm:$0xff]  }
 0x4c3   : > { %6495 = vmatpush1.bf16.msra.mxu1 %v12550_v54  ;;  %9539 = vmatprep.mubr.msk.bf16.mxu1 %vm2006_vm5, %v11736_v56 }
 0x4c4   : > { %6496 = vmatprep.subr.bf16.mxu1 %v11981_v22  ;;  %10782 = vmatmul.mubr.bf16.vlgmr.msra.gmra.mrb[108].mxu0 %v4444_v35  ;;  %v11764_v35 = vld [vmem:[%s14801_s6 + $0x2e8] sm:$0xff]  }
 0x4c5   : > { %10790 = vmatpush3.bf16.msra.mxu0 %v11733_v33  ;;  %v4428_v63 = vpop.f32.mrb[224].mxu1  ;;  %v11760_v33 = vld [vmem:[%s14800_s5 + $0x470] ss:$8 sps:$4 sm:$0xff]  }
 0x4c6   : > { %10791 = vmatprep.subr.bf16.mxu0 %v11737_v61  ;;  %v4430_v2 = vpop.f32.mrb[225].mxu1 }
 0x4c7   : > { %6497 = vmatpush1.bf16.msra.mxu1 %v12556_v10  ;;  %v4431_v9 = vpop.f32.mrb[226].mxu1 }
 0x4c8   : > { %6498 = vmatprep.subr.bf16.mxu1 %v11981_v22  ;;  %v4445_v57 = vpack.c.bf16 %v4431_v9, %v4428_v63  ;;  %v4433_v41 = vpop.f32.mrb[227].mxu1  ;;  %v11767_v63 = vld [vmem:[%s14800_s5 + $0x484] ss:$8 sps:$4 sm:$0xff]  }
 0x4c9   : > { %10792 = vmatpush3.bf16.msra.mxu0 %v11737_v61 }
 0x4ca   : > { %6275 = vmatmul.mubr.bf16.gmra.mrb[64].mxu1 %v11734_v1  ;;  %10793 = vmatprep.subr.bf16.mxu0 %v11738_v6  ;;  %v11768_v1 = vld [vmem:[%s14801_s6 + $0x2f0] sm:$0xff]  }
 0x4cb   : > { %6499 = vmatpush1.bf16.msra.mxu1 %v12562_v43  ;;  %9540 = vmatprep.mubr.msk.bf16.mxu1 %vm2006_vm5, %v11741_v5  ;;  %v11765_v5 = vld [vmem:[%s14800_s5 + $0x480] ss:$8 sps:$4 sm:$0xff]  }
 0x4cc   : > { %6500 = vmatprep.subr.bf16.mxu1 %v11981_v22  ;;  %10785 = vmatprep.mubr.bf16.mxu0 %v4445_v57 }
 0x4cd   : > { %10794 = vmatpush3.bf16.msra.mxu0 %v11738_v6  ;;  %v4436_v49 = vpop.f32.mrb[228].mxu1  ;;  %v11769_v6 = vld [vmem:[%s14801_s6 + $0x2f8] sm:$0xff]  }
 0x4ce   : > { %10795 = vmatprep.subr.bf16.mxu0 %v11742_v60  ;;  %v4438_v37 = vpop.f32.mrb[229].mxu1 }
 0x4cf   : > { %6501 = vmatpush1.bf16.msra.mxu1 %v12568_v42  ;;  %v4439_v13 = vpop.f32.mrb[230].mxu1 }
 0x4d0   : > { %6502 = vmatprep.subr.bf16.mxu1 %v11981_v22  ;;  %v4446_v11 = vpack.c.bf16 %v4439_v13, %v4436_v49  ;;  %v4441_v58 = vpop.f32.mrb[231].mxu1  ;;  %v11770_v49 = vld [vmem:[%s14801_s6 + $0x300] sm:$0xff]  }
 0x4d1   : > { %10796 = vmatpush3.bf16.msra.mxu0 %v11742_v60  ;;  %v11774_v58 = vld [vmem:[%s14801_s6 + $0x308] sm:$0xff]  }
 0x4d2   : > { %6283 = vmatmul.mubr.bf16.gmra.mrb[68].mxu1 %v11739_v51  ;;  %10797 = vmatprep.subr.bf16.mxu0 %v11743_v8  ;;  %v11773_v51 = vld [vmem:[%s14800_s5 + $0x494] ss:$8 sps:$4 sm:$0xff]  }
 0x4d3   : > { %6503 = vmatpush1.bf16.msra.mxu1 %v12574_v59  ;;  %9581 = vmatprep.mubr.msk.bf16.mxu1 %vm2006_vm5, %v11746_v12  ;;  %v11771_v12 = vld [vmem:[%s14800_s5 + $0x490] ss:$8 sps:$4 sm:$0xff]  }
 0x4d4   : > { %6504 = vmatprep.subr.bf16.mxu1 %v11981_v22  ;;  %10786 = vmatmul.mubr.bf16.gmra.mrb[112].mxu0 %v4446_v11 }
 0x4d5   : > { %10798 = vmatpush3.bf16.msra.mxu0 %v11743_v8 }
 0x4d6   : > { %10799 = vmatprep.subr.bf16.mxu0 %v11747_v14 }
 0x4d7   : > { %6505 = vmatpush1.bf16.msra.mxu1 %v12580_v40 }
 0x4d8   : > { %6506 = vmatprep.subr.bf16.mxu1 %v11981_v22 }
 0x4d9   : > { %10800 = vmatpush3.bf16.msra.mxu0 %v11747_v14  ;;  %v4676_v39 = vpop.f32.mrb[232].mxu1 }
 0x4da   : > { %10801 = vmatprep.subr.bf16.mxu0 %v11748_v31  ;;  %v4678_v16 = vpop.f32.mrb[233].mxu1 }
 0x4db   : > { %6507 = vmatpush1.bf16.msra.mxu1 %v12586_v28  ;;  %v4679_v62 = vpop.f32.mrb[234].mxu1  ;;  %v11776_v16 = vld [vmem:[%s14800_s5 + $0x4a0] ss:$8 sps:$4 sm:$0xff]  }
 0x4dc   : > { %6754 = vmatprep.subr.bf16.mxu1 %v11981_v22  ;;  %v4707_v20 = vpack.c.bf16 %v4679_v62, %v4676_v39  ;;  %v4681_v21 = vpop.f32.mrb[235].mxu1  ;;  %v11775_v39 = vld [vmem:[%s14801_s6 + $0x310] sm:$0xff]  }
 0x4dd   : > { %10802 = vmatpush3.bf16.msra.mxu0 %v11748_v31  ;;  %v11778_v31 = vld [vmem:[%s14800_s5 + $0x4a4] ss:$8 sps:$4 sm:$0xff]  }
 0x4de   : > { %6523 = vmatmul.mubr.bf16.vlgmr.msra.gmra.mrb[72].mxu1 %v11744_v45  ;;  %10803 = vmatprep.subr.bf16.mxu0 %v11749_v18 }
 0x4df   : > { %6755 = vmatpush1.bf16.msra.mxu1 %v12538_v15  ;;  %9582 = vmatprep.mubr.msk.bf16.mxu1 %vm2006_vm5, %v11752_v19  ;;  %v11779_v19 = vld [vmem:[%s14801_s6 + $0x318] sm:$0xff]  }
 0x4e0   : > { %6756 = vmatprep.subr.bf16.mxu1 %v11981_v22  ;;  %10805 = vmatprep.mubr.bf16.mxu0 %v4707_v20 }
 0x4e1   : > { %v4684_v23 = vpop.f32.mrb[236].mxu1  ;;  %10804 = vmatpush3.bf16.msra.mxu0 %v11749_v18 }
 0x4e2   : > { %v4686_v0 = vpop.f32.mrb[237].mxu1  ;;  %10813 = vmatprep.subr.bf16.mxu0 %v11753_v17 }
 0x4e3   : > { %6757 = vmatpush1.bf16.msra.mxu1 %v12544_v34  ;;  %v4687_v27 = vpop.f32.mrb[238].mxu1 }
 0x4e4   : > { %6758 = vmatprep.subr.bf16.mxu1 %v11981_v22  ;;  %v4708_v25 = vpack.c.bf16 %v4687_v27, %v4684_v23  ;;  %v4689_v44 = vpop.f32.mrb[239].mxu1  ;;  %v11780_v23 = vld [vmem:[%s14801_s6 + $0x320] sm:$0xff]  }
 0x4e6   : > { %6531 = vmatmul.mubr.bf16.gmra.mrb[76].mxu1 %v11750_v50  ;;  %10806 = vmatmul.mubr.bf16.vlgmr.msra.gmra.mrb[108].mxu0 %v4708_v25  ;;  %v11781_v50 = vld [vmem:[%s14800_s5 + $0x4b0] ss:$8 sps:$4 sm:$0xff]  }
 0x4e7   : > { %6759 = vmatpush1.bf16.msra.mxu1 %v12550_v54  ;;  %10814 = vmatpush3.bf16.msra.mxu0 %v11753_v17  ;;  %v11783_v17 = vld [vmem:[%s14800_s5 + $0x4b4] ss:$8 sps:$4 sm:$0xff]  }
 0x4e8   : > { %6760 = vmatprep.subr.bf16.mxu1 %v11981_v22  ;;  %10815 = vmatprep.subr.bf16.mxu0 %v11754_v26 }
 0x4e9   : > { %9583 = vmatprep.mubr.msk.bf16.mxu1 %vm2006_vm5, %v11757_v4  ;;  %v4692_v36 = vpop.f32.mrb[240].mxu1 }
 0x4ea   : > { %v4694_v29 = vpop.f32.mrb[241].mxu1 }
 0x4eb   : > { %6761 = vmatpush1.bf16.msra.mxu1 %v12556_v10  ;;  %10816 = vmatpush3.bf16.msra.mxu0 %v11754_v26  ;;  %v4695_v48 = vpop.f32.mrb[242].mxu1  ;;  %v11784_v26 = vld [vmem:[%s14801_s6 + $0x328] sm:$0xff]  }
 0x4ec   : > { %6762 = vmatprep.subr.bf16.mxu1 %v11981_v22  ;;  %10817 = vmatprep.subr.bf16.mxu0 %v11758_v52  ;;  %v4709_v47 = vpack.c.bf16 %v4695_v48, %v4692_v36  ;;  %v4697_v53 = vpop.f32.mrb[243].mxu1  ;;  %v11785_v36 = vld [vmem:[%s14801_s6 + $0x330] sm:$0xff]  }
 0x4ee   : > { %6539 = vmatmul.mubr.bf16.gmra.mrb[80].mxu1 %v11755_v3  ;;  %10809 = vmatprep.mubr.bf16.mxu0 %v4709_v47  ;;  %v11789_v3 = vld [vmem:[%s14801_s6 + $0x338] sm:$0xff]  }
 0x4ef   : > { %6763 = vmatpush1.bf16.msra.mxu1 %v12562_v43  ;;  %10818 = vmatpush3.bf16.msra.mxu0 %v11758_v52  ;;  %v11788_v52 = vld [vmem:[%s14800_s5 + $0x4c4] ss:$8 sps:$4 sm:$0xff]  }
 0x4f0   : > { %6764 = vmatprep.subr.bf16.mxu1 %v11981_v22  ;;  %10819 = vmatprep.subr.bf16.mxu0 %v11759_v46 }
 0x4f1   : > { %9584 = vmatprep.mubr.msk.bf16.mxu1 %vm2006_vm5, %v11762_v32  ;;  %v4700_v30 = vpop.f32.mrb[244].mxu1 }
 0x4f2   : > { %v4702_v55 = vpop.f32.mrb[245].mxu1 }
 0x4f3   : > { %6765 = vmatpush1.bf16.msra.mxu1 %v12568_v42  ;;  %10820 = vmatpush3.bf16.msra.mxu0 %v11759_v46  ;;  %v4703_v56 = vpop.f32.mrb[246].mxu1  ;;  %v11786_v46 = vld [vmem:[%s14800_s5 + $0x4c0] ss:$8 sps:$4 sm:$0xff]   ;;  %v11790_v55 = vld [vmem:[%s14800_s5 + $0x4d0] ss:$8 sps:$4 sm:$0xff]  }
 0x4f4   : > { %6766 = vmatprep.subr.bf16.mxu1 %v11981_v22  ;;  %10821 = vmatprep.subr.bf16.mxu0 %v11763_v24  ;;  %v4710_v38 = vpack.c.bf16 %v4703_v56, %v4700_v30  ;;  %v4705_v61 = vpop.f32.mrb[247].mxu1 }
 0x4f5   : > { %v11795_v61 = vld [vmem:[%s14800_s5 + $0x4e4] ss:$8 sps:$4 sm:$0xff]  }
 0x4f6   : > { %6547 = vmatmul.mubr.bf16.gmra.mrb[84].mxu1 %v11760_v33  ;;  %10810 = vmatmul.mubr.bf16.gmra.mrb[112].mxu0 %v4710_v38 }
 0x4f7   : > { %6767 = vmatpush1.bf16.msra.mxu1 %v12574_v59  ;;  %10822 = vmatpush3.bf16.msra.mxu0 %v11763_v24  ;;  %v11792_v24 = vld [vmem:[%s14800_s5 + $0x4d4] ss:$8 sps:$4 sm:$0xff]  }
 0x4f8   : > { %6768 = vmatprep.subr.bf16.mxu1 %v11981_v22  ;;  %10823 = vmatprep.subr.bf16.mxu0 %v11764_v35 }
 0x4f9   : > { %9625 = vmatprep.mubr.msk.bf16.mxu1 %vm2006_vm5, %v11767_v63 }
 0x4fb   : > { %6769 = vmatpush1.bf16.msra.mxu1 %v12580_v40  ;;  %10824 = vmatpush3.bf16.msra.mxu0 %v11764_v35 }
 0x4fc   : > { %6770 = vmatprep.subr.bf16.mxu1 %v11981_v22  ;;  %10825 = vmatprep.subr.bf16.mxu0 %v11768_v1 }
 0x4fd   : > { %v4940_v2 = vpop.f32.mrb[248].mxu1 }
 0x4fe   : > { %v4942_v9 = vpop.f32.mrb[249].mxu1 }
 0x4ff   : > { %6771 = vmatpush1.bf16.msra.mxu1 %v12586_v28  ;;  %10826 = vmatpush3.bf16.msra.mxu0 %v11768_v1  ;;  %v4943_v57 = vpop.f32.mrb[250].mxu1  ;;  %v11793_v1 = vld [vmem:[%s14800_s5 + $0x4e0] ss:$8 sps:$4 sm:$0xff]  }
 0x500   : > { %7018 = vmatprep.subr.bf16.mxu1 %v11981_v22  ;;  %v4971_v41 = vpack.c.bf16 %v4943_v57, %v4940_v2  ;;  %v4945_v60 = vpop.f32.mrb[251].mxu1  ;;  %10827 = vmatprep.subr.bf16.mxu0 %v11769_v6  ;;  %v11798_v57 = vld [vmem:[%s14800_s5 + $0x4f4] ss:$8 sps:$4 sm:$0xff]  }
 0x501   : > { %v11796_v60 = vld [vmem:[%s14800_s5 + $0x4f0] ss:$8 sps:$4 sm:$0xff]  }
 0x502   : > { %6787 = vmatmul.mubr.bf16.vlgmr.msra.gmra.mrb[88].mxu1 %v11765_v5  ;;  %10829 = vmatprep.mubr.bf16.mxu0 %v4971_v41 }
 0x503   : > { %7019 = vmatpush1.bf16.msra.mxu1 %v12538_v15  ;;  %10828 = vmatpush3.bf16.msra.mxu0 %v11769_v6 }
 0x504   : > { %7020 = vmatprep.subr.bf16.mxu1 %v11981_v22  ;;  %10837 = vmatprep.subr.bf16.mxu0 %v11770_v49 }
 0x505   : > { %v4948_v8 = vpop.f32.mrb[252].mxu1  ;;  %9626 = vmatprep.mubr.msk.bf16.mxu1 %vm2006_vm5, %v11773_v51 }
 0x506   : > { %v4950_v37 = vpop.f32.mrb[253].mxu1 }
 0x507   : > { %7021 = vmatpush1.bf16.msra.mxu1 %v12544_v34  ;;  %v4951_v13 = vpop.f32.mrb[254].mxu1 }
 0x508   : > { %7022 = vmatprep.subr.bf16.mxu1 %v11981_v22  ;;  %v4972_v11 = vpack.c.bf16 %v4951_v13, %v4948_v8  ;;  %v4953_v14 = vpop.f32.mrb[255].mxu1  ;;  %v11804_v13 = vld [vmem:[%s14800_s5 + $0x344] ss:$8 sps:$4 sm:$0xff]  }
 0x509   : > { %v11802_v14 = vld [vmem:[%s14800_s5 + $0x340] ss:$8 sps:$4 sm:$0xff]  }
 0x50a   : > { %10830 = vmatmul.mubr.bf16.vlgmr.msra.gmra.mrb[108].mxu0 %v4972_v11  ;;  %6795 = vmatmul.mubr.bf16.gmra.mrb[92].mxu1 %v11771_v12  ;;  %v11801_v12 = vld [vmem:[%s14800_s5 + $0x504] ss:$8 sps:$4 sm:$0xff]   ;;  %v11799_v11 = vld [vmem:[%s14800_s5 + $0x500] ss:$8 sps:$4 sm:$0xff]  }
 0x50b   : > { %7023 = vmatpush1.bf16.msra.mxu1 %v12550_v54  ;;  %10838 = vmatpush3.bf16.msra.mxu0 %v11770_v49 }
 0x50c   : > { %7024 = vmatprep.subr.bf16.mxu1 %v11981_v22  ;;  %10839 = vmatprep.subr.bf16.mxu0 %v11774_v58 }
 0x50d   : > { %9627 = vmatprep.mubr.msk.bf16.mxu1 %vm2006_vm5, %v11778_v31  ;;  %v4956_v45 = vpop.f32.mrb[0].mxu1  ;;  %v11805_v31 = vld [vmem:[%s14800_s5 + $0x510] ss:$8 sps:$4 sm:$0xff]  }
 0x50e   : > { %v4958_v18 = vpop.f32.mrb[1].mxu1 }
 0x50f   : > { %7025 = vmatpush1.bf16.msra.mxu1 %v12556_v10  ;;  %10840 = vmatpush3.bf16.msra.mxu0 %v11774_v58  ;;  %v4959_v62 = vpop.f32.mrb[2].mxu1  ;;  %v11807_v58 = vld [vmem:[%s14800_s5 + $0x514] ss:$8 sps:$4 sm:$0xff]   ;;  %v11811_v18 = vld [vmem:[%s14800_s5 + $0x520] ss:$8 sps:$4 sm:$0xff]  }
 0x510   : > { %7026 = vmatprep.subr.bf16.mxu1 %v11981_v22  ;;  %10841 = vmatprep.subr.bf16.mxu0 %v11775_v39  ;;  %v4973_v20 = vpack.c.bf16 %v4959_v62, %v4956_v45  ;;  %v4961_v21 = vpop.f32.mrb[3].mxu1  ;;  %v11813_v45 = vld [vmem:[%s14800_s5 + $0x524] ss:$8 sps:$4 sm:$0xff]   ;;  %v11816_v62 = vld [vmem:[%s14800_s5 + $0x534] ss:$8 sps:$4 sm:$0xff]  }
 0x511   : > { %v11851_v21 = vld [vmem:[%s14801_s6 + $0x348] sm:$0xff]  }
 0x512   : > { %6803 = vmatmul.mubr.bf16.gmra.mrb[96].mxu1 %v11776_v16  ;;  %10833 = vmatprep.mubr.bf16.mxu0 %v4973_v20  ;;  %v11810_v16 = vld [vmem:[%s14800_s5 + $0x350] ss:$8 sps:$4 sm:$0xff]   ;;  %v11817_v20 = vld [vmem:[%s14800_s5 + $0x364] ss:$8 sps:$4 sm:$0xff]  }
 0x513   : > { %7027 = vmatpush1.bf16.msra.mxu1 %v12562_v43  ;;  %10842 = vmatpush3.bf16.msra.mxu0 %v11775_v39  ;;  %v11808_v39 = vld [vmem:[%s14800_s5 + $0x354] ss:$8 sps:$4 sm:$0xff]  }
 0x514   : > { %7028 = vmatprep.subr.bf16.mxu1 %v11981_v22  ;;  %10843 = vmatprep.subr.bf16.mxu0 %v11779_v19 }
 0x515   : > { %9628 = vmatprep.mubr.msk.bf16.mxu1 %vm2006_vm5, %v11783_v17  ;;  %v4964_v0 = vpop.f32.mrb[4].mxu1  ;;  %v11814_v17 = vld [vmem:[%s14800_s5 + $0x530] ss:$8 sps:$4 sm:$0xff]  }
 0x516   : > { %v4966_v27 = vpop.f32.mrb[5].mxu1 }
 0x517   : > { %7029 = vmatpush1.bf16.msra.mxu1 %v12568_v42  ;;  %10844 = vmatpush3.bf16.msra.mxu0 %v11779_v19  ;;  %v4967_v25 = vpop.f32.mrb[6].mxu1  ;;  %v11850_v19 = vld [vmem:[%s14801_s6 + $0x340] sm:$0xff]   ;;  %v11852_v27 = vld [vmem:[%s14801_s6 + $0x350] sm:$0xff]  }
 0x518   : > { %7030 = vmatprep.subr.bf16.mxu1 %v11981_v22  ;;  %10845 = vmatprep.subr.bf16.mxu0 %v11780_v23  ;;  %v4974_v44 = vpack.c.bf16 %v4967_v25, %v4964_v0  ;;  %v4969_v4 = vpop.f32.mrb[7].mxu1  ;;  %v11822_v0 = vld [vmem:[%s14800_s5 + $0x544] ss:$8 sps:$4 sm:$0xff]   ;;  %v11853_v25 = vld [vmem:[%s14801_s6 + $0x358] sm:$0xff]  }
 0x519   : > { %v11820_v4 = vld [vmem:[%s14800_s5 + $0x540] ss:$8 sps:$4 sm:$0xff]  }
 0x51a   : > { %6811 = vmatmul.mubr.bf16.gmra.mrb[100].mxu1 %v11781_v50  ;;  %10834 = vmatmul.mubr.bf16.gmra.mrb[112].mxu0 %v4974_v44  ;;  %v11823_v50 = vld [vmem:[%s14800_s5 + $0x374] ss:$8 sps:$4 sm:$0xff]   ;;  %v11854_v44 = vld [vmem:[%s14801_s6 + $0x360] sm:$0xff]  }
 0x51b   : > { %7031 = vmatpush1.bf16.msra.mxu1 %v12574_v59  ;;  %10846 = vmatpush3.bf16.msra.mxu0 %v11780_v23  ;;  %v11819_v23 = vld [vmem:[%s14800_s5 + $0x360] ss:$8 sps:$4 sm:$0xff]  }
 0x51c   : > { %7032 = vmatprep.subr.bf16.mxu1 %v11981_v22  ;;  %10847 = vmatprep.subr.bf16.mxu0 %v11784_v26 }
 0x51d   : > { %9669 = vmatprep.mubr.msk.bf16.mxu1 %vm2006_vm5, %v11788_v52  ;;  %v11828_v52 = vld [vmem:[%s14800_s5 + $0x554] ss:$8 sps:$4 sm:$0xff]  }
 0x51f   : > { %7033 = vmatpush1.bf16.msra.mxu1 %v12580_v40  ;;  %10848 = vmatpush3.bf16.msra.mxu0 %v11784_v26  ;;  %v11825_v26 = vld [vmem:[%s14800_s5 + $0x370] ss:$8 sps:$4 sm:$0xff]  }
 0x520   : > { %7034 = vmatprep.subr.bf16.mxu1 %v11981_v22  ;;  %10849 = vmatprep.subr.bf16.mxu0 %v11785_v36 }
 0x521   : > { %v5204_v29 = vpop.f32.mrb[8].mxu1 }
 0x522   : > { %v5206_v48 = vpop.f32.mrb[9].mxu1 }
 0x523   : > { %7035 = vmatpush1.bf16.msra.mxu1 %v12586_v28  ;;  %10850 = vmatpush3.bf16.msra.mxu0 %v11785_v36  ;;  %v5207_v47 = vpop.f32.mrb[10].mxu1  ;;  %v11855_v36 = vld [vmem:[%s14801_s6 + $0x368] sm:$0xff]  }
 0x524   : > { %7282 = vmatprep.subr.bf16.mxu1 %v11981_v22  ;;  %v5235_v53 = vpack.c.bf16 %v5207_v47, %v5204_v29  ;;  %v5209_v32 = vpop.f32.mrb[11].mxu1  ;;  %10851 = vmatprep.subr.bf16.mxu0 %v11789_v3  ;;  %v11831_v29 = vld [vmem:[%s14800_s5 + $0x564] ss:$8 sps:$4 sm:$0xff]   ;;  %v11829_v48 = vld [vmem:[%s14800_s5 + $0x560] ss:$8 sps:$4 sm:$0xff]  }
 0x525   : > { %v11832_v47 = vld [vmem:[%s14800_s5 + $0x570] ss:$8 sps:$4 sm:$0xff]   ;;  %v11835_v32 = vld [vmem:[%s14800_s5 + $0x580] ss:$8 sps:$4 sm:$0xff]  }
 0x526   : > { %7051 = vmatmul.mubr.bf16.vlgmr.msra.gmra.mrb[104].mxu1 %v11786_v46  ;;  %10853 = vmatprep.mubr.bf16.mxu0 %v5235_v53  ;;  %v11834_v46 = vld [vmem:[%s14800_s5 + $0x574] ss:$8 sps:$4 sm:$0xff]   ;;  %v11837_v53 = vld [vmem:[%s14800_s5 + $0x584] ss:$8 sps:$4 sm:$0xff]  }
 0x527   : > { %7283 = vmatpush1.bf16.msra.mxu1 %v12538_v15  ;;  %10852 = vmatpush3.bf16.msra.mxu0 %v11789_v3  ;;  %v11826_v3 = vld [vmem:[%s14800_s5 + $0x550] ss:$8 sps:$4 sm:$0xff]  }
 0x528   : > { %7284 = vmatprep.subr.bf16.mxu1 %v11981_v22  ;;  %5434 = vmatprep.subr.bf16.mxu0 %v11981_v22 }
 0x529   : > { %v5212_v30 = vpop.f32.mrb[12].mxu1  ;;  %9670 = vmatprep.mubr.msk.bf16.mxu1 %vm2006_vm5, %v11792_v24  ;;  %v11840_v24 = vld [vmem:[%s14800_s5 + $0x594] ss:$8 sps:$4 sm:$0xff]  }
 0x52a   : > { %v5214_v33 = vpop.f32.mrb[13].mxu1 }
 0x52b   : > { %v5215_v56 = vpop.f32.mrb[14].mxu1  ;;  %7285 = vmatpush1.bf16.msra.mxu1 %v12544_v34 }
 0x52c   : > { %v5236_v35 = vpack.c.bf16 %v5215_v56, %v5212_v30  ;;  %7286 = vmatprep.subr.bf16.mxu1 %v11981_v22  ;;  %v5217_v38 = vpop.f32.mrb[15].mxu1 }
 0x52e   : > { %10854 = vmatmul.mubr.bf16.vlgmr.msra.gmra.mrb[108].mxu0 %v5236_v35  ;;  %7059 = vmatmul.mubr.bf16.gmra.mrb[108].mxu1 %v11790_v55  ;;  %v11838_v55 = vld [vmem:[%s14800_s5 + $0x590] ss:$8 sps:$4 sm:$0xff]   ;;  %v11843_v35 = vld [vmem:[%s14800_s5 + $0x5a4] ss:$8 sps:$4 sm:$0xff]  }
 0x52f   : > { %5435 = vmatpush1.bf16.msra.mxu0 %v12538_v15  ;;  %7287 = vmatpush1.bf16.msra.mxu1 %v12550_v54 }
 0x530   : > { %5436 = vmatprep.subr.bf16.mxu0 %v11981_v22  ;;  %7288 = vmatprep.subr.bf16.mxu1 %v11981_v22 }
 0x531   : > { %9671 = vmatprep.mubr.msk.bf16.mxu1 %vm2006_vm5, %v11795_v61  ;;  %v5220_v63 = vpop.f32.mrb[16].mxu1 }
 0x532   : > { %v5222_v6 = vpop.f32.mrb[17].mxu1 }
 0x533   : > { %5437 = vmatpush1.bf16.msra.mxu0 %v12544_v34  ;;  %7289 = vmatpush1.bf16.msra.mxu1 %v12556_v10  ;;  %v5223_v2 = vpop.f32.mrb[18].mxu1 }
 0x534   : > { %5438 = vmatprep.subr.bf16.mxu0 %v11981_v22  ;;  %7290 = vmatprep.subr.bf16.mxu1 %v11981_v22  ;;  %v5237_v5 = vpack.c.bf16 %v5223_v2, %v5220_v63  ;;  %v5225_v9 = vpop.f32.mrb[19].mxu1  ;;  %v11841_v63 = vld [vmem:[%s14800_s5 + $0x5a0] ss:$8 sps:$4 sm:$0xff]  }
 0x536   : > { %7067 = vmatmul.mubr.bf16.gmra.mrb[112].mxu1 %v11793_v1  ;;  %10857 = vmatprep.mubr.bf16.mxu0 %v5237_v5  ;;  %v11846_v1 = vld [vmem:[%s14800_s5 + $0x5b4] ss:$8 sps:$4 sm:$0xff]  }
 0x537   : > { %5439 = vmatpush1.bf16.msra.mxu0 %v12550_v54  ;;  %7291 = vmatpush1.bf16.msra.mxu1 %v12562_v43 }
 0x538   : > { %5440 = vmatprep.subr.bf16.mxu0 %v11981_v22  ;;  %7292 = vmatprep.subr.bf16.mxu1 %v11981_v22 }
 0x539   : > { %9672 = vmatprep.mubr.msk.bf16.mxu1 %vm2006_vm5, %v11798_v57  ;;  %v5228_v41 = vpop.f32.mrb[20].mxu1 }
 0x53a   : > { %v5230_v49 = vpop.f32.mrb[21].mxu1 }
 0x53b   : > { %5441 = vmatpush1.bf16.msra.mxu0 %v12556_v10  ;;  %7293 = vmatpush1.bf16.msra.mxu1 %v12568_v42  ;;  %v5231_v51 = vpop.f32.mrb[22].mxu1  ;;  %v11849_v49 = vld [vmem:[%s14800_s5 + $0x5c4] ss:$8 sps:$4 sm:$0xff]  }
 0x53c   : > { %5442 = vmatprep.subr.bf16.mxu0 %v11981_v22  ;;  %7294 = vmatprep.subr.bf16.mxu1 %v11981_v22  ;;  %v5238_v8 = vpack.c.bf16 %v5231_v51, %v5228_v41  ;;  %v5233_v37 = vpop.f32.mrb[23].mxu1  ;;  %v11856_v41 = vld [vmem:[%s14801_s6 + $0x370] sm:$0xff]  }
 0x53e   : > { %7075 = vmatmul.mubr.bf16.gmra.mrb[116].mxu1 %v11796_v60  ;;  %10858 = vmatmul.mubr.bf16.gmra.mrb[112].mxu0 %v5238_v8  ;;  %v11844_v60 = vld [vmem:[%s14800_s5 + $0x5b0] ss:$8 sps:$4 sm:$0xff]  }
 0x53f   : > { %5443 = vmatpush1.bf16.msra.mxu0 %v12562_v43  ;;  %7295 = vmatpush1.bf16.msra.mxu1 %v12574_v59 }
 0x540   : > { %5444 = vmatprep.subr.bf16.mxu0 %v11981_v22  ;;  %7296 = vmatprep.subr.bf16.mxu1 %v11981_v22 }
 0x541   : > { %9713 = vmatprep.mubr.msk.bf16.mxu1 %vm2006_vm5, %v11801_v12  ;;  %9405 = vmatprep.mubr.msk.bf16.mxu0 %vm2006_vm5, %v11804_v13 }
 0x543   : > { %5445 = vmatpush1.bf16.msra.mxu0 %v12568_v42  ;;  %7297 = vmatpush1.bf16.msra.mxu1 %v12580_v40 }
 0x544   : > { %5446 = vmatprep.subr.bf16.mxu0 %v11981_v22  ;;  %7298 = vmatprep.subr.bf16.mxu1 %v11981_v22 }
 0x545   : > { %v13996_v30 = vpop.f32.mrb[24].mxu1 }
 0x546   : > { %v5734_v33 = vpop.f32.mrb[25].mxu1 }
 0x547   : > { %5447 = vmatpush1.bf16.msra.mxu0 %v12574_v59  ;;  %7299 = vmatpush1.bf16.msra.mxu1 %v12586_v28  ;;  %v14001_v56 = vpop.f32.mrb[26].mxu1 }
 0x548   : > { %5448 = vmatprep.subr.bf16.mxu0 %v11981_v22  ;;  %7546 = vmatprep.subr.bf16.mxu1 %v11981_v22  ;;  %v5737_v38 = vpop.f32.mrb[27].mxu1  ;;  %v5763_v61 = vpack.c.bf16 %v14001_v56, %v13996_v30 }
 0x54a   : > { %7315 = vmatmul.mubr.bf16.vlgmr.msra.gmra.mrb[120].mxu1 %v11799_v11  ;;  %v11857_v11 = vld [vmem:[%s14801_s6 + $0x378] sm:$0xff]  }
 0x54b   : > { %5449 = vmatpush1.bf16.msra.mxu0 %v12580_v40  ;;  %7547 = vmatpush1.bf16.msra.mxu1 %v12538_v15 }
 0x54c   : > { %5450 = vmatprep.subr.bf16.mxu0 %v11981_v22  ;;  %7548 = vmatprep.subr.bf16.mxu1 %v11981_v22 }
 0x54d   : > { %9714 = vmatprep.mubr.msk.bf16.mxu1 %vm2006_vm5, %v11807_v58  ;;  %v14021_v6 = vpop.f32.mrb[28].mxu1  ;;  %v14058_v58 = vld [vmem:[%s14801_s6 + $0x380] sm:$0xff]  }
 0x54e   : > { %v5742_v2 = vpop.f32.mrb[29].mxu1 }
 0x54f   : > { %5451 = vmatpush1.bf16.msra.mxu0 %v12586_v28  ;;  %7549 = vmatpush1.bf16.msra.mxu1 %v12544_v34  ;;  %v14023_v5 = vpop.f32.mrb[30].mxu1 }
 0x550   : > { %7550 = vmatprep.subr.bf16.mxu1 %v11981_v22  ;;  %10861 = vmatprep.subr.bf16.mxu0 %v11850_v19  ;;  %v5745_v9 = vpop.f32.mrb[31].mxu1  ;;  %v5764_v57 = vpack.c.bf16 %v14023_v5, %v14021_v6  ;;  %v11869_v6 = vld [vmem:[%s14801_s6 + $0x3d8] sm:$0xff]  }
 0x552   : > { %5467 = vmatmul.mubr.bf16.vlgmr.msra.gmra.mrb[116].mxu0 %v11802_v14  ;;  %7323 = vmatmul.mubr.bf16.gmra.mrb[124].mxu1 %v11805_v31 }
 0x553   : > { %7551 = vmatpush1.bf16.msra.mxu1 %v12550_v54  ;;  %9406 = vmatprep.mubr.msk.bf16.mxu0 %vm2006_vm5, %v11808_v39  ;;  %v11847_v39 = vld [vmem:[%s14800_s5 + $0x5c0] ss:$8 sps:$4 sm:$0xff]  }
 0x554   : > { %7552 = vmatprep.subr.bf16.mxu1 %v11981_v22  ;;  %9715 = vmatprep.mubr.msk.bf16.mxu1 %vm2006_vm5, %v11813_v45 }
 0x555   : > { %10862 = vmatpush3.bf16.msra.mxu0 %v11850_v19  ;;  %v14041_v51 = vpop.f32.mrb[32].mxu1 }
 0x556   : > { %10863 = vmatprep.subr.bf16.mxu0 %v11851_v21  ;;  %v5750_v8 = vpop.f32.mrb[33].mxu1 }
 0x557   : > { %7553 = vmatpush1.bf16.msra.mxu1 %v12556_v10  ;;  %v14043_v37 = vpop.f32.mrb[34].mxu1 }
 0x558   : > { %7554 = vmatprep.subr.bf16.mxu1 %v11981_v22  ;;  %v5753_v12 = vpop.f32.mrb[35].mxu1  ;;  %v5765_v13 = vpack.c.bf16 %v14043_v37, %v14041_v51 }
 0x559   : > { %10864 = vmatpush3.bf16.msra.mxu0 %v11851_v21 }
 0x55a   : > { %5475 = vmatmul.mubr.bf16.gmra.mrb[120].mxu0 %v11810_v16  ;;  %7331 = vmatmul.mubr.bf16.gmra.mrb[128].mxu1 %v11811_v18 }
 0x55b   : > { %7555 = vmatpush1.bf16.msra.mxu1 %v12562_v43  ;;  %9716 = vmatprep.mubr.msk.bf16.mxu1 %vm2006_vm5, %v11816_v62 }
 0x55c   : > { %7556 = vmatprep.subr.bf16.mxu1 %v11981_v22  ;;  %9407 = vmatprep.mubr.msk.bf16.mxu0 %vm2006_vm5, %v11817_v20 }
 0x55d   : > { %10865 = vmatprep.subr.bf16.mxu0 %v11852_v27  ;;  %v14060_v14 = vpop.f32.mrb[36].mxu1 }
 0x55e   : > { %10866 = vmatpush3.bf16.msra.mxu0 %v11852_v27  ;;  %v5758_v31 = vpop.f32.mrb[37].mxu1 }
 0x55f   : > { %7557 = vmatpush1.bf16.msra.mxu1 %v12568_v42  ;;  %10867 = vmatprep.subr.bf16.mxu0 %v11853_v25  ;;  %v14066_v45 = vpop.f32.mrb[38].mxu1 }
 0x560   : > { %7558 = vmatprep.subr.bf16.mxu1 %v11981_v22  ;;  %v5761_v16 = vpop.f32.mrb[39].mxu1  ;;  %v5766_v18 = vpack.c.bf16 %v14066_v45, %v14060_v14  ;;  %v11871_v14 = vld [vmem:[%s14801_s6 + $0x3e8] sm:$0xff]  }
 0x562   : > { %7339 = vmatmul.mubr.bf16.gmra.mrb[132].mxu1 %v11814_v17  ;;  %5483 = vmatmul.mubr.bf16.gmra.mrb[124].mxu0 %v11819_v23 }
 0x563   : > { %7559 = vmatpush1.bf16.msra.mxu1 %v12574_v59  ;;  %9757 = vmatprep.mubr.msk.bf16.mxu1 %vm2006_vm5, %v11822_v0 }
 0x564   : > { %7560 = vmatprep.subr.bf16.mxu1 %v11981_v22  ;;  %9408 = vmatprep.mubr.msk.bf16.mxu0 %vm2006_vm5, %v11823_v50 }
 0x565   : > { %10868 = vmatpush3.bf16.msra.mxu0 %v11853_v25 }
 0x566   : > { %10869 = vmatprep.subr.bf16.mxu0 %v11854_v44 }
 0x567   : > { %7561 = vmatpush1.bf16.msra.mxu1 %v12580_v40 }
 0x568   : > { %7562 = vmatprep.subr.bf16.mxu1 %v11981_v22 }
 0x569   : > { %10870 = vmatpush3.bf16.msra.mxu0 %v11854_v44  ;;  %v14074_v62 = vpop.f32.mrb[40].mxu1 }
 0x56a   : > { %5491 = vmatmul.mubr.bf16.gmra.mrb[128].mxu0 %v11825_v26  ;;  %10871 = vmatprep.subr.bf16.mxu0 %v11855_v36  ;;  %v5998_v19 = vpop.f32.mrb[41].mxu1 }
 0x56b   : > { %7563 = vmatpush1.bf16.msra.mxu1 %v12586_v28  ;;  %v14076_v20 = vpop.f32.mrb[42].mxu1 }
 0x56c   : > { %7810 = vmatprep.subr.bf16.mxu1 %v11981_v22  ;;  %v6001_v21 = vpop.f32.mrb[43].mxu1  ;;  %v6027_v17 = vpack.c.bf16 %v14076_v20, %v14074_v62 }
 0x56d   : > { %10872 = vmatpush3.bf16.msra.mxu0 %v11855_v36 }
 0x56e   : > { %7579 = vmatmul.mubr.bf16.vlgmr.msra.gmra.mrb[136].mxu1 %v11820_v4  ;;  %10873 = vmatprep.subr.bf16.mxu0 %v11856_v41 }
 0x56f   : > { %7811 = vmatpush1.bf16.msra.mxu1 %v12538_v15  ;;  %9758 = vmatprep.mubr.msk.bf16.mxu1 %vm2006_vm5, %v11828_v52 }
 0x570   : > { %7812 = vmatprep.subr.bf16.mxu1 %v11981_v22 }
 0x571   : > { %10874 = vmatpush3.bf16.msra.mxu0 %v11856_v41 }
 0x572   : > { %10875 = vmatprep.subr.bf16.mxu0 %v11857_v11 }
 0x573   : > { %7813 = vmatpush1.bf16.msra.mxu1 %v12544_v34 }
 0x574   : > { %7814 = vmatprep.subr.bf16.mxu1 %v11981_v22 }
 0x575   : > { %10876 = vmatpush3.bf16.msra.mxu0 %v11857_v11  ;;  %v11884_v11 = vld [vmem:[%s14800_s5 + $0x5d4] ss:$8 sps:$4 sm:$0xff]  }
 0x576   : > { %7587 = vmatmul.mubr.bf16.gmra.mrb[140].mxu1 %v11826_v3  ;;  %10885 = vmatprep.subr.bf16.mxu0 %v14058_v58 }
 0x577   : > { %7815 = vmatpush1.bf16.msra.mxu1 %v12550_v54  ;;  %9759 = vmatprep.mubr.msk.bf16.mxu1 %vm2006_vm5, %v11831_v29 }
 0x578   : > { %7816 = vmatprep.subr.bf16.mxu1 %v11981_v22 }
 0x57b   : > { %7817 = vmatpush1.bf16.msra.mxu1 %v12556_v10 }
 0x57c   : > { %7818 = vmatprep.subr.bf16.mxu1 %v11981_v22 }
 0x57e   : > { %7595 = vmatmul.mubr.bf16.gmra.mrb[144].mxu1 %v11829_v48 }
 0x57f   : > { %7819 = vmatpush1.bf16.msra.mxu1 %v12562_v43  ;;  %9760 = vmatprep.mubr.msk.bf16.mxu1 %vm2006_vm5, %v11834_v46 }
 0x580   : > { %7820 = vmatprep.subr.bf16.mxu1 %v11981_v22 }
 0x583   : > { %7821 = vmatpush1.bf16.msra.mxu1 %v12568_v42 }
 0x584   : > { %7822 = vmatprep.subr.bf16.mxu1 %v11981_v22 }
 0x586   : > { %7603 = vmatmul.mubr.bf16.gmra.mrb[148].mxu1 %v11832_v47 }
 0x587   : > { %7823 = vmatpush1.bf16.msra.mxu1 %v12574_v59  ;;  %9801 = vmatprep.mubr.msk.bf16.mxu1 %vm2006_vm5, %v11837_v53 }
 0x588   : > { %7824 = vmatprep.subr.bf16.mxu1 %v11981_v22 }
 0x58b   : > { %7825 = vmatpush1.bf16.msra.mxu1 %v12580_v40 }
 0x58c   : > { %7826 = vmatprep.subr.bf16.mxu1 %v11981_v22 }
 0x58f   : > { %7827 = vmatpush1.bf16.msra.mxu1 %v12586_v28 }
 0x590   : > { %8074 = vmatprep.subr.bf16.mxu1 %v11981_v22 }
 0x592   : > { %7843 = vmatmul.mubr.bf16.vlgmr.msra.gmra.mrb[152].mxu1 %v11835_v32 }
 0x593   : > { %8075 = vmatpush1.bf16.msra.mxu1 %v12538_v15  ;;  %9802 = vmatprep.mubr.msk.bf16.mxu1 %vm2006_vm5, %v11840_v24 }
 0x594   : > { %8076 = vmatprep.subr.bf16.mxu1 %v11981_v22 }
 0x597   : > { %8077 = vmatpush1.bf16.msra.mxu1 %v12544_v34 }
 0x598   : > { %8078 = vmatprep.subr.bf16.mxu1 %v11981_v22 }
 0x59a   : > { %7851 = vmatmul.mubr.bf16.gmra.mrb[156].mxu1 %v11838_v55 }
 0x59b   : > { %8079 = vmatpush1.bf16.msra.mxu1 %v12550_v54  ;;  %9803 = vmatprep.mubr.msk.bf16.mxu1 %vm2006_vm5, %v11843_v35 }
 0x59c   : > { %8080 = vmatprep.subr.bf16.mxu1 %v11981_v22 }
 0x59f   : > { %8081 = vmatpush1.bf16.msra.mxu1 %v12556_v10 }
 0x5a0   : > { %8082 = vmatprep.subr.bf16.mxu1 %v11981_v22 }
 0x5a2   : > { %7859 = vmatmul.mubr.bf16.gmra.mrb[160].mxu1 %v11841_v63 }
 0x5a3   : > { %8083 = vmatpush1.bf16.msra.mxu1 %v12562_v43  ;;  %9804 = vmatprep.mubr.msk.bf16.mxu1 %vm2006_vm5, %v11846_v1 }
 0x5a4   : > { %8084 = vmatprep.subr.bf16.mxu1 %v11981_v22 }
 0x5a7   : > { %8085 = vmatpush1.bf16.msra.mxu1 %v12568_v42 }
 0x5a8   : > { %8086 = vmatprep.subr.bf16.mxu1 %v11981_v22 }
 0x5aa   : > { %7867 = vmatmul.mubr.bf16.gmra.mrb[164].mxu1 %v11844_v60 }
 0x5ab   : > { %8087 = vmatpush1.bf16.msra.mxu1 %v12574_v59  ;;  %9845 = vmatprep.mubr.msk.bf16.mxu1 %vm2006_vm5, %v11849_v49 }
 0x5ac   : > { %8088 = vmatprep.subr.bf16.mxu1 %v11981_v22 }
 0x5af   : > { %8089 = vmatpush1.bf16.msra.mxu1 %v12580_v40 }
 0x5b0   : > { %8090 = vmatprep.subr.bf16.mxu1 %v11981_v22 }
 0x5b3   : > { %8091 = vmatpush1.bf16.msra.mxu1 %v12586_v28 }
 0x5b4   : > { %8338 = vmatprep.subr.bf16.mxu1 %v11981_v22 }
 0x5b6   : > { %8107 = vmatmul.mubr.bf16.vlgmr.msra.gmra.mrb[168].mxu1 %v11847_v39  ;;  %v11882_v39 = vld [vmem:[%s14800_s5 + $0x5d0] ss:$8 sps:$4 sm:$0xff]  }
 0x5b7   : > { %8339 = vmatpush1.bf16.msra.mxu1 %v12538_v15  ;;  %v14086_v15 = vpop.f32.mrb[44].mxu1  ;;  %9846 = vmatprep.mubr.msk.bf16.mxu1 %vm2006_vm5, %v11884_v11  ;;  %v11899_v11 = vld [vmem:[%s14800_s5 + $0x604] ss:$8 sps:$4 sm:$0xff]  }
 0x5b8   : > { %8340 = vmatprep.subr.bf16.mxu1 %v11981_v22  ;;  %v6006_v23 = vpop.f32.mrb[45].mxu1 }
 0x5b9   : > { %v14088_v0 = vpop.f32.mrb[46].mxu1 }
 0x5ba   : > { %v6028_v50 = vpack.c.bf16 %v14088_v0, %v14086_v15 }
 0x5bb   : > { %8341 = vmatpush1.bf16.msra.mxu1 %v12544_v34  ;;  %v6009_v34 = vpop.f32.mrb[47].mxu1 }
 0x5bc   : > { %8342 = vmatprep.subr.bf16.mxu1 %v11981_v22  ;;  %v11889_v34 = vld [vmem:[%s14800_s5 + $0x5e4] ss:$8 sps:$4 sm:$0xff]  }
 0x5be   : > { %8115 = vmatmul.mubr.bf16.gmra.mrb[172].mxu1 %v11882_v39 }
 0x5bf   : > { %8343 = vmatpush1.bf16.msra.mxu1 %v12550_v54  ;;  %v14096_v54 = vpop.f32.mrb[48].mxu1  ;;  %9847 = vmatprep.mubr.msk.bf16.mxu1 %vm2006_vm5, %v11889_v34 }
 0x5c0   : > { %8344 = vmatprep.subr.bf16.mxu1 %v11981_v22 }
 0x5c3   : > { %8345 = vmatpush1.bf16.msra.mxu1 %v12556_v10  ;;  %v6014_v10 = vpop.f32.mrb[49].mxu1 }
 0x5c4   : > { %8346 = vmatprep.subr.bf16.mxu1 %v11981_v22  ;;  %v14098_v27 = vpop.f32.mrb[50].mxu1 }
 0x5c5   : > { %v6017_v25 = vpop.f32.mrb[51].mxu1 }
 0x5c6   : > { %v11887_v25 = vld [vmem:[%s14800_s5 + $0x5e0] ss:$8 sps:$4 sm:$0xff]  }
 0x5c7   : > { %8347 = vmatpush1.bf16.msra.mxu1 %v12562_v43  ;;  %v6029_v43 = vpack.c.bf16 %v14098_v27, %v14096_v54  ;;  %v11878_v54 = vld [vmem:[%s14801_s6 + $0x420] sm:$0xff]  }
 0x5c8   : > { %8348 = vmatprep.subr.bf16.mxu1 %v11981_v22  ;;  %8123 = vmatmul.mubr.bf16.gmra.mrb[176].mxu1 %v11887_v25 }
 0x5cb   : > { %8349 = vmatpush1.bf16.msra.mxu1 %v12568_v42  ;;  %v14106_v42 = vpop.f32.mrb[52].mxu1 }
 0x5cc   : > { %8350 = vmatprep.subr.bf16.mxu1 %v11981_v22  ;;  %v6022_v26 = vpop.f32.mrb[53].mxu1 }
 0x5cd   : > { %v14108_v44 = vpop.f32.mrb[54].mxu1 }
 0x5ce   : > { %v6025_v4 = vpop.f32.mrb[55].mxu1 }
 0x5cf   : > { %8351 = vmatpush1.bf16.msra.mxu1 %v12574_v59  ;;  %v6030_v59 = vpack.c.bf16 %v14108_v44, %v14106_v42  ;;  %v14114_v52 = vpop.f32.mrb[56].mxu1 }
 0x5d0   : > { %8352 = vmatprep.subr.bf16.mxu1 %v11981_v22  ;;  %v6262_v36 = vpop.f32.mrb[57].mxu1 }
 0x5d1   : > { %v14116_v3 = vpop.f32.mrb[58].mxu1 }
 0x5d3   : > { %8353 = vmatpush1.bf16.msra.mxu1 %v12580_v40  ;;  %v6265_v40 = vpop.f32.mrb[59].mxu1 }
 0x5d4   : > { %8354 = vmatprep.subr.bf16.mxu1 %v11981_v22  ;;  %v6291_v22 = vpack.c.bf16 %v14116_v3, %v14114_v52  ;;  %v14120_v29 = vpop.f32.mrb[60].mxu1  ;;  %v11880_v3 = vld [vmem:[%s14801_s6 + $0x430] sm:$0xff]  }
 0x5d5   : > { %v6270_v48 = vpop.f32.mrb[61].mxu1 }
 0x5d6   : > { %v14122_v46 = vpop.f32.mrb[62].mxu1  ;;  %v11894_v48 = vld [vmem:[%s14800_s5 + $0x5f4] ss:$8 sps:$4 sm:$0xff]  }
 0x5d7   : > { %8355 = vmatpush1.bf16.msra.mxu1 %v12586_v28  ;;  %v6273_v28 = vpop.f32.mrb[63].mxu1  ;;  %v6292_v47 = vpack.c.bf16 %v14122_v46, %v14120_v29  ;;  %9848 = vmatprep.mubr.msk.bf16.mxu1 %vm2006_vm5, %v11894_v48  ;;  %v11891_v29 = vld [vmem:[%s14801_s6 + $0x458] sm:$0xff]   ;;  %v11895_v46 = vld [vmem:[%s14801_s6 + $0x460] sm:$0xff]  }
 0x5d8   : > { %11149 = vmatprep.subr.bf16.mxu1 %v11979_v7  ;;  %v14126_v53 = vpop.f32.mrb[64].mxu1 }
 0x5d9   : > { %v6278_v32 = vpop.f32.mrb[65].mxu1 }
 0x5da   : > { %v14128_v24 = vpop.f32.mrb[66].mxu1  ;;  %v11892_v32 = vld [vmem:[%s14800_s5 + $0x5f0] ss:$8 sps:$4 sm:$0xff]  }
 0x5db   : > { %v6281_v33 = vpop.f32.mrb[67].mxu1  ;;  %v6293_v55 = vpack.c.bf16 %v14128_v24, %v14126_v53  ;;  %8131 = vmatmul.mubr.bf16.gmra.mrb[180].mxu1 %v11892_v32 }
 0x5dc   : > { %v14132_v35 = vpop.f32.mrb[68].mxu1  ;;  %9889 = vmatprep.mubr.msk.bf16.mxu1 %vm2006_vm5, %v11899_v11  ;;  %v11859_v11 = vld [vmem:[%s14801_s6 + $0x388] sm:$0xff]  }
 0x5dd   : > { %v6286_v38 = vpop.f32.mrb[69].mxu1 }
 0x5de   : > { %v14134_v63 = vpop.f32.mrb[70].mxu1 }
 0x5df   : > { %v6289_v1 = vpop.f32.mrb[71].mxu1  ;;  %v6294_v2 = vpack.c.bf16 %v14134_v63, %v14132_v35  ;;  %v11896_v35 = vld [vmem:[%s14801_s6 + $0x468] sm:$0xff]  }
 0x5e0   : > { %v14138_v9 = vpop.f32.mrb[72].mxu1 }
 0x5e1   : > { %v6526_v41 = vpop.f32.mrb[73].mxu1 }
 0x5e2   : > { %v14140_v60 = vpop.f32.mrb[74].mxu1 }
 0x5e3   : > { %v6529_v49 = vpop.f32.mrb[75].mxu1  ;;  %v6555_v8 = vpack.c.bf16 %v14140_v60, %v14138_v9 }
 0x5e4   : > { %v14144_v12 = vpop.f32.mrb[76].mxu1 }
 0x5e5   : > { %v6534_v31 = vpop.f32.mrb[77].mxu1 }
 0x5e6   : > { %v14152_v16 = vpop.f32.mrb[78].mxu1 }
 0x5e7   : > { %v6537_v19 = vpop.f32.mrb[79].mxu1 }
 0x5e8   : > { %v14157_v23 = vpop.f32.mrb[80].mxu1  ;;  %v11897_v19 = vld [vmem:[%s14800_s5 + $0x600] ss:$8 sps:$4 sm:$0xff]  }
 0x5e9   : > { %v6542_v10 = vpop.f32.mrb[81].mxu1  ;;  %8371 = vmatmul.mubr.bf16.vlgmr.msra.gmra.mrb[184].mxu1 %v11897_v19 }
 0x5ea   : > { %v14165_v26 = vpop.f32.mrb[82].mxu1 }
 0x5eb   : > { %v6545_v4 = vpop.f32.mrb[83].mxu1 }
 0x5ec   : > { %v14170_v40 = vpop.f32.mrb[84].mxu1 }
 0x5ed   : > { %v6550_v28 = vpop.f32.mrb[85].mxu1 }
 0x5ee   : > { %v14178_v33 = vpop.f32.mrb[86].mxu1 }
 0x5ef   : > { %v6553_v38 = vpop.f32.mrb[87].mxu1 }
 0x5f0   : > { %v14183_v41 = vpop.f32.mrb[88].mxu1  ;;  %v11904_v38 = vld [vmem:[%s14800_s5 + $0x614] ss:$8 sps:$4 sm:$0xff]  }
 0x5f1   : > { %v6790_v31 = vpop.f32.mrb[89].mxu1  ;;  %9890 = vmatprep.mubr.msk.bf16.mxu1 %vm2006_vm5, %v11904_v38 }
 0x5f2   : > { %v14191_v34 = vpop.f32.mrb[90].mxu1 }
 0x5f3   : > { %v6793_v25 = vpop.f32.mrb[91].mxu1 }
 0x625   : > { %v5468_v49 = vpop.f32.mrb[116].mxu0 }
 0x626   : > { %v5470_v39 = vpop.f32.mrb[117].mxu0 }
 0x627   : > { %v5471_v10 = vpop.f32.mrb[118].mxu0  ;;  %v11902_v39 = vld [vmem:[%s14800_s5 + $0x610] ss:$8 sps:$4 sm:$0xff]  }
 0x628   : > { %v5499_v4 = vpack.c.bf16 %v5471_v10, %v5468_v49  ;;  %v5473_v48 = vpop.f32.mrb[119].mxu0  ;;  %8379 = vmatmul.mubr.bf16.gmra.mrb[188].mxu1 %v11902_v39  ;;  %v14206_v10 = vpop.f32.mrb[92].mxu1 }
 0x629   : > { %v6798_v25 = vpop.f32.mrb[93].mxu1 }
 0x62a   : > { %10877 = vmatprep.mubr.bf16.mxu0 %v5499_v4  ;;  %v14208_v4 = vpop.f32.mrb[94].mxu1 }
 0x62b   : > { %v6801_v48 = vpop.f32.mrb[95].mxu1 }
 0x62d   : > { %v5476_v32 = vpop.f32.mrb[120].mxu0 }
 0x62e   : > { %v5478_v31 = vpop.f32.mrb[121].mxu0 }
 0x62f   : > { %v5479_v1 = vpop.f32.mrb[122].mxu0  ;;  %v11909_v31 = vld [vmem:[%s14800_s5 + $0x624] ss:$8 sps:$4 sm:$0xff]  }
 0x630   : > { %v5500_v49 = vpack.c.bf16 %v5479_v1, %v5476_v32  ;;  %v5481_v19 = vpop.f32.mrb[123].mxu0  ;;  %v11860_v1 = vld [vmem:[%s14801_s6 + $0x390] sm:$0xff]   ;;  %9891 = vmatprep.mubr.msk.bf16.mxu1 %vm2006_vm5, %v11909_v31  ;;  %v14226_v32 = vpop.f32.mrb[96].mxu1 }
 0x631   : > { %v11861_v19 = vld [vmem:[%s14801_s6 + $0x398] sm:$0xff]   ;;  %v6806_v28 = vpop.f32.mrb[97].mxu1 }
 0x632   : > { %10878 = vmatmul.mubr.bf16.vlgmr.msra.gmra.mrb[108].mxu0 %v5500_v49  ;;  %v11907_v49 = vld [vmem:[%s14800_s5 + $0x620] ss:$8 sps:$4 sm:$0xff]   ;;  %v11912_v28 = vld [vmem:[%s14800_s5 + $0x630] ss:$8 sps:$4 sm:$0xff]  }
 0x633   : > { %10886 = vmatpush3.bf16.msra.mxu0 %v14058_v58  ;;  %8387 = vmatmul.mubr.bf16.gmra.mrb[192].mxu1 %v11907_v49 }
 0x634   : > { %10887 = vmatprep.subr.bf16.mxu0 %v11859_v11 }
 0x635   : > { %v5484_v38 = vpop.f32.mrb[124].mxu0 }
 0x636   : > { %v5486_v39 = vpop.f32.mrb[125].mxu0 }
 0x637   : > { %10888 = vmatpush3.bf16.msra.mxu0 %v11859_v11  ;;  %v5487_v58 = vpop.f32.mrb[126].mxu0  ;;  %v14228_v39 = vpop.f32.mrb[98].mxu1  ;;  %v11862_v11 = vld [vmem:[%s14801_s6 + $0x3a0] sm:$0xff]  }
 0x638   : > { %10889 = vmatprep.subr.bf16.mxu0 %v11860_v1  ;;  %v5501_v25 = vpack.c.bf16 %v5487_v58, %v5484_v38  ;;  %v5489_v48 = vpop.f32.mrb[127].mxu0  ;;  %v6809_v36 = vpop.f32.mrb[99].mxu1  ;;  %v11914_v38 = vld [vmem:[%s14800_s5 + $0x634] ss:$8 sps:$4 sm:$0xff]  }
 0x639   : > { %9892 = vmatprep.mubr.msk.bf16.mxu1 %vm2006_vm5, %v11914_v38  ;;  %v14245_v48 = vpop.f32.mrb[100].mxu1  ;;  %v11865_v38 = vld [vmem:[%s14801_s6 + $0x3b8] sm:$0xff]  }
 0x63a   : > { %10881 = vmatprep.mubr.bf16.mxu0 %v5501_v25  ;;  %v6814_v31 = vpop.f32.mrb[101].mxu1 }
 0x63b   : > { %10890 = vmatpush3.bf16.msra.mxu0 %v11860_v1  ;;  %v11863_v1 = vld [vmem:[%s14801_s6 + $0x3a8] sm:$0xff]   ;;  %8395 = vmatmul.mubr.bf16.gmra.mrb[196].mxu1 %v11912_v28 }
 0x63c   : > { %10891 = vmatprep.subr.bf16.mxu0 %v11861_v19  ;;  %11157 = vmatprep.mubr.msk.bf16.mxu1 %vm11980_vm3, %v11979_v7 }
 0x63d   : > { %v5492_v21 = vpop.f32.mrb[128].mxu0 }
 0x63e   : > { %v5494_v49 = vpop.f32.mrb[129].mxu0 }
 0x63f   : > { %10892 = vmatpush3.bf16.msra.mxu0 %v11861_v19  ;;  %v5495_v36 = vpop.f32.mrb[130].mxu0  ;;  %v14249_v49 = vpop.f32.mrb[102].mxu1 }
 0x640   : > { %10893 = vmatprep.subr.bf16.mxu0 %v11862_v11  ;;  %v5502_v58 = vpack.c.bf16 %v5495_v36, %v5492_v21  ;;  %v5497_v25 = vpop.f32.mrb[131].mxu0  ;;  %v6817_v19 = vpop.f32.mrb[103].mxu1  ;;  %v11864_v21 = vld [vmem:[%s14801_s6 + $0x3b0] sm:$0xff]   ;;  %v6822_v31 = vpack.c.bf16 %v14249_v49, %v14245_v48  ;;  %v11924_v48 = vld [vmem:[%s14801_s6 + $0x4e8] sm:$0xff]  }
 0x642   : > { %10882 = vmatmul.mubr.bf16.gmra.mrb[112].mxu0 %v5502_v58  ;;  %v11868_v58 = vld [vmem:[%s14801_s6 + $0x3d0] sm:$0xff]  }
 0x643   : > { %10894 = vmatpush3.bf16.msra.mxu0 %v11862_v11  ;;  %10901 = vmatprep.mubr.bf16.mxu0 %v5763_v61  ;;  %v14262_v11 = vpop.f32.mrb[104].mxu1  ;;  %v11866_v61 = vld [vmem:[%s14801_s6 + $0x3c0] sm:$0xff]  }
 0x644   : > { %10895 = vmatprep.subr.bf16.mxu0 %v11863_v1  ;;  %v7054_v28 = vpop.f32.mrb[105].mxu1 }
 0x645   : > { %v14264_v30 = vpop.f32.mrb[106].mxu1 }
 0x646   : > { %v7057_v56 = vpop.f32.mrb[107].mxu1  ;;  %v7083_v36 = vpack.c.bf16 %v14264_v30, %v14262_v11 }
 0x647   : > { %10896 = vmatpush3.bf16.msra.mxu0 %v11863_v1  ;;  %v11867_v1 = vld [vmem:[%s14801_s6 + $0x3c8] sm:$0xff]   ;;  %v14283_v25 = vpop.f32.mrb[108].mxu1 }
 0x648   : > { %10897 = vmatprep.subr.bf16.mxu0 %v11864_v21  ;;  %v7062_v19 = vpop.f32.mrb[109].mxu1 }
 0x64b   : > { %10898 = vmatpush3.bf16.msra.mxu0 %v11864_v21  ;;  %v14285_v21 = vpop.f32.mrb[110].mxu1 }
 0x64c   : > { %10899 = vmatprep.subr.bf16.mxu0 %v11865_v38  ;;  %v7084_v5 = vpack.c.bf16 %v14285_v21, %v14283_v25  ;;  %v11930_v21 = vld [vmem:[%s14801_s6 + $0x518] sm:$0xff]  }
 0x64f   : > { %10900 = vmatpush3.bf16.msra.mxu0 %v11865_v38  ;;  %v7065_v38 = vpop.f32.mrb[111].mxu1 }
 0x650   : > { %10909 = vmatprep.subr.bf16.mxu0 %v11866_v61  ;;  %v14301_v51 = vpop.f32.mrb[112].mxu1 }
 0x651   : > { %v7070_v37 = vpop.f32.mrb[113].mxu1 }
 0x652   : > { %10902 = vmatmul.mubr.bf16.vlgmr.msra.gmra.mrb[108].mxu0 %v5764_v57  ;;  %v11870_v57 = vld [vmem:[%s14801_s6 + $0x3e0] sm:$0xff]   ;;  %v11875_v37 = vld [vmem:[%s14801_s6 + $0x408] sm:$0xff]  }
 0x653   : > { %10910 = vmatpush3.bf16.msra.mxu0 %v11866_v61  ;;  %10905 = vmatprep.mubr.bf16.mxu0 %v5765_v13  ;;  %v14303_v13 = vpop.f32.mrb[114].mxu1  ;;  %v11873_v61 = vld [vmem:[%s14801_s6 + $0x3f8] sm:$0xff]  }
 0x654   : > { %10911 = vmatprep.subr.bf16.mxu0 %v11867_v1  ;;  %v7073_v28 = vpop.f32.mrb[115].mxu1  ;;  %v7085_v45 = vpack.c.bf16 %v14303_v13, %v14301_v51  ;;  %v11931_v51 = vld [vmem:[%s14801_s6 + $0x520] sm:$0xff]  }
 0x655   : > { %v14313_v62 = vpop.f32.mrb[116].mxu1 }
 0x656   : > { %v7078_v20 = vpop.f32.mrb[117].mxu1 }
 0x657   : > { %10912 = vmatpush3.bf16.msra.mxu0 %v11867_v1 }
 0x658   : > { %10913 = vmatprep.subr.bf16.mxu0 %v11868_v58 }
 0x65a   : > { %10906 = vmatmul.mubr.bf16.gmra.mrb[112].mxu0 %v5766_v18  ;;  %v11872_v18 = vld [vmem:[%s14801_s6 + $0x3f0] sm:$0xff]  }
 0x65b   : > { %10914 = vmatpush3.bf16.msra.mxu0 %v11868_v58  ;;  %10925 = vmatprep.mubr.bf16.mxu0 %v6027_v17  ;;  %v14315_v17 = vpop.f32.mrb[118].mxu1  ;;  %v11874_v58 = vld [vmem:[%s14801_s6 + $0x400] sm:$0xff]  }
 0x65c   : > { %10915 = vmatprep.subr.bf16.mxu0 %v11869_v6  ;;  %v7081_v56 = vpop.f32.mrb[119].mxu1  ;;  %v7086_v1 = vpack.c.bf16 %v14315_v17, %v14313_v62  ;;  %v11932_v17 = vld [vmem:[%s14801_s6 + $0x528] sm:$0xff]  }
 0x65d   : > { %v14325_v19 = vpop.f32.mrb[120].mxu1  ;;  %v11881_v56 = vld [vmem:[%s14801_s6 + $0x438] sm:$0xff]  }
 0x65e   : > { %v7318_v38 = vpop.f32.mrb[121].mxu1 }
 0x65f   : > { %10916 = vmatpush3.bf16.msra.mxu0 %v11869_v6  ;;  %v14327_v6 = vpop.f32.mrb[122].mxu1 }
 0x660   : > { %10917 = vmatprep.subr.bf16.mxu0 %v11870_v57  ;;  %v7347_v28 = vpack.c.bf16 %v14327_v6, %v14325_v19  ;;  %v11933_v19 = vld [vmem:[%s14801_s6 + $0x530] sm:$0xff]  }
 0x663   : > { %10918 = vmatpush3.bf16.msra.mxu0 %v11870_v57  ;;  %v7321_v57 = vpop.f32.mrb[123].mxu1 }
 0x664   : > { %10919 = vmatprep.subr.bf16.mxu0 %v11871_v14  ;;  %v14346_v20 = vpop.f32.mrb[124].mxu1 }
 0x665   : > { %v7326_v15 = vpop.f32.mrb[125].mxu1 }
 0x666   : > { %v14351_v0 = vpop.f32.mrb[126].mxu1 }
 0x667   : > { %10920 = vmatpush3.bf16.msra.mxu0 %v11871_v14  ;;  %v11876_v14 = vld [vmem:[%s14801_s6 + $0x410] sm:$0xff]   ;;  %v7348_v27 = vpack.c.bf16 %v14351_v0, %v14346_v20  ;;  %v11938_v0 = vld [vmem:[%s14801_s6 + $0x558] sm:$0xff]  }
 0x668   : > { %10921 = vmatprep.subr.bf16.mxu0 %v11872_v18 }
 0x66b   : > { %10922 = vmatpush3.bf16.msra.mxu0 %v11872_v18  ;;  %v11877_v18 = vld [vmem:[%s14801_s6 + $0x418] sm:$0xff]  }
 0x66c   : > { %10923 = vmatprep.subr.bf16.mxu0 %v11873_v61 }
 0x66f   : > { %10924 = vmatpush3.bf16.msra.mxu0 %v11873_v61 }
 0x670   : > { %10933 = vmatprep.subr.bf16.mxu0 %v11874_v58 }
 0x672   : > { %10926 = vmatmul.mubr.bf16.vlgmr.msra.gmra.mrb[108].mxu0 %v6028_v50  ;;  %v7329_v50 = vpop.f32.mrb[127].mxu1 }
 0x673   : > { %10934 = vmatpush3.bf16.msra.mxu0 %v11874_v58  ;;  %10929 = vmatprep.mubr.bf16.mxu0 %v6029_v43  ;;  %v11879_v43 = vld [vmem:[%s14801_s6 + $0x428] sm:$0xff]   ;;  %v14364_v42 = vpop.f32.mrb[128].mxu1 }
 0x674   : > { %10935 = vmatprep.subr.bf16.mxu0 %v11875_v37  ;;  %v7334_v44 = vpop.f32.mrb[129].mxu1 }
 0x675   : > { %v11890_v44 = vld [vmem:[%s14801_s6 + $0x450] sm:$0xff]  }
 0x677   : > { %10936 = vmatpush3.bf16.msra.mxu0 %v11875_v37  ;;  %v11885_v37 = vld [vmem:[%s14801_s6 + $0x440] sm:$0xff]  }
 0x678   : > { %10937 = vmatprep.subr.bf16.mxu0 %v11876_v14 }
 0x67a   : > { %10930 = vmatmul.mubr.bf16.gmra.mrb[112].mxu0 %v6030_v59  ;;  %v14366_v59 = vpop.f32.mrb[130].mxu1 }
 0x67b   : > { %10938 = vmatpush3.bf16.msra.mxu0 %v11876_v14  ;;  %10949 = vmatprep.mubr.bf16.mxu0 %v6291_v22  ;;  %v7337_v52 = vpop.f32.mrb[131].mxu1  ;;  %v7349_v22 = vpack.c.bf16 %v14366_v59, %v14364_v42  ;;  %v11940_v42 = vld [vmem:[%s14801_s6 + $0x568] sm:$0xff]   ;;  %v11941_v59 = vld [vmem:[%s14801_s6 + $0x570] sm:$0xff]  }
 0x67c   : > { %10939 = vmatprep.subr.bf16.mxu0 %v11877_v18  ;;  %v14376_v61 = vpop.f32.mrb[132].mxu1 }
 0x67d   : > { %v7342_v58 = vpop.f32.mrb[133].mxu1 }
 0x67e   : > { %v14378_v38 = vpop.f32.mrb[134].mxu1 }
 0x67f   : > { %10940 = vmatpush3.bf16.msra.mxu0 %v11877_v18  ;;  %v7345_v57 = vpop.f32.mrb[135].mxu1  ;;  %v7350_v14 = vpack.c.bf16 %v14378_v38, %v14376_v61  ;;  %v11886_v18 = vld [vmem:[%s14801_s6 + $0x448] sm:$0xff]   ;;  %v11943_v61 = vld [vmem:[%s14801_s6 + $0x580] sm:$0xff]  }
 0x680   : > { %10941 = vmatprep.subr.bf16.mxu0 %v11878_v54  ;;  %v14388_v15 = vpop.f32.mrb[136].mxu1  ;;  %v11905_v57 = vld [vmem:[%s14801_s6 + $0x480] sm:$0xff]   ;;  %v11944_v38 = vld [vmem:[%s14801_s6 + $0x588] sm:$0xff]  }
 0x681   : > { %v7582_v50 = vpop.f32.mrb[137].mxu1 }
 0x683   : > { %10942 = vmatpush3.bf16.msra.mxu0 %v11878_v54  ;;  %v14393_v54 = vpop.f32.mrb[138].mxu1 }
 0x684   : > { %10943 = vmatprep.subr.bf16.mxu0 %v11879_v43  ;;  %v7611_v52 = vpack.c.bf16 %v14393_v54, %v14388_v15  ;;  %v11946_v15 = vld [vmem:[%s14801_s6 + $0x598] sm:$0xff]   ;;  %v11947_v54 = vld [vmem:[%s14801_s6 + $0x5a0] sm:$0xff]  }
 0x687   : > { %10944 = vmatpush3.bf16.msra.mxu0 %v11879_v43  ;;  %v7585_v43 = vpop.f32.mrb[139].mxu1 }
 0x688   : > { %10945 = vmatprep.subr.bf16.mxu0 %v11880_v3 }
 0x68b   : > { %10946 = vmatpush3.bf16.msra.mxu0 %v11880_v3 }
 0x68c   : > { %10947 = vmatprep.subr.bf16.mxu0 %v11881_v56 }
 0x68f   : > { %10948 = vmatpush3.bf16.msra.mxu0 %v11881_v56  ;;  %v11901_v56 = vld [vmem:[%s14801_s6 + $0x478] sm:$0xff]  }
 0x690   : > { %10957 = vmatprep.subr.bf16.mxu0 %v11885_v37 }
 0x692   : > { %10950 = vmatmul.mubr.bf16.vlgmr.msra.gmra.mrb[108].mxu0 %v6292_v47  ;;  %v14415_v47 = vpop.f32.mrb[140].mxu1 }
 0x693   : > { %10958 = vmatpush3.bf16.msra.mxu0 %v11885_v37  ;;  %10953 = vmatprep.mubr.bf16.mxu0 %v6293_v55  ;;  %v7590_v53 = vpop.f32.mrb[141].mxu1 }
 0x694   : > { %10959 = vmatprep.subr.bf16.mxu0 %v11886_v18  ;;  %v14417_v24 = vpop.f32.mrb[142].mxu1  ;;  %v14807_v53 = vpack.c.bf16 %v14165_v26, %v14157_v23  ;;  %v14808_v23 = vpack.c.bf16 %v14178_v33, %v14170_v40  ;;  %v14809_v26 = vpack.c.bf16 %v14191_v34, %v14183_v41  ;;  %v11917_v41 = vld [vmem:[%s14801_s6 + $0x4b0] sm:$0xff]  }
 0x695   : > { %v7593_v55 = vpop.f32.mrb[143].mxu1  ;;  %v7612_v63 = vpack.c.bf16 %v14417_v24, %v14415_v47  ;;  %v11949_v47 = vld [vmem:[%s14801_s6 + $0x5b0] sm:$0xff]   ;;  %v11950_v24 = vld [vmem:[%s14801_s6 + $0x5b8] sm:$0xff]  }
 0x696   : > { %v14427_v9 = vpop.f32.mrb[144].mxu1  ;;  %v11910_v55 = vld [vmem:[%s14801_s6 + $0x490] sm:$0xff]  }
 0x697   : > { %10960 = vmatpush3.bf16.msra.mxu0 %v11886_v18  ;;  %v7598_v60 = vpop.f32.mrb[145].mxu1 }
 0x698   : > { %10961 = vmatprep.subr.bf16.mxu0 %v11890_v44 }
 0x69a   : > { %10954 = vmatmul.mubr.bf16.gmra.mrb[112].mxu0 %v6294_v2  ;;  %v11900_v2 = vld [vmem:[%s14801_s6 + $0x470] sm:$0xff]  }
 0x69b   : > { %10962 = vmatpush3.bf16.msra.mxu0 %v11890_v44  ;;  %10973 = vmatprep.mubr.bf16.mxu0 %v6555_v8  ;;  %v14429_v8 = vpop.f32.mrb[146].mxu1  ;;  %v11906_v44 = vld [vmem:[%s14801_s6 + $0x488] sm:$0xff]  }
 0x69c   : > { %10963 = vmatprep.subr.bf16.mxu0 %v11891_v29  ;;  %v7601_v3 = vpop.f32.mrb[147].mxu1  ;;  %v7613_v58 = vpack.c.bf16 %v14429_v8, %v14427_v9  ;;  %v11952_v9 = vld [vmem:[%s14801_s6 + $0x5c8] sm:$0xff]   ;;  %v11953_v8 = vld [vmem:[%s14801_s6 + $0x5d0] sm:$0xff]  }
 0x69d   : > { %v14439_v37 = vpop.f32.mrb[148].mxu1 }
 0x69e   : > { %v7606_v18 = vpop.f32.mrb[149].mxu1 }
 0x69f   : > { %10964 = vmatpush3.bf16.msra.mxu0 %v11891_v29  ;;  %v14441_v50 = vpop.f32.mrb[150].mxu1 }
 0x6a0   : > { %10965 = vmatprep.subr.bf16.mxu0 %v11895_v46  ;;  %v7609_v43 = vpop.f32.mrb[151].mxu1  ;;  %v7614_v29 = vpack.c.bf16 %v14441_v50, %v14439_v37  ;;  %v11955_v37 = vld [vmem:[%s14801_s6 + $0x5e0] sm:$0xff]   ;;  %v11956_v50 = vld [vmem:[%s14801_s6 + $0x5e8] sm:$0xff]  }
 0x6a3   : > { %10966 = vmatpush3.bf16.msra.mxu0 %v11895_v46  ;;  %v14806_v46 = vpack.c.bf16 %v14152_v16, %v14144_v12  ;;  %v11911_v12 = vld [vmem:[%s14801_s6 + $0x498] sm:$0xff]  }
 0x6a4   : > { %10967 = vmatprep.subr.bf16.mxu0 %v11896_v35 }
 0x6a7   : > { %10968 = vmatpush3.bf16.msra.mxu0 %v11896_v35  ;;  %v14457_v35 = vpop.f32.mrb[152].mxu1 }
 0x6a8   : > { %10969 = vmatprep.subr.bf16.mxu0 %v11900_v2 }
 0x6ab   : > { %10970 = vmatpush3.bf16.msra.mxu0 %v11900_v2  ;;  %v7846_v2 = vpop.f32.mrb[153].mxu1 }
 0x6ac   : > { %10971 = vmatprep.subr.bf16.mxu0 %v11901_v56  ;;  %v14459_v60 = vpop.f32.mrb[154].mxu1 }
 0x6ad   : > { %v7849_v3 = vpop.f32.mrb[155].mxu1  ;;  %v7875_v16 = vpack.c.bf16 %v14459_v60, %v14457_v35  ;;  %v11958_v35 = vld [vmem:[%s14801_s6 + $0x5f8] sm:$0xff]   ;;  %v11959_v60 = vld [vmem:[%s14801_s6 + $0x600] sm:$0xff]  }
 0x6ae   : > { %v14478_v18 = vpop.f32.mrb[156].mxu1  ;;  %v11919_v3 = vld [vmem:[%s14801_s6 + $0x4c0] sm:$0xff]  }
 0x6af   : > { %10972 = vmatpush3.bf16.msra.mxu0 %v11901_v56  ;;  %v11915_v56 = vld [vmem:[%s14801_s6 + $0x4a0] sm:$0xff]   ;;  %v7854_v40 = vpop.f32.mrb[157].mxu1 }
 0x6b0   : > { %10981 = vmatprep.subr.bf16.mxu0 %v11905_v57  ;;  %v14480_v33 = vpop.f32.mrb[158].mxu1 }
 0x6b1   : > { %v7857_v43 = vpop.f32.mrb[159].mxu1  ;;  %v7876_v34 = vpack.c.bf16 %v14480_v33, %v14478_v18  ;;  %v11961_v18 = vld [vmem:[%s14801_s6 + $0x610] sm:$0xff]   ;;  %v11962_v33 = vld [vmem:[%s14801_s6 + $0x618] sm:$0xff]  }
 0x6b2   : > { %10974 = vmatmul.mubr.bf16.vlgmr.msra.gmra.mrb[108].mxu0 %v14806_v46  ;;  %v14490_v46 = vpop.f32.mrb[160].mxu1  ;;  %v14811_v43 = vpack.c.bf16 %v14228_v39, %v14226_v32 }
 0x6b3   : > { %10982 = vmatpush3.bf16.msra.mxu0 %v11905_v57  ;;  %10977 = vmatprep.mubr.bf16.mxu0 %v14807_v53  ;;  %v11916_v57 = vld [vmem:[%s14801_s6 + $0x4a8] sm:$0xff]   ;;  %v7862_v53 = vpop.f32.mrb[161].mxu1 }
 0x6b4   : > { %10983 = vmatprep.subr.bf16.mxu0 %v11906_v44 }
 0x6b7   : > { %10984 = vmatpush3.bf16.msra.mxu0 %v11906_v44  ;;  %v11918_v44 = vld [vmem:[%s14801_s6 + $0x4b8] sm:$0xff]  }
 0x6b8   : > { %10985 = vmatprep.subr.bf16.mxu0 %v11910_v55 }
 0x6ba   : > { %10978 = vmatmul.mubr.bf16.gmra.mrb[112].mxu0 %v14808_v23  ;;  %v11920_v23 = vld [vmem:[%s14801_s6 + $0x4c8] sm:$0xff]  }
 0x6bb   : > { %10986 = vmatpush3.bf16.msra.mxu0 %v11910_v55  ;;  %10997 = vmatprep.mubr.bf16.mxu0 %v14809_v26  ;;  %v14492_v55 = vpop.f32.mrb[162].mxu1 }
 0x6bc   : > { %10987 = vmatprep.subr.bf16.mxu0 %v11911_v12  ;;  %v7865_v2 = vpop.f32.mrb[163].mxu1 }
 0x6bd   : > { %v14502_v26 = vpop.f32.mrb[164].mxu1 }
 0x6bf   : > { %10988 = vmatpush3.bf16.msra.mxu0 %v11911_v12  ;;  %v7877_v12 = vpack.c.bf16 %v14492_v55, %v14490_v46  ;;  %v11964_v46 = vld [vmem:[%s14801_s6 + $0x628] sm:$0xff]   ;;  %v11965_v55 = vld [vmem:[%s14801_s6 + $0x630] sm:$0xff]  }
 0x6c0   : > { %10989 = vmatprep.subr.bf16.mxu0 %v11915_v56 }
 0x6c3   : > { %10990 = vmatpush3.bf16.msra.mxu0 %v11915_v56  ;;  %v7870_v56 = vpop.f32.mrb[165].mxu1 }
 0x6c4   : > { %10991 = vmatprep.subr.bf16.mxu0 %v11916_v57  ;;  %v14507_v40 = vpop.f32.mrb[166].mxu1 }
 0x6c5   : > { %v7878_v53 = vpack.c.bf16 %v14507_v40, %v14502_v26  ;;  %v9917_v26 = vld [vmem:[%s14802_s7] ss:$0 sm:$0xff] }
 0x6c7   : > { %10992 = vmatpush3.bf16.msra.mxu0 %v11916_v57  ;;  %v14810_v57 = vpack.c.bf16 %v14208_v4, %v14206_v10  ;;  %v11922_v10 = vld [vmem:[%s14801_s6 + $0x4d8] sm:$0xff]  }
 0x6c8   : > { %10993 = vmatprep.subr.bf16.mxu0 %v11917_v41 }
 0x6cb   : > { %10994 = vmatpush3.bf16.msra.mxu0 %v11917_v41  ;;  %v7873_v41 = vpop.f32.mrb[167].mxu1 }
 0x6cc   : > { %10995 = vmatprep.subr.bf16.mxu0 %v11918_v44  ;;  %v14520_v4 = vpop.f32.mrb[168].mxu1  ;;  %v11927_v41 = vld [vmem:[%s14801_s6 + $0x500] sm:$0xff]  }
 0x6cd   : > { %v8110_v2 = vpop.f32.mrb[169].mxu1 }
 0x6ce   : > { %v14525_v32 = vpop.f32.mrb[170].mxu1 }
 0x6cf   : > { %10996 = vmatpush3.bf16.msra.mxu0 %v11918_v44  ;;  %v11921_v44 = vld [vmem:[%s14801_s6 + $0x4d0] sm:$0xff]   ;;  %v8113_v39 = vpop.f32.mrb[171].mxu1 }
 0x6d0   : > { %11005 = vmatprep.subr.bf16.mxu0 %v11919_v3  ;;  %v14538_v49 = vpop.f32.mrb[172].mxu1 }
 0x6d1   : > { %v8118_v11 = vpop.f32.mrb[173].mxu1 }
 0x6d2   : > { %10998 = vmatmul.mubr.bf16.vlgmr.msra.gmra.mrb[108].mxu0 %v14810_v57  ;;  %v14543_v30 = vpop.f32.mrb[174].mxu1  ;;  %v11926_v57 = vld [vmem:[%s14801_s6 + $0x4f8] sm:$0xff]  }
 0x6d3   : > { %11006 = vmatpush3.bf16.msra.mxu0 %v11919_v3  ;;  %11001 = vmatprep.mubr.bf16.mxu0 %v14811_v43  ;;  %v11923_v3 = vld [vmem:[%s14801_s6 + $0x4e0] sm:$0xff]   ;;  %v8140_v56 = vpack.c.bf16 %v14543_v30, %v14538_v49 }
 0x6d4   : > { %11007 = vmatprep.subr.bf16.mxu0 %v11920_v23 }
 0x6d7   : > { %11008 = vmatpush3.bf16.msra.mxu0 %v11920_v23  ;;  %v8139_v23 = vpack.c.bf16 %v14525_v32, %v14520_v4 }
 0x6d8   : > { %11009 = vmatprep.subr.bf16.mxu0 %v11921_v44 }
 0x6da   : > { %11002 = vmatmul.mubr.bf16.gmra.mrb[112].mxu0 %v6822_v31  ;;  %v11925_v31 = vld [vmem:[%s14801_s6 + $0x4f0] sm:$0xff]  }
 0x6db   : > { %11010 = vmatpush3.bf16.msra.mxu0 %v11921_v44  ;;  %11021 = vmatprep.mubr.bf16.mxu0 %v7083_v36  ;;  %v8121_v36 = vpop.f32.mrb[175].mxu1 }
 0x6dc   : > { %11011 = vmatprep.subr.bf16.mxu0 %v11922_v10  ;;  %v14550_v43 = vpop.f32.mrb[176].mxu1 }
 0x6dd   : > { %v8126_v44 = vpop.f32.mrb[177].mxu1 }
 0x6df   : > { %11012 = vmatpush3.bf16.msra.mxu0 %v11922_v10  ;;  %v14555_v10 = vpop.f32.mrb[178].mxu1 }
 0x6e0   : > { %11013 = vmatprep.subr.bf16.mxu0 %v11923_v3  ;;  %v8129_v2 = vpop.f32.mrb[179].mxu1  ;;  %v8141_v39 = vpack.c.bf16 %v14555_v10, %v14550_v43 }
 0x6e3   : > { %11014 = vmatpush3.bf16.msra.mxu0 %v11923_v3  ;;  %v11928_v3 = vld [vmem:[%s14801_s6 + $0x508] sm:$0xff]  }
 0x6e4   : > { %11015 = vmatprep.subr.bf16.mxu0 %v11924_v48 }
 0x6e7   : > { %11016 = vmatpush3.bf16.msra.mxu0 %v11924_v48  ;;  %v14568_v48 = vpop.f32.mrb[180].mxu1 }
 0x6e8   : > { %11017 = vmatprep.subr.bf16.mxu0 %v11925_v31  ;;  %v8134_v11 = vpop.f32.mrb[181].mxu1 }
 0x6e9   : > { %v14573_v36 = vpop.f32.mrb[182].mxu1  ;;  %v11935_v11 = vld [vmem:[%s14801_s6 + $0x540] sm:$0xff]  }
 0x6ea   : > { %v8142_v25 = vpack.c.bf16 %v14573_v36, %v14568_v48 }
 0x6eb   : > { %11018 = vmatpush3.bf16.msra.mxu0 %v11925_v31  ;;  %v11929_v31 = vld [vmem:[%s14801_s6 + $0x510] sm:$0xff]  }
 0x6ec   : > { %11019 = vmatprep.subr.bf16.mxu0 %v11926_v57 }
 0x6ef   : > { %11020 = vmatpush3.bf16.msra.mxu0 %v11926_v57  ;;  %v8137_v57 = vpop.f32.mrb[183].mxu1 }
 0x6f0   : > { %11029 = vmatprep.subr.bf16.mxu0 %v11927_v41 }
 0x6f2   : > { %11022 = vmatmul.mubr.bf16.vlgmr.msra.gmra.mrb[108].mxu0 %v7084_v5  ;;  %v14586_v5 = vpop.f32.mrb[184].mxu1 }
 0x6f3   : > { %11030 = vmatpush3.bf16.msra.mxu0 %v11927_v41  ;;  %11025 = vmatprep.mubr.bf16.mxu0 %v7085_v45  ;;  %v8374_v13 = vpop.f32.mrb[185].mxu1 }
 0x6f4   : > { %11031 = vmatprep.subr.bf16.mxu0 %v11928_v3  ;;  %v14591_v45 = vpop.f32.mrb[186].mxu1 }
 0x6f5   : > { %v8377_v41 = vpop.f32.mrb[187].mxu1  ;;  %v8403_v62 = vpack.c.bf16 %v14591_v45, %v14586_v5 }
 0x6f6   : > { %v11936_v41 = vld [vmem:[%s14801_s6 + $0x548] sm:$0xff]  }
 0x6f7   : > { %11032 = vmatpush3.bf16.msra.mxu0 %v11928_v3  ;;  %v11934_v3 = vld [vmem:[%s14801_s6 + $0x538] sm:$0xff]  }
 0x6f8   : > { %11033 = vmatprep.subr.bf16.mxu0 %v11929_v31 }
 0x6fa   : > { %11026 = vmatmul.mubr.bf16.gmra.mrb[112].mxu0 %v7086_v1 }
 0x6fb   : > { %11034 = vmatpush3.bf16.msra.mxu0 %v11929_v31  ;;  %11045 = vmatprep.mubr.bf16.mxu0 %v7347_v28  ;;  %v14598_v1 = vpop.f32.mrb[188].mxu1 }
 0x6fc   : > { %11035 = vmatprep.subr.bf16.mxu0 %v11930_v21  ;;  %v8382_v6 = vpop.f32.mrb[189].mxu1 }
 0x6fd   : > { %v14603_v28 = vpop.f32.mrb[190].mxu1 }
 0x6fe   : > { %v8385_v44 = vpop.f32.mrb[191].mxu1  ;;  %v8404_v2 = vpack.c.bf16 %v14603_v28, %v14598_v1 }
 0x6ff   : > { %11036 = vmatpush3.bf16.msra.mxu0 %v11930_v21 }
 0x700   : > { %11037 = vmatprep.subr.bf16.mxu0 %v11931_v51 }
 0x703   : > { %11038 = vmatpush3.bf16.msra.mxu0 %v11931_v51 }
 0x704   : > { %11039 = vmatprep.subr.bf16.mxu0 %v11932_v17 }
 0x706   : > { %v14610_v31 = vpop.f32.mrb[192].mxu1 }
 0x707   : > { %11040 = vmatpush3.bf16.msra.mxu0 %v11932_v17  ;;  %v8390_v57 = vpop.f32.mrb[193].mxu1 }
 0x708   : > { %11041 = vmatprep.subr.bf16.mxu0 %v11933_v19  ;;  %v14615_v21 = vpop.f32.mrb[194].mxu1 }
 0x709   : > { %v8393_v51 = vpop.f32.mrb[195].mxu1  ;;  %v8405_v13 = vpack.c.bf16 %v14615_v21, %v14610_v31 }
 0x70b   : > { %11042 = vmatpush3.bf16.msra.mxu0 %v11933_v19  ;;  %v11937_v19 = vld [vmem:[%s14801_s6 + $0x550] sm:$0xff]  }
 0x70c   : > { %11043 = vmatprep.subr.bf16.mxu0 %v11934_v3 }
 0x70e   : > { %v14628_v17 = vpop.f32.mrb[196].mxu1 }
 0x70f   : > { %11044 = vmatpush3.bf16.msra.mxu0 %v11934_v3  ;;  %v8398_v6 = vpop.f32.mrb[197].mxu1 }
 0x710   : > { %11053 = vmatprep.subr.bf16.mxu0 %v11935_v11  ;;  %v14633_v44 = vpop.f32.mrb[198].mxu1 }
 0x711   : > { %v8406_v3 = vpack.c.bf16 %v14633_v44, %v14628_v17  ;;  %v8401_v20 = vpop.f32.mrb[199].mxu1 }
 0x712   : > { %11046 = vmatmul.mubr.bf16.vlgmr.msra.gmra.mrb[108].mxu0 %v7348_v27  ;;  %v11939_v27 = vld [vmem:[%s14801_s6 + $0x560] sm:$0xff]  }
 0x713   : > { %11054 = vmatpush3.bf16.msra.mxu0 %v11935_v11  ;;  %11049 = vmatprep.mubr.bf16.mxu0 %v7349_v22  ;;  %v11942_v22 = vld [vmem:[%s14801_s6 + $0x578] sm:$0xff]  }
 0x714   : > { %11055 = vmatprep.subr.bf16.mxu0 %v11936_v41 }
 0x717   : > { %11056 = vmatpush3.bf16.msra.mxu0 %v11936_v41 }
 0x718   : > { %11057 = vmatprep.subr.bf16.mxu0 %v11937_v19 }
 0x71a   : > { %11050 = vmatmul.mubr.bf16.gmra.mrb[112].mxu0 %v7350_v14  ;;  %v11945_v14 = vld [vmem:[%s14801_s6 + $0x590] sm:$0xff]  }
 0x71b   : > { %11058 = vmatpush3.bf16.msra.mxu0 %v11937_v19  ;;  %11069 = vmatprep.mubr.bf16.mxu0 %v7611_v52  ;;  %v11948_v52 = vld [vmem:[%s14801_s6 + $0x5a8] sm:$0xff]  }
 0x71c   : > { %11059 = vmatprep.subr.bf16.mxu0 %v11938_v0 }
 0x71f   : > { %11060 = vmatpush3.bf16.msra.mxu0 %v11938_v0 }
 0x720   : > { %11061 = vmatprep.subr.bf16.mxu0 %v11939_v27 }
 0x723   : > { %11062 = vmatpush3.bf16.msra.mxu0 %v11939_v27 }
 0x724   : > { %11063 = vmatprep.subr.bf16.mxu0 %v11940_v42 }
 0x727   : > { %11064 = vmatpush3.bf16.msra.mxu0 %v11940_v42 }
 0x728   : > { %11065 = vmatprep.subr.bf16.mxu0 %v11941_v59 }
 0x72b   : > { %11066 = vmatpush3.bf16.msra.mxu0 %v11941_v59 }
 0x72c   : > { %11067 = vmatprep.subr.bf16.mxu0 %v11942_v22 }
 0x72f   : > { %11068 = vmatpush3.bf16.msra.mxu0 %v11942_v22  ;;  %v11967_v22 = vld [vmem:[%s14804_s9] sm:$0xff]  }
 0x730   : > { %11077 = vmatprep.subr.bf16.mxu0 %v11943_v61 }
 0x732   : > { %11070 = vmatmul.mubr.bf16.vlgmr.msra.gmra.mrb[108].mxu0 %v7612_v63  ;;  %v11951_v63 = vld [vmem:[%s14801_s6 + $0x5c0] sm:$0xff]  }
 0x733   : > { %11078 = vmatpush3.bf16.msra.mxu0 %v11943_v61  ;;  %11073 = vmatprep.mubr.bf16.mxu0 %v7613_v58  ;;  %v11954_v58 = vld [vmem:[%s14801_s6 + $0x5d8] sm:$0xff]  }
 0x734   : > { %11079 = vmatprep.subr.bf16.mxu0 %v11944_v38 }
 0x737   : > { %11080 = vmatpush3.bf16.msra.mxu0 %v11944_v38 }
 0x738   : > { %11081 = vmatprep.subr.bf16.mxu0 %v11945_v14 }
 0x73a   : > { %11074 = vmatmul.mubr.bf16.gmra.mrb[112].mxu0 %v7614_v29  ;;  %v11957_v29 = vld [vmem:[%s14801_s6 + $0x5f0] sm:$0xff]  }
 0x73b   : > { %11082 = vmatpush3.bf16.msra.mxu0 %v11945_v14  ;;  %11093 = vmatprep.mubr.bf16.mxu0 %v7875_v16  ;;  %v11960_v16 = vld [vmem:[%s14801_s6 + $0x608] sm:$0xff]  }
 0x73c   : > { %11083 = vmatprep.subr.bf16.mxu0 %v11946_v15 }
 0x73f   : > { %11084 = vmatpush3.bf16.msra.mxu0 %v11946_v15 }
 0x740   : > { %11085 = vmatprep.subr.bf16.mxu0 %v11947_v54 }
 0x743   : > { %11086 = vmatpush3.bf16.msra.mxu0 %v11947_v54 }
 0x744   : > { %11087 = vmatprep.subr.bf16.mxu0 %v11948_v52 }
 0x747   : > { %11088 = vmatpush3.bf16.msra.mxu0 %v11948_v52 }
 0x748   : > { %11089 = vmatprep.subr.bf16.mxu0 %v11949_v47 }
 0x74b   : > { %11090 = vmatpush3.bf16.msra.mxu0 %v11949_v47 }
 0x74c   : > { %11091 = vmatprep.subr.bf16.mxu0 %v11950_v24 }
 0x74f   : > { %11092 = vmatpush3.bf16.msra.mxu0 %v11950_v24 }
 0x750   : > { %11101 = vmatprep.subr.bf16.mxu0 %v11951_v63 }
 0x752   : > { %11094 = vmatmul.mubr.bf16.vlgmr.msra.gmra.mrb[108].mxu0 %v7876_v34  ;;  %v11963_v34 = vld [vmem:[%s14801_s6 + $0x620] sm:$0xff]  }
 0x753   : > { %11102 = vmatpush3.bf16.msra.mxu0 %v11951_v63  ;;  %11097 = vmatprep.mubr.bf16.mxu0 %v7877_v12  ;;  %v11966_v12 = vld [vmem:[%s14801_s6 + $0x638] sm:$0xff]  }
 0x754   : > { %11103 = vmatprep.subr.bf16.mxu0 %v11952_v9 }
 0x757   : > { %11104 = vmatpush3.bf16.msra.mxu0 %v11952_v9 }
 0x758   : > { %11105 = vmatprep.subr.bf16.mxu0 %v11953_v8 }
 0x75a   : > { %11098 = vmatmul.mubr.bf16.gmra.mrb[112].mxu0 %v7878_v53  ;;  %v9918_v53 = vld [vmem:[%s14803_s8] ss:$0 sm:$0xff] }
 0x75b   : > { %11106 = vmatpush3.bf16.msra.mxu0 %v11953_v8  ;;  %11117 = vmatprep.mubr.bf16.mxu0 %v8139_v23 }
 0x75c   : > { %11107 = vmatprep.subr.bf16.mxu0 %v11954_v58 }
 0x75f   : > { %11108 = vmatpush3.bf16.msra.mxu0 %v11954_v58 }
 0x760   : > { %11109 = vmatprep.subr.bf16.mxu0 %v11955_v37 }
 0x763   : > { %11110 = vmatpush3.bf16.msra.mxu0 %v11955_v37 }
 0x764   : > { %11111 = vmatprep.subr.bf16.mxu0 %v11956_v50 }
 0x767   : > { %11112 = vmatpush3.bf16.msra.mxu0 %v11956_v50 }
 0x768   : > { %11113 = vmatprep.subr.bf16.mxu0 %v11957_v29 }
 0x76b   : > { %11114 = vmatpush3.bf16.msra.mxu0 %v11957_v29 }
 0x76c   : > { %11115 = vmatprep.subr.bf16.mxu0 %v11958_v35 }
 0x76f   : > { %11116 = vmatpush3.bf16.msra.mxu0 %v11958_v35 }
 0x770   : > { %11125 = vmatprep.subr.bf16.mxu0 %v11959_v60 }
 0x772   : > { %11118 = vmatmul.mubr.bf16.vlgmr.msra.gmra.mrb[108].mxu0 %v8140_v56 }
 0x773   : > { %11126 = vmatpush3.bf16.msra.mxu0 %v11959_v60  ;;  %11121 = vmatprep.mubr.bf16.mxu0 %v8141_v39 }
 0x774   : > { %11127 = vmatprep.subr.bf16.mxu0 %v11960_v16 }
 0x777   : > { %11128 = vmatpush3.bf16.msra.mxu0 %v11960_v16 }
 0x778   : > { %11129 = vmatprep.subr.bf16.mxu0 %v11961_v18 }
 0x77a   : > { %11122 = vmatmul.mubr.bf16.gmra.mrb[112].mxu0 %v8142_v25 }
 0x77b   : > { %11130 = vmatpush3.bf16.msra.mxu0 %v11961_v18  ;;  %11141 = vmatprep.mubr.bf16.mxu0 %v8403_v62 }
 0x77c   : > { %11131 = vmatprep.subr.bf16.mxu0 %v11962_v33 }
 0x77f   : > { %11132 = vmatpush3.bf16.msra.mxu0 %v11962_v33 }
 0x780   : > { %11133 = vmatprep.subr.bf16.mxu0 %v11963_v34 }
 0x783   : > { %11134 = vmatpush3.bf16.msra.mxu0 %v11963_v34 }
 0x784   : > { %11135 = vmatprep.subr.bf16.mxu0 %v11964_v46 }
 0x787   : > { %11136 = vmatpush3.bf16.msra.mxu0 %v11964_v46 }
 0x788   : > { %11137 = vmatprep.subr.bf16.mxu0 %v11965_v55 }
 0x78b   : > { %11138 = vmatpush3.bf16.msra.mxu0 %v11965_v55 }
 0x78c   : > { %11139 = vmatprep.subr.bf16.mxu0 %v11966_v12 }
 0x78f   : > { %11140 = vmatpush3.bf16.msra.mxu0 %v11966_v12 }
 0x792   : > { %11142 = vmatmul.mubr.bf16.vlgmr.msra.gmra.mrb[108].mxu0 %v8404_v2 }
 0x793   : > { %11145 = vmatprep.mubr.bf16.mxu0 %v8405_v13 }
 0x79a   : > { %11146 = vmatmul.mubr.bf16.gmra.mrb[112].mxu0 %v8406_v3 }
 0x865   : > { %v11143_v40 = vpop.f32.mrb[108].mxu0 }
 0x866   : > { %v8554_v4 = vmul.f32 %v11143_v40, %v9917_v26  ;;  %v8506_v32 = vpop.f32.mrb[109].mxu0 }
 0x867   : > { %v8552_v23 = vmul.f32 %v9917_v26, %v8506_v32  ;;  %v11144_v49 = vpop.f32.mrb[110].mxu0 }
 0x868   : > { %v8569_v30 = vadd.f32 %v9918_v53, %v8554_v4  ;;  %v8555_v56 = vmul.f32 %v11144_v49, %v9917_v26  ;;  %v8509_v43 = vpop.f32.mrb[111].mxu0 }
 0x869   : > { %v8567_v10 = vadd.f32 %v9918_v53, %v8552_v23  ;;  %v8553_v39 = vmul.f32 %v9917_v26, %v8509_v43 }
 0x86a   : > { %v8570_v48 = vadd.f32 %v9918_v53, %v8555_v56  ;;  %v8577_v25 = vmax.f32 %v8569_v30, 0.0 }
 0x86b   : > { %v8568_v36 = vadd.f32 %v9918_v53, %v8553_v39  ;;  %v8575_v45 = vmax.f32 %v8567_v10, 0.0 }
 0x86c   : > { %v8578_v5 = vmax.f32 %v8570_v48, 0.0 }
 0x86d   : > { %v8576_v62 = vmax.f32 %v8568_v36, 0.0  ;;  %v11147_v1 = vpop.f32.mrb[112].mxu0 }
 0x86e   : > { %v8584_v28 = vpack.c.bf16 %v8578_v5, %v8577_v25  ;;  %v8558_v2 = vmul.f32 %v11147_v1, %v9917_v26  ;;  %v8522_v31 = vpop.f32.mrb[113].mxu0 }
 0x86f   : > { %v8583_v11 = vpack.c.bf16 %v8576_v62, %v8575_v45  ;;  %v8556_v57 = vmul.f32 %v9917_v26, %v8522_v31  ;;  %v11148_v21 = vpop.f32.mrb[114].mxu0 }
 0x870   : > { %v8573_v51 = vadd.f32 %v9918_v53, %v8558_v2  ;;  %v8559_v13 = vmul.f32 %v11148_v21, %v9917_v26  ;;  %v8525_v41 = vpop.f32.mrb[115].mxu0 }
 0x871   : > { %v8571_v17 = vadd.f32 %v9918_v53, %v8556_v57  ;;  %v8557_v19 = vmul.f32 %v9917_v26, %v8525_v41  ;;  %11150 = vmatpush3.bf16.msra.mxu1 %v8583_v11 }
 0x872   : > { %v8574_v6 = vadd.f32 %v9918_v53, %v8559_v13  ;;  %11151 = vmatprep.subr.bf16.mxu1 %v11979_v7  ;;  %v8581_v3 = vmax.f32 %v8573_v51, 0.0 }
 0x873   : > { %v8572_v44 = vadd.f32 %v9918_v53, %v8557_v19  ;;  %v8579_v0 = vmax.f32 %v8571_v17, 0.0 }
 0x874   : > { %v8582_v20 = vmax.f32 %v8574_v6, 0.0 }
 0x875   : > { %v8580_v27 = vmax.f32 %v8572_v44, 0.0  ;;  %11152 = vmatpush3.bf16.msra.mxu1 %v8584_v28 }
 0x876   : > { %v8586_v42 = vpack.c.bf16 %v8582_v20, %v8581_v3  ;;  %11153 = vmatprep.subr.bf16.mxu1 %v11979_v7 }
 0x877   : > { %v8585_v59 = vpack.c.bf16 %v8580_v27, %v8579_v0 }
 0x879   : > { %11154 = vmatpush3.bf16.msra.mxu1 %v8585_v59 }
 0x87a   : > { %11155 = vmatprep.subr.bf16.mxu1 %v11979_v7 }
 0x87d   : > { %11156 = vmatpush3.bf16.msra.mxu1 %v8586_v42 }
 0x880   : > { %11158 = vmatmul.mubr.msk.bf16.vlgmr.msra.gmra.mrb[200].mxu1 %vm1610_vm4, %v11967_v22 }
 0x953   : > { %v8631_v61 = vpop.f32.mrb[200].mxu1 }
 0x954   : > { %v11159_v38 = vpop.f32.mrb[201].mxu1 }
 0x955   : > { %v8634_v14 = vpop.f32.mrb[202].mxu1 }
 0x956   : > { %v9931_v15 = vpack.c.bf16 %v8634_v14, %v8631_v61  ;;  %v11160_v54 = vpop.f32.mrb[203].mxu1 }
 0x958   : > { %9932 = vst [vmem:[%s359_s30] sm:$0xff] %v9931_v15  }
 0x959 PF: > { %s20_s13 = sadd.s32 1, %s11976_s13  }
 0x95a   : > { %p17_p4 = scmp.ge.s32.totalorder %s20_s13, 4  }
 0x95c   :  { %19 = sbr.rel (!%p17_p4) target bundleno = 1 (0x1), region = 138 }

</bundles_post_ra>
